<compile_context>
chip_gen: v7x
topology: tpu7x:2x2x1
jax: 0.10.0
libtpu: 0.0.40
codegen_flags: <defaults>
</compile_context>

<pallas_src>
import functools

import jax
import jax.numpy as jnp
from jax.experimental import pallas as pl
from jax.experimental.pallas import tpu as pltpu

NEG_SLOPE = 0.2
BN_EPS = 1e-5
VMEM_LIMIT = 32 * 1024 * 1024


# ------------------------------- helpers ----------------------------------- #
def _round_up(x, m):
    return (x + m - 1) // m * m


def _leaky(z):
    return jnp.where(z > 0, z, NEG_SLOPE * z)


def _ep_identity(z):
    return z


def _ep_leaky(z):
    return _leaky(z)


def _ep_sigmoid(z):
    return jax.nn.sigmoid(z)


def _pad2(a, rp, cp, dtype):
    r, c = a.shape
    a = a.astype(dtype)
    if r == rp and c == cp:
        return a
    return jnp.pad(a, ((0, rp - r), (0, cp - c)))


# --------------------------- fused matmul kernel ---------------------------- #
def _matmul_kernel(x_ref, w_ref, b_ref, o_ref, acc_ref, *, epilogue):
    @pl.when(pl.program_id(2) == 0)
    def _():
        acc_ref[...] = jnp.zeros_like(acc_ref)

    acc_ref[...] += jnp.dot(x_ref[...], w_ref[...],
                            preferred_element_type=jnp.float32)

    @pl.when(pl.program_id(2) == pl.num_programs(2) - 1)
    def _():
        z = acc_ref[...] + b_ref[...]
        o_ref[...] = epilogue(z).astype(o_ref.dtype)


def _tile_sizes(m, k, n):
    tm = _round_up(m, 8) if m <= 512 else 256
    tn = min(512, _round_up(n, 128))
    tk = k if k <= 2048 else 512
    return tm, tk, tn


def _matmul_padded(x, w, b, *, epilogue, out_dtype):
    """epilogue(x @ w + b); returns (padded (Mp,Np) output, (M,N), tm)."""
    m, k = x.shape
    k2, n = w.shape
    assert k == k2
    tm, tk, tn = _tile_sizes(m, k, n)
    mp, kp, np_ = _round_up(m, tm), _round_up(k, tk), _round_up(n, tn)

    xp = _pad2(x, mp, kp, jnp.bfloat16)
    wp = _pad2(w, kp, np_, jnp.bfloat16)
    if b is None:
        bp = jnp.zeros((1, np_), jnp.float32)
    else:
        bp = _pad2(b.astype(jnp.float32).reshape(1, n), 1, np_, jnp.float32)

    grid = (mp // tm, np_ // tn, kp // tk)
    flops = 2 * mp * np_ * kp
    bytes_accessed = (mp * kp + kp * np_) * 2 + mp * np_ * jnp.dtype(out_dtype).itemsize

    out = pl.pallas_call(
        functools.partial(_matmul_kernel, epilogue=epilogue),
        out_shape=jax.ShapeDtypeStruct((mp, np_), out_dtype),
        grid_spec=pltpu.PrefetchScalarGridSpec(
            num_scalar_prefetch=0,
            grid=grid,
            in_specs=[
                pl.BlockSpec((tm, tk), lambda i, j, kk: (i, kk)),
                pl.BlockSpec((tk, tn), lambda i, j, kk: (kk, j)),
                pl.BlockSpec((1, tn), lambda i, j, kk: (0, j)),
            ],
            out_specs=pl.BlockSpec((tm, tn), lambda i, j, kk: (i, j)),
            scratch_shapes=[pltpu.VMEM((tm, tn), jnp.float32)],
        ),
        compiler_params=pltpu.CompilerParams(
            dimension_semantics=("parallel", "parallel", "arbitrary"),
            vmem_limit_bytes=VMEM_LIMIT,
        ),
        cost_estimate=pl.CostEstimate(
            flops=flops,
            transcendentals=mp * np_ if epilogue is _ep_sigmoid else 0,
            bytes_accessed=bytes_accessed,
        ),
    )(xp, wp, bp)
    return out, (m, n), tm


def _matmul(x, w, b, *, epilogue, out_dtype):
    out, (m, n), _ = _matmul_padded(x, w, b, epilogue=epilogue, out_dtype=out_dtype)
    return out[:m, :n]


# --------------------- batch-stat BatchNorm (two-pass) ---------------------- #
def _bn_stats_kernel(z_ref, stats_ref, *, tm, m_real, m_padded):
    i = pl.program_id(0)

    @pl.when(i == 0)
    def _():
        stats_ref[...] = jnp.zeros_like(stats_ref)

    z = z_ref[...].astype(jnp.float32)
    if m_padded != m_real:  # mask zero-padded rows (they carry the bias value)
        row = i * tm + jax.lax.broadcasted_iota(jnp.int32, z.shape, 0)
        z = jnp.where(row < m_real, z, 0.0)
    stats_ref[0:1, :] = stats_ref[0:1, :] + jnp.sum(z, axis=0, keepdims=True)
    stats_ref[1:2, :] = stats_ref[1:2, :] + jnp.sum(z * z, axis=0, keepdims=True)


def _bn_apply_kernel(z_ref, stats_ref, g_ref, b_ref, o_ref, *, m_real):
    z = z_ref[...].astype(jnp.float32)
    inv_m = 1.0 / m_real
    mean = stats_ref[0:1, :] * inv_m
    var = stats_ref[1:2, :] * inv_m - mean * mean           # biased (training) var
    inv_std = jax.lax.rsqrt(var + BN_EPS)
    scale = g_ref[...] * inv_std
    shift = b_ref[...] - mean * scale
    o_ref[...] = _leaky(z * scale + shift).astype(o_ref.dtype)


def _linear_bn_leaky(x, w, b, gamma, beta, *, out_dtype=jnp.bfloat16):
    """leaky_relu(batchnorm(x @ w + b)) with batch statistics over the M rows."""
    zp, (m, n), tm = _matmul_padded(x, w, b, epilogue=_ep_identity,
                                    out_dtype=jnp.float32)
    mp, np_ = zp.shape
    assert np_ == n, "BN channel count must be a multiple of 128 (128 / 1024 here)"
    grid = (mp // tm,)

    stats = pl.pallas_call(
        functools.partial(_bn_stats_kernel, tm=tm, m_real=m, m_padded=mp),
        out_shape=jax.ShapeDtypeStruct((8, np_), jnp.float32),
        grid_spec=pltpu.PrefetchScalarGridSpec(
            num_scalar_prefetch=0,
            grid=grid,
            in_specs=[pl.BlockSpec((tm, np_), lambda i: (i, 0))],
            out_specs=pl.BlockSpec((8, np_), lambda i: (0, 0)),
        ),
        compiler_params=pltpu.CompilerParams(
            dimension_semantics=("arbitrary",),
            vmem_limit_bytes=VMEM_LIMIT,
        ),
        cost_estimate=pl.CostEstimate(
            flops=3 * mp * np_, transcendentals=0,
            bytes_accessed=mp * np_ * 4 + 8 * np_ * 4,
        ),
    )(zp)

    g2 = gamma.astype(jnp.float32).reshape(1, n)
    b2 = beta.astype(jnp.float32).reshape(1, n)
    yp = pl.pallas_call(
        functools.partial(_bn_apply_kernel, m_real=m),
        out_shape=jax.ShapeDtypeStruct((mp, np_), out_dtype),
        grid_spec=pltpu.PrefetchScalarGridSpec(
            num_scalar_prefetch=0,
            grid=grid,
            in_specs=[
                pl.BlockSpec((tm, np_), lambda i: (i, 0)),
                pl.BlockSpec((8, np_), lambda i: (0, 0)),
                pl.BlockSpec((1, np_), lambda i: (0, 0)),
                pl.BlockSpec((1, np_), lambda i: (0, 0)),
            ],
            out_specs=pl.BlockSpec((tm, np_), lambda i: (i, 0)),
        ),
        compiler_params=pltpu.CompilerParams(
            dimension_semantics=("parallel",),
            vmem_limit_bytes=VMEM_LIMIT,
        ),
        cost_estimate=pl.CostEstimate(
            flops=4 * mp * np_, transcendentals=np_,
            bytes_accessed=mp * np_ * 4 + mp * np_ * jnp.dtype(out_dtype).itemsize,
        ),
    )(zp, stats, g2, b2)
    return yp[:m]


# ------------------------------ JAX glue ----------------------------------- #
def _im2col(x_nhwc, k=4, s=2, p=1):
    """(k x k) patches, stride s, pad p. Columns ordered (kh, kw, c)."""
    n, h, w, c = x_nhwc.shape
    ho = (h + 2 * p - k) // s + 1
    wo = (w + 2 * p - k) // s + 1
    xp = jnp.pad(x_nhwc, ((0, 0), (p, p), (p, p), (0, 0)))
    cols = [xp[:, kh:kh + s * ho:s, kw:kw + s * wo:s, :]
            for kh in range(k) for kw in range(k)]
    col = jnp.concatenate(cols, axis=-1)          # (N, Ho, Wo, k*k*C)
    return col.reshape(n * ho * wo, k * k * c), ho, wo


def discriminator_forward(x_nchw, params, image_size, num_classes):
    n = x_nchw.shape[0]
    # NCHW -> NHWC, bf16 (halves im2col HBM traffic; MXU consumes bf16 anyway).
    x = jnp.transpose(x_nchw.astype(jnp.bfloat16), (0, 2, 3, 1))

    # --- Conv1 (3->64) + LeakyReLU ------------------------------------------
    col1, h1, w1 = _im2col(x)                                       # (N*H1*W1, 48)
    w1m = jnp.transpose(params["conv1_w"], (2, 3, 1, 0)).reshape(4 * 4 * 3, 64)
    y1 = _matmul(col1, w1m, params["conv1_b"],
                 epilogue=_ep_leaky, out_dtype=jnp.bfloat16)
    y1 = y1.reshape(n, h1, w1, 64)

    # --- Conv2 (64->128) + BatchNorm2d + LeakyReLU ---------------------------
    col2, h2, w2 = _im2col(y1)                                      # (N*H2*W2, 1024)
    w2m = jnp.transpose(params["conv2_w"], (2, 3, 1, 0)).reshape(4 * 4 * 64, 128)
    y2 = _linear_bn_leaky(col2, w2m, params["conv2_b"],
                          params["bn2_g"], params["bn2_b"])         # (N*H2*W2, 128)

    # Flatten in natural NHWC order (no activation transpose); fc1 weight is
    # permuted once (weight-only op) to consume (h, w, c) column order.
    flat = y2.reshape(n, h2 * w2 * 128)

    w_fc1 = params["fc1_w"].reshape(1024, 128, h2, w2)              # (out, c, h, w)
    w_fc1 = jnp.transpose(w_fc1, (2, 3, 1, 0)).reshape(h2 * w2 * 128, 1024)

    # --- Linear(flat_dim -> 1024) + BatchNorm1d + LeakyReLU -------------------
    y3 = _linear_bn_leaky(flat, w_fc1, params["fc1_b"],
                          params["bn3_g"], params["bn3_b"])         # (N, 1024)

    # --- Linear(1024 -> classes) + Sigmoid (lane-dense padded, sliced here) ---
    out = _matmul(y3, params["fc2_w"].T, params["fc2_b"],
                  epilogue=_ep_sigmoid, out_dtype=jnp.float32)
    return out


# ------------------------------ Parameters --------------------------------- #
def init_params(key, image_size, num_classes):
    flat_dim = 128 * (image_size // 4) * (image_size // 4)
    ks = jax.random.split(key, 8)
    f32 = jnp.float32
    return {
        # PyTorch Conv2d weight layout: (Cout, Cin, kH, kW)
        "conv1_w": jax.random.normal(ks[0], (64, 3, 4, 4), f32) * 0.05,
        "conv1_b": jax.random.normal(ks[1], (64,), f32) * 0.05,
        "conv2_w": jax.random.normal(ks[2], (128, 64, 4, 4), f32) * 0.05,
        "conv2_b": jax.random.normal(ks[3], (128,), f32) * 0.05,
        "bn2_g": jnp.ones((128,), f32),
        "bn2_b": jnp.zeros((128,), f32),
        # PyTorch Linear weight layout: (out_features, in_features)
        "fc1_w": jax.random.normal(ks[4], (1024, flat_dim), f32) * 0.02,
        "fc1_b": jax.random.normal(ks[5], (1024,), f32) * 0.02,
        "bn3_g": jnp.ones((1024,), f32),
        "bn3_b": jnp.zeros((1024,), f32),
        "fc2_w": jax.random.normal(ks[6], (num_classes, 1024), f32) * 0.02,
        "fc2_b": jax.random.normal(ks[7], (num_classes,), f32) * 0.02,
    }


if __name__ == "__main__":
    batch = 2
    image_size = 16          # -> flat dim 128 * 4 * 4 = 2048
    num_classes = 2

    root = jax.random.PRNGKey(0)
    pkey, xkey = jax.random.split(root)
    params = init_params(pkey, image_size, num_classes)
    x = jax.random.normal(xkey, (batch, 3, image_size, image_size), jnp.float32)

    fwd = jax.jit(discriminator_forward, static_argnums=(2, 3))
    out = fwd(x, params, image_size, num_classes)
    out = jax.block_until_ready(out)

    assert out.shape == (batch, num_classes)
    assert bool(jnp.all(jnp.isfinite(out)))
    assert bool(jnp.all((out >= 0.0) & (out <= 1.0)))  # sigmoid output range
    print("KERNEL_OK")
</pallas_src>

<mosaic_0001>
module attributes {stable_mosaic.version = 11 : i64} {
  func.func @_matmul_kernel(%arg0: i32, %arg1: i32, %arg2: i32, %arg3: memref<128x48xbf16, #tpu.memory_space<vmem>>, %arg4: memref<48x128xbf16, #tpu.memory_space<vmem>>, %arg5: memref<1x128xf32, #tpu.memory_space<vmem>>, %arg6: memref<128x128xbf16, #tpu.memory_space<vmem>>, %arg7: memref<128x128xf32, #tpu.memory_space<vmem>>) attributes {dimension_semantics = [#tpu.dimension_semantics<parallel>, #tpu.dimension_semantics<parallel>, #tpu.dimension_semantics<arbitrary>], iteration_bounds = array<i64: 1, 1, 1>, scalar_prefetch = 0 : i64, scratch_operands = 1 : i64, tpu.core_type = #tpu.core_type<tc>, window_params = [{transform_indices = @transform_0, window_bounds = array<i64: 128, 48>}, {transform_indices = @transform_1, window_bounds = array<i64: 48, 128>}, {transform_indices = @transform_2, window_bounds = array<i64: 1, 128>}, {transform_indices = @transform_3, window_bounds = array<i64: 128, 128>}]} {
    %c0_i32 = arith.constant 0 : i32
    %0 = arith.cmpi eq, %arg2, %c0_i32 : i32
    %1 = arith.extui %0 : i1 to i32
    %c0_i32_0 = arith.constant 0 : i32
    %2 = arith.cmpi ne, %1, %c0_i32_0 : i32
    scf.if %2 {
      %cst_10 = arith.constant 0.000000e+00 : f32
      %12 = vector.broadcast %cst_10 : f32 to vector<128x128xf32>
      %c0_11 = arith.constant 0 : index
      %c0_12 = arith.constant 0 : index
      %13 = vector.load %arg7[%c0_11, %c0_12] : memref<128x128xf32, #tpu.memory_space<vmem>>, vector<128x128xf32>
      tpu.vector_store %arg7[%c0_11, %c0_12], %12 {strides = array<i32>} : memref<128x128xf32, #tpu.memory_space<vmem>>, vector<128x128xf32>,
    } else {
    }
    %c0 = arith.constant 0 : index
    %c0_1 = arith.constant 0 : index
    %3 = vector.load %arg7[%c0, %c0_1] : memref<128x128xf32, #tpu.memory_space<vmem>>, vector<128x128xf32>
    %c0_2 = arith.constant 0 : index
    %c0_3 = arith.constant 0 : index
    %4 = vector.load %arg3[%c0_2, %c0_3] : memref<128x48xbf16, #tpu.memory_space<vmem>>, vector<128x48xbf16>
    %c0_4 = arith.constant 0 : index
    %c0_5 = arith.constant 0 : index
    %5 = vector.load %arg4[%c0_4, %c0_5] : memref<48x128xbf16, #tpu.memory_space<vmem>>, vector<48x128xbf16>
    %cst = arith.constant dense<0.000000e+00> : vector<128x128xf32>
    %6 = tpu.matmul %4, %5, %cst {dimension_numbers = #tpu.dot_dimension_numbers<[1], [0], [0], [1], [0, 0, 1, 1], [], []>} : vector<128x48xbf16>, vector<48x128xbf16>, vector<128x128xf32> -> vector<128x128xf32>
    %7 = arith.addf %3, %6 : vector<128x128xf32>
    %c0_6 = arith.constant 0 : index
    %c0_7 = arith.constant 0 : index
    %8 = vector.load %arg7[%c0_6, %c0_7] : memref<128x128xf32, #tpu.memory_space<vmem>>, vector<128x128xf32>
    tpu.vector_store %arg7[%c0_6, %c0_7], %7 {strides = array<i32>} : memref<128x128xf32, #tpu.memory_space<vmem>>, vector<128x128xf32>,
    %c0_i32_8 = arith.constant 0 : i32
    %9 = arith.cmpi eq, %arg2, %c0_i32_8 : i32
    %10 = arith.extui %9 : i1 to i32
    %c0_i32_9 = arith.constant 0 : i32
    %11 = arith.cmpi ne, %10, %c0_i32_9 : i32
    scf.if %11 {
      %c0_10 = arith.constant 0 : index
      %c0_11 = arith.constant 0 : index
      %12 = vector.load %arg7[%c0_10, %c0_11] : memref<128x128xf32, #tpu.memory_space<vmem>>, vector<128x128xf32>
      %c0_12 = arith.constant 0 : index
      %c0_13 = arith.constant 0 : index
      %13 = vector.load %arg5[%c0_12, %c0_13] : memref<1x128xf32, #tpu.memory_space<vmem>>, vector<1x128xf32>
      %14 = vector.broadcast %13 : vector<1x128xf32> to vector<128x128xf32>
      %15 = arith.addf %12, %14 : vector<128x128xf32>
      %cst_14 = arith.constant 0.000000e+00 : f32
      %16 = vector.broadcast %cst_14 : f32 to vector<128x128xf32>
      %17 = arith.cmpf ogt, %15, %16 : vector<128x128xf32>
      %cst_15 = arith.constant 2.000000e-01 : f32
      %18 = vector.broadcast %cst_15 : f32 to vector<128x128xf32>
      %19 = arith.mulf %18, %15 : vector<128x128xf32>
      %20 = arith.select %17, %15, %19 : vector<128x128xi1>, vector<128x128xf32>
      %21 = arith.truncf %20 : vector<128x128xf32> to vector<128x128xbf16>
      %c0_16 = arith.constant 0 : index
      %c0_17 = arith.constant 0 : index
      %22 = vector.load %arg6[%c0_16, %c0_17] : memref<128x128xbf16, #tpu.memory_space<vmem>>, vector<128x128xbf16>
      tpu.vector_store %arg6[%c0_16, %c0_17], %21 {strides = array<i32>} : memref<128x128xbf16, #tpu.memory_space<vmem>>, vector<128x128xbf16>,
    } else {
    }
    return
  }
  func.func @transform_0(%arg0: i32, %arg1: i32, %arg2: i32) -> (i32, i32) {
    %c0_i32 = arith.constant 0 : i32
    return %arg0, %arg2 : i32, i32
  }
  func.func @transform_1(%arg0: i32, %arg1: i32, %arg2: i32) -> (i32, i32) {
    %c0_i32 = arith.constant 0 : i32
    return %arg2, %arg1 : i32, i32
  }
  func.func @transform_2(%arg0: i32, %arg1: i32, %arg2: i32) -> (i32, i32) {
    %c0_i32 = arith.constant 0 : i32
    %c0_i32_0 = arith.constant 0 : i32
    return %c0_i32, %arg1 : i32, i32
  }
  func.func @transform_3(%arg0: i32, %arg1: i32, %arg2: i32) -> (i32, i32) {
    %c0_i32 = arith.constant 0 : i32
    return %arg0, %arg1 : i32, i32
  }
}

module attributes {stable_mosaic.version = 11 : i64} {
  func.func @_matmul_kernel(%arg0: i32, %arg1: i32, %arg2: i32, %arg3: memref<32x1024xbf16, #tpu.memory_space<vmem>>, %arg4: memref<1024x128xbf16, #tpu.memory_space<vmem>>, %arg5: memref<1x128xf32, #tpu.memory_space<vmem>>, %arg6: memref<32x128xf32, #tpu.memory_space<vmem>>, %arg7: memref<32x128xf32, #tpu.memory_space<vmem>>) attributes {dimension_semantics = [#tpu.dimension_semantics<parallel>, #tpu.dimension_semantics<parallel>, #tpu.dimension_semantics<arbitrary>], iteration_bounds = array<i64: 1, 1, 1>, scalar_prefetch = 0 : i64, scratch_operands = 1 : i64, tpu.core_type = #tpu.core_type<tc>, window_params = [{transform_indices = @transform_0, window_bounds = array<i64: 32, 1024>}, {transform_indices = @transform_1, window_bounds = array<i64: 1024, 128>}, {transform_indices = @transform_2, window_bounds = array<i64: 1, 128>}, {transform_indices = @transform_3, window_bounds = array<i64: 32, 128>}]} {
    %c0_i32 = arith.constant 0 : i32
    %0 = arith.cmpi eq, %arg2, %c0_i32 : i32
    %1 = arith.extui %0 : i1 to i32
    %c0_i32_0 = arith.constant 0 : i32
    %2 = arith.cmpi ne, %1, %c0_i32_0 : i32
    scf.if %2 {
      %cst_10 = arith.constant 0.000000e+00 : f32
      %12 = vector.broadcast %cst_10 : f32 to vector<32x128xf32>
      %c0_11 = arith.constant 0 : index
      %c0_12 = arith.constant 0 : index
      %13 = vector.load %arg7[%c0_11, %c0_12] : memref<32x128xf32, #tpu.memory_space<vmem>>, vector<32x128xf32>
      tpu.vector_store %arg7[%c0_11, %c0_12], %12 {strides = array<i32>} : memref<32x128xf32, #tpu.memory_space<vmem>>, vector<32x128xf32>,
    } else {
    }
    %c0 = arith.constant 0 : index
    %c0_1 = arith.constant 0 : index
    %3 = vector.load %arg7[%c0, %c0_1] : memref<32x128xf32, #tpu.memory_space<vmem>>, vector<32x128xf32>
    %c0_2 = arith.constant 0 : index
    %c0_3 = arith.constant 0 : index
    %4 = vector.load %arg3[%c0_2, %c0_3] : memref<32x1024xbf16, #tpu.memory_space<vmem>>, vector<32x1024xbf16>
    %c0_4 = arith.constant 0 : index
    %c0_5 = arith.constant 0 : index
    %5 = vector.load %arg4[%c0_4, %c0_5] : memref<1024x128xbf16, #tpu.memory_space<vmem>>, vector<1024x128xbf16>
    %cst = arith.constant dense<0.000000e+00> : vector<32x128xf32>
    %6 = tpu.matmul %4, %5, %cst {dimension_numbers = #tpu.dot_dimension_numbers<[1], [0], [0], [1], [0, 0, 1, 1], [], []>} : vector<32x1024xbf16>, vector<1024x128xbf16>, vector<32x128xf32> -> vector<32x128xf32>
    %7 = arith.addf %3, %6 : vector<32x128xf32>
    %c0_6 = arith.constant 0 : index
    %c0_7 = arith.constant 0 : index
    %8 = vector.load %arg7[%c0_6, %c0_7] : memref<32x128xf32, #tpu.memory_space<vmem>>, vector<32x128xf32>
    tpu.vector_store %arg7[%c0_6, %c0_7], %7 {strides = array<i32>} : memref<32x128xf32, #tpu.memory_space<vmem>>, vector<32x128xf32>,
    %c0_i32_8 = arith.constant 0 : i32
    %9 = arith.cmpi eq, %arg2, %c0_i32_8 : i32
    %10 = arith.extui %9 : i1 to i32
    %c0_i32_9 = arith.constant 0 : i32
    %11 = arith.cmpi ne, %10, %c0_i32_9 : i32
    scf.if %11 {
      %c0_10 = arith.constant 0 : index
      %c0_11 = arith.constant 0 : index
      %12 = vector.load %arg7[%c0_10, %c0_11] : memref<32x128xf32, #tpu.memory_space<vmem>>, vector<32x128xf32>
      %c0_12 = arith.constant 0 : index
      %c0_13 = arith.constant 0 : index
      %13 = vector.load %arg5[%c0_12, %c0_13] : memref<1x128xf32, #tpu.memory_space<vmem>>, vector<1x128xf32>
      %14 = vector.broadcast %13 : vector<1x128xf32> to vector<32x128xf32>
      %15 = arith.addf %12, %14 : vector<32x128xf32>
      %c0_14 = arith.constant 0 : index
      %c0_15 = arith.constant 0 : index
      %16 = vector.load %arg6[%c0_14, %c0_15] : memref<32x128xf32, #tpu.memory_space<vmem>>, vector<32x128xf32>
      tpu.vector_store %arg6[%c0_14, %c0_15], %15 {strides = array<i32>} : memref<32x128xf32, #tpu.memory_space<vmem>>, vector<32x128xf32>,
    } else {
    }
    return
  }
  func.func @transform_0(%arg0: i32, %arg1: i32, %arg2: i32) -> (i32, i32) {
    %c0_i32 = arith.constant 0 : i32
    return %arg0, %arg2 : i32, i32
  }
  func.func @transform_1(%arg0: i32, %arg1: i32, %arg2: i32) -> (i32, i32) {
    %c0_i32 = arith.constant 0 : i32
    return %arg2, %arg1 : i32, i32
  }
  func.func @transform_2(%arg0: i32, %arg1: i32, %arg2: i32) -> (i32, i32) {
    %c0_i32 = arith.constant 0 : i32
    %c0_i32_0 = arith.constant 0 : i32
    return %c0_i32, %arg1 : i32, i32
  }
  func.func @transform_3(%arg0: i32, %arg1: i32, %arg2: i32) -> (i32, i32) {
    %c0_i32 = arith.constant 0 : i32
    return %arg0, %arg1 : i32, i32
  }
}

module attributes {stable_mosaic.version = 11 : i64} {
  func.func @_bn_stats_kernel(%arg0: i32, %arg1: memref<32x128xf32, #tpu.memory_space<vmem>>, %arg2: memref<8x128xf32, #tpu.memory_space<vmem>>) attributes {dimension_semantics = [#tpu.dimension_semantics<arbitrary>], iteration_bounds = array<i64: 1>, scalar_prefetch = 0 : i64, scratch_operands = 0 : i64, tpu.core_type = #tpu.core_type<tc>, window_params = [{transform_indices = @transform_0, window_bounds = array<i64: 32, 128>}, {pipeline_mode = #tpu.pipeline_mode<synchronous>, transform_indices = @transform_1, window_bounds = array<i64: 8, 128>}]} {
    %c0_i32 = arith.constant 0 : i32
    %0 = arith.cmpi eq, %arg0, %c0_i32 : i32
    %1 = arith.extui %0 : i1 to i32
    %c0_i32_0 = arith.constant 0 : i32
    %2 = arith.cmpi ne, %1, %c0_i32_0 : i32
    scf.if %2 {
      %cst_10 = arith.constant 0.000000e+00 : f32
      %15 = vector.broadcast %cst_10 : f32 to vector<8x128xf32>
      %c0_11 = arith.constant 0 : index
      %c0_12 = arith.constant 0 : index
      %16 = vector.load %arg2[%c0_11, %c0_12] : memref<8x128xf32, #tpu.memory_space<vmem>>, vector<8x128xf32>
      tpu.vector_store %arg2[%c0_11, %c0_12], %15 {strides = array<i32>} : memref<8x128xf32, #tpu.memory_space<vmem>>, vector<8x128xf32>,
    } else {
    }
    %c0 = arith.constant 0 : index
    %c0_1 = arith.constant 0 : index
    %3 = vector.load %arg1[%c0, %c0_1] : memref<32x128xf32, #tpu.memory_space<vmem>>, vector<32x128xf32>
    %c0_2 = arith.constant 0 : index
    %c0_3 = arith.constant 0 : index
    %4 = vector.load %arg2[%c0_2, %c0_3] : memref<8x128xf32, #tpu.memory_space<vmem>>, vector<1x128xf32>
    %cst = arith.constant dense<0.000000e+00> : vector<128xf32>
    %5 = vector.multi_reduction <add>, %3, %cst [0] : vector<32x128xf32> to vector<128xf32>
    %6 = vector.shape_cast %5 : vector<128xf32> to vector<1x128xf32>
    %7 = arith.addf %4, %6 : vector<1x128xf32>
    %c0_4 = arith.constant 0 : index
    %c0_5 = arith.constant 0 : index
    %8 = vector.load %arg2[%c0_4, %c0_5] : memref<8x128xf32, #tpu.memory_space<vmem>>, vector<1x128xf32>
    tpu.vector_store %arg2[%c0_4, %c0_5], %7 {strides = array<i32>} : memref<8x128xf32, #tpu.memory_space<vmem>>, vector<1x128xf32>,
    %c1 = arith.constant 1 : index
    %c0_6 = arith.constant 0 : index
    %9 = vector.load %arg2[%c1, %c0_6] : memref<8x128xf32, #tpu.memory_space<vmem>>, vector<1x128xf32>
    %10 = arith.mulf %3, %3 : vector<32x128xf32>
    %cst_7 = arith.constant dense<0.000000e+00> : vector<128xf32>
    %11 = vector.multi_reduction <add>, %10, %cst_7 [0] : vector<32x128xf32> to vector<128xf32>
    %12 = vector.shape_cast %11 : vector<128xf32> to vector<1x128xf32>
    %13 = arith.addf %9, %12 : vector<1x128xf32>
    %c1_8 = arith.constant 1 : index
    %c0_9 = arith.constant 0 : index
    %14 = vector.load %arg2[%c1_8, %c0_9] : memref<8x128xf32, #tpu.memory_space<vmem>>, vector<1x128xf32>
    tpu.vector_store %arg2[%c1_8, %c0_9], %13 {strides = array<i32>} : memref<8x128xf32, #tpu.memory_space<vmem>>, vector<1x128xf32>,
    return
  }
  func.func @transform_0(%arg0: i32) -> (i32, i32) {
    %c0_i32 = arith.constant 0 : i32
    %c0_i32_0 = arith.constant 0 : i32
    return %arg0, %c0_i32 : i32, i32
  }
  func.func @transform_1(%arg0: i32) -> (i32, i32) {
    %c0_i32 = arith.constant 0 : i32
    %c0_i32_0 = arith.constant 0 : i32
    %c0_i32_1 = arith.constant 0 : i32
    return %c0_i32, %c0_i32_0 : i32, i32
  }
}

module attributes {stable_mosaic.version = 11 : i64} {
  func.func @_bn_apply_kernel(%arg0: i32, %arg1: memref<32x128xf32, #tpu.memory_space<vmem>>, %arg2: memref<8x128xf32, #tpu.memory_space<vmem>>, %arg3: memref<1x128xf32, #tpu.memory_space<vmem>>, %arg4: memref<1x128xf32, #tpu.memory_space<vmem>>, %arg5: memref<32x128xbf16, #tpu.memory_space<vmem>>) attributes {dimension_semantics = [#tpu.dimension_semantics<parallel>], iteration_bounds = array<i64: 1>, scalar_prefetch = 0 : i64, scratch_operands = 0 : i64, tpu.core_type = #tpu.core_type<tc>, window_params = [{transform_indices = @transform_0, window_bounds = array<i64: 32, 128>}, {pipeline_mode = #tpu.pipeline_mode<synchronous>, transform_indices = @transform_1, window_bounds = array<i64: 8, 128>}, {pipeline_mode = #tpu.pipeline_mode<synchronous>, transform_indices = @transform_2, window_bounds = array<i64: 1, 128>}, {pipeline_mode = #tpu.pipeline_mode<synchronous>, transform_indices = @transform_3, window_bounds = array<i64: 1, 128>}, {transform_indices = @transform_4, window_bounds = array<i64: 32, 128>}]} {
    %c0 = arith.constant 0 : index
    %c0_0 = arith.constant 0 : index
    %0 = vector.load %arg1[%c0, %c0_0] : memref<32x128xf32, #tpu.memory_space<vmem>>, vector<32x128xf32>
    %c0_1 = arith.constant 0 : index
    %c0_2 = arith.constant 0 : index
    %1 = vector.load %arg2[%c0_1, %c0_2] : memref<8x128xf32, #tpu.memory_space<vmem>>, vector<1x128xf32>
    %cst = arith.constant 3.125000e-02 : f32
    %2 = vector.broadcast %cst : f32 to vector<1x128xf32>
    %3 = arith.mulf %1, %2 : vector<1x128xf32>
    %c1 = arith.constant 1 : index
    %c0_3 = arith.constant 0 : index
    %4 = vector.load %arg2[%c1, %c0_3] : memref<8x128xf32, #tpu.memory_space<vmem>>, vector<1x128xf32>
    %cst_4 = arith.constant 3.125000e-02 : f32
    %5 = vector.broadcast %cst_4 : f32 to vector<1x128xf32>
    %6 = arith.mulf %4, %5 : vector<1x128xf32>
    %7 = arith.mulf %3, %3 : vector<1x128xf32>
    %8 = arith.subf %6, %7 : vector<1x128xf32>
    %cst_5 = arith.constant 9.99999974E-6 : f32
    %9 = vector.broadcast %cst_5 : f32 to vector<1x128xf32>
    %10 = arith.addf %8, %9 : vector<1x128xf32>
    %11 = math.rsqrt %10 : vector<1x128xf32>
    %c0_6 = arith.constant 0 : index
    %c0_7 = arith.constant 0 : index
    %12 = vector.load %arg3[%c0_6, %c0_7] : memref<1x128xf32, #tpu.memory_space<vmem>>, vector<1x128xf32>
    %13 = arith.mulf %12, %11 : vector<1x128xf32>
    %c0_8 = arith.constant 0 : index
    %c0_9 = arith.constant 0 : index
    %14 = vector.load %arg4[%c0_8, %c0_9] : memref<1x128xf32, #tpu.memory_space<vmem>>, vector<1x128xf32>
    %15 = arith.mulf %3, %13 : vector<1x128xf32>
    %16 = arith.subf %14, %15 : vector<1x128xf32>
    %17 = vector.broadcast %13 : vector<1x128xf32> to vector<32x128xf32>
    %18 = arith.mulf %0, %17 : vector<32x128xf32>
    %19 = vector.broadcast %16 : vector<1x128xf32> to vector<32x128xf32>
    %20 = arith.addf %18, %19 : vector<32x128xf32>
    %cst_10 = arith.constant 0.000000e+00 : f32
    %21 = vector.broadcast %cst_10 : f32 to vector<32x128xf32>
    %22 = arith.cmpf ogt, %20, %21 : vector<32x128xf32>
    %cst_11 = arith.constant 2.000000e-01 : f32
    %23 = vector.broadcast %cst_11 : f32 to vector<32x128xf32>
    %24 = arith.mulf %23, %20 : vector<32x128xf32>
    %25 = arith.select %22, %20, %24 : vector<32x128xi1>, vector<32x128xf32>
    %26 = arith.truncf %25 : vector<32x128xf32> to vector<32x128xbf16>
    %c0_12 = arith.constant 0 : index
    %c0_13 = arith.constant 0 : index
    %27 = vector.load %arg5[%c0_12, %c0_13] : memref<32x128xbf16, #tpu.memory_space<vmem>>, vector<32x128xbf16>
    tpu.vector_store %arg5[%c0_12, %c0_13], %26 {strides = array<i32>} : memref<32x128xbf16, #tpu.memory_space<vmem>>, vector<32x128xbf16>,
    return
  }
  func.func @transform_0(%arg0: i32) -> (i32, i32) {
    %c0_i32 = arith.constant 0 : i32
    %c0_i32_0 = arith.constant 0 : i32
    return %arg0, %c0_i32 : i32, i32
  }
  func.func @transform_1(%arg0: i32) -> (i32, i32) {
    %c0_i32 = arith.constant 0 : i32
    %c0_i32_0 = arith.constant 0 : i32
    %c0_i32_1 = arith.constant 0 : i32
    return %c0_i32, %c0_i32_0 : i32, i32
  }
  func.func @transform_2(%arg0: i32) -> (i32, i32) {
    %c0_i32 = arith.constant 0 : i32
    %c0_i32_0 = arith.constant 0 : i32
    %c0_i32_1 = arith.constant 0 : i32
    return %c0_i32, %c0_i32_0 : i32, i32
  }
  func.func @transform_3(%arg0: i32) -> (i32, i32) {
    %c0_i32 = arith.constant 0 : i32
    %c0_i32_0 = arith.constant 0 : i32
    %c0_i32_1 = arith.constant 0 : i32
    return %c0_i32, %c0_i32_0 : i32, i32
  }
  func.func @transform_4(%arg0: i32) -> (i32, i32) {
    %c0_i32 = arith.constant 0 : i32
    %c0_i32_0 = arith.constant 0 : i32
    return %arg0, %c0_i32 : i32, i32
  }
}

module attributes {stable_mosaic.version = 11 : i64} {
  func.func @_matmul_kernel(%arg0: i32, %arg1: i32, %arg2: i32, %arg3: memref<8x2048xbf16, #tpu.memory_space<vmem>>, %arg4: memref<2048x512xbf16, #tpu.memory_space<vmem>>, %arg5: memref<1x512xf32, #tpu.memory_space<vmem>>, %arg6: memref<8x512xf32, #tpu.memory_space<vmem>>, %arg7: memref<8x512xf32, #tpu.memory_space<vmem>>) attributes {dimension_semantics = [#tpu.dimension_semantics<parallel>, #tpu.dimension_semantics<parallel>, #tpu.dimension_semantics<arbitrary>], iteration_bounds = array<i64: 1, 2, 1>, scalar_prefetch = 0 : i64, scratch_operands = 1 : i64, tpu.core_type = #tpu.core_type<tc>, window_params = [{transform_indices = @transform_0, window_bounds = array<i64: 8, 2048>}, {transform_indices = @transform_1, window_bounds = array<i64: 2048, 512>}, {transform_indices = @transform_2, window_bounds = array<i64: 1, 512>}, {transform_indices = @transform_3, window_bounds = array<i64: 8, 512>}]} {
    %c0_i32 = arith.constant 0 : i32
    %0 = arith.cmpi eq, %arg2, %c0_i32 : i32
    %1 = arith.extui %0 : i1 to i32
    %c0_i32_0 = arith.constant 0 : i32
    %2 = arith.cmpi ne, %1, %c0_i32_0 : i32
    scf.if %2 {
      %cst_10 = arith.constant 0.000000e+00 : f32
      %12 = vector.broadcast %cst_10 : f32 to vector<8x512xf32>
      %c0_11 = arith.constant 0 : index
      %c0_12 = arith.constant 0 : index
      %13 = vector.load %arg7[%c0_11, %c0_12] : memref<8x512xf32, #tpu.memory_space<vmem>>, vector<8x512xf32>
      tpu.vector_store %arg7[%c0_11, %c0_12], %12 {strides = array<i32>} : memref<8x512xf32, #tpu.memory_space<vmem>>, vector<8x512xf32>,
    } else {
    }
    %c0 = arith.constant 0 : index
    %c0_1 = arith.constant 0 : index
    %3 = vector.load %arg7[%c0, %c0_1] : memref<8x512xf32, #tpu.memory_space<vmem>>, vector<8x512xf32>
    %c0_2 = arith.constant 0 : index
    %c0_3 = arith.constant 0 : index
    %4 = vector.load %arg3[%c0_2, %c0_3] : memref<8x2048xbf16, #tpu.memory_space<vmem>>, vector<8x2048xbf16>
    %c0_4 = arith.constant 0 : index
    %c0_5 = arith.constant 0 : index
    %5 = vector.load %arg4[%c0_4, %c0_5] : memref<2048x512xbf16, #tpu.memory_space<vmem>>, vector<2048x512xbf16>
    %cst = arith.constant dense<0.000000e+00> : vector<8x512xf32>
    %6 = tpu.matmul %4, %5, %cst {dimension_numbers = #tpu.dot_dimension_numbers<[1], [0], [0], [1], [0, 0, 1, 1], [], []>} : vector<8x2048xbf16>, vector<2048x512xbf16>, vector<8x512xf32> -> vector<8x512xf32>
    %7 = arith.addf %3, %6 : vector<8x512xf32>
    %c0_6 = arith.constant 0 : index
    %c0_7 = arith.constant 0 : index
    %8 = vector.load %arg7[%c0_6, %c0_7] : memref<8x512xf32, #tpu.memory_space<vmem>>, vector<8x512xf32>
    tpu.vector_store %arg7[%c0_6, %c0_7], %7 {strides = array<i32>} : memref<8x512xf32, #tpu.memory_space<vmem>>, vector<8x512xf32>,
    %c0_i32_8 = arith.constant 0 : i32
    %9 = arith.cmpi eq, %arg2, %c0_i32_8 : i32
    %10 = arith.extui %9 : i1 to i32
    %c0_i32_9 = arith.constant 0 : i32
    %11 = arith.cmpi ne, %10, %c0_i32_9 : i32
    scf.if %11 {
      %c0_10 = arith.constant 0 : index
      %c0_11 = arith.constant 0 : index
      %12 = vector.load %arg7[%c0_10, %c0_11] : memref<8x512xf32, #tpu.memory_space<vmem>>, vector<8x512xf32>
      %c0_12 = arith.constant 0 : index
      %c0_13 = arith.constant 0 : index
      %13 = vector.load %arg5[%c0_12, %c0_13] : memref<1x512xf32, #tpu.memory_space<vmem>>, vector<1x512xf32>
      %14 = vector.broadcast %13 : vector<1x512xf32> to vector<8x512xf32>
      %15 = arith.addf %12, %14 : vector<8x512xf32>
      %c0_14 = arith.constant 0 : index
      %c0_15 = arith.constant 0 : index
      %16 = vector.load %arg6[%c0_14, %c0_15] : memref<8x512xf32, #tpu.memory_space<vmem>>, vector<8x512xf32>
      tpu.vector_store %arg6[%c0_14, %c0_15], %15 {strides = array<i32>} : memref<8x512xf32, #tpu.memory_space<vmem>>, vector<8x512xf32>,
    } else {
    }
    return
  }
  func.func @transform_0(%arg0: i32, %arg1: i32, %arg2: i32) -> (i32, i32) {
    %c0_i32 = arith.constant 0 : i32
    return %arg0, %arg2 : i32, i32
  }
  func.func @transform_1(%arg0: i32, %arg1: i32, %arg2: i32) -> (i32, i32) {
    %c0_i32 = arith.constant 0 : i32
    return %arg2, %arg1 : i32, i32
  }
  func.func @transform_2(%arg0: i32, %arg1: i32, %arg2: i32) -> (i32, i32) {
    %c0_i32 = arith.constant 0 : i32
    %c0_i32_0 = arith.constant 0 : i32
    return %c0_i32, %arg1 : i32, i32
  }
  func.func @transform_3(%arg0: i32, %arg1: i32, %arg2: i32) -> (i32, i32) {
    %c0_i32 = arith.constant 0 : i32
    return %arg0, %arg1 : i32, i32
  }
}

module attributes {stable_mosaic.version = 11 : i64} {
  func.func @_bn_stats_kernel(%arg0: i32, %arg1: memref<8x1024xf32, #tpu.memory_space<vmem>>, %arg2: memref<8x1024xf32, #tpu.memory_space<vmem>>) attributes {dimension_semantics = [#tpu.dimension_semantics<arbitrary>], iteration_bounds = array<i64: 1>, scalar_prefetch = 0 : i64, scratch_operands = 0 : i64, tpu.core_type = #tpu.core_type<tc>, window_params = [{transform_indices = @transform_0, window_bounds = array<i64: 8, 1024>}, {pipeline_mode = #tpu.pipeline_mode<synchronous>, transform_indices = @transform_1, window_bounds = array<i64: 8, 1024>}]} {
    %c0_i32 = arith.constant 0 : i32
    %0 = arith.cmpi eq, %arg0, %c0_i32 : i32
    %1 = arith.extui %0 : i1 to i32
    %c0_i32_0 = arith.constant 0 : i32
    %2 = arith.cmpi ne, %1, %c0_i32_0 : i32
    scf.if %2 {
      %cst_11 = arith.constant 0.000000e+00 : f32
      %23 = vector.broadcast %cst_11 : f32 to vector<8x1024xf32>
      %c0_12 = arith.constant 0 : index
      %c0_13 = arith.constant 0 : index
      %24 = vector.load %arg2[%c0_12, %c0_13] : memref<8x1024xf32, #tpu.memory_space<vmem>>, vector<8x1024xf32>
      tpu.vector_store %arg2[%c0_12, %c0_13], %23 {strides = array<i32>} : memref<8x1024xf32, #tpu.memory_space<vmem>>, vector<8x1024xf32>,
    } else {
    }
    %c0 = arith.constant 0 : index
    %c0_1 = arith.constant 0 : index
    %3 = vector.load %arg1[%c0, %c0_1] : memref<8x1024xf32, #tpu.memory_space<vmem>>, vector<8x1024xf32>
    %c8_i32 = arith.constant 8 : i32
    %4 = arith.muli %arg0, %c8_i32 : i32
    %5 = tpu.iota {dimensions = array<i32: 0>} : vector<8x1024xi32>
    %6 = vector.broadcast %4 : i32 to vector<8x1024xi32>
    %7 = arith.addi %6, %5 : vector<8x1024xi32>
    %c2_i32 = arith.constant 2 : i32
    %8 = vector.broadcast %c2_i32 : i32 to vector<8x1024xi32>
    %9 = arith.cmpi slt, %7, %8 : vector<8x1024xi32>
    %cst = arith.constant 0.000000e+00 : f32
    %10 = vector.broadcast %cst : f32 to vector<8x1024xf32>
    %11 = arith.select %9, %3, %10 : vector<8x1024xi1>, vector<8x1024xf32>
    %c0_2 = arith.constant 0 : index
    %c0_3 = arith.constant 0 : index
    %12 = vector.load %arg2[%c0_2, %c0_3] : memref<8x1024xf32, #tpu.memory_space<vmem>>, vector<1x1024xf32>
    %cst_4 = arith.constant dense<0.000000e+00> : vector<1024xf32>
    %13 = vector.multi_reduction <add>, %11, %cst_4 [0] : vector<8x1024xf32> to vector<1024xf32>
    %14 = vector.shape_cast %13 : vector<1024xf32> to vector<1x1024xf32>
    %15 = arith.addf %12, %14 : vector<1x1024xf32>
    %c0_5 = arith.constant 0 : index
    %c0_6 = arith.constant 0 : index
    %16 = vector.load %arg2[%c0_5, %c0_6] : memref<8x1024xf32, #tpu.memory_space<vmem>>, vector<1x1024xf32>
    tpu.vector_store %arg2[%c0_5, %c0_6], %15 {strides = array<i32>} : memref<8x1024xf32, #tpu.memory_space<vmem>>, vector<1x1024xf32>,
    %c1 = arith.constant 1 : index
    %c0_7 = arith.constant 0 : index
    %17 = vector.load %arg2[%c1, %c0_7] : memref<8x1024xf32, #tpu.memory_space<vmem>>, vector<1x1024xf32>
    %18 = arith.mulf %11, %11 : vector<8x1024xf32>
    %cst_8 = arith.constant dense<0.000000e+00> : vector<1024xf32>
    %19 = vector.multi_reduction <add>, %18, %cst_8 [0] : vector<8x1024xf32> to vector<1024xf32>
    %20 = vector.shape_cast %19 : vector<1024xf32> to vector<1x1024xf32>
    %21 = arith.addf %17, %20 : vector<1x1024xf32>
    %c1_9 = arith.constant 1 : index
    %c0_10 = arith.constant 0 : index
    %22 = vector.load %arg2[%c1_9, %c0_10] : memref<8x1024xf32, #tpu.memory_space<vmem>>, vector<1x1024xf32>
    tpu.vector_store %arg2[%c1_9, %c0_10], %21 {strides = array<i32>} : memref<8x1024xf32, #tpu.memory_space<vmem>>, vector<1x1024xf32>,
    return
  }
  func.func @transform_0(%arg0: i32) -> (i32, i32) {
    %c0_i32 = arith.constant 0 : i32
    %c0_i32_0 = arith.constant 0 : i32
    return %arg0, %c0_i32 : i32, i32
  }
  func.func @transform_1(%arg0: i32) -> (i32, i32) {
    %c0_i32 = arith.constant 0 : i32
    %c0_i32_0 = arith.constant 0 : i32
    %c0_i32_1 = arith.constant 0 : i32
    return %c0_i32, %c0_i32_0 : i32, i32
  }
}

module attributes {stable_mosaic.version = 11 : i64} {
  func.func @_bn_apply_kernel(%arg0: i32, %arg1: memref<8x1024xf32, #tpu.memory_space<vmem>>, %arg2: memref<8x1024xf32, #tpu.memory_space<vmem>>, %arg3: memref<1x1024xf32, #tpu.memory_space<vmem>>, %arg4: memref<1x1024xf32, #tpu.memory_space<vmem>>, %arg5: memref<8x1024xbf16, #tpu.memory_space<vmem>>) attributes {dimension_semantics = [#tpu.dimension_semantics<parallel>], iteration_bounds = array<i64: 1>, scalar_prefetch = 0 : i64, scratch_operands = 0 : i64, tpu.core_type = #tpu.core_type<tc>, window_params = [{transform_indices = @transform_0, window_bounds = array<i64: 8, 1024>}, {pipeline_mode = #tpu.pipeline_mode<synchronous>, transform_indices = @transform_1, window_bounds = array<i64: 8, 1024>}, {pipeline_mode = #tpu.pipeline_mode<synchronous>, transform_indices = @transform_2, window_bounds = array<i64: 1, 1024>}, {pipeline_mode = #tpu.pipeline_mode<synchronous>, transform_indices = @transform_3, window_bounds = array<i64: 1, 1024>}, {transform_indices = @transform_4, window_bounds = array<i64: 8, 1024>}]} {
    %c0 = arith.constant 0 : index
    %c0_0 = arith.constant 0 : index
    %0 = vector.load %arg1[%c0, %c0_0] : memref<8x1024xf32, #tpu.memory_space<vmem>>, vector<8x1024xf32>
    %c0_1 = arith.constant 0 : index
    %c0_2 = arith.constant 0 : index
    %1 = vector.load %arg2[%c0_1, %c0_2] : memref<8x1024xf32, #tpu.memory_space<vmem>>, vector<1x1024xf32>
    %cst = arith.constant 5.000000e-01 : f32
    %2 = vector.broadcast %cst : f32 to vector<1x1024xf32>
    %3 = arith.mulf %1, %2 : vector<1x1024xf32>
    %c1 = arith.constant 1 : index
    %c0_3 = arith.constant 0 : index
    %4 = vector.load %arg2[%c1, %c0_3] : memref<8x1024xf32, #tpu.memory_space<vmem>>, vector<1x1024xf32>
    %cst_4 = arith.constant 5.000000e-01 : f32
    %5 = vector.broadcast %cst_4 : f32 to vector<1x1024xf32>
    %6 = arith.mulf %4, %5 : vector<1x1024xf32>
    %7 = arith.mulf %3, %3 : vector<1x1024xf32>
    %8 = arith.subf %6, %7 : vector<1x1024xf32>
    %cst_5 = arith.constant 9.99999974E-6 : f32
    %9 = vector.broadcast %cst_5 : f32 to vector<1x1024xf32>
    %10 = arith.addf %8, %9 : vector<1x1024xf32>
    %11 = math.rsqrt %10 : vector<1x1024xf32>
    %c0_6 = arith.constant 0 : index
    %c0_7 = arith.constant 0 : index
    %12 = vector.load %arg3[%c0_6, %c0_7] : memref<1x1024xf32, #tpu.memory_space<vmem>>, vector<1x1024xf32>
    %13 = arith.mulf %12, %11 : vector<1x1024xf32>
    %c0_8 = arith.constant 0 : index
    %c0_9 = arith.constant 0 : index
    %14 = vector.load %arg4[%c0_8, %c0_9] : memref<1x1024xf32, #tpu.memory_space<vmem>>, vector<1x1024xf32>
    %15 = arith.mulf %3, %13 : vector<1x1024xf32>
    %16 = arith.subf %14, %15 : vector<1x1024xf32>
    %17 = vector.broadcast %13 : vector<1x1024xf32> to vector<8x1024xf32>
    %18 = arith.mulf %0, %17 : vector<8x1024xf32>
    %19 = vector.broadcast %16 : vector<1x1024xf32> to vector<8x1024xf32>
    %20 = arith.addf %18, %19 : vector<8x1024xf32>
    %cst_10 = arith.constant 0.000000e+00 : f32
    %21 = vector.broadcast %cst_10 : f32 to vector<8x1024xf32>
    %22 = arith.cmpf ogt, %20, %21 : vector<8x1024xf32>
    %cst_11 = arith.constant 2.000000e-01 : f32
    %23 = vector.broadcast %cst_11 : f32 to vector<8x1024xf32>
    %24 = arith.mulf %23, %20 : vector<8x1024xf32>
    %25 = arith.select %22, %20, %24 : vector<8x1024xi1>, vector<8x1024xf32>
    %26 = arith.truncf %25 : vector<8x1024xf32> to vector<8x1024xbf16>
    %c0_12 = arith.constant 0 : index
    %c0_13 = arith.constant 0 : index
    %27 = vector.load %arg5[%c0_12, %c0_13] : memref<8x1024xbf16, #tpu.memory_space<vmem>>, vector<8x1024xbf16>
    tpu.vector_store %arg5[%c0_12, %c0_13], %26 {strides = array<i32>} : memref<8x1024xbf16, #tpu.memory_space<vmem>>, vector<8x1024xbf16>,
    return
  }
  func.func @transform_0(%arg0: i32) -> (i32, i32) {
    %c0_i32 = arith.constant 0 : i32
    %c0_i32_0 = arith.constant 0 : i32
    return %arg0, %c0_i32 : i32, i32
  }
  func.func @transform_1(%arg0: i32) -> (i32, i32) {
    %c0_i32 = arith.constant 0 : i32
    %c0_i32_0 = arith.constant 0 : i32
    %c0_i32_1 = arith.constant 0 : i32
    return %c0_i32, %c0_i32_0 : i32, i32
  }
  func.func @transform_2(%arg0: i32) -> (i32, i32) {
    %c0_i32 = arith.constant 0 : i32
    %c0_i32_0 = arith.constant 0 : i32
    %c0_i32_1 = arith.constant 0 : i32
    return %c0_i32, %c0_i32_0 : i32, i32
  }
  func.func @transform_3(%arg0: i32) -> (i32, i32) {
    %c0_i32 = arith.constant 0 : i32
    %c0_i32_0 = arith.constant 0 : i32
    %c0_i32_1 = arith.constant 0 : i32
    return %c0_i32, %c0_i32_0 : i32, i32
  }
  func.func @transform_4(%arg0: i32) -> (i32, i32) {
    %c0_i32 = arith.constant 0 : i32
    %c0_i32_0 = arith.constant 0 : i32
    return %arg0, %c0_i32 : i32, i32
  }
}

module attributes {stable_mosaic.version = 11 : i64} {
  func.func @_matmul_kernel(%arg0: i32, %arg1: i32, %arg2: i32, %arg3: memref<8x1024xbf16, #tpu.memory_space<vmem>>, %arg4: memref<1024x128xbf16, #tpu.memory_space<vmem>>, %arg5: memref<1x128xf32, #tpu.memory_space<vmem>>, %arg6: memref<8x128xf32, #tpu.memory_space<vmem>>, %arg7: memref<8x128xf32, #tpu.memory_space<vmem>>) attributes {dimension_semantics = [#tpu.dimension_semantics<parallel>, #tpu.dimension_semantics<parallel>, #tpu.dimension_semantics<arbitrary>], iteration_bounds = array<i64: 1, 1, 1>, scalar_prefetch = 0 : i64, scratch_operands = 1 : i64, tpu.core_type = #tpu.core_type<tc>, window_params = [{transform_indices = @transform_0, window_bounds = array<i64: 8, 1024>}, {transform_indices = @transform_1, window_bounds = array<i64: 1024, 128>}, {transform_indices = @transform_2, window_bounds = array<i64: 1, 128>}, {transform_indices = @transform_3, window_bounds = array<i64: 8, 128>}]} {
    %c0_i32 = arith.constant 0 : i32
    %0 = arith.cmpi eq, %arg2, %c0_i32 : i32
    %1 = arith.extui %0 : i1 to i32
    %c0_i32_0 = arith.constant 0 : i32
    %2 = arith.cmpi ne, %1, %c0_i32_0 : i32
    scf.if %2 {
      %cst_10 = arith.constant 0.000000e+00 : f32
      %12 = vector.broadcast %cst_10 : f32 to vector<8x128xf32>
      %c0_11 = arith.constant 0 : index
      %c0_12 = arith.constant 0 : index
      %13 = vector.load %arg7[%c0_11, %c0_12] : memref<8x128xf32, #tpu.memory_space<vmem>>, vector<8x128xf32>
      tpu.vector_store %arg7[%c0_11, %c0_12], %12 {strides = array<i32>} : memref<8x128xf32, #tpu.memory_space<vmem>>, vector<8x128xf32>,
    } else {
    }
    %c0 = arith.constant 0 : index
    %c0_1 = arith.constant 0 : index
    %3 = vector.load %arg7[%c0, %c0_1] : memref<8x128xf32, #tpu.memory_space<vmem>>, vector<8x128xf32>
    %c0_2 = arith.constant 0 : index
    %c0_3 = arith.constant 0 : index
    %4 = vector.load %arg3[%c0_2, %c0_3] : memref<8x1024xbf16, #tpu.memory_space<vmem>>, vector<8x1024xbf16>
    %c0_4 = arith.constant 0 : index
    %c0_5 = arith.constant 0 : index
    %5 = vector.load %arg4[%c0_4, %c0_5] : memref<1024x128xbf16, #tpu.memory_space<vmem>>, vector<1024x128xbf16>
    %cst = arith.constant dense<0.000000e+00> : vector<8x128xf32>
    %6 = tpu.matmul %4, %5, %cst {dimension_numbers = #tpu.dot_dimension_numbers<[1], [0], [0], [1], [0, 0, 1, 1], [], []>} : vector<8x1024xbf16>, vector<1024x128xbf16>, vector<8x128xf32> -> vector<8x128xf32>
    %7 = arith.addf %3, %6 : vector<8x128xf32>
    %c0_6 = arith.constant 0 : index
    %c0_7 = arith.constant 0 : index
    %8 = vector.load %arg7[%c0_6, %c0_7] : memref<8x128xf32, #tpu.memory_space<vmem>>, vector<8x128xf32>
    tpu.vector_store %arg7[%c0_6, %c0_7], %7 {strides = array<i32>} : memref<8x128xf32, #tpu.memory_space<vmem>>, vector<8x128xf32>,
    %c0_i32_8 = arith.constant 0 : i32
    %9 = arith.cmpi eq, %arg2, %c0_i32_8 : i32
    %10 = arith.extui %9 : i1 to i32
    %c0_i32_9 = arith.constant 0 : i32
    %11 = arith.cmpi ne, %10, %c0_i32_9 : i32
    scf.if %11 {
      %c0_10 = arith.constant 0 : index
      %c0_11 = arith.constant 0 : index
      %12 = vector.load %arg7[%c0_10, %c0_11] : memref<8x128xf32, #tpu.memory_space<vmem>>, vector<8x128xf32>
      %c0_12 = arith.constant 0 : index
      %c0_13 = arith.constant 0 : index
      %13 = vector.load %arg5[%c0_12, %c0_13] : memref<1x128xf32, #tpu.memory_space<vmem>>, vector<1x128xf32>
      %14 = vector.broadcast %13 : vector<1x128xf32> to vector<8x128xf32>
      %15 = arith.addf %12, %14 : vector<8x128xf32>
      %16 = arith.negf %15 : vector<8x128xf32>
      %17 = math.exp %16 : vector<8x128xf32>
      %cst_14 = arith.constant 1.000000e+00 : f32
      %18 = vector.broadcast %cst_14 : f32 to vector<8x128xf32>
      %19 = arith.addf %18, %17 : vector<8x128xf32>
      %20 = arith.divf %18, %19 : vector<8x128xf32>
      %c0_15 = arith.constant 0 : index
      %c0_16 = arith.constant 0 : index
      %21 = vector.load %arg6[%c0_15, %c0_16] : memref<8x128xf32, #tpu.memory_space<vmem>>, vector<8x128xf32>
      tpu.vector_store %arg6[%c0_15, %c0_16], %20 {strides = array<i32>} : memref<8x128xf32, #tpu.memory_space<vmem>>, vector<8x128xf32>,
    } else {
    }
    return
  }
  func.func @transform_0(%arg0: i32, %arg1: i32, %arg2: i32) -> (i32, i32) {
    %c0_i32 = arith.constant 0 : i32
    return %arg0, %arg2 : i32, i32
  }
  func.func @transform_1(%arg0: i32, %arg1: i32, %arg2: i32) -> (i32, i32) {
    %c0_i32 = arith.constant 0 : i32
    return %arg2, %arg1 : i32, i32
  }
  func.func @transform_2(%arg0: i32, %arg1: i32, %arg2: i32) -> (i32, i32) {
    %c0_i32 = arith.constant 0 : i32
    %c0_i32_0 = arith.constant 0 : i32
    return %c0_i32, %arg1 : i32, i32
  }
  func.func @transform_3(%arg0: i32, %arg1: i32, %arg2: i32) -> (i32, i32) {
    %c0_i32 = arith.constant 0 : i32
    return %arg0, %arg1 : i32, i32
  }
}

</mosaic_0001>

<bundles_post_ra>
// kernel: discriminator_forward.8
= control target key start
LH: loop header
LB: loop body
LE: loop exit
PB: predicated region body
PF: predicated region fallthrough
CT: control target
= control target key end

     0   :  { %vm131_vm0 = vcmask 392192   ;;  %s718_s1 = inlined_call_operand.vmem [shape: bf16[48,128], index: 1, kind: input, shape index: {}]   ;;  %s719_s0 = inlined_call_operand.vmem [shape: bf16[128,48], index: 0, kind: input, shape index: {}]   ;;  %s720_s2 = inlined_call_operand.vmem [shape: f32[1,128], index: 2, kind: input, shape index: {}]   ;;  %s721_s3 = inlined_call_operand.vmem [shape: bf16[128,128], index: 3, kind: output, shape index: {}]  }
   0x1   :  { %v597_v0 = vld [vmem:[%s718_s1] sm:$0xff]   ;;  %v598_v1 = vld [vmem:[%s718_s1 + $0x8] sm:$0xff]   ;;  %v599_v2 = vld [vmem:[%s718_s1 + $0x10] sm:$0xff]  }
   0x2   :  { %569 = vmatprep.subr.bf16.mxu0 %v597_v0  ;;  %591 = vmatprep.subr.bf16.mxu1 %v597_v0  ;;  %v600_v3 = vld [vmem:[%s719_s0] sm:$0xff]   ;;  %v602_v5 = vld [vmem:[%s719_s0 + $0x8] sm:$0xff]   ;;  %v604_v7 = vld [vmem:[%s719_s0 + $0x10] sm:$0xff]  }
   0x3   :  { %570 = vmatpush3.bf16.msra.mxu0 %v597_v0  ;;  %594 = vmatpush3.bf16.msra.mxu1 %v597_v0  ;;  %v601_v4 = vld [vmem:[%s719_s0 + $0x20] sm:$0xff]   ;;  %v603_v6 = vld [vmem:[%s719_s0 + $0x28] sm:$0xff]   ;;  %v605_v8 = vld [vmem:[%s719_s0 + $0x30] sm:$0xff]  }
   0x4   :  { %571 = vmatprep.subr.bf16.mxu0 %v598_v1  ;;  %592 = vmatprep.subr.bf16.mxu1 %v598_v1  ;;  %v606_v9 = vld [vmem:[%s719_s0 + $0x18] sm:$0xff]   ;;  %v672_v11 = vld [vmem:[%s720_s2] ss:$0 sm:$0xff] }
   0x5   :  { %575 = vmatprep.mubr.msk.bf16.mxu0 %vm131_vm0, %v600_v3  ;;  %583 = vmatprep.mubr.msk.bf16.mxu1 %vm131_vm0, %v601_v4  ;;  %v607_v10 = vld [vmem:[%s719_s0 + $0x38] sm:$0xff]  }
   0x7   :  { %572 = vmatpush3.bf16.msra.mxu0 %v598_v1  ;;  %595 = vmatpush3.bf16.msra.mxu1 %v598_v1 }
   0x8   :  { %573 = vmatprep.subr.bf16.mxu0 %v599_v2  ;;  %593 = vmatprep.subr.bf16.mxu1 %v599_v2 }
   0xb   :  { %574 = vmatpush3.bf16.msra.mxu0 %v599_v2  ;;  %596 = vmatpush3.bf16.msra.mxu1 %v599_v2 }
   0xe   :  { %576 = vmatmul.mubr.msk.bf16.vlgmr.msra.gmra.mrb[0].mxu0 %vm131_vm0, %v602_v5  ;;  %584 = vmatmul.mubr.msk.bf16.vlgmr.msra.gmra.mrb[0].mxu1 %vm131_vm0, %v603_v6 }
   0xf   :  { %579 = vmatprep.mubr.msk.bf16.mxu0 %vm131_vm0, %v604_v7  ;;  %587 = vmatprep.mubr.msk.bf16.mxu1 %vm131_vm0, %v605_v8 }
  0x16   :  { %580 = vmatmul.mubr.msk.bf16.gmra.mrb[4].mxu0 %vm131_vm0, %v606_v9  ;;  %588 = vmatmul.mubr.msk.bf16.gmra.mrb[4].mxu1 %vm131_vm0, %v607_v10 }
  0xe1   :  { %v577_v12 = vpop.f32.mrb[0].mxu0  ;;  %v585_v13 = vpop.f32.mrb[0].mxu1 }
  0xe2   :  { %v313_v14 = vadd.f32 %v577_v12, %v672_v11  ;;  %v321_v15 = vadd.f32 %v585_v13, %v672_v11  ;;  %v190_v16 = vpop.f32.mrb[1].mxu0  ;;  %v222_v17 = vpop.f32.mrb[1].mxu1 }
  0xe3   :  { %v311_v18 = vadd.f32 %v672_v11, %v190_v16  ;;  %v319_v19 = vadd.f32 %v672_v11, %v222_v17  ;;  %v578_v20 = vpop.f32.mrb[2].mxu0  ;;  %v586_v21 = vpop.f32.mrb[2].mxu1 }
  0xe4   :  { %vm329_vm1 = vcmp.gt.f32.partialorder %v313_v14, 0.0  ;;  %v345_v22 = vmul.f32 0.2, %v313_v14  ;;  %vm337_vm2 = vcmp.gt.f32.partialorder %v321_v15, 0.0  ;;  %v353_v23 = vmul.f32 0.2, %v321_v15 }
  0xe5   :  { %vm327_vm3 = vcmp.gt.f32.partialorder %v311_v18, 0.0  ;;  %v343_v24 = vmul.f32 0.2, %v311_v18  ;;  %vm335_vm4 = vcmp.gt.f32.partialorder %v319_v19, 0.0  ;;  %v351_v25 = vmul.f32 0.2, %v319_v19 }
  0xe6   :  { %v314_v26 = vadd.f32 %v578_v20, %v672_v11  ;;  %v322_v27 = vadd.f32 %v586_v21, %v672_v11  ;;  %v193_v28 = vpop.f32.mrb[3].mxu0  ;;  %v225_v29 = vpop.f32.mrb[3].mxu1  ;;  %v361_v30 = vsel %vm329_vm1, %v313_v14, %v345_v22  ;;  %v369_v31 = vsel %vm337_vm2, %v321_v15, %v353_v23 }
  0xe7   :  { %v312_v32 = vadd.f32 %v672_v11, %v193_v28  ;;  %v320_v33 = vadd.f32 %v672_v11, %v225_v29  ;;  %v359_v38 = vsel %vm327_vm3, %v311_v18, %v343_v24  ;;  %v367_v39 = vsel %vm335_vm4, %v319_v19, %v351_v25 }
  0xe8   :  { %vm330_vm5 = vcmp.gt.f32.partialorder %v314_v26, 0.0  ;;  %v346_v34 = vmul.f32 0.2, %v314_v26  ;;  %vm338_vm6 = vcmp.gt.f32.partialorder %v322_v27, 0.0  ;;  %v354_v35 = vmul.f32 0.2, %v322_v27 }
  0xe9   :  { %vm328_vm7 = vcmp.gt.f32.partialorder %v312_v32, 0.0  ;;  %v344_v36 = vmul.f32 0.2, %v312_v32  ;;  %vm336_vm8 = vcmp.gt.f32.partialorder %v320_v33, 0.0  ;;  %v352_v37 = vmul.f32 0.2, %v320_v33 }
  0xea   :  { %v362_v40 = vsel %vm330_vm5, %v314_v26, %v346_v34  ;;  %v370_v41 = vsel %vm338_vm6, %v322_v27, %v354_v35  ;;  %v581_v42 = vpop.f32.mrb[4].mxu0  ;;  %v589_v43 = vpop.f32.mrb[4].mxu1 }
  0xeb   :  { %v519_v44 = vpack.c.bf16 %v362_v40, %v361_v30  ;;  %v539_v45 = vpack.c.bf16 %v370_v41, %v369_v31  ;;  %v360_v46 = vsel %vm328_vm7, %v312_v32, %v344_v36  ;;  %v368_v47 = vsel %vm336_vm8, %v320_v33, %v352_v37  ;;  %v206_v48 = vpop.f32.mrb[5].mxu0  ;;  %v238_v49 = vpop.f32.mrb[5].mxu1 }
  0xec   :  { %v514_v50 = vpack.c.bf16 %v360_v46, %v359_v38  ;;  %v534_v51 = vpack.c.bf16 %v368_v47, %v367_v39  ;;  %v317_v52 = vadd.f32 %v581_v42, %v672_v11  ;;  %v325_v53 = vadd.f32 %v589_v43, %v672_v11  ;;  %v582_v54 = vpop.f32.mrb[6].mxu0  ;;  %v590_v55 = vpop.f32.mrb[6].mxu1 }
  0xed   :  { %551 = vst [vmem:[%s721_s3 + $0x8] sm:$0xff] %v519_v44   ;;  %555 = vst [vmem:[%s721_s3 + $0x28] sm:$0xff] %v539_v45   ;;  %v315_v56 = vadd.f32 %v672_v11, %v206_v48  ;;  %v323_v57 = vadd.f32 %v672_v11, %v238_v49  ;;  %v318_v58 = vadd.f32 %v582_v54, %v672_v11  ;;  %v209_v60 = vpop.f32.mrb[7].mxu0  ;;  %v241_v61 = vpop.f32.mrb[7].mxu1 }
  0xee   :  { %v326_v59 = vadd.f32 %v590_v55, %v672_v11  ;;  %515 = vst [vmem:[%s721_s3] sm:$0xff] %v514_v50   ;;  %554 = vst [vmem:[%s721_s3 + $0x20] sm:$0xff] %v534_v51   ;;  %v349_v62 = vmul.f32 0.2, %v317_v52  ;;  %vm333_vm9 = vcmp.gt.f32.partialorder %v317_v52, 0.0  ;;  %v357_v63 = vmul.f32 0.2, %v325_v53 }
  0xef   :  { %vm341_vm10 = vcmp.gt.f32.partialorder %v325_v53, 0.0  ;;  %vm331_vm11 = vcmp.gt.f32.partialorder %v315_v56, 0.0  ;;  %vm334_vm12 = vcmp.gt.f32.partialorder %v318_v58, 0.0  ;;  %v350_v0 = vmul.f32 0.2, %v318_v58 }
  0xf0   :  { %v347_v1 = vmul.f32 0.2, %v315_v56  ;;  %vm339_vm13 = vcmp.gt.f32.partialorder %v323_v57, 0.0  ;;  %vm342_vm14 = vcmp.gt.f32.partialorder %v326_v59, 0.0  ;;  %v358_v2 = vmul.f32 0.2, %v326_v59 }
  0xf1   :  { %v365_v3 = vsel %vm333_vm9, %v317_v52, %v349_v62  ;;  %v366_v4 = vsel %vm334_vm12, %v318_v58, %v350_v0  ;;  %v316_v5 = vadd.f32 %v672_v11, %v209_v60  ;;  %v324_v6 = vadd.f32 %v672_v11, %v241_v61 }
  0xf2   :  { %v373_v7 = vsel %vm341_vm10, %v325_v53, %v357_v63  ;;  %v355_v8 = vmul.f32 0.2, %v323_v57  ;;  %v529_v9 = vpack.c.bf16 %v366_v4, %v365_v3  ;;  %v374_v10 = vsel %vm342_vm14, %v326_v59, %v358_v2 }
  0xf3   :  { %v549_v12 = vpack.c.bf16 %v374_v10, %v373_v7  ;;  %vm332_vm15 = vcmp.gt.f32.partialorder %v316_v5, 0.0  ;;  %v348_v13 = vmul.f32 0.2, %v316_v5  ;;  %vm340_vm0 = vcmp.gt.f32.partialorder %v324_v6, 0.0 }
  0xf4   :  { %553 = vst [vmem:[%s721_s3 + $0x18] sm:$0xff] %v529_v9   ;;  %v356_v14 = vmul.f32 0.2, %v324_v6  ;;  %v363_v15 = vsel %vm331_vm11, %v315_v56, %v347_v1  ;;  %v371_v16 = vsel %vm339_vm13, %v323_v57, %v355_v8 }
  0xf5   :  { %557 = vst [vmem:[%s721_s3 + $0x38] sm:$0xff] %v549_v12   ;;  %v364_v11 = vsel %vm332_vm15, %v316_v5, %v348_v13 }
  0xf6   :  { %v524_v17 = vpack.c.bf16 %v364_v11, %v363_v15  ;;  %v372_v18 = vsel %vm340_vm0, %v324_v6, %v356_v14 }
  0xf7   :  { %v544_v19 = vpack.c.bf16 %v372_v18, %v371_v16 }
  0xf8   :  { %552 = vst [vmem:[%s721_s3 + $0x10] sm:$0xff] %v524_v17  }
  0xf9   :  { %556 = vst [vmem:[%s721_s3 + $0x30] sm:$0xff] %v544_v19  }

// kernel: discriminator_forward.10
= control target key start
LH: loop header
LB: loop body
LE: loop exit
PB: predicated region body
PF: predicated region fallthrough
CT: control target
= control target key end

     0   :  { %v50_v0 = vmov 0.0   ;;  %s88_s1 = inlined_call_operand.vmem [shape: f32[8,128], index: 1, kind: output, shape index: {}]   ;;  %s89_s0 = inlined_call_operand.vmem [shape: f32[32,128], index: 0, kind: input, shape index: {}]  }
   0x1   :  { %12 = vst [vmem:[%s88_s1] sm:$0xff] %v50_v0  ;;  %v13_v1 = vld [vmem:[%s89_s0] sm:$0xff]  ;;  %v14_v2 = vld [vmem:[%s89_s0 + $0x8] sm:$0xff]  ;;  %v15_v3 = vld [vmem:[%s89_s0 + $0x10] sm:$0xff] }
   0x2   :  { %v16_v4 = vld [vmem:[%s89_s0 + $0x18] sm:$0xff]  ;;  %v18_v5 = vadd.f32 %v14_v2, %v13_v1  ;;  %v30_v6 = vmul.f32 %v13_v1, %v13_v1  ;;  %v31_v7 = vmul.f32 %v14_v2, %v14_v2  ;;  %v32_v8 = vmul.f32 %v15_v3, %v15_v3 }
   0x3   :  { %v33_v10 = vmul.f32 %v16_v4, %v16_v4 }
   0x4   :  { %v19_v9 = vadd.f32 %v18_v5, %v15_v3  ;;  %v34_v11 = vadd.f32 %v31_v7, %v30_v6 }
   0x6   :  { %v20_v12 = vadd.f32 %v19_v9, %v16_v4  ;;  %v35_v13 = vadd.f32 %v34_v11, %v32_v8 }
   0x8   :  { %v21_v14 = vrot.slane %v20_v12, 4  ;;  %v36_v15 = vadd.f32 %v35_v13, %v33_v10  ;;  %v17_v24 = vld [vmem:[%s88_s1] sm:$0x1]  ;;  %v29_v27 = vld [vmem:[%s88_s1 + $0x1] sm:$0x1] }
   0xa   :  { %v22_v16 = vadd.f32 %v21_v14, %v20_v12  ;;  %v37_v17 = vrot.slane %v36_v15, 4 }
   0xc   :  { %v23_v18 = vrot.slane %v22_v16, 2  ;;  %v38_v19 = vadd.f32 %v37_v17, %v36_v15 }
   0xe   :  { %v24_v20 = vadd.f32 %v23_v18, %v22_v16  ;;  %v39_v21 = vrot.slane %v38_v19, 2 }
  0x10   :  { %v25_v22 = vrot.slane %v24_v20, 1  ;;  %v40_v23 = vadd.f32 %v39_v21, %v38_v19 }
  0x12   :  { %v26_v25 = vadd.f32 %v25_v22, %v24_v20  ;;  %v41_v26 = vrot.slane %v40_v23, 1 }
  0x14   :  { %v27_v28 = vadd.f32 %v26_v25, %v17_v24  ;;  %v42_v29 = vadd.f32 %v41_v26, %v40_v23 }
  0x16   :  { %28 = vst [vmem:[%s88_s1] sm:$0x1] %v27_v28  ;;  %v43_v30 = vadd.f32 %v42_v29, %v29_v27 }
  0x18   :  { %44 = vst [vmem:[%s88_s1 + $0x1] sm:$0x1] %v43_v30 }

// kernel: discriminator_forward.11
= control target key start
LH: loop header
LB: loop body
LE: loop exit
PB: predicated region body
PF: predicated region fallthrough
CT: control target
= control target key end

     0   :  { %v35_v7 = vlaneseq  ;;  %s166_s1 = inlined_call_operand.vmem [shape: f32[8,128], index: 1, kind: input, shape index: {}]   ;;  %s167_s2 = inlined_call_operand.vmem [shape: f32[1,128], index: 2, kind: input, shape index: {}]   ;;  %s168_s0 = inlined_call_operand.vmem [shape: f32[32,128], index: 0, kind: input, shape index: {}]   ;;  %s169_s3 = inlined_call_operand.vmem [shape: f32[1,128], index: 3, kind: input, shape index: {}]   ;;  %s170_s4 = inlined_call_operand.vmem [shape: bf16[32,128], index: 4, kind: output, shape index: {}]  }
   0x1   :  { %v21_v0 = vld [vmem:[%s166_s1] sm:$0x1]  ;;  %v23_v2 = vld [vmem:[%s166_s1 + $0x1] sm:$0x1]  ;;  %v18_v14 = vld [vmem:[%s168_s0 + $0x8] sm:$0xff] }
   0x2   :  { %v22_v1 = vmul.f32 0.03125, %v21_v0  ;;  %v24_v3 = vmul.f32 0.03125, %v23_v2  ;;  %v36_v8 = vshrl.u32 %v35_v7, 7  ;;  %v29_v9 = vld [vmem:[%s167_s2] sm:$0x1]  ;;  %v19_v16 = vld [vmem:[%s168_s0 + $0x10] sm:$0xff] }
   0x3   :  { %v17_v12 = vld [vmem:[%s168_s0] sm:$0xff]  ;;  %v20_v19 = vld [vmem:[%s168_s0 + $0x18] sm:$0xff] }
   0x4   :  { %v25_v4 = vmul.f32 %v22_v1, %v22_v1  ;;  %v37_v10 = vsub.s32 0, %v36_v8  ;;  %v31_v15 = vld [vmem:[%s169_s3] sm:$0x1] }
   0x6   :  { %v26_v5 = vsub.f32 %v24_v3, %v25_v4 }
   0x8   :  { %v27_v6 = vadd.f32 1e-05, %v26_v5 }
   0xa   :  { %109 = vrsqrt.f32 %v27_v6 }
  0x14   :  { %v110_v11 = vpop.eup %109 }
  0x15   :  { %v30_v13 = vmul.f32 %v110_v11, %v29_v9 }
  0x17   :  { %v32_v17 = vmul.f32 %v30_v13, %v22_v1  ;;  %v38_v18 = vrot.slane %v30_v13, %v37_v10 }
  0x19   :  { %v33_v20 = vsub.f32 %v31_v15, %v32_v17  ;;  %v40_v21 = vmul.f32 %v38_v18, %v17_v12  ;;  %v41_v22 = vmul.f32 %v38_v18, %v18_v14  ;;  %v42_v23 = vmul.f32 %v38_v18, %v19_v16 }
  0x1a   :  { %v43_v24 = vmul.f32 %v38_v18, %v20_v19 }
  0x1b   :  { %v48_v25 = vrot.slane %v33_v20, %v37_v10 }
  0x1d   :  { %v50_v26 = vadd.f32 %v48_v25, %v40_v21  ;;  %v51_v27 = vadd.f32 %v48_v25, %v41_v22  ;;  %v52_v28 = vadd.f32 %v48_v25, %v42_v23  ;;  %v53_v29 = vadd.f32 %v48_v25, %v43_v24 }
  0x1f   :  { %vm54_vm0 = vcmp.gt.f32.partialorder %v50_v26, 0.0  ;;  %vm55_vm1 = vcmp.gt.f32.partialorder %v51_v27, 0.0  ;;  %v58_v30 = vmul.f32 0.2, %v50_v26  ;;  %v59_v31 = vmul.f32 0.2, %v51_v27 }
  0x20   :  { %vm56_vm2 = vcmp.gt.f32.partialorder %v52_v28, 0.0  ;;  %vm57_vm3 = vcmp.gt.f32.partialorder %v53_v29, 0.0  ;;  %v60_v32 = vmul.f32 0.2, %v52_v28  ;;  %v61_v33 = vmul.f32 0.2, %v53_v29 }
  0x21   :  { %v62_v34 = vsel %vm54_vm0, %v50_v26, %v58_v30  ;;  %v63_v35 = vsel %vm55_vm1, %v51_v27, %v59_v31 }
  0x22   :  { %v101_v36 = vpack.c.bf16 %v63_v35, %v62_v34  ;;  %v64_v37 = vsel %vm56_vm2, %v52_v28, %v60_v32  ;;  %v65_v38 = vsel %vm57_vm3, %v53_v29, %v61_v33 }
  0x23   :  { %v106_v39 = vpack.c.bf16 %v65_v38, %v64_v37 }
  0x24   :  { %102 = vst [vmem:[%s170_s4] sm:$0xff] %v101_v36  }
  0x25   :  { %108 = vst [vmem:[%s170_s4 + $0x8] sm:$0xff] %v106_v39  }

// kernel: discriminator_forward.9
= control target key start
LH: loop header
LB: loop body
LE: loop exit
PB: predicated region body
PF: predicated region fallthrough
CT: control target
= control target key end

     0   :  { %8 = vsyncpa [#allocation4], 0  ;;  %s1160_s12 = smov [#allocation3]   ;;  %s1445_s0 = inlined_call_operand.vmem [shape: bf16[32,1024], index: 0, kind: input, shape index: {}]   ;;  %s1446_s1 = inlined_call_operand.vmem [shape: bf16[1024,128], index: 1, kind: input, shape index: {}]   ;;  %s1447_s2 = inlined_call_operand.hbm [shape: f32[1,128], index: 2, kind: input, shape index: {}]   ;;  %s1448_s3 = inlined_call_operand.vmem [shape: f32[32,128], index: 3, kind: output, shape index: {}]  }
   0x1   :  { %s19_s13 = sshll.u32 %s1160_s12, 4  ;;  %s1136_s16 = scalar_lea.hbm %s1447_s2, 16  ;;  %s20_s13 = int_to_ptr.vmem [resolvable:$true] %s19_s13 }
   0x2   :  { %p1137_p0 = scmp.ne.s32.totalorder %s1447_s2, %s1136_s16  ;;  %p1140_p1 = scmp.lt.u32.totalorder %s1136_s16, %s1447_s2 }
   0x4   :  { %p1142_p2 = pnand %p1140_p1, %p1137_p0 }
   0x6   :  { %1145 = shalt.err (!%p1142_p2)
}
   0x7   :  { %s1146_s21 = scalar_lea.vmem %s20_s13, 16  ;;  %s1150_s22 = scalar_lea.vmem %s20_s13, 32 }
   0x8   :  { %p1147_p3 = scmp.ne.s32.totalorder %s20_s13, %s1146_s21  ;;  %p1151_p4 = scmp.lt.s32.totalorder %s20_s13, %s20_s13 }
   0x9   :  { %p1152_p5 = scmp.lt.s32.totalorder %s1150_s22, %s1146_s21 }
   0xb   :  { %p1153_p6 = por %p1152_p5, %p1151_p4 }
   0xd   :  { %p1154_p7 = pnand %p1153_p6, %p1147_p3 }
   0xf   :  { %1157 = shalt.err (!%p1154_p7)
}
  0x10   :  { %22 = dma.hbm_to_vmem [thread:$0]  %s1447_s2, 16, %s20_s13, [#allocation4]  }
  0x11   :  { %1158 = dma.done.wait [#allocation4], 16  }
  0x12   :  { %1159 = vsyncadd [#allocation4], 4294967280  ;;  %v1072_v0 = vld [vmem:[%s1446_s1 + $0x40] sm:$0xff]   ;;  %v1076_v4 = vld [vmem:[%s1446_s1 + $0x48] sm:$0xff]  }
  0x13   :  { %v1073_v1 = vld [vmem:[%s1446_s1 + $0xc0] sm:$0xff]   ;;  %959 = vmatprep.subr.bf16.mxu0 %v1072_v0  ;;  %v1077_v5 = vld [vmem:[%s1446_s1 + $0xc8] sm:$0xff]   ;;  %v1080_v8 = vld [vmem:[%s1446_s1 + $0x50] sm:$0xff]  }
  0x14   :  { %v1074_v2 = vld [vmem:[%s1446_s1] sm:$0xff]   ;;  %987 = vmatprep.subr.bf16.mxu1 %v1073_v1  ;;  %v1078_v6 = vld [vmem:[%s1446_s1 + $0x8] sm:$0xff]   ;;  %v1081_v9 = vld [vmem:[%s1446_s1 + $0xd0] sm:$0xff]  }
  0x15   :  { %v1075_v3 = vld [vmem:[%s1446_s1 + $0x80] sm:$0xff]   ;;  %960 = vmatpush3.bf16.msra.mxu0 %v1074_v2  ;;  %v1079_v7 = vld [vmem:[%s1446_s1 + $0x88] sm:$0xff]   ;;  %v1082_v10 = vld [vmem:[%s1446_s1 + $0x10] sm:$0xff]  }
  0x16   :  { %988 = vmatpush3.bf16.msra.mxu1 %v1075_v3  ;;  %961 = vmatprep.subr.bf16.mxu0 %v1076_v4  ;;  %v1083_v11 = vld [vmem:[%s1446_s1 + $0x90] sm:$0xff]   ;;  %v1084_v12 = vld [vmem:[%s1446_s1 + $0x58] sm:$0xff]   ;;  %v1088_v16 = vld [vmem:[%s1446_s1 + $0x60] sm:$0xff]  }
  0x17   :  { %989 = vmatprep.subr.bf16.mxu1 %v1077_v5  ;;  %v1085_v13 = vld [vmem:[%s1446_s1 + $0xd8] sm:$0xff]   ;;  %v1089_v17 = vld [vmem:[%s1446_s1 + $0xe0] sm:$0xff]   ;;  %v1092_v20 = vld [vmem:[%s1446_s1 + $0x68] sm:$0xff]  }
  0x18   :  { %v1086_v14 = vld [vmem:[%s1446_s1 + $0x18] sm:$0xff]   ;;  %v1090_v18 = vld [vmem:[%s1446_s1 + $0x20] sm:$0xff]   ;;  %v1093_v21 = vld [vmem:[%s1446_s1 + $0xe8] sm:$0xff]  }
  0x19   :  { %962 = vmatpush3.bf16.msra.mxu0 %v1078_v6  ;;  %v1087_v15 = vld [vmem:[%s1446_s1 + $0x98] sm:$0xff]   ;;  %v1091_v19 = vld [vmem:[%s1446_s1 + $0xa0] sm:$0xff]   ;;  %v1094_v22 = vld [vmem:[%s1446_s1 + $0x28] sm:$0xff]  }
  0x1a   :  { %990 = vmatpush3.bf16.msra.mxu1 %v1079_v7  ;;  %963 = vmatprep.subr.bf16.mxu0 %v1080_v8  ;;  %v1095_v23 = vld [vmem:[%s1446_s1 + $0xa8] sm:$0xff]   ;;  %v1096_v24 = vld [vmem:[%s1446_s1 + $0x70] sm:$0xff]   ;;  %v1100_v28 = vld [vmem:[%s1446_s1 + $0x78] sm:$0xff]  }
  0x1b   :  { %991 = vmatprep.subr.bf16.mxu1 %v1081_v9  ;;  %v1097_v25 = vld [vmem:[%s1446_s1 + $0xf0] sm:$0xff]   ;;  %v1101_v29 = vld [vmem:[%s1446_s1 + $0xf8] sm:$0xff]   ;;  %v39_v32 = vld [vmem:[%s1445_s0] sm:$0xff] }
  0x1c   :  { %v1098_v26 = vld [vmem:[%s1446_s1 + $0x30] sm:$0xff]   ;;  %v1102_v30 = vld [vmem:[%s1446_s1 + $0x38] sm:$0xff]   ;;  %v43_v33 = vld [vmem:[%s1445_s0 + $0x20] sm:$0xff] }
  0x1d   :  { %964 = vmatpush3.bf16.msra.mxu0 %v1082_v10  ;;  %v1099_v27 = vld [vmem:[%s1446_s1 + $0xb0] sm:$0xff]   ;;  %v1103_v31 = vld [vmem:[%s1446_s1 + $0xb8] sm:$0xff]   ;;  %v40_v34 = vld [vmem:[%s1445_s0 + $0x8] sm:$0xff]  ;;  %v878_v35 = vcombine.low %v39_v32, %v43_v33  ;;  %v879_v36 = vcombine.high %v39_v32, %v43_v33 }
  0x1e   :  { %992 = vmatpush3.bf16.msra.mxu1 %v1083_v11  ;;  %965 = vmatprep.subr.bf16.mxu0 %v1084_v12  ;;  %v44_v37 = vld [vmem:[%s1445_s0 + $0x28] sm:$0xff]  ;;  %v1104_v40 = vld [vmem:[%s1446_s1 + $0x140] sm:$0xff]   ;;  %v1112_v48 = vld [vmem:[%s1446_s1 + $0x150] sm:$0xff]  }
  0x1f   :  { %993 = vmatprep.subr.bf16.mxu1 %v1085_v13  ;;  %v880_v38 = vcombine.low %v40_v34, %v44_v37  ;;  %v881_v39 = vcombine.high %v40_v34, %v44_v37  ;;  %679 = vmatprep.mubr.bf16.mxu0 %v879_v36  ;;  %v1105_v41 = vld [vmem:[%s1446_s1 + $0x1c0] sm:$0xff]   ;;  %v1108_v44 = vld [vmem:[%s1446_s1 + $0x148] sm:$0xff]   ;;  %v1113_v49 = vld [vmem:[%s1446_s1 + $0x1d0] sm:$0xff]  }
  0x20   :  { %v1106_v42 = vld [vmem:[%s1446_s1 + $0x100] sm:$0xff]   ;;  %v1109_v45 = vld [vmem:[%s1446_s1 + $0x1c8] sm:$0xff]   ;;  %v1114_v50 = vld [vmem:[%s1446_s1 + $0x110] sm:$0xff]  }
  0x21   :  { %966 = vmatpush3.bf16.msra.mxu0 %v1086_v14  ;;  %728 = vmatprep.mubr.bf16.mxu1 %v881_v39  ;;  %v1107_v43 = vld [vmem:[%s1446_s1 + $0x180] sm:$0xff]   ;;  %v1110_v46 = vld [vmem:[%s1446_s1 + $0x108] sm:$0xff]   ;;  %v1115_v51 = vld [vmem:[%s1446_s1 + $0x190] sm:$0xff]  }
  0x22   :  { %994 = vmatpush3.bf16.msra.mxu1 %v1087_v15  ;;  %967 = vmatprep.subr.bf16.mxu0 %v1088_v16  ;;  %v1111_v47 = vld [vmem:[%s1446_s1 + $0x188] sm:$0xff]   ;;  %v1116_v52 = vld [vmem:[%s1446_s1 + $0x158] sm:$0xff]   ;;  %v1120_v56 = vld [vmem:[%s1446_s1 + $0x160] sm:$0xff]  }
  0x23   :  { %995 = vmatprep.subr.bf16.mxu1 %v1089_v17  ;;  %v1117_v53 = vld [vmem:[%s1446_s1 + $0x1d8] sm:$0xff]   ;;  %v1121_v57 = vld [vmem:[%s1446_s1 + $0x1e0] sm:$0xff]   ;;  %v48_v63 = vld [vmem:[%s1445_s0 + $0x48] sm:$0xff] }
  0x24   :  { %v1118_v54 = vld [vmem:[%s1446_s1 + $0x118] sm:$0xff]   ;;  %v1122_v58 = vld [vmem:[%s1446_s1 + $0x120] sm:$0xff]   ;;  %v52_v0 = vld [vmem:[%s1445_s0 + $0x68] sm:$0xff] }
  0x25   :  { %968 = vmatpush3.bf16.msra.mxu0 %v1090_v18  ;;  %v1119_v55 = vld [vmem:[%s1446_s1 + $0x198] sm:$0xff]   ;;  %v1123_v59 = vld [vmem:[%s1446_s1 + $0x1a0] sm:$0xff]   ;;  %v889_v2 = vcombine.high %v48_v63, %v52_v0  ;;  %v1124_v3 = vld [vmem:[%s1446_s1 + $0x168] sm:$0xff]   ;;  %v888_v4 = vcombine.low %v48_v63, %v52_v0 }
  0x26   :  { %996 = vmatpush3.bf16.msra.mxu1 %v1091_v19  ;;  %969 = vmatprep.subr.bf16.mxu0 %v1092_v20  ;;  %v47_v60 = vld [vmem:[%s1445_s0 + $0x40] sm:$0xff]  ;;  %v1125_v5 = vld [vmem:[%s1446_s1 + $0x1e8] sm:$0xff]   ;;  %v1128_v8 = vld [vmem:[%s1446_s1 + $0x170] sm:$0xff]  }
  0x27   :  { %997 = vmatprep.subr.bf16.mxu1 %v1093_v21  ;;  %v51_v61 = vld [vmem:[%s1445_s0 + $0x60] sm:$0xff]  ;;  %v1126_v6 = vld [vmem:[%s1446_s1 + $0x128] sm:$0xff]   ;;  %v1129_v9 = vld [vmem:[%s1446_s1 + $0x1f0] sm:$0xff]  }
  0x28   :  { %v887_v62 = vcombine.high %v47_v60, %v51_v61  ;;  %v886_v1 = vcombine.low %v47_v60, %v51_v61  ;;  %v1127_v7 = vld [vmem:[%s1446_s1 + $0x1a8] sm:$0xff]   ;;  %v1130_v10 = vld [vmem:[%s1446_s1 + $0x130] sm:$0xff]   ;;  %v1132_v12 = vld [vmem:[%s1446_s1 + $0x178] sm:$0xff]  }
  0x29   :  { %970 = vmatpush3.bf16.msra.mxu0 %v1094_v22  ;;  %v1131_v11 = vld [vmem:[%s1446_s1 + $0x1b0] sm:$0xff]   ;;  %v1133_v13 = vld [vmem:[%s1446_s1 + $0x1f8] sm:$0xff]  }
  0x2a   :  { %998 = vmatpush3.bf16.msra.mxu1 %v1095_v23  ;;  %971 = vmatprep.subr.bf16.mxu0 %v1096_v24  ;;  %v1134_v14 = vld [vmem:[%s1446_s1 + $0x138] sm:$0xff]   ;;  %v41_v16 = vld [vmem:[%s1445_s0 + $0x10] sm:$0xff] }
  0x2b   :  { %999 = vmatprep.subr.bf16.mxu1 %v1097_v25  ;;  %v1135_v15 = vld [vmem:[%s1446_s1 + $0x1b8] sm:$0xff]   ;;  %v45_v17 = vld [vmem:[%s1445_s0 + $0x30] sm:$0xff] }
  0x2c   :  { %v42_v18 = vld [vmem:[%s1445_s0 + $0x18] sm:$0xff]  ;;  %v882_v20 = vcombine.low %v41_v16, %v45_v17  ;;  %v883_v21 = vcombine.high %v41_v16, %v45_v17  ;;  %v49_v24 = vld [vmem:[%s1445_s0 + $0x50] sm:$0xff] }
  0x2d   :  { %972 = vmatpush3.bf16.msra.mxu0 %v1098_v26  ;;  %v46_v19 = vld [vmem:[%s1445_s0 + $0x38] sm:$0xff]  ;;  %v53_v25 = vld [vmem:[%s1445_s0 + $0x70] sm:$0xff] }
  0x2e   :  { %1000 = vmatpush3.bf16.msra.mxu1 %v1099_v27  ;;  %973 = vmatprep.subr.bf16.mxu0 %v1100_v28  ;;  %v884_v22 = vcombine.low %v42_v18, %v46_v19  ;;  %v885_v23 = vcombine.high %v42_v18, %v46_v19  ;;  %v50_v26 = vld [vmem:[%s1445_s0 + $0x58] sm:$0xff]  ;;  %v891_v27 = vcombine.high %v49_v24, %v53_v25 }
  0x2f   :  { %1001 = vmatprep.subr.bf16.mxu1 %v1101_v29  ;;  %v54_v28 = vld [vmem:[%s1445_s0 + $0x78] sm:$0xff] }
  0x30   :  { %v893_v29 = vcombine.high %v50_v26, %v54_v28 }
  0x31   :  { %974 = vmatpush3.bf16.msra.mxu0 %v1102_v30  ;;  %v890_v30 = vcombine.low %v49_v24, %v53_v25 }
  0x32   :  { %1002 = vmatpush3.bf16.msra.mxu1 %v1103_v31  ;;  %1015 = vmatprep.subr.bf16.mxu0 %v1104_v40  ;;  %v892_v31 = vcombine.low %v50_v26, %v54_v28 }
  0x33   :  { %1043 = vmatprep.subr.bf16.mxu1 %v1105_v41 }
  0x34   :  { %680 = vmatmul.mubr.bf16.vlgmr.msra.gmra.mrb[0].mxu0 %v878_v35 }
  0x35   :  { %729 = vmatmul.mubr.bf16.vlgmr.msra.gmra.mrb[0].mxu1 %v880_v38  ;;  %1016 = vmatpush3.bf16.msra.mxu0 %v1106_v42 }
  0x36   :  { %1044 = vmatpush3.bf16.msra.mxu1 %v1107_v43  ;;  %1017 = vmatprep.subr.bf16.mxu0 %v1108_v44 }
  0x37   :  { %1045 = vmatprep.subr.bf16.mxu1 %v1109_v45  ;;  %687 = vmatprep.mubr.bf16.mxu0 %v887_v62 }
  0x38   :  { %736 = vmatprep.mubr.bf16.mxu1 %v889_v2 }
  0x39   :  { %1018 = vmatpush3.bf16.msra.mxu0 %v1110_v46 }
  0x3a   :  { %1046 = vmatpush3.bf16.msra.mxu1 %v1111_v47  ;;  %1019 = vmatprep.subr.bf16.mxu0 %v1112_v48 }
  0x3b   :  { %1047 = vmatprep.subr.bf16.mxu1 %v1113_v49 }
  0x3c   :  { %688 = vmatmul.mubr.bf16.gmra.mrb[4].mxu0 %v886_v1 }
  0x3d   :  { %1020 = vmatpush3.bf16.msra.mxu0 %v1114_v50  ;;  %737 = vmatmul.mubr.bf16.gmra.mrb[4].mxu1 %v888_v4 }
  0x3e   :  { %1048 = vmatpush3.bf16.msra.mxu1 %v1115_v51  ;;  %1021 = vmatprep.subr.bf16.mxu0 %v1116_v52 }
  0x3f   :  { %1049 = vmatprep.subr.bf16.mxu1 %v1117_v53  ;;  %777 = vmatprep.mubr.bf16.mxu0 %v883_v21 }
  0x40   :  { %826 = vmatprep.mubr.bf16.mxu1 %v885_v23 }
  0x41   :  { %1022 = vmatpush3.bf16.msra.mxu0 %v1118_v54 }
  0x42   :  { %1050 = vmatpush3.bf16.msra.mxu1 %v1119_v55  ;;  %1023 = vmatprep.subr.bf16.mxu0 %v1120_v56 }
  0x43   :  { %1051 = vmatprep.subr.bf16.mxu1 %v1121_v57 }
  0x45   :  { %1024 = vmatpush3.bf16.msra.mxu0 %v1122_v58 }
  0x46   :  { %1052 = vmatpush3.bf16.msra.mxu1 %v1123_v59  ;;  %1025 = vmatprep.subr.bf16.mxu0 %v1124_v3 }
  0x47   :  { %1053 = vmatprep.subr.bf16.mxu1 %v1125_v5 }
  0x49   :  { %1026 = vmatpush3.bf16.msra.mxu0 %v1126_v6 }
  0x4a   :  { %1054 = vmatpush3.bf16.msra.mxu1 %v1127_v7  ;;  %1027 = vmatprep.subr.bf16.mxu0 %v1128_v8 }
  0x4b   :  { %1055 = vmatprep.subr.bf16.mxu1 %v1129_v9  ;;  %v958_v9 = vld [vmem:[#allocation3] ss:$0 sm:$0xff] }
  0x4d   :  { %1028 = vmatpush3.bf16.msra.mxu0 %v1130_v10 }
  0x4e   :  { %1056 = vmatpush3.bf16.msra.mxu1 %v1131_v11  ;;  %1029 = vmatprep.subr.bf16.mxu0 %v1132_v12 }
  0x4f   :  { %1057 = vmatprep.subr.bf16.mxu1 %v1133_v13 }
  0x51   :  { %1030 = vmatpush3.bf16.msra.mxu0 %v1134_v14 }
  0x52   :  { %1058 = vmatpush3.bf16.msra.mxu1 %v1135_v15 }
  0x54   :  { %778 = vmatmul.mubr.bf16.vlgmr.msra.gmra.mrb[8].mxu0 %v882_v20 }
  0x55   :  { %827 = vmatmul.mubr.bf16.vlgmr.msra.gmra.mrb[8].mxu1 %v884_v22  ;;  %785 = vmatprep.mubr.bf16.mxu0 %v891_v27 }
  0x56   :  { %834 = vmatprep.mubr.bf16.mxu1 %v893_v29 }
  0x5c   :  { %786 = vmatmul.mubr.bf16.gmra.mrb[12].mxu0 %v890_v30 }
  0x5d   :  { %835 = vmatmul.mubr.bf16.gmra.mrb[12].mxu1 %v892_v31 }
 0x107   :  { %v975_v32 = vpop.f32.mrb[0].mxu0 }
 0x108   :  { %v1003_v33 = vpop.f32.mrb[0].mxu1  ;;  %v976_v34 = vpop.f32.mrb[1].mxu0 }
 0x109   :  { %v977_v35 = vadd.f32 %v976_v34, %v975_v32  ;;  %v1004_v36 = vpop.f32.mrb[1].mxu1  ;;  %v978_v37 = vpop.f32.mrb[2].mxu0 }
 0x10a   :  { %v1005_v38 = vadd.f32 %v1004_v36, %v1003_v33  ;;  %v1006_v39 = vpop.f32.mrb[2].mxu1  ;;  %v979_v40 = vpop.f32.mrb[3].mxu0 }
 0x10b   :  { %v980_v41 = vadd.f32 %v979_v40, %v978_v37  ;;  %v1007_v42 = vpop.f32.mrb[3].mxu1 }
 0x10c   :  { %v731_v43 = vadd.f32 %v1005_v38, %v977_v35  ;;  %v1008_v44 = vadd.f32 %v1007_v42, %v1006_v39 }
 0x10e   :  { %v734_v45 = vadd.f32 %v1008_v44, %v980_v41 }
 0x10f   :  { %v981_v46 = vpop.f32.mrb[4].mxu0 }
 0x110   :  { %v1009_v47 = vpop.f32.mrb[4].mxu1  ;;  %v982_v48 = vpop.f32.mrb[5].mxu0 }
 0x111   :  { %v983_v49 = vadd.f32 %v982_v48, %v981_v46  ;;  %v1010_v50 = vpop.f32.mrb[5].mxu1  ;;  %v984_v51 = vpop.f32.mrb[6].mxu0 }
 0x112   :  { %v1011_v52 = vadd.f32 %v1010_v50, %v1009_v47  ;;  %v1012_v53 = vpop.f32.mrb[6].mxu1  ;;  %v985_v54 = vpop.f32.mrb[7].mxu0 }
 0x113   :  { %v986_v55 = vadd.f32 %v985_v54, %v984_v51  ;;  %v1013_v56 = vpop.f32.mrb[7].mxu1 }
 0x114   :  { %v739_v57 = vadd.f32 %v1011_v52, %v983_v49  ;;  %v1014_v58 = vadd.f32 %v1013_v56, %v1012_v53 }
 0x116   :  { %v742_v59 = vadd.f32 %v1014_v58, %v986_v55 }
 0x127   :  { %v1031_v60 = vpop.f32.mrb[8].mxu0 }
 0x128   :  { %v1059_v61 = vpop.f32.mrb[8].mxu1  ;;  %v1032_v62 = vpop.f32.mrb[9].mxu0 }
 0x129   :  { %v1060_v63 = vpop.f32.mrb[9].mxu1  ;;  %v1033_v0 = vadd.f32 %v1032_v62, %v1031_v60  ;;  %v1034_v2 = vpop.f32.mrb[10].mxu0 }
 0x12a   :  { %v1061_v1 = vadd.f32 %v1060_v63, %v1059_v61  ;;  %v1062_v3 = vpop.f32.mrb[10].mxu1  ;;  %v1035_v4 = vpop.f32.mrb[11].mxu0 }
 0x12b   :  { %v1063_v5 = vpop.f32.mrb[11].mxu1  ;;  %v780_v6 = vadd.f32 %v1033_v0, %v731_v43  ;;  %v1036_v7 = vadd.f32 %v1035_v4, %v1034_v2 }
 0x12c   :  { %v1064_v8 = vadd.f32 %v1063_v5, %v1062_v3 }
 0x12d   :  { %v829_v10 = vadd.f32 %v1061_v1, %v780_v6  ;;  %v783_v11 = vadd.f32 %v1036_v7, %v734_v45 }
 0x12f   :  { %v865_v12 = vadd.f32 %v958_v9, %v829_v10  ;;  %v832_v13 = vadd.f32 %v1064_v8, %v783_v11  ;;  %v1037_v14 = vpop.f32.mrb[12].mxu0 }
 0x130   :  { %v1065_v15 = vpop.f32.mrb[12].mxu1  ;;  %v1038_v16 = vpop.f32.mrb[13].mxu0 }
 0x131   :  { %v1066_v17 = vpop.f32.mrb[13].mxu1  ;;  %869 = vst [vmem:[%s1448_s3] sm:$0xff] %v865_v12  ;;  %v866_v18 = vadd.f32 %v958_v9, %v832_v13  ;;  %v1039_v19 = vadd.f32 %v1038_v16, %v1037_v14  ;;  %v1040_v21 = vpop.f32.mrb[14].mxu0 }
 0x132   :  { %v1067_v20 = vadd.f32 %v1066_v17, %v1065_v15  ;;  %v1068_v22 = vpop.f32.mrb[14].mxu1  ;;  %v1041_v23 = vpop.f32.mrb[15].mxu0 }
 0x133   :  { %v1069_v24 = vpop.f32.mrb[15].mxu1  ;;  %870 = vst [vmem:[%s1448_s3 + $0x8] sm:$0xff] %v866_v18  ;;  %v788_v25 = vadd.f32 %v1039_v19, %v739_v57  ;;  %v1042_v26 = vadd.f32 %v1041_v23, %v1040_v21 }
 0x134   :  { %v1070_v27 = vadd.f32 %v1069_v24, %v1068_v22 }
 0x135   :  { %v837_v28 = vadd.f32 %v1067_v20, %v788_v25  ;;  %v791_v29 = vadd.f32 %v1042_v26, %v742_v59 }
 0x137   :  { %v867_v30 = vadd.f32 %v958_v9, %v837_v28  ;;  %v840_v31 = vadd.f32 %v1070_v27, %v791_v29 }
 0x139   :  { %871 = vst [vmem:[%s1448_s3 + $0x10] sm:$0xff] %v867_v30  ;;  %v868_v32 = vadd.f32 %v958_v9, %v840_v31 }
 0x13b   :  { %872 = vst [vmem:[%s1448_s3 + $0x18] sm:$0xff] %v868_v32 }
 0x13c   :  { %877 = vsyncpa [#allocation4], 1 }

// kernel: discriminator_forward.13
= control target key start
LH: loop header
LB: loop body
LE: loop exit
PB: predicated region body
PF: predicated region fallthrough
CT: control target
= control target key end

     0   :  { %v29_v0 = vlaneseq  ;;  %v285_v1 = vmov 0.0   ;;  %v286_v3 = vmov 1966171168   ;;  %s419_s1 = inlined_call_operand.vmem [shape: f32[8,1024], index: 1, kind: output, shape index: {}]   ;;  %s420_s0 = inlined_call_operand.vmem [shape: f32[8,1024], index: 0, kind: input, shape index: {}]  }
   0x1   :  { %12 = vst [vmem:[%s419_s1] sm:$0xff] %v285_v1  ;;  %13 = vst [vmem:[%s419_s1 + $0x8] sm:$0xff] %v285_v1  ;;  %v20_v2 = vld [vmem:[%s420_s0] sm:$0xff]  ;;  %v106_v4 = vunpack.c.l.s4 %v286_v3  ;;  %v21_v5 = vld [vmem:[%s420_s0 + $0x8] sm:$0xff] }
   0x2   :  { %14 = vst [vmem:[%s419_s1 + $0x10] sm:$0xff] %v285_v1  ;;  %15 = vst [vmem:[%s419_s1 + $0x18] sm:$0xff] %v285_v1  ;;  %v22_v6 = vld [vmem:[%s420_s0 + $0x10] sm:$0xff]  ;;  %v23_v7 = vld [vmem:[%s420_s0 + $0x18] sm:$0xff]  ;;  %v30_v8 = vshrl.u32 %v29_v0, 7 }
   0x3   :  { %16 = vst [vmem:[%s419_s1 + $0x20] sm:$0xff] %v285_v1  ;;  %17 = vst [vmem:[%s419_s1 + $0x28] sm:$0xff] %v285_v1  ;;  %v24_v9 = vld [vmem:[%s420_s0 + $0x20] sm:$0xff]  ;;  %v25_v10 = vld [vmem:[%s420_s0 + $0x28] sm:$0xff]  ;;  %v107_v12 = vunpack.c.0.s8 %v106_v4 }
   0x4   :  { %18 = vst [vmem:[%s419_s1 + $0x30] sm:$0xff] %v285_v1  ;;  %19 = vst [vmem:[%s419_s1 + $0x38] sm:$0xff] %v285_v1  ;;  %v26_v11 = vld [vmem:[%s420_s0 + $0x30] sm:$0xff]  ;;  %vm33_vm0 = vcmp.lt.s32.totalorder %v30_v8, 2  ;;  %v27_v13 = vld [vmem:[%s420_s0 + $0x38] sm:$0xff] }
   0x5   :  { %v34_v14 = vsel %vm33_vm0, %v20_v2, 0.0  ;;  %v35_v15 = vsel %vm33_vm0, %v21_v5, 0.0  ;;  %v36_v16 = vsel %vm33_vm0, %v22_v6, 0.0  ;;  %v37_v17 = vsel %vm33_vm0, %v23_v7, 0.0 }
   0x6   :  { %v345_v18 = vsel %vm33_vm0, %v24_v9, 0.0  ;;  %v347_v19 = vsel %vm33_vm0, %v25_v10, 0.0  ;;  %v349_v20 = vsel %vm33_vm0, %v26_v11, 0.0  ;;  %v45_v21 = vrot.slane %v34_v14, 4 }
   0x7   :  { %v51_v22 = vrot.slane %v35_v15, 4  ;;  %v57_v23 = vrot.slane %v36_v16, 4  ;;  %v63_v24 = vrot.slane %v37_v17, 4  ;;  %v41_v25 = vsel %vm33_vm0, %v27_v13, 0.0 }
   0x8   :  { %v351_v26 = vsub.s32 %v107_v12, %v30_v8  ;;  %v353_v27 = vmul.f32 %v34_v14, %v34_v14  ;;  %v355_v28 = vmul.f32 %v35_v15, %v35_v15  ;;  %v46_v29 = vadd.f32 %v45_v21, %v34_v14 }
   0x9   :  { %v52_v30 = vadd.f32 %v51_v22, %v35_v15  ;;  %v58_v31 = vadd.f32 %v57_v23, %v36_v16  ;;  %v357_v32 = vmul.f32 %v36_v16, %v36_v16  ;;  %v64_v33 = vadd.f32 %v63_v24, %v37_v17  ;;  %v368_v49 = vld [vmem:[%s419_s1] ss:$8 sm:$0xf] }
   0xa   :  { %v69_v34 = vrot.slane %v345_v18, 4  ;;  %v75_v35 = vrot.slane %v347_v19, 4  ;;  %v81_v36 = vrot.slane %v349_v20, 4  ;;  %v47_v37 = vrot.slane %v46_v29, 2 }
   0xb   :  { %v53_v38 = vrot.slane %v52_v30, 2  ;;  %v59_v39 = vrot.slane %v58_v31, 2  ;;  %v87_v40 = vrot.slane %v41_v25, 4  ;;  %v65_v41 = vrot.slane %v64_v33, 2 }
   0xc   :  { %v70_v42 = vadd.f32 %v69_v34, %v345_v18  ;;  %v76_v43 = vadd.f32 %v75_v35, %v347_v19  ;;  %v82_v44 = vadd.f32 %v81_v36, %v349_v20  ;;  %v48_v45 = vadd.f32 %v47_v37, %v46_v29  ;;  %v373_v58 = vld [vmem:[%s419_s1] ss:$8 sm:$0xf0] }
   0xd   :  { %v54_v46 = vadd.f32 %v53_v38, %v52_v30  ;;  %v60_v47 = vadd.f32 %v59_v39, %v58_v31  ;;  %v88_v48 = vadd.f32 %v87_v40, %v41_v25  ;;  %v66_v50 = vadd.f32 %v65_v41, %v64_v33 }
   0xe   :  { %v71_v51 = vrot.slane %v70_v42, 2  ;;  %v77_v52 = vrot.slane %v76_v43, 2  ;;  %v83_v53 = vrot.slane %v82_v44, 2  ;;  %v49_v54 = vrot.slane %v48_v45, 1 }
   0xf   :  { %v55_v55 = vrot.slane %v54_v46, 1  ;;  %v61_v56 = vrot.slane %v60_v47, 1  ;;  %v89_v57 = vrot.slane %v88_v48, 2  ;;  %v67_v59 = vrot.slane %v66_v50, 1 }
  0x10   :  { %v72_v60 = vadd.f32 %v71_v51, %v70_v42  ;;  %v78_v61 = vadd.f32 %v77_v52, %v76_v43  ;;  %v84_v62 = vadd.f32 %v83_v53, %v82_v44  ;;  %v50_v63 = vadd.f32 %v49_v54, %v48_v45 }
  0x11   :  { %v56_v0 = vadd.f32 %v55_v55, %v54_v46  ;;  %v62_v1 = vadd.f32 %v61_v56, %v60_v47  ;;  %v90_v2 = vadd.f32 %v89_v57, %v88_v48  ;;  %v68_v3 = vadd.f32 %v67_v59, %v66_v50 }
  0x12   :  { %v73_v4 = vrot.slane %v72_v60, 1  ;;  %v79_v5 = vrot.slane %v78_v61, 1  ;;  %v85_v6 = vrot.slane %v84_v62, 1  ;;  %v44_v7 = vor.u32 %v373_v58, %v368_v49 }
  0x13   :  { %v91_v8 = vrot.slane %v90_v2, 1  ;;  %v101_v9 = vcombine.low %v50_v63, %v56_v0  ;;  %v161_v10 = vmul.f32 %v37_v17, %v37_v17  ;;  %v102_v14 = vcombine.low %v62_v1, %v68_v3 }
  0x14   :  { %v74_v11 = vadd.f32 %v73_v4, %v72_v60  ;;  %v80_v12 = vadd.f32 %v79_v5, %v78_v61  ;;  %v86_v13 = vadd.f32 %v85_v6, %v84_v62  ;;  %v162_v21 = vmul.f32 %v345_v18, %v345_v18 }
  0x15   :  { %v92_v15 = vadd.f32 %v91_v8, %v90_v2  ;;  %v111_v16 = vrot.slane %v101_v9, %v351_v26  ;;  %v163_v22 = vmul.f32 %v347_v19, %v347_v19  ;;  %v118_v24 = vrot.slane %v102_v14, %v351_v26 }
  0x16   :  { %v103_v23 = vcombine.low %v74_v11, %v80_v12  ;;  %v164_v29 = vmul.f32 %v349_v20, %v349_v20  ;;  %v165_v17 = vmul.f32 %v41_v25, %v41_v25  ;;  %v166_v31 = vrot.slane %v353_v27, 4 }
  0x17   :  { %v104_v30 = vcombine.low %v86_v13, %v92_v15  ;;  %v172_v33 = vrot.slane %v355_v28, 4  ;;  %v178_v34 = vrot.slane %v357_v32, 4  ;;  %v133_v18 = vcombine.low %v111_v16, %v118_v24 }
  0x18   :  { %v125_v35 = vrot.slane %v103_v23, %v351_v26  ;;  %v184_v36 = vrot.slane %v161_v10, 4  ;;  %v190_v37 = vrot.slane %v162_v21, 4  ;;  %v167_v38 = vadd.f32 %v166_v31, %v353_v27 }
  0x19   :  { %v132_v19 = vrot.slane %v104_v30, %v351_v26  ;;  %v173_v39 = vadd.f32 %v172_v33, %v355_v28  ;;  %v179_v20 = vadd.f32 %v178_v34, %v357_v32  ;;  %v141_v25 = vrot.slane %v133_v18, %v351_v26  ;;  %v279_v34 = vld [vmem:[%s419_s1 + $0x1] ss:$8 sm:$0xf] }
  0x1a   :  { %v185_v40 = vadd.f32 %v184_v36, %v161_v10  ;;  %v191_v41 = vadd.f32 %v190_v37, %v162_v21  ;;  %v196_v42 = vrot.slane %v163_v22, 4  ;;  %v168_v44 = vrot.slane %v167_v38, 2 }
  0x1b   :  { %v134_v43 = vcombine.low %v125_v35, %v132_v19  ;;  %v174_v45 = vrot.slane %v173_v39, 2  ;;  %v180_v46 = vrot.slane %v179_v20, 2  ;;  %v202_v50 = vrot.slane %v164_v29, 4  ;;  %v280_v35 = vld [vmem:[%s419_s1 + $0x1] ss:$8 sm:$0xf0] }
  0x1c   :  { %v186_v47 = vrot.slane %v185_v40, 2  ;;  %v192_v48 = vrot.slane %v191_v41, 2  ;;  %v197_v49 = vadd.f32 %v196_v42, %v163_v22  ;;  %v169_v27 = vadd.f32 %v168_v44, %v167_v38 }
  0x1d   :  { %v148_v51 = vrot.slane %v134_v43, %v351_v26  ;;  %v175_v52 = vadd.f32 %v174_v45, %v173_v39  ;;  %v181_v28 = vadd.f32 %v180_v46, %v179_v20  ;;  %v203_v55 = vadd.f32 %v202_v50, %v164_v29 }
  0x1e   :  { %v187_v53 = vadd.f32 %v186_v47, %v185_v40  ;;  %v193_v32 = vadd.f32 %v192_v48, %v191_v41  ;;  %v198_v54 = vrot.slane %v197_v49, 2  ;;  %v170_v57 = vrot.slane %v169_v27, 1 }
  0x1f   :  { %v149_v56 = vcombine.low %v141_v25, %v148_v51  ;;  %v176_v58 = vrot.slane %v175_v52, 1  ;;  %v182_v59 = vrot.slane %v181_v28, 1  ;;  %v204_v62 = vrot.slane %v203_v55, 2 }
  0x20   :  { %v188_v60 = vrot.slane %v187_v53, 1  ;;  %v199_v61 = vadd.f32 %v198_v54, %v197_v49  ;;  %v171_v0 = vadd.f32 %v170_v57, %v169_v27  ;;  %v194_v3 = vrot.slane %v193_v32, 1 }
  0x21   :  { %v151_v63 = vadd.f32 %v149_v56, %v44_v7  ;;  %v177_v1 = vadd.f32 %v176_v58, %v175_v52  ;;  %v183_v2 = vadd.f32 %v182_v59, %v181_v28  ;;  %v205_v6 = vadd.f32 %v204_v62, %v203_v55 }
  0x22   :  { %v189_v4 = vadd.f32 %v188_v60, %v187_v53  ;;  %v200_v5 = vrot.slane %v199_v61, 1  ;;  %v208_v8 = vrot.slane %v165_v17, 4  ;;  %v195_v10 = vadd.f32 %v194_v3, %v193_v32 }
  0x23   :  { %152 = vst [vmem:[%s419_s1] ss:$8 sm:$0xf] %v151_v63  ;;  %153 = vst [vmem:[%s419_s1] ss:$8 sm:$0xf0] %v151_v63  ;;  %v222_v11 = vcombine.low %v171_v0, %v177_v1  ;;  %v206_v12 = vrot.slane %v205_v6, 1  ;;  %v157_v37 = vor.u32 %v280_v35, %v279_v34 }
  0x24   :  { %v209_v9 = vadd.f32 %v208_v8, %v165_v17  ;;  %v201_v7 = vadd.f32 %v200_v5, %v199_v61  ;;  %v223_v14 = vcombine.low %v183_v2, %v189_v4 }
  0x25   :  { %v232_v16 = vrot.slane %v222_v11, %v351_v26  ;;  %v207_v21 = vadd.f32 %v206_v12, %v205_v6 }
  0x26   :  { %v210_v13 = vrot.slane %v209_v9, 2  ;;  %v224_v23 = vcombine.low %v195_v10, %v201_v7  ;;  %v239_v24 = vrot.slane %v223_v14, %v351_v26 }
  0x28   :  { %v211_v15 = vadd.f32 %v210_v13, %v209_v9  ;;  %v246_v31 = vrot.slane %v224_v23, %v351_v26  ;;  %v254_v33 = vcombine.low %v232_v16, %v239_v24 }
  0x2a   :  { %v212_v22 = vrot.slane %v211_v15, 1  ;;  %v262_v36 = vrot.slane %v254_v33, %v351_v26 }
  0x2c   :  { %v213_v29 = vadd.f32 %v212_v22, %v211_v15 }
  0x2e   :  { %v225_v30 = vcombine.low %v207_v21, %v213_v29 }
  0x30   :  { %v253_v17 = vrot.slane %v225_v30, %v351_v26 }
  0x32   :  { %v255_v18 = vcombine.low %v246_v31, %v253_v17 }
  0x34   :  { %v269_v19 = vrot.slane %v255_v18, %v351_v26 }
  0x36   :  { %v270_v38 = vcombine.low %v262_v36, %v269_v19 }
  0x38   :  { %v272_v39 = vadd.f32 %v270_v38, %v157_v37 }
  0x3a   :  { %281 = vst [vmem:[%s419_s1 + $0x1] ss:$8 sm:$0xf] %v272_v39  ;;  %282 = vst [vmem:[%s419_s1 + $0x1] ss:$8 sm:$0xf0] %v272_v39 }

// kernel: discriminator_forward.14
= control target key start
LH: loop header
LB: loop body
LE: loop exit
PB: predicated region body
PF: predicated region fallthrough
CT: control target
= control target key end

     0   :  { %v44_v11 = vlaneseq  ;;  %s296_s1 = inlined_call_operand.vmem [shape: f32[8,1024], index: 1, kind: input, shape index: {}]   ;;  %s297_s2 = inlined_call_operand.vmem [shape: f32[1,1024], index: 2, kind: input, shape index: {}]   ;;  %s298_s0 = inlined_call_operand.vmem [shape: f32[8,1024], index: 0, kind: input, shape index: {}]   ;;  %s299_s3 = inlined_call_operand.vmem [shape: f32[1,1024], index: 3, kind: input, shape index: {}]   ;;  %s300_s4 = inlined_call_operand.vmem [shape: bf16[8,1024], index: 4, kind: output, shape index: {}]  }
   0x1   :  { %v25_v0 = vld [vmem:[%s296_s1] ss:$8 sm:$0xf]  ;;  %v205_v2 = vld [vmem:[%s296_s1 + $0x1] ss:$8 sm:$0xf] }
   0x2   :  { %v26_v1 = vld [vmem:[%s296_s1] ss:$8 sm:$0xf0]  ;;  %v206_v4 = vld [vmem:[%s296_s1 + $0x1] ss:$8 sm:$0xf0] }
   0x3   :  { %v27_v3 = vor.u32 %v26_v1, %v25_v0  ;;  %v32_v5 = vor.u32 %v206_v4, %v205_v2  ;;  %v45_v12 = vshrl.u32 %v44_v11, 7  ;;  %v38_v13 = vld [vmem:[%s297_s2] sm:$0xff]  ;;  %v18_v24 = vld [vmem:[%s298_s0 + $0x8] sm:$0xff]  ;;  %v19_v26 = vld [vmem:[%s298_s0 + $0x10] sm:$0xff] }
   0x4   :  { %v17_v22 = vld [vmem:[%s298_s0] sm:$0xff]  ;;  %v20_v31 = vld [vmem:[%s298_s0 + $0x18] sm:$0xff]  ;;  %v22_v34 = vld [vmem:[%s298_s0 + $0x28] sm:$0xff] }
   0x5   :  { %v28_v6 = vmul.f32 0.5, %v27_v3  ;;  %v33_v7 = vmul.f32 0.5, %v32_v5  ;;  %v46_v14 = vsub.s32 0, %v45_v12  ;;  %v50_v15 = vsub.s32 1, %v45_v12  ;;  %v40_v25 = vld [vmem:[%s299_s3] sm:$0xff]  ;;  %v23_v43 = vld [vmem:[%s298_s0 + $0x30] sm:$0xff] }
   0x6   :  { %v54_v16 = vsub.s32 2, %v45_v12  ;;  %v58_v18 = vsub.s32 3, %v45_v12  ;;  %v62_v19 = vsub.s32 4, %v45_v12  ;;  %v66_v20 = vsub.s32 5, %v45_v12  ;;  %v21_v33 = vld [vmem:[%s298_s0 + $0x20] sm:$0xff]  ;;  %v24_v44 = vld [vmem:[%s298_s0 + $0x38] sm:$0xff] }
   0x7   :  { %v34_v8 = vmul.f32 %v28_v6, %v28_v6  ;;  %v70_v21 = vsub.s32 6, %v45_v12  ;;  %v74_v27 = vsub.s32 7, %v45_v12 }
   0x9   :  { %v35_v9 = vsub.f32 %v33_v7, %v34_v8 }
   0xb   :  { %v36_v10 = vadd.f32 1e-05, %v35_v9 }
   0xd   :  { %215 = vrsqrt.f32 %v36_v10 }
  0x17   :  { %v216_v17 = vpop.eup %215 }
  0x18   :  { %v39_v23 = vmul.f32 %v216_v17, %v38_v13 }
  0x1a   :  { %v41_v28 = vmul.f32 %v39_v23, %v28_v6  ;;  %v47_v29 = vrot.slane %v39_v23, %v46_v14  ;;  %v51_v30 = vrot.slane %v39_v23, %v50_v15  ;;  %v55_v32 = vrot.slane %v39_v23, %v54_v16 }
  0x1b   :  { %v59_v35 = vrot.slane %v39_v23, %v58_v18  ;;  %v63_v36 = vrot.slane %v39_v23, %v62_v19  ;;  %v67_v37 = vrot.slane %v39_v23, %v66_v20  ;;  %v71_v38 = vrot.slane %v39_v23, %v70_v21 }
  0x1c   :  { %v42_v39 = vsub.f32 %v40_v25, %v41_v28  ;;  %v84_v40 = vmul.f32 %v47_v29, %v17_v22  ;;  %v85_v41 = vmul.f32 %v51_v30, %v18_v24  ;;  %v86_v42 = vmul.f32 %v55_v32, %v19_v26 }
  0x1d   :  { %v87_v45 = vmul.f32 %v59_v35, %v20_v31  ;;  %v88_v46 = vmul.f32 %v63_v36, %v21_v33  ;;  %v89_v47 = vmul.f32 %v67_v37, %v22_v34  ;;  %v75_v48 = vrot.slane %v39_v23, %v74_v27 }
  0x1e   :  { %v96_v49 = vrot.slane %v42_v39, %v46_v14  ;;  %v100_v50 = vrot.slane %v42_v39, %v50_v15  ;;  %v104_v51 = vrot.slane %v42_v39, %v54_v16  ;;  %v108_v52 = vrot.slane %v42_v39, %v58_v18 }
  0x1f   :  { %v112_v53 = vrot.slane %v42_v39, %v62_v19  ;;  %v116_v54 = vrot.slane %v42_v39, %v66_v20  ;;  %v90_v55 = vmul.f32 %v71_v38, %v23_v43  ;;  %v91_v56 = vmul.f32 %v75_v48, %v24_v44 }
  0x20   :  { %v133_v57 = vadd.f32 %v96_v49, %v84_v40  ;;  %v134_v58 = vadd.f32 %v100_v50, %v85_v41  ;;  %v135_v59 = vadd.f32 %v104_v51, %v86_v42  ;;  %v136_v60 = vadd.f32 %v108_v52, %v87_v45 }
  0x21   :  { %v137_v61 = vadd.f32 %v112_v53, %v88_v46  ;;  %v138_v62 = vadd.f32 %v116_v54, %v89_v47  ;;  %v120_v63 = vrot.slane %v42_v39, %v70_v21  ;;  %v124_v0 = vrot.slane %v42_v39, %v74_v27 }
  0x22   :  { %vm141_vm0 = vcmp.gt.f32.partialorder %v133_v57, 0.0  ;;  %vm142_vm1 = vcmp.gt.f32.partialorder %v134_v58, 0.0  ;;  %v149_v1 = vmul.f32 0.2, %v133_v57  ;;  %v150_v2 = vmul.f32 0.2, %v134_v58 }
  0x23   :  { %vm143_vm2 = vcmp.gt.f32.partialorder %v135_v59, 0.0  ;;  %vm144_vm3 = vcmp.gt.f32.partialorder %v136_v60, 0.0  ;;  %v151_v3 = vmul.f32 0.2, %v135_v59  ;;  %v152_v4 = vmul.f32 0.2, %v136_v60 }
  0x24   :  { %v157_v5 = vsel %vm141_vm0, %v133_v57, %v149_v1  ;;  %v158_v6 = vsel %vm142_vm1, %v134_v58, %v150_v2  ;;  %vm145_vm4 = vcmp.gt.f32.partialorder %v137_v61, 0.0  ;;  %vm146_vm5 = vcmp.gt.f32.partialorder %v138_v62, 0.0 }
  0x25   :  { %v211_v7 = vpack.c.bf16 %v158_v6, %v157_v5  ;;  %v159_v8 = vsel %vm143_vm2, %v135_v59, %v151_v3  ;;  %v160_v9 = vsel %vm144_vm3, %v136_v60, %v152_v4  ;;  %v153_v10 = vmul.f32 0.2, %v137_v61 }
  0x26   :  { %v212_v11 = vpack.c.bf16 %v160_v9, %v159_v8  ;;  %v154_v12 = vmul.f32 0.2, %v138_v62  ;;  %v139_v13 = vadd.f32 %v120_v63, %v90_v55  ;;  %v140_v14 = vadd.f32 %v124_v0, %v91_v56 }
  0x27   :  { %197 = vst [vmem:[%s300_s4] sm:$0xff] %v211_v7  ;;  %v161_v15 = vsel %vm145_vm4, %v137_v61, %v153_v10 }
  0x28   :  { %198 = vst [vmem:[%s300_s4 + $0x8] sm:$0xff] %v212_v11  ;;  %v162_v16 = vsel %vm146_vm5, %v138_v62, %v154_v12  ;;  %vm147_vm6 = vcmp.gt.f32.partialorder %v139_v13, 0.0  ;;  %vm148_vm7 = vcmp.gt.f32.partialorder %v140_v14, 0.0  ;;  %v155_v17 = vmul.f32 0.2, %v139_v13 }
  0x29   :  { %v213_v18 = vpack.c.bf16 %v162_v16, %v161_v15  ;;  %v156_v19 = vmul.f32 0.2, %v140_v14 }
  0x2a   :  { %v163_v20 = vsel %vm147_vm6, %v139_v13, %v155_v17 }
  0x2b   :  { %199 = vst [vmem:[%s300_s4 + $0x10] sm:$0xff] %v213_v18  ;;  %v164_v21 = vsel %vm148_vm7, %v140_v14, %v156_v19 }
  0x2c   :  { %v214_v22 = vpack.c.bf16 %v164_v21, %v163_v20 }
  0x2e   :  { %200 = vst [vmem:[%s300_s4 + $0x18] sm:$0xff] %v214_v22 }

// kernel: discriminator_forward.12
= control target key start
LH: loop header
LB: loop body
LE: loop exit
PB: predicated region body
PF: predicated region fallthrough
CT: control target
= control target key end

     0   :  { %s6705_s12 = smov 0   ;;  %s6707_s13 = smov 0   ;;  %s8491_s0 = inlined_call_operand.vmem [shape: bf16[8,2048], index: 0, kind: input, shape index: {}]   ;;  %s8492_s1 = inlined_call_operand.vmem [shape: bf16[2048,1024], index: 1, kind: input, shape index: {}]   ;;  %s8493_s2 = inlined_call_operand.vmem [shape: f32[1,1024], index: 2, kind: input, shape index: {}]   ;;  %s8494_s3 = inlined_call_operand.vmem [shape: f32[8,1024], index: 3, kind: output, shape index: {}]  }
   0x1   :  { %s6709_s14 = smov 0   ;;  %s6711_s15 = smov 0  }
   0x2   :  { %s6713_s16 = smov 0  }
   0x3 LB: > { %s28_s17 = sadd.s32 1, %s6679_s15  ;;  %p76_p1 = scmp.ne.s32.totalorder %s6671_s13, %s6667_s12  ;;  %s6683_s16 = sphi %s6713_s16, %s13_s16   ;;  %s6679_s15 = sphi %s6711_s15, %s8498_s15   ;;  %s6675_s14 = sphi %s6709_s14, %s8497_s14   ;;  %s6671_s13 = sphi %s6707_s13, %s8496_s13   ;;  %s6667_s12 = sphi %s6705_s12, %s8495_s12  }
   0x4   : > { %p30_p0 = scmp.ge.s32.totalorder %s28_s17, 2  ;;  %p77_p2 = scmp.eq.s32.totalorder %s6683_s16, 0 }
   0x5   : > { %s69_s19 = sadd.s32 1, %s6671_s13  ;;  %p5281_p5 = scmp.ge.s32.totalorder %s6683_s16, 2 }
   0x6   : > { %s8500_s17 = smov (%p30_p0, %s28_s17), 0  ;;  %p78_p3 = por %p77_p2, %p76_p1 }
   0x7   : > { %s65_s18 = ssub.s32 %s6679_s15, %s8500_s17  ;;  %169 = sbr.rel (%p5281_p5) target bundleno = 274 (0x112), region = 20 }
   0x8   : > { %p67_p4 = scmp.eq.s32.totalorder %s65_s18, 0 }
   0xa   : > { %s6740_s20 = scalar_select %p67_p4, %s6671_s13, %s69_s19  }
   0xe   : > { %172 = sbr.rel (!%p78_p3) target bundleno = 274 (0x112), region = 24  ;;  %s174_s21 = sand.u32 (%p78_p3), 1, %s6671_s13  }
   0xf   : > { %s5820_s22 = sshll.u32 (%p78_p3), %s6679_s15, 4  ;;  %s5282_s23 = sshll.u32 (%p78_p3), %s174_s21, 12 }
  0x10   : > { %s6748_s26 = scalar_lea.vmem (%p78_p3), %s8492_s1, %s5820_s22  ;;  %s6753_s27 = scalar_lea.vmem (%p78_p3), [#allocation3], %s5282_s23 }
  0x11   : > { %v195_v0 = vld [vmem:[%s6748_s26] sm:$0xff] (%p78_p3)  ;;  %v197_v1 = vld [vmem:[%s6748_s26 + $0x8] sm:$0xff] (%p78_p3) }
  0x12   : > { %v199_v2 = vld [vmem:[%s6748_s26 + $0x20] sm:$0xff] (%p78_p3)  ;;  %196 = vst [vmem:[%s6753_s27] sm:$0xff] (%p78_p3), %v195_v0  ;;  %198 = vst [vmem:[%s6753_s27 + $0x8] sm:$0xff] (%p78_p3), %v197_v1  ;;  %v201_v3 = vld [vmem:[%s6748_s26 + $0x28] sm:$0xff] (%p78_p3) }
  0x13   : > { %200 = vst [vmem:[%s6753_s27 + $0x10] sm:$0xff] (%p78_p3), %v199_v2  ;;  %v203_v4 = vld [vmem:[%s6748_s26 + $0x40] sm:$0xff] (%p78_p3)  ;;  %v205_v5 = vld [vmem:[%s6748_s26 + $0x48] sm:$0xff] (%p78_p3)  ;;  %202 = vst [vmem:[%s6753_s27 + $0x18] sm:$0xff] (%p78_p3), %v201_v3 }
  0x14   : > { %204 = vst [vmem:[%s6753_s27 + $0x20] sm:$0xff] (%p78_p3), %v203_v4  ;;  %206 = vst [vmem:[%s6753_s27 + $0x28] sm:$0xff] (%p78_p3), %v205_v5  ;;  %v207_v6 = vld [vmem:[%s6748_s26 + $0x60] sm:$0xff] (%p78_p3)  ;;  %v209_v7 = vld [vmem:[%s6748_s26 + $0x68] sm:$0xff] (%p78_p3) }
  0x15   : > { %v211_v8 = vld [vmem:[%s6748_s26 + $0x80] sm:$0xff]  ;;  %208 = vst [vmem:[%s6753_s27 + $0x30] sm:$0xff] %v207_v6  ;;  %210 = vst [vmem:[%s6753_s27 + $0x38] sm:$0xff] %v209_v7  ;;  %v213_v9 = vld [vmem:[%s6748_s26 + $0x88] sm:$0xff] }
  0x16   : > { %212 = vst [vmem:[%s6753_s27 + $0x40] sm:$0xff] %v211_v8  ;;  %v215_v10 = vld [vmem:[%s6748_s26 + $0xa0] sm:$0xff]  ;;  %v217_v11 = vld [vmem:[%s6748_s26 + $0xa8] sm:$0xff]  ;;  %214 = vst [vmem:[%s6753_s27 + $0x48] sm:$0xff] %v213_v9 }
  0x17   : > { %216 = vst [vmem:[%s6753_s27 + $0x50] sm:$0xff] %v215_v10  ;;  %218 = vst [vmem:[%s6753_s27 + $0x58] sm:$0xff] %v217_v11  ;;  %v219_v12 = vld [vmem:[%s6748_s26 + $0xc0] sm:$0xff]  ;;  %v221_v13 = vld [vmem:[%s6748_s26 + $0xc8] sm:$0xff] }
  0x18   : > { %v223_v14 = vld [vmem:[%s6748_s26 + $0xe0] sm:$0xff]  ;;  %220 = vst [vmem:[%s6753_s27 + $0x60] sm:$0xff] %v219_v12  ;;  %222 = vst [vmem:[%s6753_s27 + $0x68] sm:$0xff] %v221_v13  ;;  %v225_v15 = vld [vmem:[%s6748_s26 + $0xe8] sm:$0xff] }
  0x19   : > { %224 = vst [vmem:[%s6753_s27 + $0x70] sm:$0xff] %v223_v14  ;;  %v227_v16 = vld [vmem:[%s6748_s26 + $0x100] sm:$0xff]  ;;  %v229_v17 = vld [vmem:[%s6748_s26 + $0x108] sm:$0xff]  ;;  %226 = vst [vmem:[%s6753_s27 + $0x78] sm:$0xff] %v225_v15 }
  0x1a   : > { %228 = vst [vmem:[%s6753_s27 + $0x80] sm:$0xff] %v227_v16  ;;  %230 = vst [vmem:[%s6753_s27 + $0x88] sm:$0xff] %v229_v17  ;;  %v231_v18 = vld [vmem:[%s6748_s26 + $0x120] sm:$0xff]  ;;  %v233_v19 = vld [vmem:[%s6748_s26 + $0x128] sm:$0xff] }
  0x1b   : > { %v235_v20 = vld [vmem:[%s6748_s26 + $0x140] sm:$0xff]  ;;  %232 = vst [vmem:[%s6753_s27 + $0x90] sm:$0xff] %v231_v18  ;;  %234 = vst [vmem:[%s6753_s27 + $0x98] sm:$0xff] %v233_v19  ;;  %v237_v21 = vld [vmem:[%s6748_s26 + $0x148] sm:$0xff] }
  0x1c   : > { %236 = vst [vmem:[%s6753_s27 + $0xa0] sm:$0xff] %v235_v20  ;;  %v239_v22 = vld [vmem:[%s6748_s26 + $0x160] sm:$0xff]  ;;  %v241_v23 = vld [vmem:[%s6748_s26 + $0x168] sm:$0xff]  ;;  %238 = vst [vmem:[%s6753_s27 + $0xa8] sm:$0xff] %v237_v21 }
  0x1d   : > { %240 = vst [vmem:[%s6753_s27 + $0xb0] sm:$0xff] %v239_v22  ;;  %242 = vst [vmem:[%s6753_s27 + $0xb8] sm:$0xff] %v241_v23  ;;  %v243_v24 = vld [vmem:[%s6748_s26 + $0x180] sm:$0xff]  ;;  %v245_v25 = vld [vmem:[%s6748_s26 + $0x188] sm:$0xff] }
  0x1e   : > { %v247_v26 = vld [vmem:[%s6748_s26 + $0x1a0] sm:$0xff]  ;;  %244 = vst [vmem:[%s6753_s27 + $0xc0] sm:$0xff] %v243_v24  ;;  %246 = vst [vmem:[%s6753_s27 + $0xc8] sm:$0xff] %v245_v25  ;;  %v249_v27 = vld [vmem:[%s6748_s26 + $0x1a8] sm:$0xff] }
  0x1f   : > { %248 = vst [vmem:[%s6753_s27 + $0xd0] sm:$0xff] %v247_v26  ;;  %v251_v28 = vld [vmem:[%s6748_s26 + $0x1c0] sm:$0xff]  ;;  %v253_v29 = vld [vmem:[%s6748_s26 + $0x1c8] sm:$0xff]  ;;  %250 = vst [vmem:[%s6753_s27 + $0xd8] sm:$0xff] %v249_v27 }
  0x20   : > { %252 = vst [vmem:[%s6753_s27 + $0xe0] sm:$0xff] %v251_v28  ;;  %254 = vst [vmem:[%s6753_s27 + $0xe8] sm:$0xff] %v253_v29  ;;  %v255_v30 = vld [vmem:[%s6748_s26 + $0x1e0] sm:$0xff]  ;;  %v257_v31 = vld [vmem:[%s6748_s26 + $0x1e8] sm:$0xff] }
  0x21   : > { %v259_v32 = vld [vmem:[%s6748_s26 + $0x200] sm:$0xff]  ;;  %256 = vst [vmem:[%s6753_s27 + $0xf0] sm:$0xff] %v255_v30  ;;  %258 = vst [vmem:[%s6753_s27 + $0xf8] sm:$0xff] %v257_v31  ;;  %v261_v33 = vld [vmem:[%s6748_s26 + $0x208] sm:$0xff] }
  0x22   : > { %260 = vst [vmem:[%s6753_s27 + $0x100] sm:$0xff] %v259_v32  ;;  %v263_v34 = vld [vmem:[%s6748_s26 + $0x220] sm:$0xff]  ;;  %v265_v35 = vld [vmem:[%s6748_s26 + $0x228] sm:$0xff]  ;;  %262 = vst [vmem:[%s6753_s27 + $0x108] sm:$0xff] %v261_v33 }
  0x23   : > { %264 = vst [vmem:[%s6753_s27 + $0x110] sm:$0xff] %v263_v34  ;;  %266 = vst [vmem:[%s6753_s27 + $0x118] sm:$0xff] %v265_v35  ;;  %v267_v36 = vld [vmem:[%s6748_s26 + $0x240] sm:$0xff]  ;;  %v269_v37 = vld [vmem:[%s6748_s26 + $0x248] sm:$0xff] }
  0x24   : > { %v271_v38 = vld [vmem:[%s6748_s26 + $0x260] sm:$0xff]  ;;  %268 = vst [vmem:[%s6753_s27 + $0x120] sm:$0xff] %v267_v36  ;;  %270 = vst [vmem:[%s6753_s27 + $0x128] sm:$0xff] %v269_v37  ;;  %v273_v39 = vld [vmem:[%s6748_s26 + $0x268] sm:$0xff] }
  0x25   : > { %272 = vst [vmem:[%s6753_s27 + $0x130] sm:$0xff] %v271_v38  ;;  %v275_v40 = vld [vmem:[%s6748_s26 + $0x280] sm:$0xff]  ;;  %v277_v41 = vld [vmem:[%s6748_s26 + $0x288] sm:$0xff]  ;;  %274 = vst [vmem:[%s6753_s27 + $0x138] sm:$0xff] %v273_v39 }
  0x26   : > { %276 = vst [vmem:[%s6753_s27 + $0x140] sm:$0xff] %v275_v40  ;;  %278 = vst [vmem:[%s6753_s27 + $0x148] sm:$0xff] %v277_v41  ;;  %v279_v42 = vld [vmem:[%s6748_s26 + $0x2a0] sm:$0xff]  ;;  %v281_v43 = vld [vmem:[%s6748_s26 + $0x2a8] sm:$0xff] }
  0x27   : > { %v283_v44 = vld [vmem:[%s6748_s26 + $0x2c0] sm:$0xff]  ;;  %280 = vst [vmem:[%s6753_s27 + $0x150] sm:$0xff] %v279_v42  ;;  %282 = vst [vmem:[%s6753_s27 + $0x158] sm:$0xff] %v281_v43  ;;  %v285_v45 = vld [vmem:[%s6748_s26 + $0x2c8] sm:$0xff] }
  0x28   : > { %284 = vst [vmem:[%s6753_s27 + $0x160] sm:$0xff] %v283_v44  ;;  %v287_v46 = vld [vmem:[%s6748_s26 + $0x2e0] sm:$0xff]  ;;  %v289_v47 = vld [vmem:[%s6748_s26 + $0x2e8] sm:$0xff]  ;;  %286 = vst [vmem:[%s6753_s27 + $0x168] sm:$0xff] %v285_v45 }
  0x29   : > { %288 = vst [vmem:[%s6753_s27 + $0x170] sm:$0xff] %v287_v46  ;;  %290 = vst [vmem:[%s6753_s27 + $0x178] sm:$0xff] %v289_v47  ;;  %v291_v48 = vld [vmem:[%s6748_s26 + $0x300] sm:$0xff]  ;;  %v293_v49 = vld [vmem:[%s6748_s26 + $0x308] sm:$0xff] }
  0x2a   : > { %v295_v50 = vld [vmem:[%s6748_s26 + $0x320] sm:$0xff]  ;;  %292 = vst [vmem:[%s6753_s27 + $0x180] sm:$0xff] %v291_v48  ;;  %294 = vst [vmem:[%s6753_s27 + $0x188] sm:$0xff] %v293_v49  ;;  %v297_v51 = vld [vmem:[%s6748_s26 + $0x328] sm:$0xff] }
  0x2b   : > { %296 = vst [vmem:[%s6753_s27 + $0x190] sm:$0xff] %v295_v50  ;;  %v299_v52 = vld [vmem:[%s6748_s26 + $0x340] sm:$0xff]  ;;  %v301_v53 = vld [vmem:[%s6748_s26 + $0x348] sm:$0xff]  ;;  %298 = vst [vmem:[%s6753_s27 + $0x198] sm:$0xff] %v297_v51 }
  0x2c   : > { %300 = vst [vmem:[%s6753_s27 + $0x1a0] sm:$0xff] %v299_v52  ;;  %302 = vst [vmem:[%s6753_s27 + $0x1a8] sm:$0xff] %v301_v53  ;;  %v303_v54 = vld [vmem:[%s6748_s26 + $0x360] sm:$0xff]  ;;  %v305_v55 = vld [vmem:[%s6748_s26 + $0x368] sm:$0xff] }
  0x2d   : > { %v307_v56 = vld [vmem:[%s6748_s26 + $0x380] sm:$0xff]  ;;  %304 = vst [vmem:[%s6753_s27 + $0x1b0] sm:$0xff] %v303_v54  ;;  %306 = vst [vmem:[%s6753_s27 + $0x1b8] sm:$0xff] %v305_v55  ;;  %v309_v57 = vld [vmem:[%s6748_s26 + $0x388] sm:$0xff] }
  0x2e   : > { %308 = vst [vmem:[%s6753_s27 + $0x1c0] sm:$0xff] %v307_v56  ;;  %v311_v58 = vld [vmem:[%s6748_s26 + $0x3a0] sm:$0xff]  ;;  %v313_v59 = vld [vmem:[%s6748_s26 + $0x3a8] sm:$0xff]  ;;  %310 = vst [vmem:[%s6753_s27 + $0x1c8] sm:$0xff] %v309_v57 }
  0x2f   : > { %312 = vst [vmem:[%s6753_s27 + $0x1d0] sm:$0xff] %v311_v58  ;;  %314 = vst [vmem:[%s6753_s27 + $0x1d8] sm:$0xff] %v313_v59  ;;  %v315_v60 = vld [vmem:[%s6748_s26 + $0x3c0] sm:$0xff]  ;;  %v317_v61 = vld [vmem:[%s6748_s26 + $0x3c8] sm:$0xff] }
  0x30   : > { %v319_v62 = vld [vmem:[%s6748_s26 + $0x3e0] sm:$0xff]  ;;  %316 = vst [vmem:[%s6753_s27 + $0x1e0] sm:$0xff] %v315_v60  ;;  %318 = vst [vmem:[%s6753_s27 + $0x1e8] sm:$0xff] %v317_v61  ;;  %v321_v63 = vld [vmem:[%s6748_s26 + $0x3e8] sm:$0xff] }
  0x31   : > { %320 = vst [vmem:[%s6753_s27 + $0x1f0] sm:$0xff] %v319_v62  ;;  %v323_v0 = vld [vmem:[%s6748_s26 + $0x400] sm:$0xff]  ;;  %v325_v1 = vld [vmem:[%s6748_s26 + $0x408] sm:$0xff]  ;;  %322 = vst [vmem:[%s6753_s27 + $0x1f8] sm:$0xff] %v321_v63 }
  0x32   : > { %324 = vst [vmem:[%s6753_s27 + $0x200] sm:$0xff] %v323_v0  ;;  %326 = vst [vmem:[%s6753_s27 + $0x208] sm:$0xff] %v325_v1  ;;  %v327_v2 = vld [vmem:[%s6748_s26 + $0x420] sm:$0xff]  ;;  %v329_v3 = vld [vmem:[%s6748_s26 + $0x428] sm:$0xff] }
  0x33   : > { %v331_v4 = vld [vmem:[%s6748_s26 + $0x440] sm:$0xff]  ;;  %328 = vst [vmem:[%s6753_s27 + $0x210] sm:$0xff] %v327_v2  ;;  %330 = vst [vmem:[%s6753_s27 + $0x218] sm:$0xff] %v329_v3  ;;  %v333_v5 = vld [vmem:[%s6748_s26 + $0x448] sm:$0xff] }
  0x34   : > { %332 = vst [vmem:[%s6753_s27 + $0x220] sm:$0xff] %v331_v4  ;;  %v335_v6 = vld [vmem:[%s6748_s26 + $0x460] sm:$0xff]  ;;  %v337_v7 = vld [vmem:[%s6748_s26 + $0x468] sm:$0xff]  ;;  %334 = vst [vmem:[%s6753_s27 + $0x228] sm:$0xff] %v333_v5 }
  0x35   : > { %336 = vst [vmem:[%s6753_s27 + $0x230] sm:$0xff] %v335_v6  ;;  %338 = vst [vmem:[%s6753_s27 + $0x238] sm:$0xff] %v337_v7  ;;  %v339_v8 = vld [vmem:[%s6748_s26 + $0x480] sm:$0xff]  ;;  %v341_v9 = vld [vmem:[%s6748_s26 + $0x488] sm:$0xff] }
  0x36   : > { %v343_v10 = vld [vmem:[%s6748_s26 + $0x4a0] sm:$0xff]  ;;  %340 = vst [vmem:[%s6753_s27 + $0x240] sm:$0xff] %v339_v8  ;;  %342 = vst [vmem:[%s6753_s27 + $0x248] sm:$0xff] %v341_v9  ;;  %v345_v11 = vld [vmem:[%s6748_s26 + $0x4a8] sm:$0xff] }
  0x37   : > { %344 = vst [vmem:[%s6753_s27 + $0x250] sm:$0xff] %v343_v10  ;;  %v347_v12 = vld [vmem:[%s6748_s26 + $0x4c0] sm:$0xff]  ;;  %v349_v13 = vld [vmem:[%s6748_s26 + $0x4c8] sm:$0xff]  ;;  %346 = vst [vmem:[%s6753_s27 + $0x258] sm:$0xff] %v345_v11 }
  0x38   : > { %348 = vst [vmem:[%s6753_s27 + $0x260] sm:$0xff] %v347_v12  ;;  %350 = vst [vmem:[%s6753_s27 + $0x268] sm:$0xff] %v349_v13  ;;  %v351_v14 = vld [vmem:[%s6748_s26 + $0x4e0] sm:$0xff]  ;;  %v353_v15 = vld [vmem:[%s6748_s26 + $0x4e8] sm:$0xff] }
  0x39   : > { %v355_v16 = vld [vmem:[%s6748_s26 + $0x500] sm:$0xff]  ;;  %352 = vst [vmem:[%s6753_s27 + $0x270] sm:$0xff] %v351_v14  ;;  %354 = vst [vmem:[%s6753_s27 + $0x278] sm:$0xff] %v353_v15  ;;  %v357_v17 = vld [vmem:[%s6748_s26 + $0x508] sm:$0xff] }
  0x3a   : > { %356 = vst [vmem:[%s6753_s27 + $0x280] sm:$0xff] %v355_v16  ;;  %v359_v18 = vld [vmem:[%s6748_s26 + $0x520] sm:$0xff]  ;;  %v361_v19 = vld [vmem:[%s6748_s26 + $0x528] sm:$0xff]  ;;  %358 = vst [vmem:[%s6753_s27 + $0x288] sm:$0xff] %v357_v17 }
  0x3b   : > { %360 = vst [vmem:[%s6753_s27 + $0x290] sm:$0xff] %v359_v18  ;;  %362 = vst [vmem:[%s6753_s27 + $0x298] sm:$0xff] %v361_v19  ;;  %v363_v20 = vld [vmem:[%s6748_s26 + $0x540] sm:$0xff]  ;;  %v365_v21 = vld [vmem:[%s6748_s26 + $0x548] sm:$0xff] }
  0x3c   : > { %v367_v22 = vld [vmem:[%s6748_s26 + $0x560] sm:$0xff]  ;;  %364 = vst [vmem:[%s6753_s27 + $0x2a0] sm:$0xff] %v363_v20  ;;  %366 = vst [vmem:[%s6753_s27 + $0x2a8] sm:$0xff] %v365_v21  ;;  %v369_v23 = vld [vmem:[%s6748_s26 + $0x568] sm:$0xff] }
  0x3d   : > { %368 = vst [vmem:[%s6753_s27 + $0x2b0] sm:$0xff] %v367_v22  ;;  %v371_v24 = vld [vmem:[%s6748_s26 + $0x580] sm:$0xff]  ;;  %v373_v25 = vld [vmem:[%s6748_s26 + $0x588] sm:$0xff]  ;;  %370 = vst [vmem:[%s6753_s27 + $0x2b8] sm:$0xff] %v369_v23 }
  0x3e   : > { %372 = vst [vmem:[%s6753_s27 + $0x2c0] sm:$0xff] %v371_v24  ;;  %374 = vst [vmem:[%s6753_s27 + $0x2c8] sm:$0xff] %v373_v25  ;;  %v375_v26 = vld [vmem:[%s6748_s26 + $0x5a0] sm:$0xff]  ;;  %v377_v27 = vld [vmem:[%s6748_s26 + $0x5a8] sm:$0xff] }
  0x3f   : > { %v379_v28 = vld [vmem:[%s6748_s26 + $0x5c0] sm:$0xff]  ;;  %376 = vst [vmem:[%s6753_s27 + $0x2d0] sm:$0xff] %v375_v26  ;;  %378 = vst [vmem:[%s6753_s27 + $0x2d8] sm:$0xff] %v377_v27  ;;  %v381_v29 = vld [vmem:[%s6748_s26 + $0x5c8] sm:$0xff] }
  0x40   : > { %380 = vst [vmem:[%s6753_s27 + $0x2e0] sm:$0xff] %v379_v28  ;;  %v383_v30 = vld [vmem:[%s6748_s26 + $0x5e0] sm:$0xff]  ;;  %v385_v31 = vld [vmem:[%s6748_s26 + $0x5e8] sm:$0xff]  ;;  %382 = vst [vmem:[%s6753_s27 + $0x2e8] sm:$0xff] %v381_v29 }
  0x41   : > { %384 = vst [vmem:[%s6753_s27 + $0x2f0] sm:$0xff] %v383_v30  ;;  %386 = vst [vmem:[%s6753_s27 + $0x2f8] sm:$0xff] %v385_v31  ;;  %v387_v32 = vld [vmem:[%s6748_s26 + $0x600] sm:$0xff]  ;;  %v389_v33 = vld [vmem:[%s6748_s26 + $0x608] sm:$0xff] }
  0x42   : > { %v391_v34 = vld [vmem:[%s6748_s26 + $0x620] sm:$0xff]  ;;  %388 = vst [vmem:[%s6753_s27 + $0x300] sm:$0xff] %v387_v32  ;;  %390 = vst [vmem:[%s6753_s27 + $0x308] sm:$0xff] %v389_v33  ;;  %v393_v35 = vld [vmem:[%s6748_s26 + $0x628] sm:$0xff] }
  0x43   : > { %392 = vst [vmem:[%s6753_s27 + $0x310] sm:$0xff] %v391_v34  ;;  %v395_v36 = vld [vmem:[%s6748_s26 + $0x640] sm:$0xff]  ;;  %v397_v37 = vld [vmem:[%s6748_s26 + $0x648] sm:$0xff]  ;;  %394 = vst [vmem:[%s6753_s27 + $0x318] sm:$0xff] %v393_v35 }
  0x44   : > { %396 = vst [vmem:[%s6753_s27 + $0x320] sm:$0xff] %v395_v36  ;;  %398 = vst [vmem:[%s6753_s27 + $0x328] sm:$0xff] %v397_v37  ;;  %v399_v38 = vld [vmem:[%s6748_s26 + $0x660] sm:$0xff]  ;;  %v401_v39 = vld [vmem:[%s6748_s26 + $0x668] sm:$0xff] }
  0x45   : > { %v403_v40 = vld [vmem:[%s6748_s26 + $0x680] sm:$0xff]  ;;  %400 = vst [vmem:[%s6753_s27 + $0x330] sm:$0xff] %v399_v38  ;;  %402 = vst [vmem:[%s6753_s27 + $0x338] sm:$0xff] %v401_v39  ;;  %v405_v41 = vld [vmem:[%s6748_s26 + $0x688] sm:$0xff] }
  0x46   : > { %404 = vst [vmem:[%s6753_s27 + $0x340] sm:$0xff] %v403_v40  ;;  %v407_v42 = vld [vmem:[%s6748_s26 + $0x6a0] sm:$0xff]  ;;  %v409_v43 = vld [vmem:[%s6748_s26 + $0x6a8] sm:$0xff]  ;;  %406 = vst [vmem:[%s6753_s27 + $0x348] sm:$0xff] %v405_v41 }
  0x47   : > { %408 = vst [vmem:[%s6753_s27 + $0x350] sm:$0xff] %v407_v42  ;;  %410 = vst [vmem:[%s6753_s27 + $0x358] sm:$0xff] %v409_v43  ;;  %v411_v44 = vld [vmem:[%s6748_s26 + $0x6c0] sm:$0xff]  ;;  %v413_v45 = vld [vmem:[%s6748_s26 + $0x6c8] sm:$0xff] }
  0x48   : > { %v415_v46 = vld [vmem:[%s6748_s26 + $0x6e0] sm:$0xff]  ;;  %412 = vst [vmem:[%s6753_s27 + $0x360] sm:$0xff] %v411_v44  ;;  %414 = vst [vmem:[%s6753_s27 + $0x368] sm:$0xff] %v413_v45  ;;  %v417_v47 = vld [vmem:[%s6748_s26 + $0x6e8] sm:$0xff] }
  0x49   : > { %416 = vst [vmem:[%s6753_s27 + $0x370] sm:$0xff] %v415_v46  ;;  %v419_v48 = vld [vmem:[%s6748_s26 + $0x700] sm:$0xff]  ;;  %v421_v49 = vld [vmem:[%s6748_s26 + $0x708] sm:$0xff]  ;;  %418 = vst [vmem:[%s6753_s27 + $0x378] sm:$0xff] %v417_v47 }
  0x4a   : > { %420 = vst [vmem:[%s6753_s27 + $0x380] sm:$0xff] %v419_v48  ;;  %422 = vst [vmem:[%s6753_s27 + $0x388] sm:$0xff] %v421_v49  ;;  %v423_v50 = vld [vmem:[%s6748_s26 + $0x720] sm:$0xff]  ;;  %v425_v51 = vld [vmem:[%s6748_s26 + $0x728] sm:$0xff] }
  0x4b   : > { %v427_v52 = vld [vmem:[%s6748_s26 + $0x740] sm:$0xff]  ;;  %424 = vst [vmem:[%s6753_s27 + $0x390] sm:$0xff] %v423_v50  ;;  %426 = vst [vmem:[%s6753_s27 + $0x398] sm:$0xff] %v425_v51  ;;  %v429_v53 = vld [vmem:[%s6748_s26 + $0x748] sm:$0xff] }
  0x4c   : > { %428 = vst [vmem:[%s6753_s27 + $0x3a0] sm:$0xff] %v427_v52  ;;  %v431_v54 = vld [vmem:[%s6748_s26 + $0x760] sm:$0xff]  ;;  %v433_v55 = vld [vmem:[%s6748_s26 + $0x768] sm:$0xff]  ;;  %430 = vst [vmem:[%s6753_s27 + $0x3a8] sm:$0xff] %v429_v53 }
  0x4d   : > { %432 = vst [vmem:[%s6753_s27 + $0x3b0] sm:$0xff] %v431_v54  ;;  %434 = vst [vmem:[%s6753_s27 + $0x3b8] sm:$0xff] %v433_v55  ;;  %v435_v56 = vld [vmem:[%s6748_s26 + $0x780] sm:$0xff]  ;;  %v437_v57 = vld [vmem:[%s6748_s26 + $0x788] sm:$0xff] }
  0x4e   : > { %v439_v58 = vld [vmem:[%s6748_s26 + $0x7a0] sm:$0xff]  ;;  %436 = vst [vmem:[%s6753_s27 + $0x3c0] sm:$0xff] %v435_v56  ;;  %438 = vst [vmem:[%s6753_s27 + $0x3c8] sm:$0xff] %v437_v57  ;;  %v441_v59 = vld [vmem:[%s6748_s26 + $0x7a8] sm:$0xff] }
  0x4f   : > { %440 = vst [vmem:[%s6753_s27 + $0x3d0] sm:$0xff] %v439_v58  ;;  %v443_v60 = vld [vmem:[%s6748_s26 + $0x7c0] sm:$0xff]  ;;  %v445_v61 = vld [vmem:[%s6748_s26 + $0x7c8] sm:$0xff]  ;;  %442 = vst [vmem:[%s6753_s27 + $0x3d8] sm:$0xff] %v441_v59 }
  0x50   : > { %444 = vst [vmem:[%s6753_s27 + $0x3e0] sm:$0xff] %v443_v60  ;;  %446 = vst [vmem:[%s6753_s27 + $0x3e8] sm:$0xff] %v445_v61  ;;  %v447_v62 = vld [vmem:[%s6748_s26 + $0x7e0] sm:$0xff]  ;;  %v449_v63 = vld [vmem:[%s6748_s26 + $0x7e8] sm:$0xff] }
  0x51   : > { %v451_v0 = vld [vmem:[%s6748_s26 + $0x800] sm:$0xff]  ;;  %448 = vst [vmem:[%s6753_s27 + $0x3f0] sm:$0xff] %v447_v62  ;;  %450 = vst [vmem:[%s6753_s27 + $0x3f8] sm:$0xff] %v449_v63  ;;  %v453_v1 = vld [vmem:[%s6748_s26 + $0x808] sm:$0xff] }
  0x52   : > { %452 = vst [vmem:[%s6753_s27 + $0x400] sm:$0xff] %v451_v0  ;;  %v455_v2 = vld [vmem:[%s6748_s26 + $0x820] sm:$0xff]  ;;  %v457_v3 = vld [vmem:[%s6748_s26 + $0x828] sm:$0xff]  ;;  %454 = vst [vmem:[%s6753_s27 + $0x408] sm:$0xff] %v453_v1 }
  0x53   : > { %456 = vst [vmem:[%s6753_s27 + $0x410] sm:$0xff] %v455_v2  ;;  %458 = vst [vmem:[%s6753_s27 + $0x418] sm:$0xff] %v457_v3  ;;  %v459_v4 = vld [vmem:[%s6748_s26 + $0x840] sm:$0xff]  ;;  %v461_v5 = vld [vmem:[%s6748_s26 + $0x848] sm:$0xff] }
  0x54   : > { %v463_v6 = vld [vmem:[%s6748_s26 + $0x860] sm:$0xff]  ;;  %460 = vst [vmem:[%s6753_s27 + $0x420] sm:$0xff] %v459_v4  ;;  %462 = vst [vmem:[%s6753_s27 + $0x428] sm:$0xff] %v461_v5  ;;  %v465_v7 = vld [vmem:[%s6748_s26 + $0x868] sm:$0xff] }
  0x55   : > { %464 = vst [vmem:[%s6753_s27 + $0x430] sm:$0xff] %v463_v6  ;;  %v467_v8 = vld [vmem:[%s6748_s26 + $0x880] sm:$0xff]  ;;  %v469_v9 = vld [vmem:[%s6748_s26 + $0x888] sm:$0xff]  ;;  %466 = vst [vmem:[%s6753_s27 + $0x438] sm:$0xff] %v465_v7 }
  0x56   : > { %468 = vst [vmem:[%s6753_s27 + $0x440] sm:$0xff] %v467_v8  ;;  %470 = vst [vmem:[%s6753_s27 + $0x448] sm:$0xff] %v469_v9  ;;  %v471_v10 = vld [vmem:[%s6748_s26 + $0x8a0] sm:$0xff]  ;;  %v473_v11 = vld [vmem:[%s6748_s26 + $0x8a8] sm:$0xff] }
  0x57   : > { %v475_v12 = vld [vmem:[%s6748_s26 + $0x8c0] sm:$0xff]  ;;  %472 = vst [vmem:[%s6753_s27 + $0x450] sm:$0xff] %v471_v10  ;;  %474 = vst [vmem:[%s6753_s27 + $0x458] sm:$0xff] %v473_v11  ;;  %v477_v13 = vld [vmem:[%s6748_s26 + $0x8c8] sm:$0xff] }
  0x58   : > { %476 = vst [vmem:[%s6753_s27 + $0x460] sm:$0xff] %v475_v12  ;;  %v479_v14 = vld [vmem:[%s6748_s26 + $0x8e0] sm:$0xff]  ;;  %v481_v15 = vld [vmem:[%s6748_s26 + $0x8e8] sm:$0xff]  ;;  %478 = vst [vmem:[%s6753_s27 + $0x468] sm:$0xff] %v477_v13 }
  0x59   : > { %480 = vst [vmem:[%s6753_s27 + $0x470] sm:$0xff] %v479_v14  ;;  %482 = vst [vmem:[%s6753_s27 + $0x478] sm:$0xff] %v481_v15  ;;  %v483_v16 = vld [vmem:[%s6748_s26 + $0x900] sm:$0xff]  ;;  %v485_v17 = vld [vmem:[%s6748_s26 + $0x908] sm:$0xff] }
  0x5a   : > { %v487_v18 = vld [vmem:[%s6748_s26 + $0x920] sm:$0xff]  ;;  %484 = vst [vmem:[%s6753_s27 + $0x480] sm:$0xff] %v483_v16  ;;  %486 = vst [vmem:[%s6753_s27 + $0x488] sm:$0xff] %v485_v17  ;;  %v489_v19 = vld [vmem:[%s6748_s26 + $0x928] sm:$0xff] }
  0x5b   : > { %488 = vst [vmem:[%s6753_s27 + $0x490] sm:$0xff] %v487_v18  ;;  %v491_v20 = vld [vmem:[%s6748_s26 + $0x940] sm:$0xff]  ;;  %v493_v21 = vld [vmem:[%s6748_s26 + $0x948] sm:$0xff]  ;;  %490 = vst [vmem:[%s6753_s27 + $0x498] sm:$0xff] %v489_v19 }
  0x5c   : > { %492 = vst [vmem:[%s6753_s27 + $0x4a0] sm:$0xff] %v491_v20  ;;  %494 = vst [vmem:[%s6753_s27 + $0x4a8] sm:$0xff] %v493_v21  ;;  %v495_v22 = vld [vmem:[%s6748_s26 + $0x960] sm:$0xff]  ;;  %v497_v23 = vld [vmem:[%s6748_s26 + $0x968] sm:$0xff] }
  0x5d   : > { %v499_v24 = vld [vmem:[%s6748_s26 + $0x980] sm:$0xff]  ;;  %496 = vst [vmem:[%s6753_s27 + $0x4b0] sm:$0xff] %v495_v22  ;;  %498 = vst [vmem:[%s6753_s27 + $0x4b8] sm:$0xff] %v497_v23  ;;  %v501_v25 = vld [vmem:[%s6748_s26 + $0x988] sm:$0xff] }
  0x5e   : > { %500 = vst [vmem:[%s6753_s27 + $0x4c0] sm:$0xff] %v499_v24  ;;  %v503_v26 = vld [vmem:[%s6748_s26 + $0x9a0] sm:$0xff]  ;;  %v505_v27 = vld [vmem:[%s6748_s26 + $0x9a8] sm:$0xff]  ;;  %502 = vst [vmem:[%s6753_s27 + $0x4c8] sm:$0xff] %v501_v25 }
  0x5f   : > { %504 = vst [vmem:[%s6753_s27 + $0x4d0] sm:$0xff] %v503_v26  ;;  %506 = vst [vmem:[%s6753_s27 + $0x4d8] sm:$0xff] %v505_v27  ;;  %v507_v28 = vld [vmem:[%s6748_s26 + $0x9c0] sm:$0xff]  ;;  %v509_v29 = vld [vmem:[%s6748_s26 + $0x9c8] sm:$0xff] }
  0x60   : > { %v511_v30 = vld [vmem:[%s6748_s26 + $0x9e0] sm:$0xff]  ;;  %508 = vst [vmem:[%s6753_s27 + $0x4e0] sm:$0xff] %v507_v28  ;;  %510 = vst [vmem:[%s6753_s27 + $0x4e8] sm:$0xff] %v509_v29  ;;  %v513_v31 = vld [vmem:[%s6748_s26 + $0x9e8] sm:$0xff] }
  0x61   : > { %512 = vst [vmem:[%s6753_s27 + $0x4f0] sm:$0xff] %v511_v30  ;;  %v515_v32 = vld [vmem:[%s6748_s26 + $0xa00] sm:$0xff]  ;;  %v517_v33 = vld [vmem:[%s6748_s26 + $0xa08] sm:$0xff]  ;;  %514 = vst [vmem:[%s6753_s27 + $0x4f8] sm:$0xff] %v513_v31 }
  0x62   : > { %516 = vst [vmem:[%s6753_s27 + $0x500] sm:$0xff] %v515_v32  ;;  %518 = vst [vmem:[%s6753_s27 + $0x508] sm:$0xff] %v517_v33  ;;  %v519_v34 = vld [vmem:[%s6748_s26 + $0xa20] sm:$0xff]  ;;  %v521_v35 = vld [vmem:[%s6748_s26 + $0xa28] sm:$0xff] }
  0x63   : > { %v523_v36 = vld [vmem:[%s6748_s26 + $0xa40] sm:$0xff]  ;;  %520 = vst [vmem:[%s6753_s27 + $0x510] sm:$0xff] %v519_v34  ;;  %522 = vst [vmem:[%s6753_s27 + $0x518] sm:$0xff] %v521_v35  ;;  %v525_v37 = vld [vmem:[%s6748_s26 + $0xa48] sm:$0xff] }
  0x64   : > { %524 = vst [vmem:[%s6753_s27 + $0x520] sm:$0xff] %v523_v36  ;;  %v527_v38 = vld [vmem:[%s6748_s26 + $0xa60] sm:$0xff]  ;;  %v529_v39 = vld [vmem:[%s6748_s26 + $0xa68] sm:$0xff]  ;;  %526 = vst [vmem:[%s6753_s27 + $0x528] sm:$0xff] %v525_v37 }
  0x65   : > { %528 = vst [vmem:[%s6753_s27 + $0x530] sm:$0xff] %v527_v38  ;;  %530 = vst [vmem:[%s6753_s27 + $0x538] sm:$0xff] %v529_v39  ;;  %v531_v40 = vld [vmem:[%s6748_s26 + $0xa80] sm:$0xff]  ;;  %v533_v41 = vld [vmem:[%s6748_s26 + $0xa88] sm:$0xff] }
  0x66   : > { %v535_v42 = vld [vmem:[%s6748_s26 + $0xaa0] sm:$0xff]  ;;  %532 = vst [vmem:[%s6753_s27 + $0x540] sm:$0xff] %v531_v40  ;;  %534 = vst [vmem:[%s6753_s27 + $0x548] sm:$0xff] %v533_v41  ;;  %v537_v43 = vld [vmem:[%s6748_s26 + $0xaa8] sm:$0xff] }
  0x67   : > { %536 = vst [vmem:[%s6753_s27 + $0x550] sm:$0xff] %v535_v42  ;;  %v539_v44 = vld [vmem:[%s6748_s26 + $0xac0] sm:$0xff]  ;;  %v541_v45 = vld [vmem:[%s6748_s26 + $0xac8] sm:$0xff]  ;;  %538 = vst [vmem:[%s6753_s27 + $0x558] sm:$0xff] %v537_v43 }
  0x68   : > { %540 = vst [vmem:[%s6753_s27 + $0x560] sm:$0xff] %v539_v44  ;;  %542 = vst [vmem:[%s6753_s27 + $0x568] sm:$0xff] %v541_v45  ;;  %v543_v46 = vld [vmem:[%s6748_s26 + $0xae0] sm:$0xff]  ;;  %v545_v47 = vld [vmem:[%s6748_s26 + $0xae8] sm:$0xff] }
  0x69   : > { %v547_v48 = vld [vmem:[%s6748_s26 + $0xb00] sm:$0xff]  ;;  %544 = vst [vmem:[%s6753_s27 + $0x570] sm:$0xff] %v543_v46  ;;  %546 = vst [vmem:[%s6753_s27 + $0x578] sm:$0xff] %v545_v47  ;;  %v549_v49 = vld [vmem:[%s6748_s26 + $0xb08] sm:$0xff] }
  0x6a   : > { %548 = vst [vmem:[%s6753_s27 + $0x580] sm:$0xff] %v547_v48  ;;  %v551_v50 = vld [vmem:[%s6748_s26 + $0xb20] sm:$0xff]  ;;  %v553_v51 = vld [vmem:[%s6748_s26 + $0xb28] sm:$0xff]  ;;  %550 = vst [vmem:[%s6753_s27 + $0x588] sm:$0xff] %v549_v49 }
  0x6b   : > { %552 = vst [vmem:[%s6753_s27 + $0x590] sm:$0xff] %v551_v50  ;;  %554 = vst [vmem:[%s6753_s27 + $0x598] sm:$0xff] %v553_v51  ;;  %v555_v52 = vld [vmem:[%s6748_s26 + $0xb40] sm:$0xff]  ;;  %v557_v53 = vld [vmem:[%s6748_s26 + $0xb48] sm:$0xff] }
  0x6c   : > { %v559_v54 = vld [vmem:[%s6748_s26 + $0xb60] sm:$0xff]  ;;  %556 = vst [vmem:[%s6753_s27 + $0x5a0] sm:$0xff] %v555_v52  ;;  %558 = vst [vmem:[%s6753_s27 + $0x5a8] sm:$0xff] %v557_v53  ;;  %v561_v55 = vld [vmem:[%s6748_s26 + $0xb68] sm:$0xff] }
  0x6d   : > { %560 = vst [vmem:[%s6753_s27 + $0x5b0] sm:$0xff] %v559_v54  ;;  %v563_v56 = vld [vmem:[%s6748_s26 + $0xb80] sm:$0xff]  ;;  %v565_v57 = vld [vmem:[%s6748_s26 + $0xb88] sm:$0xff]  ;;  %562 = vst [vmem:[%s6753_s27 + $0x5b8] sm:$0xff] %v561_v55 }
  0x6e   : > { %564 = vst [vmem:[%s6753_s27 + $0x5c0] sm:$0xff] %v563_v56  ;;  %566 = vst [vmem:[%s6753_s27 + $0x5c8] sm:$0xff] %v565_v57  ;;  %v567_v58 = vld [vmem:[%s6748_s26 + $0xba0] sm:$0xff]  ;;  %v569_v59 = vld [vmem:[%s6748_s26 + $0xba8] sm:$0xff] }
  0x6f   : > { %v571_v60 = vld [vmem:[%s6748_s26 + $0xbc0] sm:$0xff]  ;;  %568 = vst [vmem:[%s6753_s27 + $0x5d0] sm:$0xff] %v567_v58  ;;  %570 = vst [vmem:[%s6753_s27 + $0x5d8] sm:$0xff] %v569_v59  ;;  %v573_v61 = vld [vmem:[%s6748_s26 + $0xbc8] sm:$0xff] }
  0x70   : > { %572 = vst [vmem:[%s6753_s27 + $0x5e0] sm:$0xff] %v571_v60  ;;  %v575_v62 = vld [vmem:[%s6748_s26 + $0xbe0] sm:$0xff]  ;;  %v577_v63 = vld [vmem:[%s6748_s26 + $0xbe8] sm:$0xff]  ;;  %574 = vst [vmem:[%s6753_s27 + $0x5e8] sm:$0xff] %v573_v61 }
  0x71   : > { %576 = vst [vmem:[%s6753_s27 + $0x5f0] sm:$0xff] %v575_v62  ;;  %578 = vst [vmem:[%s6753_s27 + $0x5f8] sm:$0xff] %v577_v63  ;;  %v579_v0 = vld [vmem:[%s6748_s26 + $0xc00] sm:$0xff]  ;;  %v581_v1 = vld [vmem:[%s6748_s26 + $0xc08] sm:$0xff] }
  0x72   : > { %v583_v2 = vld [vmem:[%s6748_s26 + $0xc20] sm:$0xff]  ;;  %580 = vst [vmem:[%s6753_s27 + $0x600] sm:$0xff] %v579_v0  ;;  %582 = vst [vmem:[%s6753_s27 + $0x608] sm:$0xff] %v581_v1  ;;  %v585_v3 = vld [vmem:[%s6748_s26 + $0xc28] sm:$0xff] }
  0x73   : > { %584 = vst [vmem:[%s6753_s27 + $0x610] sm:$0xff] %v583_v2  ;;  %v587_v4 = vld [vmem:[%s6748_s26 + $0xc40] sm:$0xff]  ;;  %v589_v5 = vld [vmem:[%s6748_s26 + $0xc48] sm:$0xff]  ;;  %586 = vst [vmem:[%s6753_s27 + $0x618] sm:$0xff] %v585_v3 }
  0x74   : > { %588 = vst [vmem:[%s6753_s27 + $0x620] sm:$0xff] %v587_v4  ;;  %590 = vst [vmem:[%s6753_s27 + $0x628] sm:$0xff] %v589_v5  ;;  %v591_v6 = vld [vmem:[%s6748_s26 + $0xc60] sm:$0xff]  ;;  %v593_v7 = vld [vmem:[%s6748_s26 + $0xc68] sm:$0xff] }
  0x75   : > { %v595_v8 = vld [vmem:[%s6748_s26 + $0xc80] sm:$0xff]  ;;  %592 = vst [vmem:[%s6753_s27 + $0x630] sm:$0xff] %v591_v6  ;;  %594 = vst [vmem:[%s6753_s27 + $0x638] sm:$0xff] %v593_v7  ;;  %v597_v9 = vld [vmem:[%s6748_s26 + $0xc88] sm:$0xff] }
  0x76   : > { %596 = vst [vmem:[%s6753_s27 + $0x640] sm:$0xff] %v595_v8  ;;  %v599_v10 = vld [vmem:[%s6748_s26 + $0xca0] sm:$0xff]  ;;  %v601_v11 = vld [vmem:[%s6748_s26 + $0xca8] sm:$0xff]  ;;  %598 = vst [vmem:[%s6753_s27 + $0x648] sm:$0xff] %v597_v9 }
  0x77   : > { %600 = vst [vmem:[%s6753_s27 + $0x650] sm:$0xff] %v599_v10  ;;  %602 = vst [vmem:[%s6753_s27 + $0x658] sm:$0xff] %v601_v11  ;;  %v603_v12 = vld [vmem:[%s6748_s26 + $0xcc0] sm:$0xff]  ;;  %v605_v13 = vld [vmem:[%s6748_s26 + $0xcc8] sm:$0xff] }
  0x78   : > { %v607_v14 = vld [vmem:[%s6748_s26 + $0xce0] sm:$0xff]  ;;  %604 = vst [vmem:[%s6753_s27 + $0x660] sm:$0xff] %v603_v12  ;;  %606 = vst [vmem:[%s6753_s27 + $0x668] sm:$0xff] %v605_v13  ;;  %v609_v15 = vld [vmem:[%s6748_s26 + $0xce8] sm:$0xff] }
  0x79   : > { %608 = vst [vmem:[%s6753_s27 + $0x670] sm:$0xff] %v607_v14  ;;  %v611_v16 = vld [vmem:[%s6748_s26 + $0xd00] sm:$0xff]  ;;  %v613_v17 = vld [vmem:[%s6748_s26 + $0xd08] sm:$0xff]  ;;  %610 = vst [vmem:[%s6753_s27 + $0x678] sm:$0xff] %v609_v15 }
  0x7a   : > { %612 = vst [vmem:[%s6753_s27 + $0x680] sm:$0xff] %v611_v16  ;;  %614 = vst [vmem:[%s6753_s27 + $0x688] sm:$0xff] %v613_v17  ;;  %v615_v18 = vld [vmem:[%s6748_s26 + $0xd20] sm:$0xff]  ;;  %v617_v19 = vld [vmem:[%s6748_s26 + $0xd28] sm:$0xff] }
  0x7b   : > { %v619_v20 = vld [vmem:[%s6748_s26 + $0xd40] sm:$0xff]  ;;  %616 = vst [vmem:[%s6753_s27 + $0x690] sm:$0xff] %v615_v18  ;;  %618 = vst [vmem:[%s6753_s27 + $0x698] sm:$0xff] %v617_v19  ;;  %v621_v21 = vld [vmem:[%s6748_s26 + $0xd48] sm:$0xff] }
  0x7c   : > { %620 = vst [vmem:[%s6753_s27 + $0x6a0] sm:$0xff] %v619_v20  ;;  %v623_v22 = vld [vmem:[%s6748_s26 + $0xd60] sm:$0xff]  ;;  %v625_v23 = vld [vmem:[%s6748_s26 + $0xd68] sm:$0xff]  ;;  %622 = vst [vmem:[%s6753_s27 + $0x6a8] sm:$0xff] %v621_v21 }
  0x7d   : > { %624 = vst [vmem:[%s6753_s27 + $0x6b0] sm:$0xff] %v623_v22  ;;  %626 = vst [vmem:[%s6753_s27 + $0x6b8] sm:$0xff] %v625_v23  ;;  %v627_v24 = vld [vmem:[%s6748_s26 + $0xd80] sm:$0xff]  ;;  %v629_v25 = vld [vmem:[%s6748_s26 + $0xd88] sm:$0xff] }
  0x7e   : > { %v631_v26 = vld [vmem:[%s6748_s26 + $0xda0] sm:$0xff]  ;;  %628 = vst [vmem:[%s6753_s27 + $0x6c0] sm:$0xff] %v627_v24  ;;  %630 = vst [vmem:[%s6753_s27 + $0x6c8] sm:$0xff] %v629_v25  ;;  %v633_v27 = vld [vmem:[%s6748_s26 + $0xda8] sm:$0xff] }
  0x7f   : > { %632 = vst [vmem:[%s6753_s27 + $0x6d0] sm:$0xff] %v631_v26  ;;  %v635_v28 = vld [vmem:[%s6748_s26 + $0xdc0] sm:$0xff]  ;;  %v637_v29 = vld [vmem:[%s6748_s26 + $0xdc8] sm:$0xff]  ;;  %634 = vst [vmem:[%s6753_s27 + $0x6d8] sm:$0xff] %v633_v27 }
  0x80   : > { %636 = vst [vmem:[%s6753_s27 + $0x6e0] sm:$0xff] %v635_v28  ;;  %638 = vst [vmem:[%s6753_s27 + $0x6e8] sm:$0xff] %v637_v29  ;;  %v639_v30 = vld [vmem:[%s6748_s26 + $0xde0] sm:$0xff]  ;;  %v641_v31 = vld [vmem:[%s6748_s26 + $0xde8] sm:$0xff] }
  0x81   : > { %v643_v32 = vld [vmem:[%s6748_s26 + $0xe00] sm:$0xff]  ;;  %640 = vst [vmem:[%s6753_s27 + $0x6f0] sm:$0xff] %v639_v30  ;;  %642 = vst [vmem:[%s6753_s27 + $0x6f8] sm:$0xff] %v641_v31  ;;  %v645_v33 = vld [vmem:[%s6748_s26 + $0xe08] sm:$0xff] }
  0x82   : > { %644 = vst [vmem:[%s6753_s27 + $0x700] sm:$0xff] %v643_v32  ;;  %v647_v34 = vld [vmem:[%s6748_s26 + $0xe20] sm:$0xff]  ;;  %v649_v35 = vld [vmem:[%s6748_s26 + $0xe28] sm:$0xff]  ;;  %646 = vst [vmem:[%s6753_s27 + $0x708] sm:$0xff] %v645_v33 }
  0x83   : > { %648 = vst [vmem:[%s6753_s27 + $0x710] sm:$0xff] %v647_v34  ;;  %650 = vst [vmem:[%s6753_s27 + $0x718] sm:$0xff] %v649_v35  ;;  %v651_v36 = vld [vmem:[%s6748_s26 + $0xe40] sm:$0xff]  ;;  %v653_v37 = vld [vmem:[%s6748_s26 + $0xe48] sm:$0xff] }
  0x84   : > { %v655_v38 = vld [vmem:[%s6748_s26 + $0xe60] sm:$0xff]  ;;  %652 = vst [vmem:[%s6753_s27 + $0x720] sm:$0xff] %v651_v36  ;;  %654 = vst [vmem:[%s6753_s27 + $0x728] sm:$0xff] %v653_v37  ;;  %v657_v39 = vld [vmem:[%s6748_s26 + $0xe68] sm:$0xff] }
  0x85   : > { %656 = vst [vmem:[%s6753_s27 + $0x730] sm:$0xff] %v655_v38  ;;  %v659_v40 = vld [vmem:[%s6748_s26 + $0xe80] sm:$0xff]  ;;  %v661_v41 = vld [vmem:[%s6748_s26 + $0xe88] sm:$0xff]  ;;  %658 = vst [vmem:[%s6753_s27 + $0x738] sm:$0xff] %v657_v39 }
  0x86   : > { %660 = vst [vmem:[%s6753_s27 + $0x740] sm:$0xff] %v659_v40  ;;  %662 = vst [vmem:[%s6753_s27 + $0x748] sm:$0xff] %v661_v41  ;;  %v663_v42 = vld [vmem:[%s6748_s26 + $0xea0] sm:$0xff]  ;;  %v665_v43 = vld [vmem:[%s6748_s26 + $0xea8] sm:$0xff] }
  0x87   : > { %v667_v44 = vld [vmem:[%s6748_s26 + $0xec0] sm:$0xff]  ;;  %664 = vst [vmem:[%s6753_s27 + $0x750] sm:$0xff] %v663_v42  ;;  %666 = vst [vmem:[%s6753_s27 + $0x758] sm:$0xff] %v665_v43  ;;  %v669_v45 = vld [vmem:[%s6748_s26 + $0xec8] sm:$0xff] }
  0x88   : > { %668 = vst [vmem:[%s6753_s27 + $0x760] sm:$0xff] %v667_v44  ;;  %v671_v46 = vld [vmem:[%s6748_s26 + $0xee0] sm:$0xff]  ;;  %v673_v47 = vld [vmem:[%s6748_s26 + $0xee8] sm:$0xff]  ;;  %670 = vst [vmem:[%s6753_s27 + $0x768] sm:$0xff] %v669_v45 }
  0x89   : > { %672 = vst [vmem:[%s6753_s27 + $0x770] sm:$0xff] %v671_v46  ;;  %674 = vst [vmem:[%s6753_s27 + $0x778] sm:$0xff] %v673_v47  ;;  %v675_v48 = vld [vmem:[%s6748_s26 + $0xf00] sm:$0xff]  ;;  %v677_v49 = vld [vmem:[%s6748_s26 + $0xf08] sm:$0xff] }
  0x8a   : > { %v679_v50 = vld [vmem:[%s6748_s26 + $0xf20] sm:$0xff]  ;;  %676 = vst [vmem:[%s6753_s27 + $0x780] sm:$0xff] %v675_v48  ;;  %678 = vst [vmem:[%s6753_s27 + $0x788] sm:$0xff] %v677_v49  ;;  %v681_v51 = vld [vmem:[%s6748_s26 + $0xf28] sm:$0xff] }
  0x8b   : > { %680 = vst [vmem:[%s6753_s27 + $0x790] sm:$0xff] %v679_v50  ;;  %v683_v52 = vld [vmem:[%s6748_s26 + $0xf40] sm:$0xff]  ;;  %v685_v53 = vld [vmem:[%s6748_s26 + $0xf48] sm:$0xff]  ;;  %682 = vst [vmem:[%s6753_s27 + $0x798] sm:$0xff] %v681_v51 }
  0x8c   : > { %684 = vst [vmem:[%s6753_s27 + $0x7a0] sm:$0xff] %v683_v52  ;;  %686 = vst [vmem:[%s6753_s27 + $0x7a8] sm:$0xff] %v685_v53  ;;  %v687_v54 = vld [vmem:[%s6748_s26 + $0xf60] sm:$0xff]  ;;  %v689_v55 = vld [vmem:[%s6748_s26 + $0xf68] sm:$0xff] }
  0x8d   : > { %v691_v56 = vld [vmem:[%s6748_s26 + $0xf80] sm:$0xff]  ;;  %688 = vst [vmem:[%s6753_s27 + $0x7b0] sm:$0xff] %v687_v54  ;;  %690 = vst [vmem:[%s6753_s27 + $0x7b8] sm:$0xff] %v689_v55  ;;  %v693_v57 = vld [vmem:[%s6748_s26 + $0xf88] sm:$0xff] }
  0x8e   : > { %692 = vst [vmem:[%s6753_s27 + $0x7c0] sm:$0xff] %v691_v56  ;;  %v695_v58 = vld [vmem:[%s6748_s26 + $0xfa0] sm:$0xff]  ;;  %v697_v59 = vld [vmem:[%s6748_s26 + $0xfa8] sm:$0xff]  ;;  %694 = vst [vmem:[%s6753_s27 + $0x7c8] sm:$0xff] %v693_v57 }
  0x8f   : > { %696 = vst [vmem:[%s6753_s27 + $0x7d0] sm:$0xff] %v695_v58  ;;  %698 = vst [vmem:[%s6753_s27 + $0x7d8] sm:$0xff] %v697_v59  ;;  %v699_v60 = vld [vmem:[%s6748_s26 + $0xfc0] sm:$0xff]  ;;  %v701_v61 = vld [vmem:[%s6748_s26 + $0xfc8] sm:$0xff] }
  0x90   : > { %v703_v62 = vld [vmem:[%s6748_s26 + $0xfe0] sm:$0xff]  ;;  %700 = vst [vmem:[%s6753_s27 + $0x7e0] sm:$0xff] %v699_v60  ;;  %702 = vst [vmem:[%s6753_s27 + $0x7e8] sm:$0xff] %v701_v61  ;;  %v705_v63 = vld [vmem:[%s6748_s26 + $0xfe8] sm:$0xff] }
  0x91   : > { %704 = vst [vmem:[%s6753_s27 + $0x7f0] sm:$0xff] %v703_v62  ;;  %v707_v0 = vld [vmem:[%s6748_s26 + $0x1000] sm:$0xff]  ;;  %v709_v1 = vld [vmem:[%s6748_s26 + $0x1008] sm:$0xff]  ;;  %706 = vst [vmem:[%s6753_s27 + $0x7f8] sm:$0xff] %v705_v63 }
  0x92   : > { %708 = vst [vmem:[%s6753_s27 + $0x800] sm:$0xff] %v707_v0  ;;  %710 = vst [vmem:[%s6753_s27 + $0x808] sm:$0xff] %v709_v1  ;;  %v711_v2 = vld [vmem:[%s6748_s26 + $0x1020] sm:$0xff]  ;;  %v713_v3 = vld [vmem:[%s6748_s26 + $0x1028] sm:$0xff] }
  0x93   : > { %v715_v4 = vld [vmem:[%s6748_s26 + $0x1040] sm:$0xff]  ;;  %712 = vst [vmem:[%s6753_s27 + $0x810] sm:$0xff] %v711_v2  ;;  %714 = vst [vmem:[%s6753_s27 + $0x818] sm:$0xff] %v713_v3  ;;  %v717_v5 = vld [vmem:[%s6748_s26 + $0x1048] sm:$0xff] }
  0x94   : > { %716 = vst [vmem:[%s6753_s27 + $0x820] sm:$0xff] %v715_v4  ;;  %v719_v6 = vld [vmem:[%s6748_s26 + $0x1060] sm:$0xff]  ;;  %v721_v7 = vld [vmem:[%s6748_s26 + $0x1068] sm:$0xff]  ;;  %718 = vst [vmem:[%s6753_s27 + $0x828] sm:$0xff] %v717_v5 }
  0x95   : > { %720 = vst [vmem:[%s6753_s27 + $0x830] sm:$0xff] %v719_v6  ;;  %722 = vst [vmem:[%s6753_s27 + $0x838] sm:$0xff] %v721_v7  ;;  %v723_v8 = vld [vmem:[%s6748_s26 + $0x1080] sm:$0xff]  ;;  %v725_v9 = vld [vmem:[%s6748_s26 + $0x1088] sm:$0xff] }
  0x96   : > { %v727_v10 = vld [vmem:[%s6748_s26 + $0x10a0] sm:$0xff]  ;;  %724 = vst [vmem:[%s6753_s27 + $0x840] sm:$0xff] %v723_v8  ;;  %726 = vst [vmem:[%s6753_s27 + $0x848] sm:$0xff] %v725_v9  ;;  %v729_v11 = vld [vmem:[%s6748_s26 + $0x10a8] sm:$0xff] }
  0x97   : > { %728 = vst [vmem:[%s6753_s27 + $0x850] sm:$0xff] %v727_v10  ;;  %v731_v12 = vld [vmem:[%s6748_s26 + $0x10c0] sm:$0xff]  ;;  %v733_v13 = vld [vmem:[%s6748_s26 + $0x10c8] sm:$0xff]  ;;  %730 = vst [vmem:[%s6753_s27 + $0x858] sm:$0xff] %v729_v11 }
  0x98   : > { %732 = vst [vmem:[%s6753_s27 + $0x860] sm:$0xff] %v731_v12  ;;  %734 = vst [vmem:[%s6753_s27 + $0x868] sm:$0xff] %v733_v13  ;;  %v735_v14 = vld [vmem:[%s6748_s26 + $0x10e0] sm:$0xff]  ;;  %v737_v15 = vld [vmem:[%s6748_s26 + $0x10e8] sm:$0xff] }
  0x99   : > { %v739_v16 = vld [vmem:[%s6748_s26 + $0x1100] sm:$0xff]  ;;  %736 = vst [vmem:[%s6753_s27 + $0x870] sm:$0xff] %v735_v14  ;;  %738 = vst [vmem:[%s6753_s27 + $0x878] sm:$0xff] %v737_v15  ;;  %v741_v17 = vld [vmem:[%s6748_s26 + $0x1108] sm:$0xff] }
  0x9a   : > { %740 = vst [vmem:[%s6753_s27 + $0x880] sm:$0xff] %v739_v16  ;;  %v743_v18 = vld [vmem:[%s6748_s26 + $0x1120] sm:$0xff]  ;;  %v745_v19 = vld [vmem:[%s6748_s26 + $0x1128] sm:$0xff]  ;;  %742 = vst [vmem:[%s6753_s27 + $0x888] sm:$0xff] %v741_v17 }
  0x9b   : > { %744 = vst [vmem:[%s6753_s27 + $0x890] sm:$0xff] %v743_v18  ;;  %746 = vst [vmem:[%s6753_s27 + $0x898] sm:$0xff] %v745_v19  ;;  %v747_v20 = vld [vmem:[%s6748_s26 + $0x1140] sm:$0xff]  ;;  %v749_v21 = vld [vmem:[%s6748_s26 + $0x1148] sm:$0xff] }
  0x9c   : > { %v751_v22 = vld [vmem:[%s6748_s26 + $0x1160] sm:$0xff]  ;;  %748 = vst [vmem:[%s6753_s27 + $0x8a0] sm:$0xff] %v747_v20  ;;  %750 = vst [vmem:[%s6753_s27 + $0x8a8] sm:$0xff] %v749_v21  ;;  %v753_v23 = vld [vmem:[%s6748_s26 + $0x1168] sm:$0xff] }
  0x9d   : > { %752 = vst [vmem:[%s6753_s27 + $0x8b0] sm:$0xff] %v751_v22  ;;  %v755_v24 = vld [vmem:[%s6748_s26 + $0x1180] sm:$0xff]  ;;  %v757_v25 = vld [vmem:[%s6748_s26 + $0x1188] sm:$0xff]  ;;  %754 = vst [vmem:[%s6753_s27 + $0x8b8] sm:$0xff] %v753_v23 }
  0x9e   : > { %756 = vst [vmem:[%s6753_s27 + $0x8c0] sm:$0xff] %v755_v24  ;;  %758 = vst [vmem:[%s6753_s27 + $0x8c8] sm:$0xff] %v757_v25  ;;  %v759_v26 = vld [vmem:[%s6748_s26 + $0x11a0] sm:$0xff]  ;;  %v761_v27 = vld [vmem:[%s6748_s26 + $0x11a8] sm:$0xff] }
  0x9f   : > { %v763_v28 = vld [vmem:[%s6748_s26 + $0x11c0] sm:$0xff]  ;;  %760 = vst [vmem:[%s6753_s27 + $0x8d0] sm:$0xff] %v759_v26  ;;  %762 = vst [vmem:[%s6753_s27 + $0x8d8] sm:$0xff] %v761_v27  ;;  %v765_v29 = vld [vmem:[%s6748_s26 + $0x11c8] sm:$0xff] }
  0xa0   : > { %764 = vst [vmem:[%s6753_s27 + $0x8e0] sm:$0xff] %v763_v28  ;;  %v767_v30 = vld [vmem:[%s6748_s26 + $0x11e0] sm:$0xff]  ;;  %v769_v31 = vld [vmem:[%s6748_s26 + $0x11e8] sm:$0xff]  ;;  %766 = vst [vmem:[%s6753_s27 + $0x8e8] sm:$0xff] %v765_v29 }
  0xa1   : > { %768 = vst [vmem:[%s6753_s27 + $0x8f0] sm:$0xff] %v767_v30  ;;  %770 = vst [vmem:[%s6753_s27 + $0x8f8] sm:$0xff] %v769_v31  ;;  %v771_v32 = vld [vmem:[%s6748_s26 + $0x1200] sm:$0xff]  ;;  %v773_v33 = vld [vmem:[%s6748_s26 + $0x1208] sm:$0xff] }
  0xa2   : > { %v775_v34 = vld [vmem:[%s6748_s26 + $0x1220] sm:$0xff]  ;;  %772 = vst [vmem:[%s6753_s27 + $0x900] sm:$0xff] %v771_v32  ;;  %774 = vst [vmem:[%s6753_s27 + $0x908] sm:$0xff] %v773_v33  ;;  %v777_v35 = vld [vmem:[%s6748_s26 + $0x1228] sm:$0xff] }
  0xa3   : > { %776 = vst [vmem:[%s6753_s27 + $0x910] sm:$0xff] %v775_v34  ;;  %v779_v36 = vld [vmem:[%s6748_s26 + $0x1240] sm:$0xff]  ;;  %v781_v37 = vld [vmem:[%s6748_s26 + $0x1248] sm:$0xff]  ;;  %778 = vst [vmem:[%s6753_s27 + $0x918] sm:$0xff] %v777_v35 }
  0xa4   : > { %780 = vst [vmem:[%s6753_s27 + $0x920] sm:$0xff] %v779_v36  ;;  %782 = vst [vmem:[%s6753_s27 + $0x928] sm:$0xff] %v781_v37  ;;  %v783_v38 = vld [vmem:[%s6748_s26 + $0x1260] sm:$0xff]  ;;  %v785_v39 = vld [vmem:[%s6748_s26 + $0x1268] sm:$0xff] }
  0xa5   : > { %v787_v40 = vld [vmem:[%s6748_s26 + $0x1280] sm:$0xff]  ;;  %784 = vst [vmem:[%s6753_s27 + $0x930] sm:$0xff] %v783_v38  ;;  %786 = vst [vmem:[%s6753_s27 + $0x938] sm:$0xff] %v785_v39  ;;  %v789_v41 = vld [vmem:[%s6748_s26 + $0x1288] sm:$0xff] }
  0xa6   : > { %788 = vst [vmem:[%s6753_s27 + $0x940] sm:$0xff] %v787_v40  ;;  %v791_v42 = vld [vmem:[%s6748_s26 + $0x12a0] sm:$0xff]  ;;  %v793_v43 = vld [vmem:[%s6748_s26 + $0x12a8] sm:$0xff]  ;;  %790 = vst [vmem:[%s6753_s27 + $0x948] sm:$0xff] %v789_v41 }
  0xa7   : > { %792 = vst [vmem:[%s6753_s27 + $0x950] sm:$0xff] %v791_v42  ;;  %794 = vst [vmem:[%s6753_s27 + $0x958] sm:$0xff] %v793_v43  ;;  %v795_v44 = vld [vmem:[%s6748_s26 + $0x12c0] sm:$0xff]  ;;  %v797_v45 = vld [vmem:[%s6748_s26 + $0x12c8] sm:$0xff] }
  0xa8   : > { %v799_v46 = vld [vmem:[%s6748_s26 + $0x12e0] sm:$0xff]  ;;  %796 = vst [vmem:[%s6753_s27 + $0x960] sm:$0xff] %v795_v44  ;;  %798 = vst [vmem:[%s6753_s27 + $0x968] sm:$0xff] %v797_v45  ;;  %v801_v47 = vld [vmem:[%s6748_s26 + $0x12e8] sm:$0xff] }
  0xa9   : > { %800 = vst [vmem:[%s6753_s27 + $0x970] sm:$0xff] %v799_v46  ;;  %v803_v48 = vld [vmem:[%s6748_s26 + $0x1300] sm:$0xff]  ;;  %v805_v49 = vld [vmem:[%s6748_s26 + $0x1308] sm:$0xff]  ;;  %802 = vst [vmem:[%s6753_s27 + $0x978] sm:$0xff] %v801_v47 }
  0xaa   : > { %804 = vst [vmem:[%s6753_s27 + $0x980] sm:$0xff] %v803_v48  ;;  %806 = vst [vmem:[%s6753_s27 + $0x988] sm:$0xff] %v805_v49  ;;  %v807_v50 = vld [vmem:[%s6748_s26 + $0x1320] sm:$0xff]  ;;  %v809_v51 = vld [vmem:[%s6748_s26 + $0x1328] sm:$0xff] }
  0xab   : > { %v811_v52 = vld [vmem:[%s6748_s26 + $0x1340] sm:$0xff]  ;;  %808 = vst [vmem:[%s6753_s27 + $0x990] sm:$0xff] %v807_v50  ;;  %810 = vst [vmem:[%s6753_s27 + $0x998] sm:$0xff] %v809_v51  ;;  %v813_v53 = vld [vmem:[%s6748_s26 + $0x1348] sm:$0xff] }
  0xac   : > { %812 = vst [vmem:[%s6753_s27 + $0x9a0] sm:$0xff] %v811_v52  ;;  %v815_v54 = vld [vmem:[%s6748_s26 + $0x1360] sm:$0xff]  ;;  %v817_v55 = vld [vmem:[%s6748_s26 + $0x1368] sm:$0xff]  ;;  %814 = vst [vmem:[%s6753_s27 + $0x9a8] sm:$0xff] %v813_v53 }
  0xad   : > { %816 = vst [vmem:[%s6753_s27 + $0x9b0] sm:$0xff] %v815_v54  ;;  %818 = vst [vmem:[%s6753_s27 + $0x9b8] sm:$0xff] %v817_v55  ;;  %v819_v56 = vld [vmem:[%s6748_s26 + $0x1380] sm:$0xff]  ;;  %v821_v57 = vld [vmem:[%s6748_s26 + $0x1388] sm:$0xff] }
  0xae   : > { %v823_v58 = vld [vmem:[%s6748_s26 + $0x13a0] sm:$0xff]  ;;  %820 = vst [vmem:[%s6753_s27 + $0x9c0] sm:$0xff] %v819_v56  ;;  %822 = vst [vmem:[%s6753_s27 + $0x9c8] sm:$0xff] %v821_v57  ;;  %v825_v59 = vld [vmem:[%s6748_s26 + $0x13a8] sm:$0xff] }
  0xaf   : > { %824 = vst [vmem:[%s6753_s27 + $0x9d0] sm:$0xff] %v823_v58  ;;  %v827_v60 = vld [vmem:[%s6748_s26 + $0x13c0] sm:$0xff]  ;;  %v829_v61 = vld [vmem:[%s6748_s26 + $0x13c8] sm:$0xff]  ;;  %826 = vst [vmem:[%s6753_s27 + $0x9d8] sm:$0xff] %v825_v59 }
  0xb0   : > { %828 = vst [vmem:[%s6753_s27 + $0x9e0] sm:$0xff] %v827_v60  ;;  %830 = vst [vmem:[%s6753_s27 + $0x9e8] sm:$0xff] %v829_v61  ;;  %v831_v62 = vld [vmem:[%s6748_s26 + $0x13e0] sm:$0xff]  ;;  %v833_v63 = vld [vmem:[%s6748_s26 + $0x13e8] sm:$0xff] }
  0xb1   : > { %v835_v0 = vld [vmem:[%s6748_s26 + $0x1400] sm:$0xff]  ;;  %832 = vst [vmem:[%s6753_s27 + $0x9f0] sm:$0xff] %v831_v62  ;;  %834 = vst [vmem:[%s6753_s27 + $0x9f8] sm:$0xff] %v833_v63  ;;  %v837_v1 = vld [vmem:[%s6748_s26 + $0x1408] sm:$0xff] }
  0xb2   : > { %836 = vst [vmem:[%s6753_s27 + $0xa00] sm:$0xff] %v835_v0  ;;  %v839_v2 = vld [vmem:[%s6748_s26 + $0x1420] sm:$0xff]  ;;  %v841_v3 = vld [vmem:[%s6748_s26 + $0x1428] sm:$0xff]  ;;  %838 = vst [vmem:[%s6753_s27 + $0xa08] sm:$0xff] %v837_v1 }
  0xb3   : > { %840 = vst [vmem:[%s6753_s27 + $0xa10] sm:$0xff] %v839_v2  ;;  %842 = vst [vmem:[%s6753_s27 + $0xa18] sm:$0xff] %v841_v3  ;;  %v843_v4 = vld [vmem:[%s6748_s26 + $0x1440] sm:$0xff]  ;;  %v845_v5 = vld [vmem:[%s6748_s26 + $0x1448] sm:$0xff] }
  0xb4   : > { %v847_v6 = vld [vmem:[%s6748_s26 + $0x1460] sm:$0xff]  ;;  %844 = vst [vmem:[%s6753_s27 + $0xa20] sm:$0xff] %v843_v4  ;;  %846 = vst [vmem:[%s6753_s27 + $0xa28] sm:$0xff] %v845_v5  ;;  %v849_v7 = vld [vmem:[%s6748_s26 + $0x1468] sm:$0xff] }
  0xb5   : > { %848 = vst [vmem:[%s6753_s27 + $0xa30] sm:$0xff] %v847_v6  ;;  %v851_v8 = vld [vmem:[%s6748_s26 + $0x1480] sm:$0xff]  ;;  %v853_v9 = vld [vmem:[%s6748_s26 + $0x1488] sm:$0xff]  ;;  %850 = vst [vmem:[%s6753_s27 + $0xa38] sm:$0xff] %v849_v7 }
  0xb6   : > { %852 = vst [vmem:[%s6753_s27 + $0xa40] sm:$0xff] %v851_v8  ;;  %854 = vst [vmem:[%s6753_s27 + $0xa48] sm:$0xff] %v853_v9  ;;  %v855_v10 = vld [vmem:[%s6748_s26 + $0x14a0] sm:$0xff]  ;;  %v857_v11 = vld [vmem:[%s6748_s26 + $0x14a8] sm:$0xff] }
  0xb7   : > { %v859_v12 = vld [vmem:[%s6748_s26 + $0x14c0] sm:$0xff]  ;;  %856 = vst [vmem:[%s6753_s27 + $0xa50] sm:$0xff] %v855_v10  ;;  %858 = vst [vmem:[%s6753_s27 + $0xa58] sm:$0xff] %v857_v11  ;;  %v861_v13 = vld [vmem:[%s6748_s26 + $0x14c8] sm:$0xff] }
  0xb8   : > { %860 = vst [vmem:[%s6753_s27 + $0xa60] sm:$0xff] %v859_v12  ;;  %v863_v14 = vld [vmem:[%s6748_s26 + $0x14e0] sm:$0xff]  ;;  %v865_v15 = vld [vmem:[%s6748_s26 + $0x14e8] sm:$0xff]  ;;  %862 = vst [vmem:[%s6753_s27 + $0xa68] sm:$0xff] %v861_v13 }
  0xb9   : > { %864 = vst [vmem:[%s6753_s27 + $0xa70] sm:$0xff] %v863_v14  ;;  %866 = vst [vmem:[%s6753_s27 + $0xa78] sm:$0xff] %v865_v15  ;;  %v867_v16 = vld [vmem:[%s6748_s26 + $0x1500] sm:$0xff]  ;;  %v869_v17 = vld [vmem:[%s6748_s26 + $0x1508] sm:$0xff] }
  0xba   : > { %v871_v18 = vld [vmem:[%s6748_s26 + $0x1520] sm:$0xff]  ;;  %868 = vst [vmem:[%s6753_s27 + $0xa80] sm:$0xff] %v867_v16  ;;  %870 = vst [vmem:[%s6753_s27 + $0xa88] sm:$0xff] %v869_v17  ;;  %v873_v19 = vld [vmem:[%s6748_s26 + $0x1528] sm:$0xff] }
  0xbb   : > { %872 = vst [vmem:[%s6753_s27 + $0xa90] sm:$0xff] %v871_v18  ;;  %v875_v20 = vld [vmem:[%s6748_s26 + $0x1540] sm:$0xff]  ;;  %v877_v21 = vld [vmem:[%s6748_s26 + $0x1548] sm:$0xff]  ;;  %874 = vst [vmem:[%s6753_s27 + $0xa98] sm:$0xff] %v873_v19 }
  0xbc   : > { %876 = vst [vmem:[%s6753_s27 + $0xaa0] sm:$0xff] %v875_v20  ;;  %878 = vst [vmem:[%s6753_s27 + $0xaa8] sm:$0xff] %v877_v21  ;;  %v879_v22 = vld [vmem:[%s6748_s26 + $0x1560] sm:$0xff]  ;;  %v881_v23 = vld [vmem:[%s6748_s26 + $0x1568] sm:$0xff] }
  0xbd   : > { %v883_v24 = vld [vmem:[%s6748_s26 + $0x1580] sm:$0xff]  ;;  %880 = vst [vmem:[%s6753_s27 + $0xab0] sm:$0xff] %v879_v22  ;;  %882 = vst [vmem:[%s6753_s27 + $0xab8] sm:$0xff] %v881_v23  ;;  %v885_v25 = vld [vmem:[%s6748_s26 + $0x1588] sm:$0xff] }
  0xbe   : > { %884 = vst [vmem:[%s6753_s27 + $0xac0] sm:$0xff] %v883_v24  ;;  %v887_v26 = vld [vmem:[%s6748_s26 + $0x15a0] sm:$0xff]  ;;  %v889_v27 = vld [vmem:[%s6748_s26 + $0x15a8] sm:$0xff]  ;;  %886 = vst [vmem:[%s6753_s27 + $0xac8] sm:$0xff] %v885_v25 }
  0xbf   : > { %888 = vst [vmem:[%s6753_s27 + $0xad0] sm:$0xff] %v887_v26  ;;  %890 = vst [vmem:[%s6753_s27 + $0xad8] sm:$0xff] %v889_v27  ;;  %v891_v28 = vld [vmem:[%s6748_s26 + $0x15c0] sm:$0xff]  ;;  %v893_v29 = vld [vmem:[%s6748_s26 + $0x15c8] sm:$0xff] }
  0xc0   : > { %v895_v30 = vld [vmem:[%s6748_s26 + $0x15e0] sm:$0xff]  ;;  %892 = vst [vmem:[%s6753_s27 + $0xae0] sm:$0xff] %v891_v28  ;;  %894 = vst [vmem:[%s6753_s27 + $0xae8] sm:$0xff] %v893_v29  ;;  %v897_v31 = vld [vmem:[%s6748_s26 + $0x15e8] sm:$0xff] }
  0xc1   : > { %896 = vst [vmem:[%s6753_s27 + $0xaf0] sm:$0xff] %v895_v30  ;;  %v899_v32 = vld [vmem:[%s6748_s26 + $0x1600] sm:$0xff]  ;;  %v901_v33 = vld [vmem:[%s6748_s26 + $0x1608] sm:$0xff]  ;;  %898 = vst [vmem:[%s6753_s27 + $0xaf8] sm:$0xff] %v897_v31 }
  0xc2   : > { %900 = vst [vmem:[%s6753_s27 + $0xb00] sm:$0xff] %v899_v32  ;;  %902 = vst [vmem:[%s6753_s27 + $0xb08] sm:$0xff] %v901_v33  ;;  %v903_v34 = vld [vmem:[%s6748_s26 + $0x1620] sm:$0xff]  ;;  %v905_v35 = vld [vmem:[%s6748_s26 + $0x1628] sm:$0xff] }
  0xc3   : > { %v907_v36 = vld [vmem:[%s6748_s26 + $0x1640] sm:$0xff]  ;;  %904 = vst [vmem:[%s6753_s27 + $0xb10] sm:$0xff] %v903_v34  ;;  %906 = vst [vmem:[%s6753_s27 + $0xb18] sm:$0xff] %v905_v35  ;;  %v909_v37 = vld [vmem:[%s6748_s26 + $0x1648] sm:$0xff] }
  0xc4   : > { %908 = vst [vmem:[%s6753_s27 + $0xb20] sm:$0xff] %v907_v36  ;;  %v911_v38 = vld [vmem:[%s6748_s26 + $0x1660] sm:$0xff]  ;;  %v913_v39 = vld [vmem:[%s6748_s26 + $0x1668] sm:$0xff]  ;;  %910 = vst [vmem:[%s6753_s27 + $0xb28] sm:$0xff] %v909_v37 }
  0xc5   : > { %912 = vst [vmem:[%s6753_s27 + $0xb30] sm:$0xff] %v911_v38  ;;  %914 = vst [vmem:[%s6753_s27 + $0xb38] sm:$0xff] %v913_v39  ;;  %v915_v40 = vld [vmem:[%s6748_s26 + $0x1680] sm:$0xff]  ;;  %v917_v41 = vld [vmem:[%s6748_s26 + $0x1688] sm:$0xff] }
  0xc6   : > { %v919_v42 = vld [vmem:[%s6748_s26 + $0x16a0] sm:$0xff]  ;;  %916 = vst [vmem:[%s6753_s27 + $0xb40] sm:$0xff] %v915_v40  ;;  %918 = vst [vmem:[%s6753_s27 + $0xb48] sm:$0xff] %v917_v41  ;;  %v921_v43 = vld [vmem:[%s6748_s26 + $0x16a8] sm:$0xff] }
  0xc7   : > { %920 = vst [vmem:[%s6753_s27 + $0xb50] sm:$0xff] %v919_v42  ;;  %v923_v44 = vld [vmem:[%s6748_s26 + $0x16c0] sm:$0xff]  ;;  %v925_v45 = vld [vmem:[%s6748_s26 + $0x16c8] sm:$0xff]  ;;  %922 = vst [vmem:[%s6753_s27 + $0xb58] sm:$0xff] %v921_v43 }
  0xc8   : > { %924 = vst [vmem:[%s6753_s27 + $0xb60] sm:$0xff] %v923_v44  ;;  %926 = vst [vmem:[%s6753_s27 + $0xb68] sm:$0xff] %v925_v45  ;;  %v927_v46 = vld [vmem:[%s6748_s26 + $0x16e0] sm:$0xff]  ;;  %v929_v47 = vld [vmem:[%s6748_s26 + $0x16e8] sm:$0xff] }
  0xc9   : > { %v931_v48 = vld [vmem:[%s6748_s26 + $0x1700] sm:$0xff]  ;;  %928 = vst [vmem:[%s6753_s27 + $0xb70] sm:$0xff] %v927_v46  ;;  %930 = vst [vmem:[%s6753_s27 + $0xb78] sm:$0xff] %v929_v47  ;;  %v933_v49 = vld [vmem:[%s6748_s26 + $0x1708] sm:$0xff] }
  0xca   : > { %932 = vst [vmem:[%s6753_s27 + $0xb80] sm:$0xff] %v931_v48  ;;  %v935_v50 = vld [vmem:[%s6748_s26 + $0x1720] sm:$0xff]  ;;  %v937_v51 = vld [vmem:[%s6748_s26 + $0x1728] sm:$0xff]  ;;  %934 = vst [vmem:[%s6753_s27 + $0xb88] sm:$0xff] %v933_v49 }
  0xcb   : > { %936 = vst [vmem:[%s6753_s27 + $0xb90] sm:$0xff] %v935_v50  ;;  %938 = vst [vmem:[%s6753_s27 + $0xb98] sm:$0xff] %v937_v51  ;;  %v939_v52 = vld [vmem:[%s6748_s26 + $0x1740] sm:$0xff]  ;;  %v941_v53 = vld [vmem:[%s6748_s26 + $0x1748] sm:$0xff] }
  0xcc   : > { %v943_v54 = vld [vmem:[%s6748_s26 + $0x1760] sm:$0xff]  ;;  %940 = vst [vmem:[%s6753_s27 + $0xba0] sm:$0xff] %v939_v52  ;;  %942 = vst [vmem:[%s6753_s27 + $0xba8] sm:$0xff] %v941_v53  ;;  %v945_v55 = vld [vmem:[%s6748_s26 + $0x1768] sm:$0xff] }
  0xcd   : > { %944 = vst [vmem:[%s6753_s27 + $0xbb0] sm:$0xff] %v943_v54  ;;  %v947_v56 = vld [vmem:[%s6748_s26 + $0x1780] sm:$0xff]  ;;  %v949_v57 = vld [vmem:[%s6748_s26 + $0x1788] sm:$0xff]  ;;  %946 = vst [vmem:[%s6753_s27 + $0xbb8] sm:$0xff] %v945_v55 }
  0xce   : > { %948 = vst [vmem:[%s6753_s27 + $0xbc0] sm:$0xff] %v947_v56  ;;  %950 = vst [vmem:[%s6753_s27 + $0xbc8] sm:$0xff] %v949_v57  ;;  %v951_v58 = vld [vmem:[%s6748_s26 + $0x17a0] sm:$0xff]  ;;  %v953_v59 = vld [vmem:[%s6748_s26 + $0x17a8] sm:$0xff] }
  0xcf   : > { %v955_v60 = vld [vmem:[%s6748_s26 + $0x17c0] sm:$0xff]  ;;  %952 = vst [vmem:[%s6753_s27 + $0xbd0] sm:$0xff] %v951_v58  ;;  %954 = vst [vmem:[%s6753_s27 + $0xbd8] sm:$0xff] %v953_v59  ;;  %v957_v61 = vld [vmem:[%s6748_s26 + $0x17c8] sm:$0xff] }
  0xd0   : > { %956 = vst [vmem:[%s6753_s27 + $0xbe0] sm:$0xff] %v955_v60  ;;  %v959_v62 = vld [vmem:[%s6748_s26 + $0x17e0] sm:$0xff]  ;;  %v961_v63 = vld [vmem:[%s6748_s26 + $0x17e8] sm:$0xff]  ;;  %958 = vst [vmem:[%s6753_s27 + $0xbe8] sm:$0xff] %v957_v61 }
  0xd1   : > { %960 = vst [vmem:[%s6753_s27 + $0xbf0] sm:$0xff] %v959_v62  ;;  %962 = vst [vmem:[%s6753_s27 + $0xbf8] sm:$0xff] %v961_v63  ;;  %v963_v0 = vld [vmem:[%s6748_s26 + $0x1800] sm:$0xff]  ;;  %v965_v1 = vld [vmem:[%s6748_s26 + $0x1808] sm:$0xff] }
  0xd2   : > { %v967_v2 = vld [vmem:[%s6748_s26 + $0x1820] sm:$0xff]  ;;  %964 = vst [vmem:[%s6753_s27 + $0xc00] sm:$0xff] %v963_v0  ;;  %966 = vst [vmem:[%s6753_s27 + $0xc08] sm:$0xff] %v965_v1  ;;  %v969_v3 = vld [vmem:[%s6748_s26 + $0x1828] sm:$0xff] }
  0xd3   : > { %968 = vst [vmem:[%s6753_s27 + $0xc10] sm:$0xff] %v967_v2  ;;  %v971_v4 = vld [vmem:[%s6748_s26 + $0x1840] sm:$0xff]  ;;  %v973_v5 = vld [vmem:[%s6748_s26 + $0x1848] sm:$0xff]  ;;  %970 = vst [vmem:[%s6753_s27 + $0xc18] sm:$0xff] %v969_v3 }
  0xd4   : > { %972 = vst [vmem:[%s6753_s27 + $0xc20] sm:$0xff] %v971_v4  ;;  %974 = vst [vmem:[%s6753_s27 + $0xc28] sm:$0xff] %v973_v5  ;;  %v975_v6 = vld [vmem:[%s6748_s26 + $0x1860] sm:$0xff]  ;;  %v977_v7 = vld [vmem:[%s6748_s26 + $0x1868] sm:$0xff] }
  0xd5   : > { %v979_v8 = vld [vmem:[%s6748_s26 + $0x1880] sm:$0xff]  ;;  %976 = vst [vmem:[%s6753_s27 + $0xc30] sm:$0xff] %v975_v6  ;;  %978 = vst [vmem:[%s6753_s27 + $0xc38] sm:$0xff] %v977_v7  ;;  %v981_v9 = vld [vmem:[%s6748_s26 + $0x1888] sm:$0xff] }
  0xd6   : > { %980 = vst [vmem:[%s6753_s27 + $0xc40] sm:$0xff] %v979_v8  ;;  %v983_v10 = vld [vmem:[%s6748_s26 + $0x18a0] sm:$0xff]  ;;  %v985_v11 = vld [vmem:[%s6748_s26 + $0x18a8] sm:$0xff]  ;;  %982 = vst [vmem:[%s6753_s27 + $0xc48] sm:$0xff] %v981_v9 }
  0xd7   : > { %984 = vst [vmem:[%s6753_s27 + $0xc50] sm:$0xff] %v983_v10  ;;  %986 = vst [vmem:[%s6753_s27 + $0xc58] sm:$0xff] %v985_v11  ;;  %v987_v12 = vld [vmem:[%s6748_s26 + $0x18c0] sm:$0xff]  ;;  %v989_v13 = vld [vmem:[%s6748_s26 + $0x18c8] sm:$0xff] }
  0xd8   : > { %v991_v14 = vld [vmem:[%s6748_s26 + $0x18e0] sm:$0xff]  ;;  %988 = vst [vmem:[%s6753_s27 + $0xc60] sm:$0xff] %v987_v12  ;;  %990 = vst [vmem:[%s6753_s27 + $0xc68] sm:$0xff] %v989_v13  ;;  %v993_v15 = vld [vmem:[%s6748_s26 + $0x18e8] sm:$0xff] }
  0xd9   : > { %992 = vst [vmem:[%s6753_s27 + $0xc70] sm:$0xff] %v991_v14  ;;  %v995_v16 = vld [vmem:[%s6748_s26 + $0x1900] sm:$0xff]  ;;  %v997_v17 = vld [vmem:[%s6748_s26 + $0x1908] sm:$0xff]  ;;  %994 = vst [vmem:[%s6753_s27 + $0xc78] sm:$0xff] %v993_v15 }
  0xda   : > { %996 = vst [vmem:[%s6753_s27 + $0xc80] sm:$0xff] %v995_v16  ;;  %998 = vst [vmem:[%s6753_s27 + $0xc88] sm:$0xff] %v997_v17  ;;  %v999_v18 = vld [vmem:[%s6748_s26 + $0x1920] sm:$0xff]  ;;  %v1001_v19 = vld [vmem:[%s6748_s26 + $0x1928] sm:$0xff] }
  0xdb   : > { %v1003_v20 = vld [vmem:[%s6748_s26 + $0x1940] sm:$0xff]  ;;  %1000 = vst [vmem:[%s6753_s27 + $0xc90] sm:$0xff] %v999_v18  ;;  %1002 = vst [vmem:[%s6753_s27 + $0xc98] sm:$0xff] %v1001_v19  ;;  %v1005_v21 = vld [vmem:[%s6748_s26 + $0x1948] sm:$0xff] }
  0xdc   : > { %1004 = vst [vmem:[%s6753_s27 + $0xca0] sm:$0xff] %v1003_v20  ;;  %v1007_v22 = vld [vmem:[%s6748_s26 + $0x1960] sm:$0xff]  ;;  %v1009_v23 = vld [vmem:[%s6748_s26 + $0x1968] sm:$0xff]  ;;  %1006 = vst [vmem:[%s6753_s27 + $0xca8] sm:$0xff] %v1005_v21 }
  0xdd   : > { %1008 = vst [vmem:[%s6753_s27 + $0xcb0] sm:$0xff] %v1007_v22  ;;  %1010 = vst [vmem:[%s6753_s27 + $0xcb8] sm:$0xff] %v1009_v23  ;;  %v1011_v24 = vld [vmem:[%s6748_s26 + $0x1980] sm:$0xff]  ;;  %v1013_v25 = vld [vmem:[%s6748_s26 + $0x1988] sm:$0xff] }
  0xde   : > { %v1015_v26 = vld [vmem:[%s6748_s26 + $0x19a0] sm:$0xff]  ;;  %1012 = vst [vmem:[%s6753_s27 + $0xcc0] sm:$0xff] %v1011_v24  ;;  %1014 = vst [vmem:[%s6753_s27 + $0xcc8] sm:$0xff] %v1013_v25  ;;  %v1017_v27 = vld [vmem:[%s6748_s26 + $0x19a8] sm:$0xff] }
  0xdf   : > { %1016 = vst [vmem:[%s6753_s27 + $0xcd0] sm:$0xff] %v1015_v26  ;;  %v1019_v28 = vld [vmem:[%s6748_s26 + $0x19c0] sm:$0xff]  ;;  %v1021_v29 = vld [vmem:[%s6748_s26 + $0x19c8] sm:$0xff]  ;;  %1018 = vst [vmem:[%s6753_s27 + $0xcd8] sm:$0xff] %v1017_v27 }
  0xe0   : > { %1020 = vst [vmem:[%s6753_s27 + $0xce0] sm:$0xff] %v1019_v28  ;;  %1022 = vst [vmem:[%s6753_s27 + $0xce8] sm:$0xff] %v1021_v29  ;;  %v1023_v30 = vld [vmem:[%s6748_s26 + $0x19e0] sm:$0xff]  ;;  %v1025_v31 = vld [vmem:[%s6748_s26 + $0x19e8] sm:$0xff] }
  0xe1   : > { %v1027_v32 = vld [vmem:[%s6748_s26 + $0x1a00] sm:$0xff]  ;;  %1024 = vst [vmem:[%s6753_s27 + $0xcf0] sm:$0xff] %v1023_v30  ;;  %1026 = vst [vmem:[%s6753_s27 + $0xcf8] sm:$0xff] %v1025_v31  ;;  %v1029_v33 = vld [vmem:[%s6748_s26 + $0x1a08] sm:$0xff] }
  0xe2   : > { %1028 = vst [vmem:[%s6753_s27 + $0xd00] sm:$0xff] %v1027_v32  ;;  %v1031_v34 = vld [vmem:[%s6748_s26 + $0x1a20] sm:$0xff]  ;;  %v1033_v35 = vld [vmem:[%s6748_s26 + $0x1a28] sm:$0xff]  ;;  %1030 = vst [vmem:[%s6753_s27 + $0xd08] sm:$0xff] %v1029_v33 }
  0xe3   : > { %1032 = vst [vmem:[%s6753_s27 + $0xd10] sm:$0xff] %v1031_v34  ;;  %1034 = vst [vmem:[%s6753_s27 + $0xd18] sm:$0xff] %v1033_v35  ;;  %v1035_v36 = vld [vmem:[%s6748_s26 + $0x1a40] sm:$0xff]  ;;  %v1037_v37 = vld [vmem:[%s6748_s26 + $0x1a48] sm:$0xff] }
  0xe4   : > { %v1039_v38 = vld [vmem:[%s6748_s26 + $0x1a60] sm:$0xff]  ;;  %1036 = vst [vmem:[%s6753_s27 + $0xd20] sm:$0xff] %v1035_v36  ;;  %1038 = vst [vmem:[%s6753_s27 + $0xd28] sm:$0xff] %v1037_v37  ;;  %v1041_v39 = vld [vmem:[%s6748_s26 + $0x1a68] sm:$0xff] }
  0xe5   : > { %1040 = vst [vmem:[%s6753_s27 + $0xd30] sm:$0xff] %v1039_v38  ;;  %v1043_v40 = vld [vmem:[%s6748_s26 + $0x1a80] sm:$0xff]  ;;  %v1045_v41 = vld [vmem:[%s6748_s26 + $0x1a88] sm:$0xff]  ;;  %1042 = vst [vmem:[%s6753_s27 + $0xd38] sm:$0xff] %v1041_v39 }
  0xe6   : > { %1044 = vst [vmem:[%s6753_s27 + $0xd40] sm:$0xff] %v1043_v40  ;;  %1046 = vst [vmem:[%s6753_s27 + $0xd48] sm:$0xff] %v1045_v41  ;;  %v1047_v42 = vld [vmem:[%s6748_s26 + $0x1aa0] sm:$0xff]  ;;  %v1049_v43 = vld [vmem:[%s6748_s26 + $0x1aa8] sm:$0xff] }
  0xe7   : > { %v1051_v44 = vld [vmem:[%s6748_s26 + $0x1ac0] sm:$0xff]  ;;  %1048 = vst [vmem:[%s6753_s27 + $0xd50] sm:$0xff] %v1047_v42  ;;  %1050 = vst [vmem:[%s6753_s27 + $0xd58] sm:$0xff] %v1049_v43  ;;  %v1053_v45 = vld [vmem:[%s6748_s26 + $0x1ac8] sm:$0xff] }
  0xe8   : > { %1052 = vst [vmem:[%s6753_s27 + $0xd60] sm:$0xff] %v1051_v44  ;;  %v1055_v46 = vld [vmem:[%s6748_s26 + $0x1ae0] sm:$0xff]  ;;  %v1057_v47 = vld [vmem:[%s6748_s26 + $0x1ae8] sm:$0xff]  ;;  %1054 = vst [vmem:[%s6753_s27 + $0xd68] sm:$0xff] %v1053_v45 }
  0xe9   : > { %1056 = vst [vmem:[%s6753_s27 + $0xd70] sm:$0xff] %v1055_v46  ;;  %1058 = vst [vmem:[%s6753_s27 + $0xd78] sm:$0xff] %v1057_v47  ;;  %v1059_v48 = vld [vmem:[%s6748_s26 + $0x1b00] sm:$0xff]  ;;  %v1061_v49 = vld [vmem:[%s6748_s26 + $0x1b08] sm:$0xff] }
  0xea   : > { %v1063_v50 = vld [vmem:[%s6748_s26 + $0x1b20] sm:$0xff]  ;;  %1060 = vst [vmem:[%s6753_s27 + $0xd80] sm:$0xff] %v1059_v48  ;;  %1062 = vst [vmem:[%s6753_s27 + $0xd88] sm:$0xff] %v1061_v49  ;;  %v1065_v51 = vld [vmem:[%s6748_s26 + $0x1b28] sm:$0xff] }
  0xeb   : > { %1064 = vst [vmem:[%s6753_s27 + $0xd90] sm:$0xff] %v1063_v50  ;;  %v1067_v52 = vld [vmem:[%s6748_s26 + $0x1b40] sm:$0xff]  ;;  %v1069_v53 = vld [vmem:[%s6748_s26 + $0x1b48] sm:$0xff]  ;;  %1066 = vst [vmem:[%s6753_s27 + $0xd98] sm:$0xff] %v1065_v51 }
  0xec   : > { %1068 = vst [vmem:[%s6753_s27 + $0xda0] sm:$0xff] %v1067_v52  ;;  %1070 = vst [vmem:[%s6753_s27 + $0xda8] sm:$0xff] %v1069_v53  ;;  %v1071_v54 = vld [vmem:[%s6748_s26 + $0x1b60] sm:$0xff]  ;;  %v1073_v55 = vld [vmem:[%s6748_s26 + $0x1b68] sm:$0xff] }
  0xed   : > { %v1075_v56 = vld [vmem:[%s6748_s26 + $0x1b80] sm:$0xff]  ;;  %1072 = vst [vmem:[%s6753_s27 + $0xdb0] sm:$0xff] %v1071_v54  ;;  %1074 = vst [vmem:[%s6753_s27 + $0xdb8] sm:$0xff] %v1073_v55  ;;  %v1077_v57 = vld [vmem:[%s6748_s26 + $0x1b88] sm:$0xff] }
  0xee   : > { %1076 = vst [vmem:[%s6753_s27 + $0xdc0] sm:$0xff] %v1075_v56  ;;  %v1079_v58 = vld [vmem:[%s6748_s26 + $0x1ba0] sm:$0xff]  ;;  %v1081_v59 = vld [vmem:[%s6748_s26 + $0x1ba8] sm:$0xff]  ;;  %1078 = vst [vmem:[%s6753_s27 + $0xdc8] sm:$0xff] %v1077_v57 }
  0xef   : > { %1080 = vst [vmem:[%s6753_s27 + $0xdd0] sm:$0xff] %v1079_v58  ;;  %1082 = vst [vmem:[%s6753_s27 + $0xdd8] sm:$0xff] %v1081_v59  ;;  %v1083_v60 = vld [vmem:[%s6748_s26 + $0x1bc0] sm:$0xff]  ;;  %v1085_v61 = vld [vmem:[%s6748_s26 + $0x1bc8] sm:$0xff] }
  0xf0   : > { %v1087_v62 = vld [vmem:[%s6748_s26 + $0x1be0] sm:$0xff]  ;;  %1084 = vst [vmem:[%s6753_s27 + $0xde0] sm:$0xff] %v1083_v60  ;;  %1086 = vst [vmem:[%s6753_s27 + $0xde8] sm:$0xff] %v1085_v61  ;;  %v1089_v63 = vld [vmem:[%s6748_s26 + $0x1be8] sm:$0xff] }
  0xf1   : > { %1088 = vst [vmem:[%s6753_s27 + $0xdf0] sm:$0xff] %v1087_v62  ;;  %v1091_v0 = vld [vmem:[%s6748_s26 + $0x1c00] sm:$0xff]  ;;  %v1093_v1 = vld [vmem:[%s6748_s26 + $0x1c08] sm:$0xff]  ;;  %1090 = vst [vmem:[%s6753_s27 + $0xdf8] sm:$0xff] %v1089_v63 }
  0xf2   : > { %1092 = vst [vmem:[%s6753_s27 + $0xe00] sm:$0xff] %v1091_v0  ;;  %1094 = vst [vmem:[%s6753_s27 + $0xe08] sm:$0xff] %v1093_v1  ;;  %v1095_v2 = vld [vmem:[%s6748_s26 + $0x1c20] sm:$0xff]  ;;  %v1097_v3 = vld [vmem:[%s6748_s26 + $0x1c28] sm:$0xff] }
  0xf3   : > { %v1099_v4 = vld [vmem:[%s6748_s26 + $0x1c40] sm:$0xff]  ;;  %1096 = vst [vmem:[%s6753_s27 + $0xe10] sm:$0xff] %v1095_v2  ;;  %1098 = vst [vmem:[%s6753_s27 + $0xe18] sm:$0xff] %v1097_v3  ;;  %v1101_v5 = vld [vmem:[%s6748_s26 + $0x1c48] sm:$0xff] }
  0xf4   : > { %1100 = vst [vmem:[%s6753_s27 + $0xe20] sm:$0xff] %v1099_v4  ;;  %v1103_v6 = vld [vmem:[%s6748_s26 + $0x1c60] sm:$0xff]  ;;  %v1105_v7 = vld [vmem:[%s6748_s26 + $0x1c68] sm:$0xff]  ;;  %1102 = vst [vmem:[%s6753_s27 + $0xe28] sm:$0xff] %v1101_v5 }
  0xf5   : > { %1104 = vst [vmem:[%s6753_s27 + $0xe30] sm:$0xff] %v1103_v6  ;;  %1106 = vst [vmem:[%s6753_s27 + $0xe38] sm:$0xff] %v1105_v7  ;;  %v1107_v8 = vld [vmem:[%s6748_s26 + $0x1c80] sm:$0xff]  ;;  %v1109_v9 = vld [vmem:[%s6748_s26 + $0x1c88] sm:$0xff] }
  0xf6   : > { %v1111_v10 = vld [vmem:[%s6748_s26 + $0x1ca0] sm:$0xff]  ;;  %1108 = vst [vmem:[%s6753_s27 + $0xe40] sm:$0xff] %v1107_v8  ;;  %1110 = vst [vmem:[%s6753_s27 + $0xe48] sm:$0xff] %v1109_v9  ;;  %v1113_v11 = vld [vmem:[%s6748_s26 + $0x1ca8] sm:$0xff] }
  0xf7   : > { %1112 = vst [vmem:[%s6753_s27 + $0xe50] sm:$0xff] %v1111_v10  ;;  %v1115_v12 = vld [vmem:[%s6748_s26 + $0x1cc0] sm:$0xff]  ;;  %v1117_v13 = vld [vmem:[%s6748_s26 + $0x1cc8] sm:$0xff]  ;;  %1114 = vst [vmem:[%s6753_s27 + $0xe58] sm:$0xff] %v1113_v11 }
  0xf8   : > { %1116 = vst [vmem:[%s6753_s27 + $0xe60] sm:$0xff] %v1115_v12  ;;  %1118 = vst [vmem:[%s6753_s27 + $0xe68] sm:$0xff] %v1117_v13  ;;  %v1119_v14 = vld [vmem:[%s6748_s26 + $0x1ce0] sm:$0xff]  ;;  %v1121_v15 = vld [vmem:[%s6748_s26 + $0x1ce8] sm:$0xff] }
  0xf9   : > { %v1123_v16 = vld [vmem:[%s6748_s26 + $0x1d00] sm:$0xff]  ;;  %1120 = vst [vmem:[%s6753_s27 + $0xe70] sm:$0xff] %v1119_v14  ;;  %1122 = vst [vmem:[%s6753_s27 + $0xe78] sm:$0xff] %v1121_v15  ;;  %v1125_v17 = vld [vmem:[%s6748_s26 + $0x1d08] sm:$0xff] }
  0xfa   : > { %1124 = vst [vmem:[%s6753_s27 + $0xe80] sm:$0xff] %v1123_v16  ;;  %v1127_v18 = vld [vmem:[%s6748_s26 + $0x1d20] sm:$0xff]  ;;  %v1129_v19 = vld [vmem:[%s6748_s26 + $0x1d28] sm:$0xff]  ;;  %1126 = vst [vmem:[%s6753_s27 + $0xe88] sm:$0xff] %v1125_v17 }
  0xfb   : > { %1128 = vst [vmem:[%s6753_s27 + $0xe90] sm:$0xff] %v1127_v18  ;;  %1130 = vst [vmem:[%s6753_s27 + $0xe98] sm:$0xff] %v1129_v19  ;;  %v1131_v20 = vld [vmem:[%s6748_s26 + $0x1d40] sm:$0xff]  ;;  %v1133_v21 = vld [vmem:[%s6748_s26 + $0x1d48] sm:$0xff] }
  0xfc   : > { %v1135_v22 = vld [vmem:[%s6748_s26 + $0x1d60] sm:$0xff]  ;;  %1132 = vst [vmem:[%s6753_s27 + $0xea0] sm:$0xff] %v1131_v20  ;;  %1134 = vst [vmem:[%s6753_s27 + $0xea8] sm:$0xff] %v1133_v21  ;;  %v1137_v23 = vld [vmem:[%s6748_s26 + $0x1d68] sm:$0xff] }
  0xfd   : > { %1136 = vst [vmem:[%s6753_s27 + $0xeb0] sm:$0xff] %v1135_v22  ;;  %v1139_v24 = vld [vmem:[%s6748_s26 + $0x1d80] sm:$0xff]  ;;  %v1141_v25 = vld [vmem:[%s6748_s26 + $0x1d88] sm:$0xff]  ;;  %1138 = vst [vmem:[%s6753_s27 + $0xeb8] sm:$0xff] %v1137_v23 }
  0xfe   : > { %1140 = vst [vmem:[%s6753_s27 + $0xec0] sm:$0xff] %v1139_v24  ;;  %1142 = vst [vmem:[%s6753_s27 + $0xec8] sm:$0xff] %v1141_v25  ;;  %v1143_v26 = vld [vmem:[%s6748_s26 + $0x1da0] sm:$0xff]  ;;  %v1145_v27 = vld [vmem:[%s6748_s26 + $0x1da8] sm:$0xff] }
  0xff   : > { %v1147_v28 = vld [vmem:[%s6748_s26 + $0x1dc0] sm:$0xff]  ;;  %1144 = vst [vmem:[%s6753_s27 + $0xed0] sm:$0xff] %v1143_v26  ;;  %1146 = vst [vmem:[%s6753_s27 + $0xed8] sm:$0xff] %v1145_v27  ;;  %v1149_v29 = vld [vmem:[%s6748_s26 + $0x1dc8] sm:$0xff] }
 0x100   : > { %1148 = vst [vmem:[%s6753_s27 + $0xee0] sm:$0xff] %v1147_v28  ;;  %v1151_v30 = vld [vmem:[%s6748_s26 + $0x1de0] sm:$0xff]  ;;  %v1153_v31 = vld [vmem:[%s6748_s26 + $0x1de8] sm:$0xff]  ;;  %1150 = vst [vmem:[%s6753_s27 + $0xee8] sm:$0xff] %v1149_v29 }
 0x101   : > { %1152 = vst [vmem:[%s6753_s27 + $0xef0] sm:$0xff] %v1151_v30  ;;  %1154 = vst [vmem:[%s6753_s27 + $0xef8] sm:$0xff] %v1153_v31  ;;  %v1155_v32 = vld [vmem:[%s6748_s26 + $0x1e00] sm:$0xff]  ;;  %v1157_v33 = vld [vmem:[%s6748_s26 + $0x1e08] sm:$0xff] }
 0x102   : > { %v1159_v34 = vld [vmem:[%s6748_s26 + $0x1e20] sm:$0xff]  ;;  %1156 = vst [vmem:[%s6753_s27 + $0xf00] sm:$0xff] %v1155_v32  ;;  %1158 = vst [vmem:[%s6753_s27 + $0xf08] sm:$0xff] %v1157_v33  ;;  %v1161_v35 = vld [vmem:[%s6748_s26 + $0x1e28] sm:$0xff] }
 0x103   : > { %1160 = vst [vmem:[%s6753_s27 + $0xf10] sm:$0xff] %v1159_v34  ;;  %v1163_v36 = vld [vmem:[%s6748_s26 + $0x1e40] sm:$0xff]  ;;  %v1165_v37 = vld [vmem:[%s6748_s26 + $0x1e48] sm:$0xff]  ;;  %1162 = vst [vmem:[%s6753_s27 + $0xf18] sm:$0xff] %v1161_v35 }
 0x104   : > { %1164 = vst [vmem:[%s6753_s27 + $0xf20] sm:$0xff] %v1163_v36  ;;  %1166 = vst [vmem:[%s6753_s27 + $0xf28] sm:$0xff] %v1165_v37  ;;  %v1167_v38 = vld [vmem:[%s6748_s26 + $0x1e60] sm:$0xff]  ;;  %v1169_v39 = vld [vmem:[%s6748_s26 + $0x1e68] sm:$0xff] }
 0x105   : > { %v1171_v40 = vld [vmem:[%s6748_s26 + $0x1e80] sm:$0xff]  ;;  %1168 = vst [vmem:[%s6753_s27 + $0xf30] sm:$0xff] %v1167_v38  ;;  %1170 = vst [vmem:[%s6753_s27 + $0xf38] sm:$0xff] %v1169_v39  ;;  %v1173_v41 = vld [vmem:[%s6748_s26 + $0x1e88] sm:$0xff] }
 0x106   : > { %1172 = vst [vmem:[%s6753_s27 + $0xf40] sm:$0xff] %v1171_v40  ;;  %v1175_v42 = vld [vmem:[%s6748_s26 + $0x1ea0] sm:$0xff]  ;;  %v1177_v43 = vld [vmem:[%s6748_s26 + $0x1ea8] sm:$0xff]  ;;  %1174 = vst [vmem:[%s6753_s27 + $0xf48] sm:$0xff] %v1173_v41 }
 0x107   : > { %1176 = vst [vmem:[%s6753_s27 + $0xf50] sm:$0xff] %v1175_v42  ;;  %1178 = vst [vmem:[%s6753_s27 + $0xf58] sm:$0xff] %v1177_v43  ;;  %v1179_v44 = vld [vmem:[%s6748_s26 + $0x1ec0] sm:$0xff]  ;;  %v1181_v45 = vld [vmem:[%s6748_s26 + $0x1ec8] sm:$0xff] }
 0x108   : > { %v1183_v46 = vld [vmem:[%s6748_s26 + $0x1ee0] sm:$0xff]  ;;  %1180 = vst [vmem:[%s6753_s27 + $0xf60] sm:$0xff] %v1179_v44  ;;  %1182 = vst [vmem:[%s6753_s27 + $0xf68] sm:$0xff] %v1181_v45  ;;  %v1185_v47 = vld [vmem:[%s6748_s26 + $0x1ee8] sm:$0xff] }
 0x109   : > { %1184 = vst [vmem:[%s6753_s27 + $0xf70] sm:$0xff] %v1183_v46  ;;  %v1187_v48 = vld [vmem:[%s6748_s26 + $0x1f00] sm:$0xff]  ;;  %v1189_v49 = vld [vmem:[%s6748_s26 + $0x1f08] sm:$0xff]  ;;  %1186 = vst [vmem:[%s6753_s27 + $0xf78] sm:$0xff] %v1185_v47 }
 0x10a   : > { %1188 = vst [vmem:[%s6753_s27 + $0xf80] sm:$0xff] %v1187_v48  ;;  %1190 = vst [vmem:[%s6753_s27 + $0xf88] sm:$0xff] %v1189_v49  ;;  %v1191_v50 = vld [vmem:[%s6748_s26 + $0x1f20] sm:$0xff]  ;;  %v1193_v51 = vld [vmem:[%s6748_s26 + $0x1f28] sm:$0xff] }
 0x10b   : > { %v1195_v52 = vld [vmem:[%s6748_s26 + $0x1f40] sm:$0xff]  ;;  %1192 = vst [vmem:[%s6753_s27 + $0xf90] sm:$0xff] %v1191_v50  ;;  %1194 = vst [vmem:[%s6753_s27 + $0xf98] sm:$0xff] %v1193_v51  ;;  %v1197_v53 = vld [vmem:[%s6748_s26 + $0x1f48] sm:$0xff] }
 0x10c   : > { %1196 = vst [vmem:[%s6753_s27 + $0xfa0] sm:$0xff] %v1195_v52  ;;  %v1199_v54 = vld [vmem:[%s6748_s26 + $0x1f60] sm:$0xff]  ;;  %v1201_v55 = vld [vmem:[%s6748_s26 + $0x1f68] sm:$0xff]  ;;  %1198 = vst [vmem:[%s6753_s27 + $0xfa8] sm:$0xff] %v1197_v53 }
 0x10d   : > { %1200 = vst [vmem:[%s6753_s27 + $0xfb0] sm:$0xff] %v1199_v54  ;;  %1202 = vst [vmem:[%s6753_s27 + $0xfb8] sm:$0xff] %v1201_v55  ;;  %v1203_v56 = vld [vmem:[%s6748_s26 + $0x1f80] sm:$0xff]  ;;  %v1205_v57 = vld [vmem:[%s6748_s26 + $0x1f88] sm:$0xff] }
 0x10e   : > { %v1207_v58 = vld [vmem:[%s6748_s26 + $0x1fa0] sm:$0xff]  ;;  %1204 = vst [vmem:[%s6753_s27 + $0xfc0] sm:$0xff] %v1203_v56  ;;  %1206 = vst [vmem:[%s6753_s27 + $0xfc8] sm:$0xff] %v1205_v57  ;;  %v1209_v59 = vld [vmem:[%s6748_s26 + $0x1fa8] sm:$0xff] }
 0x10f   : > { %1208 = vst [vmem:[%s6753_s27 + $0xfd0] sm:$0xff] %v1207_v58  ;;  %v1211_v60 = vld [vmem:[%s6748_s26 + $0x1fc0] sm:$0xff]  ;;  %v1213_v61 = vld [vmem:[%s6748_s26 + $0x1fc8] sm:$0xff]  ;;  %1210 = vst [vmem:[%s6753_s27 + $0xfd8] sm:$0xff] %v1209_v59 }
 0x110   : > { %1212 = vst [vmem:[%s6753_s27 + $0xfe0] sm:$0xff] %v1211_v60  ;;  %1214 = vst [vmem:[%s6753_s27 + $0xfe8] sm:$0xff] %v1213_v61  ;;  %v1215_v62 = vld [vmem:[%s6748_s26 + $0x1fe0] sm:$0xff]  ;;  %v1217_v63 = vld [vmem:[%s6748_s26 + $0x1fe8] sm:$0xff] }
 0x111   : > { %1216 = vst [vmem:[%s6753_s27 + $0xff0] sm:$0xff] %v1215_v62  ;;  %1218 = vst [vmem:[%s6753_s27 + $0xff8] sm:$0xff] %v1217_v63 }
 0x112 PF: > { %p5285_p6 = scmp.ge.s32.totalorder %s6683_s16, 1  ;;  %p1231_p7 = scmp.lt.s32.totalorder %s6683_s16, 3 }
 0x114   : > { %p1232_p8 = pnand %p5285_p6, %p1231_p7 }
 0x115   : > { %s1238_s28 = sand.u32 (!%p1232_p8), 1, %s6667_s12   ;;  %v7782_v0 = vld [vmem:[%s8491_s0] sm:$0xff] (!%p1232_p8)  ;;  %v7787_v1 = vld [vmem:[%s8491_s0 + $0x8] sm:$0xff] (!%p1232_p8)  ;;  %s5287_s26 = sshll.u32 (!%p1232_p8), %s6675_s14, 2 }
 0x116   : > { %1235 = sbr.rel (%p1232_p8) target bundleno = 1013 (0x3f5), region = 51  ;;  %s5286_s6 = sshll.u32 (!%p1232_p8), %s1238_s28, 12  ;;  %v7791_v2 = vcombine.high (!%p1232_p8), %v7782_v0, %v7782_v0  ;;  %v7795_v3 = vcombine.high (!%p1232_p8), %v7787_v1, %v7787_v1 }
 0x117   : > { %s7797_s7 = scalar_lea.vmem (!%p1232_p8), [#allocation3], %s5286_s6  ;;  %p1291_p9 = scmp.lt.s32.totalorder (!%p1232_p8), %s5287_s26, 7 }
 0x118   : > { %v5861_v4 = vld [vmem:[%s7797_s7 + $0x4] ss:$16 sps:$4 sm:$0xff] (!%p1232_p8)   ;;  %4485 = vmatprep.mubr.bf16.mxu0 (!%p1232_p8), %v7791_v2  ;;  %4526 = vmatprep.mubr.bf16.mxu1 (!%p1232_p8), %v7795_v3  ;;  %v5865_v6 = vld [vmem:[%s7797_s7] ss:$16 sps:$4 sm:$0xff] (!%p1232_p8)  }
 0x119   : > { %v5863_v5 = vld [vmem:[%s7797_s7 + $0x204] ss:$16 sps:$4 sm:$0xff] (!%p1232_p8)   ;;  %4453 = vmatprep.subr.bf16.mxu0 (!%p1232_p8), %v5861_v4  ;;  %v5866_v7 = vld [vmem:[%s7797_s7 + $0x200] ss:$16 sps:$4 sm:$0xff] (!%p1232_p8)  }
 0x11a   : > { %4494 = vmatprep.subr.bf16.mxu1 (!%p1232_p8), %v5863_v5  ;;  %v5867_v8 = vld [vmem:[%s7797_s7 + $0x24] ss:$16 sps:$4 sm:$0xff] (!%p1232_p8)   ;;  %4454 = vmatpush1.bf16.msra.mxu0 (!%p1232_p8), %v5865_v6  ;;  %v5871_v10 = vld [vmem:[%s7797_s7 + $0x20] ss:$16 sps:$4 sm:$0xff] (!%p1232_p8)  }
 0x11b   : > { %4495 = vmatpush1.bf16.msra.mxu1 (!%p1232_p8), %v5866_v7  ;;  %v5869_v9 = vld [vmem:[%s7797_s7 + $0x224] ss:$16 sps:$4 sm:$0xff] (!%p1232_p8)   ;;  %4455 = vmatprep.subr.bf16.mxu0 (!%p1232_p8), %v5867_v8  ;;  %v5872_v11 = vld [vmem:[%s7797_s7 + $0x220] ss:$16 sps:$4 sm:$0xff] (!%p1232_p8)  }
 0x11c   : > { %4496 = vmatprep.subr.bf16.mxu1 (!%p1232_p8), %v5869_v9  ;;  %v5873_v12 = vld [vmem:[%s7797_s7 + $0x44] ss:$16 sps:$4 sm:$0xff] (!%p1232_p8)   ;;  %v5877_v14 = vld [vmem:[%s7797_s7 + $0x40] ss:$16 sps:$4 sm:$0xff] (!%p1232_p8)  }
 0x11d   : > { %v5875_v13 = vld [vmem:[%s7797_s7 + $0x244] ss:$16 sps:$4 sm:$0xff]   ;;  %v5878_v15 = vld [vmem:[%s7797_s7 + $0x240] ss:$16 sps:$4 sm:$0xff]   ;;  %s8502_s26 = smov (!%p1291_p9, %s5287_s26), 7 }
 0x11e   : > { %4456 = vmatpush1.bf16.msra.mxu0 %v5871_v10  ;;  %v5879_v16 = vld [vmem:[%s7797_s7 + $0x64] ss:$16 sps:$4 sm:$0xff]   ;;  %v5883_v18 = vld [vmem:[%s7797_s7 + $0x60] ss:$16 sps:$4 sm:$0xff]   ;;  %s1293_s28 = scalar_lea.vmem %s8493_s2, %s8502_s26  ;;  %s5289_s29 = sshll.u32 %s8502_s26, 3 }
 0x11f   : > { %4497 = vmatpush1.bf16.msra.mxu1 %v5872_v11  ;;  %4457 = vmatprep.subr.bf16.mxu0 %v5873_v12  ;;  %v5881_v17 = vld [vmem:[%s7797_s7 + $0x264] ss:$16 sps:$4 sm:$0xff]   ;;  %v5884_v19 = vld [vmem:[%s7797_s7 + $0x260] ss:$16 sps:$4 sm:$0xff]   ;;  %v7875_v11 = vld [vmem:[%s8491_s0 + $0x18] sm:$0xff]  ;;  %v7879_v12 = vcombine.low %v7782_v0, %v7782_v0  ;;  %s8430_s5 = scalar_lea.vmem %s8494_s3, %s5289_s29 }
 0x120   : > { %4498 = vmatprep.subr.bf16.mxu1 %v5875_v13  ;;  %v5885_v20 = vld [vmem:[%s7797_s7 + $0x84] ss:$16 sps:$4 sm:$0xff]   ;;  %v5889_v22 = vld [vmem:[%s7797_s7 + $0x80] ss:$16 sps:$4 sm:$0xff]   ;;  %v7883_v13 = vcombine.low %v7787_v1, %v7787_v1  ;;  %v7895_v1 = vcombine.high %v7875_v11, %v7875_v11 }
 0x121   : > { %v5887_v21 = vld [vmem:[%s7797_s7 + $0x284] ss:$16 sps:$4 sm:$0xff]   ;;  %v5890_v23 = vld [vmem:[%s7797_s7 + $0x280] ss:$16 sps:$4 sm:$0xff]  }
 0x122   : > { %4458 = vmatpush1.bf16.msra.mxu0 %v5877_v14  ;;  %v5891_v24 = vld [vmem:[%s7797_s7 + $0xa4] ss:$16 sps:$4 sm:$0xff]   ;;  %v5895_v26 = vld [vmem:[%s7797_s7 + $0xa0] ss:$16 sps:$4 sm:$0xff]  }
 0x123   : > { %4499 = vmatpush1.bf16.msra.mxu1 %v5878_v15  ;;  %4459 = vmatprep.subr.bf16.mxu0 %v5879_v16  ;;  %v5893_v25 = vld [vmem:[%s7797_s7 + $0x2a4] ss:$16 sps:$4 sm:$0xff]   ;;  %v5896_v27 = vld [vmem:[%s7797_s7 + $0x2a0] ss:$16 sps:$4 sm:$0xff]  }
 0x124   : > { %4500 = vmatprep.subr.bf16.mxu1 %v5881_v17  ;;  %v5897_v28 = vld [vmem:[%s7797_s7 + $0xc4] ss:$16 sps:$4 sm:$0xff]   ;;  %v5901_v30 = vld [vmem:[%s7797_s7 + $0xc0] ss:$16 sps:$4 sm:$0xff]  }
 0x125   : > { %v5899_v29 = vld [vmem:[%s7797_s7 + $0x2c4] ss:$16 sps:$4 sm:$0xff]   ;;  %v5902_v31 = vld [vmem:[%s7797_s7 + $0x2c0] ss:$16 sps:$4 sm:$0xff]  }
 0x126   : > { %4460 = vmatpush1.bf16.msra.mxu0 %v5883_v18  ;;  %v5903_v32 = vld [vmem:[%s7797_s7 + $0xe4] ss:$16 sps:$4 sm:$0xff]   ;;  %v5907_v34 = vld [vmem:[%s7797_s7 + $0xe0] ss:$16 sps:$4 sm:$0xff]  }
 0x127   : > { %4501 = vmatpush1.bf16.msra.mxu1 %v5884_v19  ;;  %4461 = vmatprep.subr.bf16.mxu0 %v5885_v20  ;;  %v5905_v33 = vld [vmem:[%s7797_s7 + $0x2e4] ss:$16 sps:$4 sm:$0xff]   ;;  %v5908_v35 = vld [vmem:[%s7797_s7 + $0x2e0] ss:$16 sps:$4 sm:$0xff]  }
 0x128   : > { %4502 = vmatprep.subr.bf16.mxu1 %v5887_v21  ;;  %v5909_v36 = vld [vmem:[%s7797_s7 + $0x104] ss:$16 sps:$4 sm:$0xff]   ;;  %v5913_v38 = vld [vmem:[%s7797_s7 + $0x100] ss:$16 sps:$4 sm:$0xff]  }
 0x129   : > { %v5911_v37 = vld [vmem:[%s7797_s7 + $0x304] ss:$16 sps:$4 sm:$0xff]   ;;  %v5914_v39 = vld [vmem:[%s7797_s7 + $0x300] ss:$16 sps:$4 sm:$0xff]  }
 0x12a   : > { %4462 = vmatpush1.bf16.msra.mxu0 %v5889_v22  ;;  %v5915_v40 = vld [vmem:[%s7797_s7 + $0x124] ss:$16 sps:$4 sm:$0xff]   ;;  %v5919_v42 = vld [vmem:[%s7797_s7 + $0x120] ss:$16 sps:$4 sm:$0xff]  }
 0x12b   : > { %4503 = vmatpush1.bf16.msra.mxu1 %v5890_v23  ;;  %4463 = vmatprep.subr.bf16.mxu0 %v5891_v24  ;;  %v5917_v41 = vld [vmem:[%s7797_s7 + $0x324] ss:$16 sps:$4 sm:$0xff]   ;;  %v5920_v43 = vld [vmem:[%s7797_s7 + $0x320] ss:$16 sps:$4 sm:$0xff]  }
 0x12c   : > { %4504 = vmatprep.subr.bf16.mxu1 %v5893_v25  ;;  %v5921_v44 = vld [vmem:[%s7797_s7 + $0x144] ss:$16 sps:$4 sm:$0xff]   ;;  %v5925_v46 = vld [vmem:[%s7797_s7 + $0x140] ss:$16 sps:$4 sm:$0xff]  }
 0x12d   : > { %v5923_v45 = vld [vmem:[%s7797_s7 + $0x344] ss:$16 sps:$4 sm:$0xff]   ;;  %v5926_v47 = vld [vmem:[%s7797_s7 + $0x340] ss:$16 sps:$4 sm:$0xff]  }
 0x12e   : > { %4464 = vmatpush1.bf16.msra.mxu0 %v5895_v26  ;;  %v5927_v48 = vld [vmem:[%s7797_s7 + $0x164] ss:$16 sps:$4 sm:$0xff]   ;;  %v5931_v50 = vld [vmem:[%s7797_s7 + $0x160] ss:$16 sps:$4 sm:$0xff]  }
 0x12f   : > { %4505 = vmatpush1.bf16.msra.mxu1 %v5896_v27  ;;  %4465 = vmatprep.subr.bf16.mxu0 %v5897_v28  ;;  %v5929_v49 = vld [vmem:[%s7797_s7 + $0x364] ss:$16 sps:$4 sm:$0xff]   ;;  %v5932_v51 = vld [vmem:[%s7797_s7 + $0x360] ss:$16 sps:$4 sm:$0xff]  }
 0x130   : > { %4506 = vmatprep.subr.bf16.mxu1 %v5899_v29  ;;  %v5933_v52 = vld [vmem:[%s7797_s7 + $0x184] ss:$16 sps:$4 sm:$0xff]   ;;  %v5937_v54 = vld [vmem:[%s7797_s7 + $0x180] ss:$16 sps:$4 sm:$0xff]  }
 0x131   : > { %v5935_v53 = vld [vmem:[%s7797_s7 + $0x384] ss:$16 sps:$4 sm:$0xff]   ;;  %v5938_v55 = vld [vmem:[%s7797_s7 + $0x380] ss:$16 sps:$4 sm:$0xff]  }
 0x132   : > { %4466 = vmatpush1.bf16.msra.mxu0 %v5901_v30  ;;  %v5939_v56 = vld [vmem:[%s7797_s7 + $0x1a4] ss:$16 sps:$4 sm:$0xff]   ;;  %v5943_v58 = vld [vmem:[%s7797_s7 + $0x1a0] ss:$16 sps:$4 sm:$0xff]  }
 0x133   : > { %4507 = vmatpush1.bf16.msra.mxu1 %v5902_v31  ;;  %4467 = vmatprep.subr.bf16.mxu0 %v5903_v32  ;;  %v5941_v57 = vld [vmem:[%s7797_s7 + $0x3a4] ss:$16 sps:$4 sm:$0xff]   ;;  %v5944_v59 = vld [vmem:[%s7797_s7 + $0x3a0] ss:$16 sps:$4 sm:$0xff]  }
 0x134   : > { %4508 = vmatprep.subr.bf16.mxu1 %v5905_v33  ;;  %v5945_v60 = vld [vmem:[%s7797_s7 + $0x1c4] ss:$16 sps:$4 sm:$0xff]   ;;  %v5949_v62 = vld [vmem:[%s7797_s7 + $0x1c0] ss:$16 sps:$4 sm:$0xff]  }
 0x135   : > { %v5947_v61 = vld [vmem:[%s7797_s7 + $0x3c4] ss:$16 sps:$4 sm:$0xff]   ;;  %v5950_v63 = vld [vmem:[%s7797_s7 + $0x3c0] ss:$16 sps:$4 sm:$0xff]  }
 0x136   : > { %4468 = vmatpush1.bf16.msra.mxu0 %v5907_v34  ;;  %v5951_v4 = vld [vmem:[%s7797_s7 + $0x1e4] ss:$16 sps:$4 sm:$0xff]   ;;  %v5955_v6 = vld [vmem:[%s7797_s7 + $0x1e0] ss:$16 sps:$4 sm:$0xff]  }
 0x137   : > { %4509 = vmatpush1.bf16.msra.mxu1 %v5908_v35  ;;  %4469 = vmatprep.subr.bf16.mxu0 %v5909_v36  ;;  %v5953_v5 = vld [vmem:[%s7797_s7 + $0x3e4] ss:$16 sps:$4 sm:$0xff]   ;;  %v5956_v7 = vld [vmem:[%s7797_s7 + $0x3e0] ss:$16 sps:$4 sm:$0xff]  }
 0x138   : > { %4510 = vmatprep.subr.bf16.mxu1 %v5911_v37  ;;  %v5963_v8 = vld [vmem:[%s7797_s7 + $0x404] ss:$16 sps:$4 sm:$0xff]   ;;  %v5961_v14 = vld [vmem:[%s7797_s7 + $0x400] ss:$16 sps:$4 sm:$0xff]  }
 0x139   : > { %v5966_v9 = vld [vmem:[%s7797_s7 + $0x604] ss:$16 sps:$4 sm:$0xff]   ;;  %v5964_v15 = vld [vmem:[%s7797_s7 + $0x600] ss:$16 sps:$4 sm:$0xff]  }
 0x13a   : > { %4470 = vmatpush1.bf16.msra.mxu0 %v5913_v38  ;;  %v7870_v10 = vld [vmem:[%s8491_s0 + $0x10] sm:$0xff] }
 0x13b   : > { %4511 = vmatpush1.bf16.msra.mxu1 %v5914_v39  ;;  %4471 = vmatprep.subr.bf16.mxu0 %v5915_v40  ;;  %v5969_v16 = vld [vmem:[%s7797_s7 + $0x424] ss:$16 sps:$4 sm:$0xff]   ;;  %v7891_v0 = vcombine.high %v7870_v10, %v7870_v10  ;;  %v5967_v18 = vld [vmem:[%s7797_s7 + $0x420] ss:$16 sps:$4 sm:$0xff]  }
 0x13c   : > { %4512 = vmatprep.subr.bf16.mxu1 %v5917_v41  ;;  %v5972_v17 = vld [vmem:[%s7797_s7 + $0x624] ss:$16 sps:$4 sm:$0xff]   ;;  %v5970_v19 = vld [vmem:[%s7797_s7 + $0x620] ss:$16 sps:$4 sm:$0xff]  }
 0x13d   : > { %v5975_v20 = vld [vmem:[%s7797_s7 + $0x444] ss:$16 sps:$4 sm:$0xff]   ;;  %v5973_v22 = vld [vmem:[%s7797_s7 + $0x440] ss:$16 sps:$4 sm:$0xff]  }
 0x13e   : > { %4472 = vmatpush1.bf16.msra.mxu0 %v5919_v42  ;;  %v5978_v21 = vld [vmem:[%s7797_s7 + $0x644] ss:$16 sps:$4 sm:$0xff]   ;;  %v5976_v23 = vld [vmem:[%s7797_s7 + $0x640] ss:$16 sps:$4 sm:$0xff]  }
 0x13f   : > { %4513 = vmatpush1.bf16.msra.mxu1 %v5920_v43  ;;  %4473 = vmatprep.subr.bf16.mxu0 %v5921_v44  ;;  %v5981_v24 = vld [vmem:[%s7797_s7 + $0x464] ss:$16 sps:$4 sm:$0xff]   ;;  %v5979_v26 = vld [vmem:[%s7797_s7 + $0x460] ss:$16 sps:$4 sm:$0xff]  }
 0x140   : > { %4514 = vmatprep.subr.bf16.mxu1 %v5923_v45  ;;  %v5984_v25 = vld [vmem:[%s7797_s7 + $0x664] ss:$16 sps:$4 sm:$0xff]   ;;  %v5982_v27 = vld [vmem:[%s7797_s7 + $0x660] ss:$16 sps:$4 sm:$0xff]  }
 0x141   : > { %v5987_v28 = vld [vmem:[%s7797_s7 + $0x484] ss:$16 sps:$4 sm:$0xff]   ;;  %v5985_v30 = vld [vmem:[%s7797_s7 + $0x480] ss:$16 sps:$4 sm:$0xff]  }
 0x142   : > { %4474 = vmatpush1.bf16.msra.mxu0 %v5925_v46  ;;  %v5990_v29 = vld [vmem:[%s7797_s7 + $0x684] ss:$16 sps:$4 sm:$0xff]   ;;  %v5988_v31 = vld [vmem:[%s7797_s7 + $0x680] ss:$16 sps:$4 sm:$0xff]  }
 0x143   : > { %4515 = vmatpush1.bf16.msra.mxu1 %v5926_v47  ;;  %4475 = vmatprep.subr.bf16.mxu0 %v5927_v48  ;;  %v5993_v32 = vld [vmem:[%s7797_s7 + $0x4a4] ss:$16 sps:$4 sm:$0xff]   ;;  %v5991_v34 = vld [vmem:[%s7797_s7 + $0x4a0] ss:$16 sps:$4 sm:$0xff]  }
 0x144   : > { %4516 = vmatprep.subr.bf16.mxu1 %v5929_v49  ;;  %v5996_v33 = vld [vmem:[%s7797_s7 + $0x6a4] ss:$16 sps:$4 sm:$0xff]   ;;  %v5994_v35 = vld [vmem:[%s7797_s7 + $0x6a0] ss:$16 sps:$4 sm:$0xff]  }
 0x145   : > { %v5999_v36 = vld [vmem:[%s7797_s7 + $0x4c4] ss:$16 sps:$4 sm:$0xff]   ;;  %v5997_v38 = vld [vmem:[%s7797_s7 + $0x4c0] ss:$16 sps:$4 sm:$0xff]  }
 0x146   : > { %4476 = vmatpush1.bf16.msra.mxu0 %v5931_v50  ;;  %v6002_v37 = vld [vmem:[%s7797_s7 + $0x6c4] ss:$16 sps:$4 sm:$0xff]   ;;  %v6000_v39 = vld [vmem:[%s7797_s7 + $0x6c0] ss:$16 sps:$4 sm:$0xff]  }
 0x147   : > { %4517 = vmatpush1.bf16.msra.mxu1 %v5932_v51  ;;  %4477 = vmatprep.subr.bf16.mxu0 %v5933_v52  ;;  %v6005_v40 = vld [vmem:[%s7797_s7 + $0x4e4] ss:$16 sps:$4 sm:$0xff]   ;;  %v6003_v42 = vld [vmem:[%s7797_s7 + $0x4e0] ss:$16 sps:$4 sm:$0xff]  }
 0x148   : > { %4518 = vmatprep.subr.bf16.mxu1 %v5935_v53  ;;  %v6008_v41 = vld [vmem:[%s7797_s7 + $0x6e4] ss:$16 sps:$4 sm:$0xff]   ;;  %v6006_v43 = vld [vmem:[%s7797_s7 + $0x6e0] ss:$16 sps:$4 sm:$0xff]  }
 0x149   : > { %v6011_v44 = vld [vmem:[%s7797_s7 + $0x504] ss:$16 sps:$4 sm:$0xff]   ;;  %v6009_v46 = vld [vmem:[%s7797_s7 + $0x500] ss:$16 sps:$4 sm:$0xff]  }
 0x14a   : > { %4478 = vmatpush1.bf16.msra.mxu0 %v5937_v54  ;;  %v6014_v45 = vld [vmem:[%s7797_s7 + $0x704] ss:$16 sps:$4 sm:$0xff]   ;;  %v6012_v47 = vld [vmem:[%s7797_s7 + $0x700] ss:$16 sps:$4 sm:$0xff]  }
 0x14b   : > { %4519 = vmatpush1.bf16.msra.mxu1 %v5938_v55  ;;  %4479 = vmatprep.subr.bf16.mxu0 %v5939_v56  ;;  %v6017_v48 = vld [vmem:[%s7797_s7 + $0x524] ss:$16 sps:$4 sm:$0xff]   ;;  %v6015_v50 = vld [vmem:[%s7797_s7 + $0x520] ss:$16 sps:$4 sm:$0xff]  }
 0x14c   : > { %4520 = vmatprep.subr.bf16.mxu1 %v5941_v57  ;;  %v6020_v49 = vld [vmem:[%s7797_s7 + $0x724] ss:$16 sps:$4 sm:$0xff]   ;;  %v6018_v51 = vld [vmem:[%s7797_s7 + $0x720] ss:$16 sps:$4 sm:$0xff]  }
 0x14d   : > { %v6023_v52 = vld [vmem:[%s7797_s7 + $0x544] ss:$16 sps:$4 sm:$0xff]   ;;  %v6021_v54 = vld [vmem:[%s7797_s7 + $0x540] ss:$16 sps:$4 sm:$0xff]  }
 0x14e   : > { %4480 = vmatpush1.bf16.msra.mxu0 %v5943_v58  ;;  %v6026_v53 = vld [vmem:[%s7797_s7 + $0x744] ss:$16 sps:$4 sm:$0xff]   ;;  %v6024_v55 = vld [vmem:[%s7797_s7 + $0x740] ss:$16 sps:$4 sm:$0xff]  }
 0x14f   : > { %4521 = vmatpush1.bf16.msra.mxu1 %v5944_v59  ;;  %4481 = vmatprep.subr.bf16.mxu0 %v5945_v60  ;;  %v6029_v56 = vld [vmem:[%s7797_s7 + $0x564] ss:$16 sps:$4 sm:$0xff]   ;;  %v6027_v58 = vld [vmem:[%s7797_s7 + $0x560] ss:$16 sps:$4 sm:$0xff]  }
 0x150   : > { %4522 = vmatprep.subr.bf16.mxu1 %v5947_v61  ;;  %v6032_v57 = vld [vmem:[%s7797_s7 + $0x764] ss:$16 sps:$4 sm:$0xff]   ;;  %v6030_v59 = vld [vmem:[%s7797_s7 + $0x760] ss:$16 sps:$4 sm:$0xff]  }
 0x151   : > { %v6035_v60 = vld [vmem:[%s7797_s7 + $0x584] ss:$16 sps:$4 sm:$0xff]  }
 0x152   : > { %4482 = vmatpush1.bf16.msra.mxu0 %v5949_v62  ;;  %v6038_v61 = vld [vmem:[%s7797_s7 + $0x784] ss:$16 sps:$4 sm:$0xff]   ;;  %v6033_v62 = vld [vmem:[%s7797_s7 + $0x580] ss:$16 sps:$4 sm:$0xff]  }
 0x153   : > { %4523 = vmatpush1.bf16.msra.mxu1 %v5950_v63  ;;  %4483 = vmatprep.subr.bf16.mxu0 %v5951_v4  ;;  %v6036_v63 = vld [vmem:[%s7797_s7 + $0x780] ss:$16 sps:$4 sm:$0xff]   ;;  %v6041_v4 = vld [vmem:[%s7797_s7 + $0x5a4] ss:$16 sps:$4 sm:$0xff]  }
 0x154   : > { %4524 = vmatprep.subr.bf16.mxu1 %v5953_v5  ;;  %v6044_v5 = vld [vmem:[%s7797_s7 + $0x7a4] ss:$16 sps:$4 sm:$0xff]  }
 0x156   : > { %4484 = vmatpush1.bf16.msra.mxu0 %v5955_v6  ;;  %v6039_v6 = vld [vmem:[%s7797_s7 + $0x5a0] ss:$16 sps:$4 sm:$0xff]  }
 0x157   : > { %4525 = vmatpush1.bf16.msra.mxu1 %v5956_v7  ;;  %4535 = vmatprep.subr.bf16.mxu0 %v5963_v8  ;;  %v6042_v7 = vld [vmem:[%s7797_s7 + $0x7a0] ss:$16 sps:$4 sm:$0xff]   ;;  %v6047_v8 = vld [vmem:[%s7797_s7 + $0x5c4] ss:$16 sps:$4 sm:$0xff]  }
 0x158   : > { %4576 = vmatprep.subr.bf16.mxu1 %v5966_v9  ;;  %v6050_v9 = vld [vmem:[%s7797_s7 + $0x7c4] ss:$16 sps:$4 sm:$0xff]  }
 0x159   : > { %4486 = vmatmul.mubr.bf16.vlgmr.msra.gmra.mrb[0].mxu0 %v7879_v12 }
 0x15a   : > { %4527 = vmatmul.mubr.bf16.vlgmr.msra.gmra.mrb[0].mxu1 %v7883_v13  ;;  %4536 = vmatpush1.bf16.msra.mxu0 %v5961_v14  ;;  %v6045_v14 = vld [vmem:[%s7797_s7 + $0x5c0] ss:$16 sps:$4 sm:$0xff]  }
 0x15b   : > { %4577 = vmatpush1.bf16.msra.mxu1 %v5964_v15  ;;  %4537 = vmatprep.subr.bf16.mxu0 %v5969_v16  ;;  %v6048_v15 = vld [vmem:[%s7797_s7 + $0x7c0] ss:$16 sps:$4 sm:$0xff]   ;;  %v6053_v16 = vld [vmem:[%s7797_s7 + $0x5e4] ss:$16 sps:$4 sm:$0xff]  }
 0x15c   : > { %4578 = vmatprep.subr.bf16.mxu1 %v5972_v17  ;;  %4567 = vmatprep.mubr.bf16.mxu0 %v7891_v0  ;;  %v6056_v17 = vld [vmem:[%s7797_s7 + $0x7e4] ss:$16 sps:$4 sm:$0xff]  }
 0x15d   : > { %4608 = vmatprep.mubr.bf16.mxu1 %v7895_v1 }
 0x15e   : > { %4538 = vmatpush1.bf16.msra.mxu0 %v5967_v18  ;;  %v6051_v18 = vld [vmem:[%s7797_s7 + $0x5e0] ss:$16 sps:$4 sm:$0xff]  }
 0x15f   : > { %4579 = vmatpush1.bf16.msra.mxu1 %v5970_v19  ;;  %4539 = vmatprep.subr.bf16.mxu0 %v5975_v20  ;;  %v6054_v19 = vld [vmem:[%s7797_s7 + $0x7e0] ss:$16 sps:$4 sm:$0xff]   ;;  %v6063_v20 = vld [vmem:[%s7797_s7 + $0x804] ss:$16 sps:$4 sm:$0xff]  }
 0x160   : > { %4580 = vmatprep.subr.bf16.mxu1 %v5978_v21  ;;  %v6066_v21 = vld [vmem:[%s7797_s7 + $0xa04] ss:$16 sps:$4 sm:$0xff]  }
 0x162   : > { %4540 = vmatpush1.bf16.msra.mxu0 %v5973_v22  ;;  %v7963_v22 = vcombine.low %v7870_v10, %v7870_v10  ;;  %v7979_v10 = vld [vmem:[%s8491_s0 + $0x28] sm:$0xff] }
 0x163   : > { %4581 = vmatpush1.bf16.msra.mxu1 %v5976_v23  ;;  %4541 = vmatprep.subr.bf16.mxu0 %v5981_v24  ;;  %v7967_v23 = vcombine.low %v7875_v11, %v7875_v11  ;;  %v6061_v24 = vld [vmem:[%s7797_s7 + $0x800] ss:$16 sps:$4 sm:$0xff]   ;;  %v6069_v11 = vld [vmem:[%s7797_s7 + $0x824] ss:$16 sps:$4 sm:$0xff]  }
 0x164   : > { %4582 = vmatprep.subr.bf16.mxu1 %v5984_v25  ;;  %v6064_v25 = vld [vmem:[%s7797_s7 + $0xa00] ss:$16 sps:$4 sm:$0xff]  }
 0x166   : > { %4542 = vmatpush1.bf16.msra.mxu0 %v5979_v26  ;;  %v7974_v26 = vld [vmem:[%s8491_s0 + $0x20] sm:$0xff] }
 0x167   : > { %4583 = vmatpush1.bf16.msra.mxu1 %v5982_v27  ;;  %4543 = vmatprep.subr.bf16.mxu0 %v5987_v28  ;;  %v6072_v27 = vld [vmem:[%s7797_s7 + $0xa24] ss:$16 sps:$4 sm:$0xff]   ;;  %v7985_v28 = vcombine.high %v7974_v26, %v7974_v26 }
 0x168   : > { %4584 = vmatprep.subr.bf16.mxu1 %v5990_v29  ;;  %v7989_v29 = vcombine.high %v7979_v10, %v7979_v10 }
 0x16a   : > { %4544 = vmatpush1.bf16.msra.mxu0 %v5985_v30  ;;  %v6067_v30 = vld [vmem:[%s7797_s7 + $0x820] ss:$16 sps:$4 sm:$0xff]  }
 0x16b   : > { %4585 = vmatpush1.bf16.msra.mxu1 %v5988_v31  ;;  %4545 = vmatprep.subr.bf16.mxu0 %v5993_v32  ;;  %v6070_v31 = vld [vmem:[%s7797_s7 + $0xa20] ss:$16 sps:$4 sm:$0xff]   ;;  %v6075_v32 = vld [vmem:[%s7797_s7 + $0x844] ss:$16 sps:$4 sm:$0xff]  }
 0x16c   : > { %4586 = vmatprep.subr.bf16.mxu1 %v5996_v33  ;;  %v6078_v33 = vld [vmem:[%s7797_s7 + $0xa44] ss:$16 sps:$4 sm:$0xff]  }
 0x16e   : > { %4546 = vmatpush1.bf16.msra.mxu0 %v5991_v34  ;;  %v6073_v34 = vld [vmem:[%s7797_s7 + $0x840] ss:$16 sps:$4 sm:$0xff]  }
 0x16f   : > { %4587 = vmatpush1.bf16.msra.mxu1 %v5994_v35  ;;  %4547 = vmatprep.subr.bf16.mxu0 %v5999_v36  ;;  %v6076_v35 = vld [vmem:[%s7797_s7 + $0xa40] ss:$16 sps:$4 sm:$0xff]   ;;  %v6081_v36 = vld [vmem:[%s7797_s7 + $0x864] ss:$16 sps:$4 sm:$0xff]  }
 0x170   : > { %4588 = vmatprep.subr.bf16.mxu1 %v6002_v37  ;;  %v6084_v37 = vld [vmem:[%s7797_s7 + $0xa64] ss:$16 sps:$4 sm:$0xff]  }
 0x172   : > { %4548 = vmatpush1.bf16.msra.mxu0 %v5997_v38  ;;  %v6079_v38 = vld [vmem:[%s7797_s7 + $0x860] ss:$16 sps:$4 sm:$0xff]  }
 0x173   : > { %4589 = vmatpush1.bf16.msra.mxu1 %v6000_v39  ;;  %4549 = vmatprep.subr.bf16.mxu0 %v6005_v40  ;;  %v6082_v39 = vld [vmem:[%s7797_s7 + $0xa60] ss:$16 sps:$4 sm:$0xff]   ;;  %v6087_v40 = vld [vmem:[%s7797_s7 + $0x884] ss:$16 sps:$4 sm:$0xff]  }
 0x174   : > { %4590 = vmatprep.subr.bf16.mxu1 %v6008_v41  ;;  %v6090_v41 = vld [vmem:[%s7797_s7 + $0xa84] ss:$16 sps:$4 sm:$0xff]  }
 0x176   : > { %4550 = vmatpush1.bf16.msra.mxu0 %v6003_v42  ;;  %v6085_v42 = vld [vmem:[%s7797_s7 + $0x880] ss:$16 sps:$4 sm:$0xff]  }
 0x177   : > { %4591 = vmatpush1.bf16.msra.mxu1 %v6006_v43  ;;  %4551 = vmatprep.subr.bf16.mxu0 %v6011_v44  ;;  %v6088_v43 = vld [vmem:[%s7797_s7 + $0xa80] ss:$16 sps:$4 sm:$0xff]   ;;  %v6093_v44 = vld [vmem:[%s7797_s7 + $0x8a4] ss:$16 sps:$4 sm:$0xff]  }
 0x178   : > { %4592 = vmatprep.subr.bf16.mxu1 %v6014_v45  ;;  %v6096_v45 = vld [vmem:[%s7797_s7 + $0xaa4] ss:$16 sps:$4 sm:$0xff]  }
 0x17a   : > { %4552 = vmatpush1.bf16.msra.mxu0 %v6009_v46  ;;  %v6091_v46 = vld [vmem:[%s7797_s7 + $0x8a0] ss:$16 sps:$4 sm:$0xff]  }
 0x17b   : > { %4593 = vmatpush1.bf16.msra.mxu1 %v6012_v47  ;;  %4553 = vmatprep.subr.bf16.mxu0 %v6017_v48  ;;  %v6094_v47 = vld [vmem:[%s7797_s7 + $0xaa0] ss:$16 sps:$4 sm:$0xff]   ;;  %v6099_v48 = vld [vmem:[%s7797_s7 + $0x8c4] ss:$16 sps:$4 sm:$0xff]  }
 0x17c   : > { %4594 = vmatprep.subr.bf16.mxu1 %v6020_v49  ;;  %v6102_v49 = vld [vmem:[%s7797_s7 + $0xac4] ss:$16 sps:$4 sm:$0xff]  }
 0x17e   : > { %4554 = vmatpush1.bf16.msra.mxu0 %v6015_v50  ;;  %v6097_v50 = vld [vmem:[%s7797_s7 + $0x8c0] ss:$16 sps:$4 sm:$0xff]  }
 0x17f   : > { %4595 = vmatpush1.bf16.msra.mxu1 %v6018_v51  ;;  %4555 = vmatprep.subr.bf16.mxu0 %v6023_v52  ;;  %v6100_v51 = vld [vmem:[%s7797_s7 + $0xac0] ss:$16 sps:$4 sm:$0xff]   ;;  %v6105_v52 = vld [vmem:[%s7797_s7 + $0x8e4] ss:$16 sps:$4 sm:$0xff]  }
 0x180   : > { %4596 = vmatprep.subr.bf16.mxu1 %v6026_v53  ;;  %v6108_v53 = vld [vmem:[%s7797_s7 + $0xae4] ss:$16 sps:$4 sm:$0xff]  }
 0x182   : > { %4556 = vmatpush1.bf16.msra.mxu0 %v6021_v54  ;;  %v6103_v54 = vld [vmem:[%s7797_s7 + $0x8e0] ss:$16 sps:$4 sm:$0xff]  }
 0x183   : > { %4597 = vmatpush1.bf16.msra.mxu1 %v6024_v55  ;;  %4557 = vmatprep.subr.bf16.mxu0 %v6029_v56  ;;  %v6106_v55 = vld [vmem:[%s7797_s7 + $0xae0] ss:$16 sps:$4 sm:$0xff]   ;;  %v6111_v56 = vld [vmem:[%s7797_s7 + $0x904] ss:$16 sps:$4 sm:$0xff]  }
 0x184   : > { %4598 = vmatprep.subr.bf16.mxu1 %v6032_v57  ;;  %v6114_v57 = vld [vmem:[%s7797_s7 + $0xb04] ss:$16 sps:$4 sm:$0xff]  }
 0x186   : > { %4558 = vmatpush1.bf16.msra.mxu0 %v6027_v58  ;;  %v6109_v58 = vld [vmem:[%s7797_s7 + $0x900] ss:$16 sps:$4 sm:$0xff]  }
 0x187   : > { %4599 = vmatpush1.bf16.msra.mxu1 %v6030_v59  ;;  %4559 = vmatprep.subr.bf16.mxu0 %v6035_v60  ;;  %v6112_v59 = vld [vmem:[%s7797_s7 + $0xb00] ss:$16 sps:$4 sm:$0xff]   ;;  %v6117_v60 = vld [vmem:[%s7797_s7 + $0x924] ss:$16 sps:$4 sm:$0xff]  }
 0x188   : > { %4600 = vmatprep.subr.bf16.mxu1 %v6038_v61  ;;  %v6120_v61 = vld [vmem:[%s7797_s7 + $0xb24] ss:$16 sps:$4 sm:$0xff]  }
 0x18a   : > { %4560 = vmatpush1.bf16.msra.mxu0 %v6033_v62  ;;  %v6115_v62 = vld [vmem:[%s7797_s7 + $0x920] ss:$16 sps:$4 sm:$0xff]  }
 0x18b   : > { %4601 = vmatpush1.bf16.msra.mxu1 %v6036_v63  ;;  %4561 = vmatprep.subr.bf16.mxu0 %v6041_v4  ;;  %v6118_v63 = vld [vmem:[%s7797_s7 + $0xb20] ss:$16 sps:$4 sm:$0xff]   ;;  %v6123_v4 = vld [vmem:[%s7797_s7 + $0x944] ss:$16 sps:$4 sm:$0xff]  }
 0x18c   : > { %4602 = vmatprep.subr.bf16.mxu1 %v6044_v5  ;;  %v6126_v5 = vld [vmem:[%s7797_s7 + $0xb44] ss:$16 sps:$4 sm:$0xff]  }
 0x18e   : > { %4562 = vmatpush1.bf16.msra.mxu0 %v6039_v6  ;;  %v6121_v6 = vld [vmem:[%s7797_s7 + $0x940] ss:$16 sps:$4 sm:$0xff]  }
 0x18f   : > { %4603 = vmatpush1.bf16.msra.mxu1 %v6042_v7  ;;  %4563 = vmatprep.subr.bf16.mxu0 %v6047_v8  ;;  %v6124_v7 = vld [vmem:[%s7797_s7 + $0xb40] ss:$16 sps:$4 sm:$0xff]   ;;  %v6129_v8 = vld [vmem:[%s7797_s7 + $0x964] ss:$16 sps:$4 sm:$0xff]  }
 0x190   : > { %4604 = vmatprep.subr.bf16.mxu1 %v6050_v9  ;;  %v6132_v9 = vld [vmem:[%s7797_s7 + $0xb64] ss:$16 sps:$4 sm:$0xff]  }
 0x192   : > { %4564 = vmatpush1.bf16.msra.mxu0 %v6045_v14  ;;  %v6127_v14 = vld [vmem:[%s7797_s7 + $0x960] ss:$16 sps:$4 sm:$0xff]  }
 0x193   : > { %4605 = vmatpush1.bf16.msra.mxu1 %v6048_v15  ;;  %4565 = vmatprep.subr.bf16.mxu0 %v6053_v16  ;;  %v6130_v15 = vld [vmem:[%s7797_s7 + $0xb60] ss:$16 sps:$4 sm:$0xff]   ;;  %v6135_v16 = vld [vmem:[%s7797_s7 + $0x984] ss:$16 sps:$4 sm:$0xff]  }
 0x194   : > { %4606 = vmatprep.subr.bf16.mxu1 %v6056_v17  ;;  %v6138_v17 = vld [vmem:[%s7797_s7 + $0xb84] ss:$16 sps:$4 sm:$0xff]  }
 0x196   : > { %4566 = vmatpush1.bf16.msra.mxu0 %v6051_v18  ;;  %v6133_v18 = vld [vmem:[%s7797_s7 + $0x980] ss:$16 sps:$4 sm:$0xff]  }
 0x197   : > { %4607 = vmatpush1.bf16.msra.mxu1 %v6054_v19  ;;  %4617 = vmatprep.subr.bf16.mxu0 %v6063_v20  ;;  %v6136_v19 = vld [vmem:[%s7797_s7 + $0xb80] ss:$16 sps:$4 sm:$0xff]   ;;  %v6141_v20 = vld [vmem:[%s7797_s7 + $0x9a4] ss:$16 sps:$4 sm:$0xff]  }
 0x198   : > { %4658 = vmatprep.subr.bf16.mxu1 %v6066_v21  ;;  %v6144_v21 = vld [vmem:[%s7797_s7 + $0xba4] ss:$16 sps:$4 sm:$0xff]  }
 0x199   : > { %4568 = vmatmul.mubr.bf16.vlgmr.msra.gmra.mrb[4].mxu0 %v7963_v22 }
 0x19a   : > { %4609 = vmatmul.mubr.bf16.vlgmr.msra.gmra.mrb[4].mxu1 %v7967_v23  ;;  %4618 = vmatpush1.bf16.msra.mxu0 %v6061_v24  ;;  %v6139_v24 = vld [vmem:[%s7797_s7 + $0x9a0] ss:$16 sps:$4 sm:$0xff]  }
 0x19b   : > { %4659 = vmatpush1.bf16.msra.mxu1 %v6064_v25  ;;  %4619 = vmatprep.subr.bf16.mxu0 %v6069_v11  ;;  %v6142_v25 = vld [vmem:[%s7797_s7 + $0xba0] ss:$16 sps:$4 sm:$0xff]   ;;  %v6147_v11 = vld [vmem:[%s7797_s7 + $0x9c4] ss:$16 sps:$4 sm:$0xff]  }
 0x19c   : > { %4660 = vmatprep.subr.bf16.mxu1 %v6072_v27  ;;  %4649 = vmatprep.mubr.bf16.mxu0 %v7985_v28  ;;  %v6150_v27 = vld [vmem:[%s7797_s7 + $0xbc4] ss:$16 sps:$4 sm:$0xff]  }
 0x19d   : > { %4690 = vmatprep.mubr.bf16.mxu1 %v7989_v29 }
 0x19e   : > { %4620 = vmatpush1.bf16.msra.mxu0 %v6067_v30  ;;  %v6145_v30 = vld [vmem:[%s7797_s7 + $0x9c0] ss:$16 sps:$4 sm:$0xff]  }
 0x19f   : > { %4661 = vmatpush1.bf16.msra.mxu1 %v6070_v31  ;;  %4621 = vmatprep.subr.bf16.mxu0 %v6075_v32  ;;  %v6148_v31 = vld [vmem:[%s7797_s7 + $0xbc0] ss:$16 sps:$4 sm:$0xff]   ;;  %v6153_v32 = vld [vmem:[%s7797_s7 + $0x9e4] ss:$16 sps:$4 sm:$0xff]  }
 0x1a0   : > { %4662 = vmatprep.subr.bf16.mxu1 %v6078_v33  ;;  %v6156_v33 = vld [vmem:[%s7797_s7 + $0xbe4] ss:$16 sps:$4 sm:$0xff]  }
 0x1a2   : > { %4622 = vmatpush1.bf16.msra.mxu0 %v6073_v34  ;;  %v6151_v34 = vld [vmem:[%s7797_s7 + $0x9e0] ss:$16 sps:$4 sm:$0xff]  }
 0x1a3   : > { %4663 = vmatpush1.bf16.msra.mxu1 %v6076_v35  ;;  %4623 = vmatprep.subr.bf16.mxu0 %v6081_v36  ;;  %v6154_v35 = vld [vmem:[%s7797_s7 + $0xbe0] ss:$16 sps:$4 sm:$0xff]   ;;  %v6163_v36 = vld [vmem:[%s7797_s7 + $0xc04] ss:$16 sps:$4 sm:$0xff]  }
 0x1a4   : > { %4664 = vmatprep.subr.bf16.mxu1 %v6084_v37  ;;  %v6166_v37 = vld [vmem:[%s7797_s7 + $0xe04] ss:$16 sps:$4 sm:$0xff]  }
 0x1a6   : > { %4624 = vmatpush1.bf16.msra.mxu0 %v6079_v38  ;;  %v6161_v38 = vld [vmem:[%s7797_s7 + $0xc00] ss:$16 sps:$4 sm:$0xff]  }
 0x1a7   : > { %4665 = vmatpush1.bf16.msra.mxu1 %v6082_v39  ;;  %4625 = vmatprep.subr.bf16.mxu0 %v6087_v40  ;;  %v6164_v39 = vld [vmem:[%s7797_s7 + $0xe00] ss:$16 sps:$4 sm:$0xff]   ;;  %v8059_v40 = vcombine.low %v7974_v26, %v7974_v26  ;;  %v6169_v26 = vld [vmem:[%s7797_s7 + $0xc24] ss:$16 sps:$4 sm:$0xff]  }
 0x1a8   : > { %4666 = vmatprep.subr.bf16.mxu1 %v6090_v41  ;;  %v8063_v41 = vcombine.low %v7979_v10, %v7979_v10  ;;  %v6172_v10 = vld [vmem:[%s7797_s7 + $0xe24] ss:$16 sps:$4 sm:$0xff]  }
 0x1aa   : > { %4626 = vmatpush1.bf16.msra.mxu0 %v6085_v42  ;;  %v8068_v42 = vld [vmem:[%s8491_s0 + $0x30] sm:$0xff] }
 0x1ab   : > { %4667 = vmatpush1.bf16.msra.mxu1 %v6088_v43  ;;  %4627 = vmatprep.subr.bf16.mxu0 %v6093_v44  ;;  %v8073_v43 = vld [vmem:[%s8491_s0 + $0x38] sm:$0xff]  ;;  %v8079_v44 = vcombine.high %v8068_v42, %v8068_v42 }
 0x1ac   : > { %4668 = vmatprep.subr.bf16.mxu1 %v6096_v45  ;;  %v8083_v45 = vcombine.high %v8073_v43, %v8073_v43 }
 0x1ae   : > { %4628 = vmatpush1.bf16.msra.mxu0 %v6091_v46  ;;  %v6167_v46 = vld [vmem:[%s7797_s7 + $0xc20] ss:$16 sps:$4 sm:$0xff]  }
 0x1af   : > { %4669 = vmatpush1.bf16.msra.mxu1 %v6094_v47  ;;  %4629 = vmatprep.subr.bf16.mxu0 %v6099_v48  ;;  %v6170_v47 = vld [vmem:[%s7797_s7 + $0xe20] ss:$16 sps:$4 sm:$0xff]   ;;  %v6175_v48 = vld [vmem:[%s7797_s7 + $0xc44] ss:$16 sps:$4 sm:$0xff]  }
 0x1b0   : > { %4670 = vmatprep.subr.bf16.mxu1 %v6102_v49  ;;  %v6178_v49 = vld [vmem:[%s7797_s7 + $0xe44] ss:$16 sps:$4 sm:$0xff]  }
 0x1b2   : > { %4630 = vmatpush1.bf16.msra.mxu0 %v6097_v50  ;;  %v6173_v50 = vld [vmem:[%s7797_s7 + $0xc40] ss:$16 sps:$4 sm:$0xff]  }
 0x1b3   : > { %4671 = vmatpush1.bf16.msra.mxu1 %v6100_v51  ;;  %4631 = vmatprep.subr.bf16.mxu0 %v6105_v52  ;;  %v6176_v51 = vld [vmem:[%s7797_s7 + $0xe40] ss:$16 sps:$4 sm:$0xff]   ;;  %v6181_v52 = vld [vmem:[%s7797_s7 + $0xc64] ss:$16 sps:$4 sm:$0xff]  }
 0x1b4   : > { %4672 = vmatprep.subr.bf16.mxu1 %v6108_v53  ;;  %v6184_v53 = vld [vmem:[%s7797_s7 + $0xe64] ss:$16 sps:$4 sm:$0xff]  }
 0x1b6   : > { %4632 = vmatpush1.bf16.msra.mxu0 %v6103_v54  ;;  %v6179_v54 = vld [vmem:[%s7797_s7 + $0xc60] ss:$16 sps:$4 sm:$0xff]  }
 0x1b7   : > { %4673 = vmatpush1.bf16.msra.mxu1 %v6106_v55  ;;  %4633 = vmatprep.subr.bf16.mxu0 %v6111_v56  ;;  %v6182_v55 = vld [vmem:[%s7797_s7 + $0xe60] ss:$16 sps:$4 sm:$0xff]   ;;  %v6187_v56 = vld [vmem:[%s7797_s7 + $0xc84] ss:$16 sps:$4 sm:$0xff]  }
 0x1b8   : > { %4674 = vmatprep.subr.bf16.mxu1 %v6114_v57  ;;  %v6190_v57 = vld [vmem:[%s7797_s7 + $0xe84] ss:$16 sps:$4 sm:$0xff]  }
 0x1ba   : > { %4634 = vmatpush1.bf16.msra.mxu0 %v6109_v58  ;;  %v6185_v58 = vld [vmem:[%s7797_s7 + $0xc80] ss:$16 sps:$4 sm:$0xff]  }
 0x1bb   : > { %4675 = vmatpush1.bf16.msra.mxu1 %v6112_v59  ;;  %4635 = vmatprep.subr.bf16.mxu0 %v6117_v60  ;;  %v6188_v59 = vld [vmem:[%s7797_s7 + $0xe80] ss:$16 sps:$4 sm:$0xff]   ;;  %v6193_v60 = vld [vmem:[%s7797_s7 + $0xca4] ss:$16 sps:$4 sm:$0xff]  }
 0x1bc   : > { %4676 = vmatprep.subr.bf16.mxu1 %v6120_v61  ;;  %v6196_v61 = vld [vmem:[%s7797_s7 + $0xea4] ss:$16 sps:$4 sm:$0xff]  }
 0x1be   : > { %4636 = vmatpush1.bf16.msra.mxu0 %v6115_v62  ;;  %v6191_v62 = vld [vmem:[%s7797_s7 + $0xca0] ss:$16 sps:$4 sm:$0xff]  }
 0x1bf   : > { %4677 = vmatpush1.bf16.msra.mxu1 %v6118_v63  ;;  %4637 = vmatprep.subr.bf16.mxu0 %v6123_v4  ;;  %v6194_v63 = vld [vmem:[%s7797_s7 + $0xea0] ss:$16 sps:$4 sm:$0xff]   ;;  %v6199_v4 = vld [vmem:[%s7797_s7 + $0xcc4] ss:$16 sps:$4 sm:$0xff]  }
 0x1c0   : > { %4678 = vmatprep.subr.bf16.mxu1 %v6126_v5  ;;  %v6202_v5 = vld [vmem:[%s7797_s7 + $0xec4] ss:$16 sps:$4 sm:$0xff]  }
 0x1c2   : > { %4638 = vmatpush1.bf16.msra.mxu0 %v6121_v6  ;;  %v6197_v6 = vld [vmem:[%s7797_s7 + $0xcc0] ss:$16 sps:$4 sm:$0xff]  }
 0x1c3   : > { %4679 = vmatpush1.bf16.msra.mxu1 %v6124_v7  ;;  %4639 = vmatprep.subr.bf16.mxu0 %v6129_v8  ;;  %v6200_v7 = vld [vmem:[%s7797_s7 + $0xec0] ss:$16 sps:$4 sm:$0xff]   ;;  %v6205_v8 = vld [vmem:[%s7797_s7 + $0xce4] ss:$16 sps:$4 sm:$0xff]  }
 0x1c4   : > { %4680 = vmatprep.subr.bf16.mxu1 %v6132_v9  ;;  %v6208_v9 = vld [vmem:[%s7797_s7 + $0xee4] ss:$16 sps:$4 sm:$0xff]  }
 0x1c6   : > { %4640 = vmatpush1.bf16.msra.mxu0 %v6127_v14  ;;  %v6203_v14 = vld [vmem:[%s7797_s7 + $0xce0] ss:$16 sps:$4 sm:$0xff]  }
 0x1c7   : > { %4681 = vmatpush1.bf16.msra.mxu1 %v6130_v15  ;;  %4641 = vmatprep.subr.bf16.mxu0 %v6135_v16  ;;  %v6206_v15 = vld [vmem:[%s7797_s7 + $0xee0] ss:$16 sps:$4 sm:$0xff]   ;;  %v6211_v16 = vld [vmem:[%s7797_s7 + $0xd04] ss:$16 sps:$4 sm:$0xff]  }
 0x1c8   : > { %4682 = vmatprep.subr.bf16.mxu1 %v6138_v17  ;;  %v6214_v17 = vld [vmem:[%s7797_s7 + $0xf04] ss:$16 sps:$4 sm:$0xff]  }
 0x1ca   : > { %4642 = vmatpush1.bf16.msra.mxu0 %v6133_v18  ;;  %v6209_v18 = vld [vmem:[%s7797_s7 + $0xd00] ss:$16 sps:$4 sm:$0xff]  }
 0x1cb   : > { %4683 = vmatpush1.bf16.msra.mxu1 %v6136_v19  ;;  %4643 = vmatprep.subr.bf16.mxu0 %v6141_v20  ;;  %v6212_v19 = vld [vmem:[%s7797_s7 + $0xf00] ss:$16 sps:$4 sm:$0xff]   ;;  %v6217_v20 = vld [vmem:[%s7797_s7 + $0xd24] ss:$16 sps:$4 sm:$0xff]  }
 0x1cc   : > { %4684 = vmatprep.subr.bf16.mxu1 %v6144_v21  ;;  %v6220_v21 = vld [vmem:[%s7797_s7 + $0xf24] ss:$16 sps:$4 sm:$0xff]  }
 0x1ce   : > { %4644 = vmatpush1.bf16.msra.mxu0 %v6139_v24  ;;  %v6215_v24 = vld [vmem:[%s7797_s7 + $0xd20] ss:$16 sps:$4 sm:$0xff]  }
 0x1cf   : > { %4685 = vmatpush1.bf16.msra.mxu1 %v6142_v25  ;;  %4645 = vmatprep.subr.bf16.mxu0 %v6147_v11  ;;  %v6218_v25 = vld [vmem:[%s7797_s7 + $0xf20] ss:$16 sps:$4 sm:$0xff]   ;;  %v6223_v11 = vld [vmem:[%s7797_s7 + $0xd44] ss:$16 sps:$4 sm:$0xff]  }
 0x1d0   : > { %4686 = vmatprep.subr.bf16.mxu1 %v6150_v27  ;;  %v6226_v27 = vld [vmem:[%s7797_s7 + $0xf44] ss:$16 sps:$4 sm:$0xff]  }
 0x1d2   : > { %4646 = vmatpush1.bf16.msra.mxu0 %v6145_v30  ;;  %v6221_v30 = vld [vmem:[%s7797_s7 + $0xd40] ss:$16 sps:$4 sm:$0xff]  }
 0x1d3   : > { %4687 = vmatpush1.bf16.msra.mxu1 %v6148_v31  ;;  %4647 = vmatprep.subr.bf16.mxu0 %v6153_v32  ;;  %v6224_v31 = vld [vmem:[%s7797_s7 + $0xf40] ss:$16 sps:$4 sm:$0xff]   ;;  %v6229_v32 = vld [vmem:[%s7797_s7 + $0xd64] ss:$16 sps:$4 sm:$0xff]  }
 0x1d4   : > { %4688 = vmatprep.subr.bf16.mxu1 %v6156_v33  ;;  %v6232_v33 = vld [vmem:[%s7797_s7 + $0xf64] ss:$16 sps:$4 sm:$0xff]  }
 0x1d6   : > { %4648 = vmatpush1.bf16.msra.mxu0 %v6151_v34  ;;  %v6227_v34 = vld [vmem:[%s7797_s7 + $0xd60] ss:$16 sps:$4 sm:$0xff]  }
 0x1d7   : > { %4689 = vmatpush1.bf16.msra.mxu1 %v6154_v35  ;;  %4699 = vmatprep.subr.bf16.mxu0 %v6163_v36  ;;  %v6230_v35 = vld [vmem:[%s7797_s7 + $0xf60] ss:$16 sps:$4 sm:$0xff]   ;;  %v6235_v36 = vld [vmem:[%s7797_s7 + $0xd84] ss:$16 sps:$4 sm:$0xff]  }
 0x1d8   : > { %4740 = vmatprep.subr.bf16.mxu1 %v6166_v37  ;;  %v6238_v37 = vld [vmem:[%s7797_s7 + $0xf84] ss:$16 sps:$4 sm:$0xff]  }
 0x1d9   : > { %4650 = vmatmul.mubr.bf16.vlgmr.msra.gmra.mrb[8].mxu0 %v8059_v40 }
 0x1da   : > { %4691 = vmatmul.mubr.bf16.vlgmr.msra.gmra.mrb[8].mxu1 %v8063_v41  ;;  %4700 = vmatpush1.bf16.msra.mxu0 %v6161_v38  ;;  %v6233_v38 = vld [vmem:[%s7797_s7 + $0xd80] ss:$16 sps:$4 sm:$0xff]  }
 0x1db   : > { %4741 = vmatpush1.bf16.msra.mxu1 %v6164_v39  ;;  %4701 = vmatprep.subr.bf16.mxu0 %v6169_v26  ;;  %v6236_v39 = vld [vmem:[%s7797_s7 + $0xf80] ss:$16 sps:$4 sm:$0xff]   ;;  %v6241_v26 = vld [vmem:[%s7797_s7 + $0xda4] ss:$16 sps:$4 sm:$0xff]  }
 0x1dc   : > { %4742 = vmatprep.subr.bf16.mxu1 %v6172_v10  ;;  %4731 = vmatprep.mubr.bf16.mxu0 %v8079_v44  ;;  %v6244_v10 = vld [vmem:[%s7797_s7 + $0xfa4] ss:$16 sps:$4 sm:$0xff]  }
 0x1dd   : > { %4772 = vmatprep.mubr.bf16.mxu1 %v8083_v45 }
 0x1de   : > { %4702 = vmatpush1.bf16.msra.mxu0 %v6167_v46  ;;  %v6239_v46 = vld [vmem:[%s7797_s7 + $0xda0] ss:$16 sps:$4 sm:$0xff]  }
 0x1df   : > { %4743 = vmatpush1.bf16.msra.mxu1 %v6170_v47  ;;  %4703 = vmatprep.subr.bf16.mxu0 %v6175_v48  ;;  %v6242_v47 = vld [vmem:[%s7797_s7 + $0xfa0] ss:$16 sps:$4 sm:$0xff]   ;;  %v6247_v48 = vld [vmem:[%s7797_s7 + $0xdc4] ss:$16 sps:$4 sm:$0xff]  }
 0x1e0   : > { %4744 = vmatprep.subr.bf16.mxu1 %v6178_v49  ;;  %v6250_v49 = vld [vmem:[%s7797_s7 + $0xfc4] ss:$16 sps:$4 sm:$0xff]  }
 0x1e2   : > { %4704 = vmatpush1.bf16.msra.mxu0 %v6173_v50  ;;  %v6245_v50 = vld [vmem:[%s7797_s7 + $0xdc0] ss:$16 sps:$4 sm:$0xff]  }
 0x1e3   : > { %4745 = vmatpush1.bf16.msra.mxu1 %v6176_v51  ;;  %4705 = vmatprep.subr.bf16.mxu0 %v6181_v52  ;;  %v6248_v51 = vld [vmem:[%s7797_s7 + $0xfc0] ss:$16 sps:$4 sm:$0xff]   ;;  %v6253_v52 = vld [vmem:[%s7797_s7 + $0xde4] ss:$16 sps:$4 sm:$0xff]  }
 0x1e4   : > { %4746 = vmatprep.subr.bf16.mxu1 %v6184_v53  ;;  %v6256_v53 = vld [vmem:[%s7797_s7 + $0xfe4] ss:$16 sps:$4 sm:$0xff]  }
 0x1e6   : > { %4706 = vmatpush1.bf16.msra.mxu0 %v6179_v54  ;;  %v6251_v54 = vld [vmem:[%s7797_s7 + $0xde0] ss:$16 sps:$4 sm:$0xff]  }
 0x1e7   : > { %4747 = vmatpush1.bf16.msra.mxu1 %v6182_v55  ;;  %4707 = vmatprep.subr.bf16.mxu0 %v6187_v56  ;;  %v6254_v55 = vld [vmem:[%s7797_s7 + $0xfe0] ss:$16 sps:$4 sm:$0xff]   ;;  %v6263_v56 = vld [vmem:[%s7797_s7 + $0xc] ss:$16 sps:$4 sm:$0xff]  }
 0x1e8   : > { %4748 = vmatprep.subr.bf16.mxu1 %v6190_v57  ;;  %v6266_v57 = vld [vmem:[%s7797_s7 + $0x20c] ss:$16 sps:$4 sm:$0xff]  }
 0x1ea   : > { %4708 = vmatpush1.bf16.msra.mxu0 %v6185_v58  ;;  %v8151_v58 = vcombine.low %v8068_v42, %v8068_v42  ;;  %v6267_v42 = vld [vmem:[%s7797_s7 + $0x28] ss:$16 sps:$4 sm:$0xff]  }
 0x1eb   : > { %4749 = vmatpush1.bf16.msra.mxu1 %v6188_v59  ;;  %4709 = vmatprep.subr.bf16.mxu0 %v6193_v60  ;;  %v8155_v59 = vcombine.low %v8073_v43, %v8073_v43  ;;  %v6261_v60 = vld [vmem:[%s7797_s7 + $0x8] ss:$16 sps:$4 sm:$0xff]   ;;  %v6275_v43 = vld [vmem:[%s7797_s7 + $0x4c] ss:$16 sps:$4 sm:$0xff]  }
 0x1ec   : > { %4750 = vmatprep.subr.bf16.mxu1 %v6196_v61  ;;  %v6264_v61 = vld [vmem:[%s7797_s7 + $0x208] ss:$16 sps:$4 sm:$0xff]  }
 0x1ee   : > { %4710 = vmatpush1.bf16.msra.mxu0 %v6191_v62  ;;  %v6269_v62 = vld [vmem:[%s7797_s7 + $0x2c] ss:$16 sps:$4 sm:$0xff]  }
 0x1ef   : > { %4751 = vmatpush1.bf16.msra.mxu1 %v6194_v63  ;;  %4711 = vmatprep.subr.bf16.mxu0 %v6199_v4  ;;  %v6272_v63 = vld [vmem:[%s7797_s7 + $0x22c] ss:$16 sps:$4 sm:$0xff]   ;;  %v6270_v4 = vld [vmem:[%s7797_s7 + $0x228] ss:$16 sps:$4 sm:$0xff]  }
 0x1f0   : > { %4752 = vmatprep.subr.bf16.mxu1 %v6202_v5  ;;  %v6278_v5 = vld [vmem:[%s7797_s7 + $0x24c] ss:$16 sps:$4 sm:$0xff]  }
 0x1f2   : > { %4712 = vmatpush1.bf16.msra.mxu0 %v6197_v6  ;;  %v6273_v6 = vld [vmem:[%s7797_s7 + $0x48] ss:$16 sps:$4 sm:$0xff]  }
 0x1f3   : > { %4753 = vmatpush1.bf16.msra.mxu1 %v6200_v7  ;;  %4713 = vmatprep.subr.bf16.mxu0 %v6205_v8  ;;  %v6276_v7 = vld [vmem:[%s7797_s7 + $0x248] ss:$16 sps:$4 sm:$0xff]   ;;  %v6281_v8 = vld [vmem:[%s7797_s7 + $0x6c] ss:$16 sps:$4 sm:$0xff]  }
 0x1f4   : > { %4754 = vmatprep.subr.bf16.mxu1 %v6208_v9  ;;  %v6284_v9 = vld [vmem:[%s7797_s7 + $0x26c] ss:$16 sps:$4 sm:$0xff]  }
 0x1f6   : > { %4714 = vmatpush1.bf16.msra.mxu0 %v6203_v14  ;;  %v6282_v14 = vld [vmem:[%s7797_s7 + $0x268] ss:$16 sps:$4 sm:$0xff]  }
 0x1f7   : > { %4755 = vmatpush1.bf16.msra.mxu1 %v6206_v15  ;;  %4715 = vmatprep.subr.bf16.mxu0 %v6211_v16  ;;  %v6290_v15 = vld [vmem:[%s7797_s7 + $0x28c] ss:$16 sps:$4 sm:$0xff]   ;;  %v6285_v16 = vld [vmem:[%s7797_s7 + $0x88] ss:$16 sps:$4 sm:$0xff]  }
 0x1f8   : > { %4756 = vmatprep.subr.bf16.mxu1 %v6214_v17  ;;  %v6288_v17 = vld [vmem:[%s7797_s7 + $0x288] ss:$16 sps:$4 sm:$0xff]  }
 0x1fa   : > { %4716 = vmatpush1.bf16.msra.mxu0 %v6209_v18  ;;  %v6293_v18 = vld [vmem:[%s7797_s7 + $0xac] ss:$16 sps:$4 sm:$0xff]  }
 0x1fb   : > { %4757 = vmatpush1.bf16.msra.mxu1 %v6212_v19  ;;  %4717 = vmatprep.subr.bf16.mxu0 %v6217_v20  ;;  %v6296_v19 = vld [vmem:[%s7797_s7 + $0x2ac] ss:$16 sps:$4 sm:$0xff]   ;;  %v6291_v20 = vld [vmem:[%s7797_s7 + $0xa8] ss:$16 sps:$4 sm:$0xff]  }
 0x1fc   : > { %4758 = vmatprep.subr.bf16.mxu1 %v6220_v21  ;;  %v6294_v21 = vld [vmem:[%s7797_s7 + $0x2a8] ss:$16 sps:$4 sm:$0xff]  }
 0x1fe   : > { %4718 = vmatpush1.bf16.msra.mxu0 %v6215_v24  ;;  %v6299_v24 = vld [vmem:[%s7797_s7 + $0xcc] ss:$16 sps:$4 sm:$0xff]  }
 0x1ff   : > { %4759 = vmatpush1.bf16.msra.mxu1 %v6218_v25  ;;  %4719 = vmatprep.subr.bf16.mxu0 %v6223_v11  ;;  %v6302_v25 = vld [vmem:[%s7797_s7 + $0x2cc] ss:$16 sps:$4 sm:$0xff]  }
 0x200   : > { %4760 = vmatprep.subr.bf16.mxu1 %v6226_v27 }
 0x202   : > { %4720 = vmatpush1.bf16.msra.mxu0 %v6221_v30  ;;  %v6297_v30 = vld [vmem:[%s7797_s7 + $0xc8] ss:$16 sps:$4 sm:$0xff]  }
 0x203   : > { %4761 = vmatpush1.bf16.msra.mxu1 %v6224_v31  ;;  %4721 = vmatprep.subr.bf16.mxu0 %v6229_v32  ;;  %v6300_v31 = vld [vmem:[%s7797_s7 + $0x2c8] ss:$16 sps:$4 sm:$0xff]  }
 0x204   : > { %4762 = vmatprep.subr.bf16.mxu1 %v6232_v33 }
 0x206   : > { %4722 = vmatpush1.bf16.msra.mxu0 %v6227_v34 }
 0x207   : > { %4763 = vmatpush1.bf16.msra.mxu1 %v6230_v35  ;;  %4723 = vmatprep.subr.bf16.mxu0 %v6235_v36 }
 0x208   : > { %4764 = vmatprep.subr.bf16.mxu1 %v6238_v37 }
 0x20a   : > { %4724 = vmatpush1.bf16.msra.mxu0 %v6233_v38 }
 0x20b   : > { %4765 = vmatpush1.bf16.msra.mxu1 %v6236_v39  ;;  %4725 = vmatprep.subr.bf16.mxu0 %v6241_v26  ;;  %v6305_v26 = vld [vmem:[%s7797_s7 + $0xec] ss:$16 sps:$4 sm:$0xff]  }
 0x20c   : > { %4766 = vmatprep.subr.bf16.mxu1 %v6244_v10  ;;  %v6308_v10 = vld [vmem:[%s7797_s7 + $0x2ec] ss:$16 sps:$4 sm:$0xff]  }
 0x20e   : > { %4726 = vmatpush1.bf16.msra.mxu0 %v6239_v46  ;;  %v6303_v46 = vld [vmem:[%s7797_s7 + $0xe8] ss:$16 sps:$4 sm:$0xff]  }
 0x20f   : > { %4767 = vmatpush1.bf16.msra.mxu1 %v6242_v47  ;;  %4727 = vmatprep.subr.bf16.mxu0 %v6247_v48  ;;  %v6306_v47 = vld [vmem:[%s7797_s7 + $0x2e8] ss:$16 sps:$4 sm:$0xff]   ;;  %v6311_v48 = vld [vmem:[%s7797_s7 + $0x10c] ss:$16 sps:$4 sm:$0xff]  }
 0x210   : > { %4768 = vmatprep.subr.bf16.mxu1 %v6250_v49  ;;  %v6314_v49 = vld [vmem:[%s7797_s7 + $0x30c] ss:$16 sps:$4 sm:$0xff]  }
 0x212   : > { %4728 = vmatpush1.bf16.msra.mxu0 %v6245_v50  ;;  %v6309_v50 = vld [vmem:[%s7797_s7 + $0x108] ss:$16 sps:$4 sm:$0xff]  }
 0x213   : > { %4769 = vmatpush1.bf16.msra.mxu1 %v6248_v51  ;;  %4729 = vmatprep.subr.bf16.mxu0 %v6253_v52  ;;  %v6312_v51 = vld [vmem:[%s7797_s7 + $0x308] ss:$16 sps:$4 sm:$0xff]   ;;  %v6317_v52 = vld [vmem:[%s7797_s7 + $0x12c] ss:$16 sps:$4 sm:$0xff]  }
 0x214   : > { %4770 = vmatprep.subr.bf16.mxu1 %v6256_v53  ;;  %v6320_v53 = vld [vmem:[%s7797_s7 + $0x32c] ss:$16 sps:$4 sm:$0xff]  }
 0x216   : > { %4730 = vmatpush1.bf16.msra.mxu0 %v6251_v54  ;;  %v6315_v54 = vld [vmem:[%s7797_s7 + $0x128] ss:$16 sps:$4 sm:$0xff]  }
 0x217   : > { %4771 = vmatpush1.bf16.msra.mxu1 %v6254_v55  ;;  %4781 = vmatprep.subr.bf16.mxu0 %v6263_v56  ;;  %v6318_v55 = vld [vmem:[%s7797_s7 + $0x328] ss:$16 sps:$4 sm:$0xff]   ;;  %v6323_v56 = vld [vmem:[%s7797_s7 + $0x14c] ss:$16 sps:$4 sm:$0xff]  }
 0x218   : > { %4822 = vmatprep.subr.bf16.mxu1 %v6266_v57  ;;  %v6326_v57 = vld [vmem:[%s7797_s7 + $0x34c] ss:$16 sps:$4 sm:$0xff]  }
 0x219   : > { %4732 = vmatmul.mubr.bf16.vlgmr.msra.gmra.mrb[12].mxu0 %v8151_v58 }
 0x21a   : > { %4773 = vmatmul.mubr.bf16.vlgmr.msra.gmra.mrb[12].mxu1 %v8155_v59  ;;  %4782 = vmatpush1.bf16.msra.mxu0 %v6261_v60  ;;  %v6321_v60 = vld [vmem:[%s7797_s7 + $0x148] ss:$16 sps:$4 sm:$0xff]  }
 0x21b   : > { %4823 = vmatpush1.bf16.msra.mxu1 %v6264_v61  ;;  %4783 = vmatprep.subr.bf16.mxu0 %v6269_v62  ;;  %v6324_v61 = vld [vmem:[%s7797_s7 + $0x348] ss:$16 sps:$4 sm:$0xff]   ;;  %v6329_v62 = vld [vmem:[%s7797_s7 + $0x16c] ss:$16 sps:$4 sm:$0xff]  }
 0x21c   : > { %4824 = vmatprep.subr.bf16.mxu1 %v6272_v63  ;;  %4813 = vmatprep.mubr.bf16.mxu0 %v7791_v2  ;;  %v6279_v2 = vld [vmem:[%s7797_s7 + $0x68] ss:$16 sps:$4 sm:$0xff]   ;;  %v6332_v63 = vld [vmem:[%s7797_s7 + $0x36c] ss:$16 sps:$4 sm:$0xff]  }
 0x21d   : > { %4854 = vmatprep.mubr.bf16.mxu1 %v7795_v3  ;;  %v6287_v3 = vld [vmem:[%s7797_s7 + $0x8c] ss:$16 sps:$4 sm:$0xff]  }
 0x21e   : > { %4784 = vmatpush1.bf16.msra.mxu0 %v6267_v42  ;;  %v6327_v42 = vld [vmem:[%s7797_s7 + $0x168] ss:$16 sps:$4 sm:$0xff]  }
 0x21f   : > { %4825 = vmatpush1.bf16.msra.mxu1 %v6270_v4  ;;  %4785 = vmatprep.subr.bf16.mxu0 %v6275_v43  ;;  %v6330_v4 = vld [vmem:[%s7797_s7 + $0x368] ss:$16 sps:$4 sm:$0xff]   ;;  %v6335_v43 = vld [vmem:[%s7797_s7 + $0x18c] ss:$16 sps:$4 sm:$0xff]  }
 0x220   : > { %4826 = vmatprep.subr.bf16.mxu1 %v6278_v5  ;;  %v6338_v5 = vld [vmem:[%s7797_s7 + $0x38c] ss:$16 sps:$4 sm:$0xff]  }
 0x222   : > { %4786 = vmatpush1.bf16.msra.mxu0 %v6273_v6  ;;  %v6333_v6 = vld [vmem:[%s7797_s7 + $0x188] ss:$16 sps:$4 sm:$0xff]  }
 0x223   : > { %4827 = vmatpush1.bf16.msra.mxu1 %v6276_v7  ;;  %4787 = vmatprep.subr.bf16.mxu0 %v6281_v8  ;;  %v6336_v7 = vld [vmem:[%s7797_s7 + $0x388] ss:$16 sps:$4 sm:$0xff]   ;;  %v6341_v8 = vld [vmem:[%s7797_s7 + $0x1ac] ss:$16 sps:$4 sm:$0xff]  }
 0x224   : > { %4828 = vmatprep.subr.bf16.mxu1 %v6284_v9  ;;  %v6344_v9 = vld [vmem:[%s7797_s7 + $0x3ac] ss:$16 sps:$4 sm:$0xff]  }
 0x226   : > { %4788 = vmatpush1.bf16.msra.mxu0 %v6279_v2  ;;  %v6339_v2 = vld [vmem:[%s7797_s7 + $0x1a8] ss:$16 sps:$4 sm:$0xff]  }
 0x227   : > { %4829 = vmatpush1.bf16.msra.mxu1 %v6282_v14  ;;  %4789 = vmatprep.subr.bf16.mxu0 %v6287_v3  ;;  %v6342_v14 = vld [vmem:[%s7797_s7 + $0x3a8] ss:$16 sps:$4 sm:$0xff]   ;;  %v6347_v3 = vld [vmem:[%s7797_s7 + $0x1cc] ss:$16 sps:$4 sm:$0xff]  }
 0x228   : > { %4830 = vmatprep.subr.bf16.mxu1 %v6290_v15  ;;  %v6350_v15 = vld [vmem:[%s7797_s7 + $0x3cc] ss:$16 sps:$4 sm:$0xff]  }
 0x22a   : > { %4790 = vmatpush1.bf16.msra.mxu0 %v6285_v16  ;;  %v6345_v16 = vld [vmem:[%s7797_s7 + $0x1c8] ss:$16 sps:$4 sm:$0xff]  }
 0x22b   : > { %4831 = vmatpush1.bf16.msra.mxu1 %v6288_v17  ;;  %4791 = vmatprep.subr.bf16.mxu0 %v6293_v18  ;;  %v6348_v17 = vld [vmem:[%s7797_s7 + $0x3c8] ss:$16 sps:$4 sm:$0xff]   ;;  %v6353_v18 = vld [vmem:[%s7797_s7 + $0x1ec] ss:$16 sps:$4 sm:$0xff]  }
 0x22c   : > { %4832 = vmatprep.subr.bf16.mxu1 %v6296_v19  ;;  %v4487_v11 = vpop.f32.mrb[0].mxu0  ;;  %v6356_v19 = vld [vmem:[%s7797_s7 + $0x3ec] ss:$16 sps:$4 sm:$0xff]  }
 0x22d   : > { %v4528_v27 = vpop.f32.mrb[0].mxu1  ;;  %v4489_v33 = vpop.f32.mrb[1].mxu0 }
 0x22e   : > { %v8187_v32 = vadd.f32 %v4528_v27, %v4487_v11  ;;  %v4530_v34 = vpop.f32.mrb[1].mxu1  ;;  %v4491_v36 = vpop.f32.mrb[2].mxu0  ;;  %4792 = vmatpush1.bf16.msra.mxu0 %v6291_v20  ;;  %v6351_v20 = vld [vmem:[%s7797_s7 + $0x1e8] ss:$16 sps:$4 sm:$0xff]  }
 0x22f   : > { %v8189_v35 = vadd.f32 %v4530_v34, %v4489_v33  ;;  %v4532_v37 = vpop.f32.mrb[2].mxu1  ;;  %4833 = vmatpush1.bf16.msra.mxu1 %v6294_v21  ;;  %v4492_v38 = vpop.f32.mrb[3].mxu0  ;;  %4793 = vmatprep.subr.bf16.mxu0 %v6299_v24  ;;  %v6354_v21 = vld [vmem:[%s7797_s7 + $0x3e8] ss:$16 sps:$4 sm:$0xff]   ;;  %v6359_v24 = vld [vmem:[%s7797_s7 + $0x40c] ss:$16 sps:$4 sm:$0xff]  }
 0x230   : > { %v4533_v39 = vpop.f32.mrb[3].mxu1  ;;  %4834 = vmatprep.subr.bf16.mxu1 %v6302_v25  ;;  %v6362_v25 = vld [vmem:[%s7797_s7 + $0x60c] ss:$16 sps:$4 sm:$0xff]   ;;  %v6357_v11 = vld [vmem:[%s7797_s7 + $0x408] ss:$16 sps:$4 sm:$0xff]  }
 0x231   : > { %v6360_v27 = vld [vmem:[%s7797_s7 + $0x608] ss:$16 sps:$4 sm:$0xff]   ;;  %v6371_v36 = vld [vmem:[%s7797_s7 + $0x44c] ss:$16 sps:$4 sm:$0xff]  }
 0x232   : > { %4794 = vmatpush1.bf16.msra.mxu0 %v6297_v30  ;;  %v6365_v30 = vld [vmem:[%s7797_s7 + $0x42c] ss:$16 sps:$4 sm:$0xff]   ;;  %v6363_v33 = vld [vmem:[%s7797_s7 + $0x428] ss:$16 sps:$4 sm:$0xff]  }
 0x233   : > { %4835 = vmatpush1.bf16.msra.mxu1 %v6300_v31  ;;  %4795 = vmatprep.subr.bf16.mxu0 %v6305_v26  ;;  %v6368_v31 = vld [vmem:[%s7797_s7 + $0x62c] ss:$16 sps:$4 sm:$0xff]   ;;  %v6366_v34 = vld [vmem:[%s7797_s7 + $0x628] ss:$16 sps:$4 sm:$0xff]  }
 0x234   : > { %4836 = vmatprep.subr.bf16.mxu1 %v6308_v10  ;;  %v6374_v37 = vld [vmem:[%s7797_s7 + $0x64c] ss:$16 sps:$4 sm:$0xff]   ;;  %v6375_v26 = vld [vmem:[%s7797_s7 + $0x468] ss:$16 sps:$4 sm:$0xff]  }
 0x235   : > { %v6377_v38 = vld [vmem:[%s7797_s7 + $0x46c] ss:$16 sps:$4 sm:$0xff]  }
 0x236   : > { %4796 = vmatpush1.bf16.msra.mxu0 %v6303_v46  ;;  %v6380_v39 = vld [vmem:[%s7797_s7 + $0x66c] ss:$16 sps:$4 sm:$0xff]   ;;  %v6381_v46 = vld [vmem:[%s7797_s7 + $0x488] ss:$16 sps:$4 sm:$0xff]  }
 0x237   : > { %4837 = vmatpush1.bf16.msra.mxu1 %v6306_v47  ;;  %4797 = vmatprep.subr.bf16.mxu0 %v6311_v48  ;;  %v6386_v10 = vld [vmem:[%s7797_s7 + $0x68c] ss:$16 sps:$4 sm:$0xff]   ;;  %v6384_v47 = vld [vmem:[%s7797_s7 + $0x688] ss:$16 sps:$4 sm:$0xff]  }
 0x238   : > { %4838 = vmatprep.subr.bf16.mxu1 %v6314_v49  ;;  %v6389_v48 = vld [vmem:[%s7797_s7 + $0x4ac] ss:$16 sps:$4 sm:$0xff]  }
 0x239   : > { %v6392_v49 = vld [vmem:[%s7797_s7 + $0x6ac] ss:$16 sps:$4 sm:$0xff]  }
 0x23a   : > { %4798 = vmatpush1.bf16.msra.mxu0 %v6309_v50  ;;  %v6387_v50 = vld [vmem:[%s7797_s7 + $0x4a8] ss:$16 sps:$4 sm:$0xff]  }
 0x23b   : > { %4839 = vmatpush1.bf16.msra.mxu1 %v6312_v51  ;;  %4799 = vmatprep.subr.bf16.mxu0 %v6317_v52  ;;  %v6390_v51 = vld [vmem:[%s7797_s7 + $0x6a8] ss:$16 sps:$4 sm:$0xff]   ;;  %v6395_v52 = vld [vmem:[%s7797_s7 + $0x4cc] ss:$16 sps:$4 sm:$0xff]  }
 0x23c   : > { %4840 = vmatprep.subr.bf16.mxu1 %v6320_v53  ;;  %v6398_v53 = vld [vmem:[%s7797_s7 + $0x6cc] ss:$16 sps:$4 sm:$0xff]  }
 0x23e   : > { %4800 = vmatpush1.bf16.msra.mxu0 %v6315_v54 }
 0x23f   : > { %4841 = vmatpush1.bf16.msra.mxu1 %v6318_v55  ;;  %4801 = vmatprep.subr.bf16.mxu0 %v6323_v56 }
 0x240   : > { %4842 = vmatprep.subr.bf16.mxu1 %v6326_v57 }
 0x242   : > { %4802 = vmatpush1.bf16.msra.mxu0 %v6321_v60 }
 0x243   : > { %4843 = vmatpush1.bf16.msra.mxu1 %v6324_v61  ;;  %4803 = vmatprep.subr.bf16.mxu0 %v6329_v62 }
 0x244   : > { %4844 = vmatprep.subr.bf16.mxu1 %v6332_v63 }
 0x246   : > { %4804 = vmatpush1.bf16.msra.mxu0 %v6327_v42  ;;  %v6393_v42 = vld [vmem:[%s7797_s7 + $0x4c8] ss:$16 sps:$4 sm:$0xff]  }
 0x247   : > { %4845 = vmatpush1.bf16.msra.mxu1 %v6330_v4  ;;  %4805 = vmatprep.subr.bf16.mxu0 %v6335_v43  ;;  %v6396_v4 = vld [vmem:[%s7797_s7 + $0x6c8] ss:$16 sps:$4 sm:$0xff]  }
 0x248   : > { %4846 = vmatprep.subr.bf16.mxu1 %v6338_v5 }
 0x24a   : > { %4806 = vmatpush1.bf16.msra.mxu0 %v6333_v6 }
 0x24b   : > { %4847 = vmatpush1.bf16.msra.mxu1 %v6336_v7  ;;  %4807 = vmatprep.subr.bf16.mxu0 %v6341_v8  ;;  %v6399_v8 = vld [vmem:[%s7797_s7 + $0x4e8] ss:$16 sps:$4 sm:$0xff]  }
 0x24c   : > { %4848 = vmatprep.subr.bf16.mxu1 %v6344_v9  ;;  %v6402_v9 = vld [vmem:[%s7797_s7 + $0x6e8] ss:$16 sps:$4 sm:$0xff]  }
 0x24e   : > { %4808 = vmatpush1.bf16.msra.mxu0 %v6339_v2  ;;  %v6407_v2 = vld [vmem:[%s7797_s7 + $0x50c] ss:$16 sps:$4 sm:$0xff]  }
 0x24f   : > { %4849 = vmatpush1.bf16.msra.mxu1 %v6342_v14  ;;  %4809 = vmatprep.subr.bf16.mxu0 %v6347_v3  ;;  %v6410_v14 = vld [vmem:[%s7797_s7 + $0x70c] ss:$16 sps:$4 sm:$0xff]   ;;  %v6405_v3 = vld [vmem:[%s7797_s7 + $0x508] ss:$16 sps:$4 sm:$0xff]  }
 0x250   : > { %4850 = vmatprep.subr.bf16.mxu1 %v6350_v15  ;;  %v6408_v15 = vld [vmem:[%s7797_s7 + $0x708] ss:$16 sps:$4 sm:$0xff]  }
 0x252   : > { %4810 = vmatpush1.bf16.msra.mxu0 %v6345_v16  ;;  %v6413_v16 = vld [vmem:[%s7797_s7 + $0x52c] ss:$16 sps:$4 sm:$0xff]  }
 0x253   : > { %4851 = vmatpush1.bf16.msra.mxu1 %v6348_v17  ;;  %4811 = vmatprep.subr.bf16.mxu0 %v6353_v18  ;;  %v6416_v17 = vld [vmem:[%s7797_s7 + $0x72c] ss:$16 sps:$4 sm:$0xff]   ;;  %v6411_v18 = vld [vmem:[%s7797_s7 + $0x528] ss:$16 sps:$4 sm:$0xff]  }
 0x254   : > { %4852 = vmatprep.subr.bf16.mxu1 %v6356_v19  ;;  %v6414_v19 = vld [vmem:[%s7797_s7 + $0x728] ss:$16 sps:$4 sm:$0xff]  }
 0x256   : > { %4812 = vmatpush1.bf16.msra.mxu0 %v6351_v20  ;;  %v6419_v20 = vld [vmem:[%s7797_s7 + $0x54c] ss:$16 sps:$4 sm:$0xff]  }
 0x257   : > { %4853 = vmatpush1.bf16.msra.mxu1 %v6354_v21  ;;  %4863 = vmatprep.subr.bf16.mxu0 %v6359_v24  ;;  %v6422_v21 = vld [vmem:[%s7797_s7 + $0x74c] ss:$16 sps:$4 sm:$0xff]   ;;  %v6417_v24 = vld [vmem:[%s7797_s7 + $0x548] ss:$16 sps:$4 sm:$0xff]  }
 0x258   : > { %4904 = vmatprep.subr.bf16.mxu1 %v6362_v25  ;;  %v6420_v25 = vld [vmem:[%s7797_s7 + $0x748] ss:$16 sps:$4 sm:$0xff]  }
 0x259   : > { %4814 = vmatmul.mubr.bf16.vlgmr.msra.gmra.mrb[16].mxu0 %v7879_v12  ;;  %v6369_v12 = vld [vmem:[%s7797_s7 + $0x448] ss:$16 sps:$4 sm:$0xff]  }
 0x25a   : > { %4855 = vmatmul.mubr.bf16.vlgmr.msra.gmra.mrb[16].mxu1 %v7883_v13  ;;  %4864 = vmatpush1.bf16.msra.mxu0 %v6357_v11  ;;  %v6372_v13 = vld [vmem:[%s7797_s7 + $0x648] ss:$16 sps:$4 sm:$0xff]   ;;  %v6425_v11 = vld [vmem:[%s7797_s7 + $0x56c] ss:$16 sps:$4 sm:$0xff]  }
 0x25b   : > { %4905 = vmatpush1.bf16.msra.mxu1 %v6360_v27  ;;  %4865 = vmatprep.subr.bf16.mxu0 %v6365_v30  ;;  %v6428_v27 = vld [vmem:[%s7797_s7 + $0x76c] ss:$16 sps:$4 sm:$0xff]   ;;  %v6423_v30 = vld [vmem:[%s7797_s7 + $0x568] ss:$16 sps:$4 sm:$0xff]  }
 0x25c   : > { %4906 = vmatprep.subr.bf16.mxu1 %v6368_v31  ;;  %4895 = vmatprep.mubr.bf16.mxu0 %v7891_v0  ;;  %v6378_v0 = vld [vmem:[%s7797_s7 + $0x668] ss:$16 sps:$4 sm:$0xff]  }
 0x25d   : > { %4936 = vmatprep.mubr.bf16.mxu1 %v7895_v1  ;;  %v6383_v1 = vld [vmem:[%s7797_s7 + $0x48c] ss:$16 sps:$4 sm:$0xff]   ;;  %v6426_v31 = vld [vmem:[%s7797_s7 + $0x768] ss:$16 sps:$4 sm:$0xff]  }
 0x25e   : > { %4866 = vmatpush1.bf16.msra.mxu0 %v6363_v33  ;;  %v6431_v33 = vld [vmem:[%s7797_s7 + $0x58c] ss:$16 sps:$4 sm:$0xff]  }
 0x25f   : > { %4907 = vmatpush1.bf16.msra.mxu1 %v6366_v34  ;;  %4867 = vmatprep.subr.bf16.mxu0 %v6371_v36  ;;  %v6434_v34 = vld [vmem:[%s7797_s7 + $0x78c] ss:$16 sps:$4 sm:$0xff]   ;;  %v6429_v36 = vld [vmem:[%s7797_s7 + $0x588] ss:$16 sps:$4 sm:$0xff]  }
 0x260   : > { %4908 = vmatprep.subr.bf16.mxu1 %v6374_v37  ;;  %v6432_v37 = vld [vmem:[%s7797_s7 + $0x788] ss:$16 sps:$4 sm:$0xff]  }
 0x262   : > { %4868 = vmatpush1.bf16.msra.mxu0 %v6369_v12  ;;  %v6437_v12 = vld [vmem:[%s7797_s7 + $0x5ac] ss:$16 sps:$4 sm:$0xff]  }
 0x263   : > { %4909 = vmatpush1.bf16.msra.mxu1 %v6372_v13  ;;  %4869 = vmatprep.subr.bf16.mxu0 %v6377_v38  ;;  %v6440_v13 = vld [vmem:[%s7797_s7 + $0x7ac] ss:$16 sps:$4 sm:$0xff]   ;;  %v6435_v38 = vld [vmem:[%s7797_s7 + $0x5a8] ss:$16 sps:$4 sm:$0xff]  }
 0x264   : > { %4910 = vmatprep.subr.bf16.mxu1 %v6380_v39  ;;  %v6438_v39 = vld [vmem:[%s7797_s7 + $0x7a8] ss:$16 sps:$4 sm:$0xff]  }
 0x266   : > { %4870 = vmatpush1.bf16.msra.mxu0 %v6375_v26  ;;  %v6443_v26 = vld [vmem:[%s7797_s7 + $0x5cc] ss:$16 sps:$4 sm:$0xff]  }
 0x267   : > { %4911 = vmatpush1.bf16.msra.mxu1 %v6378_v0  ;;  %4871 = vmatprep.subr.bf16.mxu0 %v6383_v1  ;;  %v6446_v0 = vld [vmem:[%s7797_s7 + $0x7cc] ss:$16 sps:$4 sm:$0xff]   ;;  %v6441_v1 = vld [vmem:[%s7797_s7 + $0x5c8] ss:$16 sps:$4 sm:$0xff]  }
 0x268   : > { %4912 = vmatprep.subr.bf16.mxu1 %v6386_v10  ;;  %v6444_v10 = vld [vmem:[%s7797_s7 + $0x7c8] ss:$16 sps:$4 sm:$0xff]  }
 0x26a   : > { %4872 = vmatpush1.bf16.msra.mxu0 %v6381_v46  ;;  %v6449_v46 = vld [vmem:[%s7797_s7 + $0x5ec] ss:$16 sps:$4 sm:$0xff]  }
 0x26b   : > { %4913 = vmatpush1.bf16.msra.mxu1 %v6384_v47  ;;  %4873 = vmatprep.subr.bf16.mxu0 %v6389_v48  ;;  %v6452_v47 = vld [vmem:[%s7797_s7 + $0x7ec] ss:$16 sps:$4 sm:$0xff]   ;;  %v6447_v48 = vld [vmem:[%s7797_s7 + $0x5e8] ss:$16 sps:$4 sm:$0xff]  }
 0x26c   : > { %4914 = vmatprep.subr.bf16.mxu1 %v6392_v49  ;;  %v4569_v54 = vpop.f32.mrb[4].mxu0  ;;  %v6450_v49 = vld [vmem:[%s7797_s7 + $0x7e8] ss:$16 sps:$4 sm:$0xff]  }
 0x26d   : > { %v4610_v55 = vpop.f32.mrb[4].mxu1  ;;  %v4570_v56 = vadd.f32 %v4569_v54, %v8187_v32  ;;  %v4571_v57 = vpop.f32.mrb[5].mxu0  ;;  %v6401_v32 = vld [vmem:[%s7797_s7 + $0x4ec] ss:$16 sps:$4 sm:$0xff]  }
 0x26e   : > { %v4612_v60 = vpop.f32.mrb[5].mxu1  ;;  %v4572_v61 = vadd.f32 %v4571_v57, %v8189_v35  ;;  %v4573_v62 = vpop.f32.mrb[6].mxu0  ;;  %4874 = vmatpush1.bf16.msra.mxu0 %v6387_v50  ;;  %v6404_v35 = vld [vmem:[%s7797_s7 + $0x6ec] ss:$16 sps:$4 sm:$0xff]   ;;  %v6462_v57 = vld [vmem:[%s7797_s7 + $0xa28] ss:$16 sps:$4 sm:$0xff]  }
 0x26f   : > { %v4614_v63 = vpop.f32.mrb[6].mxu1  ;;  %4915 = vmatpush1.bf16.msra.mxu1 %v6390_v51  ;;  %v8261_v43 = vadd.f32 %v4610_v55, %v4570_v56  ;;  %v4574_v5 = vpop.f32.mrb[7].mxu0  ;;  %4875 = vmatprep.subr.bf16.mxu0 %v6395_v52  ;;  %v6455_v50 = vld [vmem:[%s7797_s7 + $0x80c] ss:$16 sps:$4 sm:$0xff]   ;;  %v6453_v52 = vld [vmem:[%s7797_s7 + $0x808] ss:$16 sps:$4 sm:$0xff]  }
 0x270   : > { %v4615_v6 = vpop.f32.mrb[7].mxu1  ;;  %4916 = vmatprep.subr.bf16.mxu1 %v6398_v53  ;;  %v8265_v7 = vadd.f32 %v4612_v60, %v4572_v61  ;;  %v6458_v51 = vld [vmem:[%s7797_s7 + $0xa0c] ss:$16 sps:$4 sm:$0xff]   ;;  %v6456_v53 = vld [vmem:[%s7797_s7 + $0xa08] ss:$16 sps:$4 sm:$0xff]  }
 0x271   : > { %v6461_v54 = vld [vmem:[%s7797_s7 + $0x82c] ss:$16 sps:$4 sm:$0xff]   ;;  %v6459_v56 = vld [vmem:[%s7797_s7 + $0x828] ss:$16 sps:$4 sm:$0xff]  }
 0x272   : > { %4876 = vmatpush1.bf16.msra.mxu0 %v6393_v42  ;;  %v6464_v55 = vld [vmem:[%s7797_s7 + $0xa2c] ss:$16 sps:$4 sm:$0xff]   ;;  %v6471_v42 = vld [vmem:[%s7797_s7 + $0x868] ss:$16 sps:$4 sm:$0xff]  }
 0x273   : > { %4917 = vmatpush1.bf16.msra.mxu1 %v6396_v4  ;;  %4877 = vmatprep.subr.bf16.mxu0 %v6401_v32  ;;  %v6467_v60 = vld [vmem:[%s7797_s7 + $0x84c] ss:$16 sps:$4 sm:$0xff]   ;;  %v6477_v5 = vld [vmem:[%s7797_s7 + $0x888] ss:$16 sps:$4 sm:$0xff]  }
 0x274   : > { %4918 = vmatprep.subr.bf16.mxu1 %v6404_v35  ;;  %v6470_v61 = vld [vmem:[%s7797_s7 + $0xa4c] ss:$16 sps:$4 sm:$0xff]   ;;  %v6480_v6 = vld [vmem:[%s7797_s7 + $0xa88] ss:$16 sps:$4 sm:$0xff]  }
 0x275   : > { %v6473_v62 = vld [vmem:[%s7797_s7 + $0x86c] ss:$16 sps:$4 sm:$0xff]  }
 0x276   : > { %4878 = vmatpush1.bf16.msra.mxu0 %v6399_v8  ;;  %v6476_v63 = vld [vmem:[%s7797_s7 + $0xa6c] ss:$16 sps:$4 sm:$0xff]   ;;  %v6483_v8 = vld [vmem:[%s7797_s7 + $0x8a8] ss:$16 sps:$4 sm:$0xff]  }
 0x277   : > { %4919 = vmatpush1.bf16.msra.mxu1 %v6402_v9  ;;  %4879 = vmatprep.subr.bf16.mxu0 %v6407_v2  ;;  %v6482_v4 = vld [vmem:[%s7797_s7 + $0xa8c] ss:$16 sps:$4 sm:$0xff]   ;;  %v6486_v9 = vld [vmem:[%s7797_s7 + $0xaa8] ss:$16 sps:$4 sm:$0xff]  }
 0x278   : > { %4920 = vmatprep.subr.bf16.mxu1 %v6410_v14  ;;  %v6485_v32 = vld [vmem:[%s7797_s7 + $0x8ac] ss:$16 sps:$4 sm:$0xff]  }
 0x279   : > { %v6488_v35 = vld [vmem:[%s7797_s7 + $0xaac] ss:$16 sps:$4 sm:$0xff]  }
 0x27a   : > { %4880 = vmatpush1.bf16.msra.mxu0 %v6405_v3  ;;  %v6491_v2 = vld [vmem:[%s7797_s7 + $0x8cc] ss:$16 sps:$4 sm:$0xff]  }
 0x27b   : > { %4921 = vmatpush1.bf16.msra.mxu1 %v6408_v15  ;;  %4881 = vmatprep.subr.bf16.mxu0 %v6413_v16  ;;  %v6494_v14 = vld [vmem:[%s7797_s7 + $0xacc] ss:$16 sps:$4 sm:$0xff]  }
 0x27c   : > { %4922 = vmatprep.subr.bf16.mxu1 %v6416_v17 }
 0x27e   : > { %4882 = vmatpush1.bf16.msra.mxu0 %v6411_v18 }
 0x27f   : > { %4923 = vmatpush1.bf16.msra.mxu1 %v6414_v19  ;;  %4883 = vmatprep.subr.bf16.mxu0 %v6419_v20 }
 0x280   : > { %4924 = vmatprep.subr.bf16.mxu1 %v6422_v21 }
 0x282   : > { %4884 = vmatpush1.bf16.msra.mxu0 %v6417_v24  ;;  %v6489_v24 = vld [vmem:[%s7797_s7 + $0x8c8] ss:$16 sps:$4 sm:$0xff]  }
 0x283   : > { %4925 = vmatpush1.bf16.msra.mxu1 %v6420_v25  ;;  %4885 = vmatprep.subr.bf16.mxu0 %v6425_v11  ;;  %v6492_v25 = vld [vmem:[%s7797_s7 + $0xac8] ss:$16 sps:$4 sm:$0xff]  }
 0x284   : > { %4926 = vmatprep.subr.bf16.mxu1 %v6428_v27 }
 0x286   : > { %4886 = vmatpush1.bf16.msra.mxu0 %v6423_v30 }
 0x287   : > { %4927 = vmatpush1.bf16.msra.mxu1 %v6426_v31  ;;  %4887 = vmatprep.subr.bf16.mxu0 %v6431_v33  ;;  %v6495_v33 = vld [vmem:[%s7797_s7 + $0x8e8] ss:$16 sps:$4 sm:$0xff]  }
 0x288   : > { %4928 = vmatprep.subr.bf16.mxu1 %v6434_v34  ;;  %v6498_v34 = vld [vmem:[%s7797_s7 + $0xae8] ss:$16 sps:$4 sm:$0xff]  }
 0x28a   : > { %4888 = vmatpush1.bf16.msra.mxu0 %v6429_v36  ;;  %v6503_v36 = vld [vmem:[%s7797_s7 + $0x90c] ss:$16 sps:$4 sm:$0xff]  }
 0x28b   : > { %4929 = vmatpush1.bf16.msra.mxu1 %v6432_v37  ;;  %4889 = vmatprep.subr.bf16.mxu0 %v6437_v12  ;;  %v6506_v37 = vld [vmem:[%s7797_s7 + $0xb0c] ss:$16 sps:$4 sm:$0xff]   ;;  %v6501_v12 = vld [vmem:[%s7797_s7 + $0x908] ss:$16 sps:$4 sm:$0xff]  }
 0x28c   : > { %4930 = vmatprep.subr.bf16.mxu1 %v6440_v13  ;;  %v6504_v13 = vld [vmem:[%s7797_s7 + $0xb08] ss:$16 sps:$4 sm:$0xff]  }
 0x28e   : > { %4890 = vmatpush1.bf16.msra.mxu0 %v6435_v38  ;;  %v6509_v38 = vld [vmem:[%s7797_s7 + $0x92c] ss:$16 sps:$4 sm:$0xff]  }
 0x28f   : > { %4931 = vmatpush1.bf16.msra.mxu1 %v6438_v39  ;;  %4891 = vmatprep.subr.bf16.mxu0 %v6443_v26  ;;  %v6512_v39 = vld [vmem:[%s7797_s7 + $0xb2c] ss:$16 sps:$4 sm:$0xff]   ;;  %v6507_v26 = vld [vmem:[%s7797_s7 + $0x928] ss:$16 sps:$4 sm:$0xff]  }
 0x290   : > { %4932 = vmatprep.subr.bf16.mxu1 %v6446_v0  ;;  %v6510_v0 = vld [vmem:[%s7797_s7 + $0xb28] ss:$16 sps:$4 sm:$0xff]  }
 0x292   : > { %4892 = vmatpush1.bf16.msra.mxu0 %v6441_v1  ;;  %v6515_v1 = vld [vmem:[%s7797_s7 + $0x94c] ss:$16 sps:$4 sm:$0xff]  }
 0x293   : > { %4933 = vmatpush1.bf16.msra.mxu1 %v6444_v10  ;;  %4893 = vmatprep.subr.bf16.mxu0 %v6449_v46  ;;  %v6518_v10 = vld [vmem:[%s7797_s7 + $0xb4c] ss:$16 sps:$4 sm:$0xff]   ;;  %v6513_v46 = vld [vmem:[%s7797_s7 + $0x948] ss:$16 sps:$4 sm:$0xff]  }
 0x294   : > { %4934 = vmatprep.subr.bf16.mxu1 %v6452_v47  ;;  %v6516_v47 = vld [vmem:[%s7797_s7 + $0xb48] ss:$16 sps:$4 sm:$0xff]  }
 0x296   : > { %4894 = vmatpush1.bf16.msra.mxu0 %v6447_v48  ;;  %v6521_v48 = vld [vmem:[%s7797_s7 + $0x96c] ss:$16 sps:$4 sm:$0xff]  }
 0x297   : > { %4935 = vmatpush1.bf16.msra.mxu1 %v6450_v49  ;;  %4945 = vmatprep.subr.bf16.mxu0 %v6455_v50  ;;  %v6524_v49 = vld [vmem:[%s7797_s7 + $0xb6c] ss:$16 sps:$4 sm:$0xff]   ;;  %v6519_v50 = vld [vmem:[%s7797_s7 + $0x968] ss:$16 sps:$4 sm:$0xff]  }
 0x298   : > { %4986 = vmatprep.subr.bf16.mxu1 %v6458_v51  ;;  %v6522_v51 = vld [vmem:[%s7797_s7 + $0xb68] ss:$16 sps:$4 sm:$0xff]  }
 0x299   : > { %4896 = vmatmul.mubr.bf16.vlgmr.msra.gmra.mrb[20].mxu0 %v7963_v22  ;;  %v6465_v22 = vld [vmem:[%s7797_s7 + $0x848] ss:$16 sps:$4 sm:$0xff]  }
 0x29a   : > { %4937 = vmatmul.mubr.bf16.vlgmr.msra.gmra.mrb[20].mxu1 %v7967_v23  ;;  %4946 = vmatpush1.bf16.msra.mxu0 %v6453_v52  ;;  %v6468_v23 = vld [vmem:[%s7797_s7 + $0xa48] ss:$16 sps:$4 sm:$0xff]   ;;  %v6527_v52 = vld [vmem:[%s7797_s7 + $0x98c] ss:$16 sps:$4 sm:$0xff]  }
 0x29b   : > { %4987 = vmatpush1.bf16.msra.mxu1 %v6456_v53  ;;  %4947 = vmatprep.subr.bf16.mxu0 %v6461_v54  ;;  %v6530_v53 = vld [vmem:[%s7797_s7 + $0xb8c] ss:$16 sps:$4 sm:$0xff]   ;;  %v6525_v54 = vld [vmem:[%s7797_s7 + $0x988] ss:$16 sps:$4 sm:$0xff]  }
 0x29c   : > { %4988 = vmatprep.subr.bf16.mxu1 %v6464_v55  ;;  %4977 = vmatprep.mubr.bf16.mxu0 %v7985_v28  ;;  %v6474_v28 = vld [vmem:[%s7797_s7 + $0xa68] ss:$16 sps:$4 sm:$0xff]  }
 0x29d   : > { %5018 = vmatprep.mubr.bf16.mxu1 %v7989_v29  ;;  %v6479_v29 = vld [vmem:[%s7797_s7 + $0x88c] ss:$16 sps:$4 sm:$0xff]   ;;  %v6528_v55 = vld [vmem:[%s7797_s7 + $0xb88] ss:$16 sps:$4 sm:$0xff]  }
 0x29e   : > { %4948 = vmatpush1.bf16.msra.mxu0 %v6459_v56  ;;  %v6533_v56 = vld [vmem:[%s7797_s7 + $0x9ac] ss:$16 sps:$4 sm:$0xff]  }
 0x29f   : > { %4989 = vmatpush1.bf16.msra.mxu1 %v6462_v57  ;;  %4949 = vmatprep.subr.bf16.mxu0 %v6467_v60  ;;  %v6536_v57 = vld [vmem:[%s7797_s7 + $0xbac] ss:$16 sps:$4 sm:$0xff]   ;;  %v6531_v60 = vld [vmem:[%s7797_s7 + $0x9a8] ss:$16 sps:$4 sm:$0xff]  }
 0x2a0   : > { %4990 = vmatprep.subr.bf16.mxu1 %v6470_v61  ;;  %v6534_v61 = vld [vmem:[%s7797_s7 + $0xba8] ss:$16 sps:$4 sm:$0xff]  }
 0x2a2   : > { %4950 = vmatpush1.bf16.msra.mxu0 %v6465_v22  ;;  %v6539_v22 = vld [vmem:[%s7797_s7 + $0x9cc] ss:$16 sps:$4 sm:$0xff]  }
 0x2a3   : > { %4991 = vmatpush1.bf16.msra.mxu1 %v6468_v23  ;;  %4951 = vmatprep.subr.bf16.mxu0 %v6473_v62  ;;  %v6542_v23 = vld [vmem:[%s7797_s7 + $0xbcc] ss:$16 sps:$4 sm:$0xff]   ;;  %v6537_v62 = vld [vmem:[%s7797_s7 + $0x9c8] ss:$16 sps:$4 sm:$0xff]  }
 0x2a4   : > { %4992 = vmatprep.subr.bf16.mxu1 %v6476_v63  ;;  %v6540_v63 = vld [vmem:[%s7797_s7 + $0xbc8] ss:$16 sps:$4 sm:$0xff]  }
 0x2a6   : > { %4952 = vmatpush1.bf16.msra.mxu0 %v6471_v42  ;;  %v6545_v42 = vld [vmem:[%s7797_s7 + $0x9ec] ss:$16 sps:$4 sm:$0xff]  }
 0x2a7   : > { %4993 = vmatpush1.bf16.msra.mxu1 %v6474_v28  ;;  %4953 = vmatprep.subr.bf16.mxu0 %v6479_v29  ;;  %v6548_v28 = vld [vmem:[%s7797_s7 + $0xbec] ss:$16 sps:$4 sm:$0xff]   ;;  %v6543_v29 = vld [vmem:[%s7797_s7 + $0x9e8] ss:$16 sps:$4 sm:$0xff]  }
 0x2a8   : > { %4994 = vmatprep.subr.bf16.mxu1 %v6482_v4  ;;  %v6546_v4 = vld [vmem:[%s7797_s7 + $0xbe8] ss:$16 sps:$4 sm:$0xff]  }
 0x2aa   : > { %4954 = vmatpush1.bf16.msra.mxu0 %v6477_v5  ;;  %v6551_v5 = vld [vmem:[%s7797_s7 + $0xc0c] ss:$16 sps:$4 sm:$0xff]  }
 0x2ab   : > { %4995 = vmatpush1.bf16.msra.mxu1 %v6480_v6  ;;  %4955 = vmatprep.subr.bf16.mxu0 %v6485_v32  ;;  %v6554_v6 = vld [vmem:[%s7797_s7 + $0xe0c] ss:$16 sps:$4 sm:$0xff]   ;;  %v6549_v32 = vld [vmem:[%s7797_s7 + $0xc08] ss:$16 sps:$4 sm:$0xff]  }
 0x2ac   : > { %4996 = vmatprep.subr.bf16.mxu1 %v6488_v35  ;;  %v4651_v3 = vpop.f32.mrb[8].mxu0  ;;  %v6552_v35 = vld [vmem:[%s7797_s7 + $0xe08] ss:$16 sps:$4 sm:$0xff]  }
 0x2ad   : > { %v4692_v15 = vpop.f32.mrb[8].mxu1  ;;  %v4652_v16 = vadd.f32 %v4651_v3, %v8261_v43  ;;  %v4653_v17 = vpop.f32.mrb[9].mxu0  ;;  %v6497_v43 = vld [vmem:[%s7797_s7 + $0x8ec] ss:$16 sps:$4 sm:$0xff]  }
 0x2ae   : > { %v4694_v18 = vpop.f32.mrb[9].mxu1  ;;  %v4654_v19 = vadd.f32 %v4653_v17, %v8265_v7  ;;  %v4655_v20 = vpop.f32.mrb[10].mxu0  ;;  %4956 = vmatpush1.bf16.msra.mxu0 %v6483_v8  ;;  %v6500_v7 = vld [vmem:[%s7797_s7 + $0xaec] ss:$16 sps:$4 sm:$0xff]  }
 0x2af   : > { %v4696_v21 = vpop.f32.mrb[10].mxu1  ;;  %4997 = vmatpush1.bf16.msra.mxu1 %v6486_v9  ;;  %v8335_v11 = vadd.f32 %v4692_v15, %v4652_v16  ;;  %v4656_v27 = vpop.f32.mrb[11].mxu0  ;;  %4957 = vmatprep.subr.bf16.mxu0 %v6491_v2  ;;  %v6557_v8 = vld [vmem:[%s7797_s7 + $0xc2c] ss:$16 sps:$4 sm:$0xff]   ;;  %v6555_v2 = vld [vmem:[%s7797_s7 + $0xc28] ss:$16 sps:$4 sm:$0xff]  }
 0x2b0   : > { %v4697_v30 = vpop.f32.mrb[11].mxu1  ;;  %4998 = vmatprep.subr.bf16.mxu1 %v6494_v14  ;;  %v8339_v31 = vadd.f32 %v4694_v18, %v4654_v19  ;;  %v6560_v9 = vld [vmem:[%s7797_s7 + $0xe2c] ss:$16 sps:$4 sm:$0xff]   ;;  %v6558_v14 = vld [vmem:[%s7797_s7 + $0xe28] ss:$16 sps:$4 sm:$0xff]   ;;  %v5126_v18 = vlaneseq }
 0x2b1   : > { %v6563_v3 = vld [vmem:[%s7797_s7 + $0xc4c] ss:$16 sps:$4 sm:$0xff]  }
 0x2b2   : > { %4958 = vmatpush1.bf16.msra.mxu0 %v6489_v24  ;;  %v6566_v15 = vld [vmem:[%s7797_s7 + $0xe4c] ss:$16 sps:$4 sm:$0xff]   ;;  %v8400_v21 = vshrl.u32 %v5126_v18, 7  ;;  %v6573_v24 = vld [vmem:[%s7797_s7 + $0xc88] ss:$16 sps:$4 sm:$0xff]  }
 0x2b3   : > { %4999 = vmatpush1.bf16.msra.mxu1 %v6492_v25  ;;  %4959 = vmatprep.subr.bf16.mxu0 %v6497_v43  ;;  %v6569_v16 = vld [vmem:[%s7797_s7 + $0xc6c] ss:$16 sps:$4 sm:$0xff]   ;;  %v6576_v25 = vld [vmem:[%s7797_s7 + $0xe88] ss:$16 sps:$4 sm:$0xff]  }
 0x2b4   : > { %5000 = vmatprep.subr.bf16.mxu1 %v6500_v7  ;;  %v6572_v17 = vld [vmem:[%s7797_s7 + $0xe6c] ss:$16 sps:$4 sm:$0xff]   ;;  %v5128_v43 = vsub.s32 0, %v8400_v21  ;;  %v6579_v7 = vld [vmem:[%s7797_s7 + $0xca8] ss:$16 sps:$4 sm:$0xff]  }
 0x2b5   : > { %v6575_v19 = vld [vmem:[%s7797_s7 + $0xc8c] ss:$16 sps:$4 sm:$0xff]   ;;  %v6630_v18 = vld [vmem:[%s7797_s7 + $0xfa8] ss:$16 sps:$4 sm:$0xff]  }
 0x2b6   : > { %4960 = vmatpush1.bf16.msra.mxu0 %v6495_v33  ;;  %v6578_v20 = vld [vmem:[%s7797_s7 + $0xe8c] ss:$16 sps:$4 sm:$0xff]   ;;  %v8412_v33 = vld [vmem:[%s1293_s28] sm:$0xf] }
 0x2b7   : > { %5001 = vmatpush1.bf16.msra.mxu1 %v6498_v34  ;;  %4961 = vmatprep.subr.bf16.mxu0 %v6503_v36  ;;  %v6581_v27 = vld [vmem:[%s7797_s7 + $0xcac] ss:$16 sps:$4 sm:$0xff]   ;;  %v5132_v34 = vsub.s32 1, %v8400_v21  ;;  %v6582_v36 = vld [vmem:[%s7797_s7 + $0xea8] ss:$16 sps:$4 sm:$0xff]  }
 0x2b8   : > { %5002 = vmatprep.subr.bf16.mxu1 %v6506_v37  ;;  %v6584_v30 = vld [vmem:[%s7797_s7 + $0xeac] ss:$16 sps:$4 sm:$0xff]  }
 0x2b9   : > { %v6587_v37 = vld [vmem:[%s7797_s7 + $0xccc] ss:$16 sps:$4 sm:$0xff]  }
 0x2ba   : > { %4962 = vmatpush1.bf16.msra.mxu0 %v6501_v12  ;;  %v6590_v12 = vld [vmem:[%s7797_s7 + $0xecc] ss:$16 sps:$4 sm:$0xff]  }
 0x2bb   : > { %5003 = vmatpush1.bf16.msra.mxu1 %v6504_v13  ;;  %4963 = vmatprep.subr.bf16.mxu0 %v6509_v38 }
 0x2bc   : > { %5004 = vmatprep.subr.bf16.mxu1 %v6512_v39 }
 0x2be   : > { %4964 = vmatpush1.bf16.msra.mxu0 %v6507_v26  ;;  %v5129_v26 = vrot.slane %v8412_v33, %v5128_v43 }
 0x2bf   : > { %5005 = vmatpush1.bf16.msra.mxu1 %v6510_v0  ;;  %4965 = vmatprep.subr.bf16.mxu0 %v6515_v1 }
 0x2c0   : > { %5006 = vmatprep.subr.bf16.mxu1 %v6518_v10 }
 0x2c2   : > { %4966 = vmatpush1.bf16.msra.mxu0 %v6513_v46  ;;  %v5133_v46 = vrot.slane %v8412_v33, %v5132_v34 }
 0x2c3   : > { %5007 = vmatpush1.bf16.msra.mxu1 %v6516_v47  ;;  %4967 = vmatprep.subr.bf16.mxu0 %v6521_v48 }
 0x2c4   : > { %5008 = vmatprep.subr.bf16.mxu1 %v6524_v49  ;;  %v6585_v49 = vld [vmem:[%s7797_s7 + $0xcc8] ss:$16 sps:$4 sm:$0xff]  }
 0x2c6   : > { %4968 = vmatpush1.bf16.msra.mxu0 %v6519_v50  ;;  %v6588_v50 = vld [vmem:[%s7797_s7 + $0xec8] ss:$16 sps:$4 sm:$0xff]  }
 0x2c7   : > { %5009 = vmatpush1.bf16.msra.mxu1 %v6522_v51  ;;  %4969 = vmatprep.subr.bf16.mxu0 %v6527_v52 }
 0x2c8   : > { %5010 = vmatprep.subr.bf16.mxu1 %v6530_v53  ;;  %v6593_v53 = vld [vmem:[%s7797_s7 + $0xcec] ss:$16 sps:$4 sm:$0xff]  }
 0x2ca   : > { %4970 = vmatpush1.bf16.msra.mxu0 %v6525_v54  ;;  %v6596_v54 = vld [vmem:[%s7797_s7 + $0xeec] ss:$16 sps:$4 sm:$0xff]  }
 0x2cb   : > { %5011 = vmatpush1.bf16.msra.mxu1 %v6528_v55  ;;  %4971 = vmatprep.subr.bf16.mxu0 %v6533_v56 }
 0x2cc   : > { %5012 = vmatprep.subr.bf16.mxu1 %v6536_v57  ;;  %v6591_v57 = vld [vmem:[%s7797_s7 + $0xce8] ss:$16 sps:$4 sm:$0xff]  }
 0x2ce   : > { %4972 = vmatpush1.bf16.msra.mxu0 %v6531_v60  ;;  %v6594_v60 = vld [vmem:[%s7797_s7 + $0xee8] ss:$16 sps:$4 sm:$0xff]  }
 0x2cf   : > { %5013 = vmatpush1.bf16.msra.mxu1 %v6534_v61  ;;  %4973 = vmatprep.subr.bf16.mxu0 %v6539_v22  ;;  %v6599_v61 = vld [vmem:[%s7797_s7 + $0xd0c] ss:$16 sps:$4 sm:$0xff]  }
 0x2d0   : > { %5014 = vmatprep.subr.bf16.mxu1 %v6542_v23  ;;  %v6602_v22 = vld [vmem:[%s7797_s7 + $0xf0c] ss:$16 sps:$4 sm:$0xff]   ;;  %v6597_v23 = vld [vmem:[%s7797_s7 + $0xd08] ss:$16 sps:$4 sm:$0xff]  }
 0x2d2   : > { %4974 = vmatpush1.bf16.msra.mxu0 %v6537_v62  ;;  %v6600_v62 = vld [vmem:[%s7797_s7 + $0xf08] ss:$16 sps:$4 sm:$0xff]  }
 0x2d3   : > { %5015 = vmatpush1.bf16.msra.mxu1 %v6540_v63  ;;  %4975 = vmatprep.subr.bf16.mxu0 %v6545_v42  ;;  %v6605_v63 = vld [vmem:[%s7797_s7 + $0xd2c] ss:$16 sps:$4 sm:$0xff]  }
 0x2d4   : > { %5016 = vmatprep.subr.bf16.mxu1 %v6548_v28  ;;  %v6608_v42 = vld [vmem:[%s7797_s7 + $0xf2c] ss:$16 sps:$4 sm:$0xff]   ;;  %v6603_v28 = vld [vmem:[%s7797_s7 + $0xd28] ss:$16 sps:$4 sm:$0xff]  }
 0x2d6   : > { %4976 = vmatpush1.bf16.msra.mxu0 %v6543_v29  ;;  %v6606_v29 = vld [vmem:[%s7797_s7 + $0xf28] ss:$16 sps:$4 sm:$0xff]  }
 0x2d7   : > { %5017 = vmatpush1.bf16.msra.mxu1 %v6546_v4  ;;  %5027 = vmatprep.subr.bf16.mxu0 %v6551_v5  ;;  %v6611_v4 = vld [vmem:[%s7797_s7 + $0xd4c] ss:$16 sps:$4 sm:$0xff]  }
 0x2d8   : > { %5068 = vmatprep.subr.bf16.mxu1 %v6554_v6  ;;  %v6614_v5 = vld [vmem:[%s7797_s7 + $0xf4c] ss:$16 sps:$4 sm:$0xff]   ;;  %v6609_v6 = vld [vmem:[%s7797_s7 + $0xd48] ss:$16 sps:$4 sm:$0xff]  }
 0x2d9   : > { %4978 = vmatmul.mubr.bf16.vlgmr.msra.gmra.mrb[24].mxu0 %v8059_v40  ;;  %v6561_v40 = vld [vmem:[%s7797_s7 + $0xc48] ss:$16 sps:$4 sm:$0xff]  }
 0x2da   : > { %5019 = vmatmul.mubr.bf16.vlgmr.msra.gmra.mrb[24].mxu1 %v8063_v41  ;;  %5028 = vmatpush1.bf16.msra.mxu0 %v6549_v32  ;;  %v6564_v41 = vld [vmem:[%s7797_s7 + $0xe48] ss:$16 sps:$4 sm:$0xff]  }
 0x2db   : > { %5069 = vmatpush1.bf16.msra.mxu1 %v6552_v35  ;;  %5029 = vmatprep.subr.bf16.mxu0 %v6557_v8  ;;  %v6612_v32 = vld [vmem:[%s7797_s7 + $0xf48] ss:$16 sps:$4 sm:$0xff]   ;;  %v6617_v35 = vld [vmem:[%s7797_s7 + $0xd6c] ss:$16 sps:$4 sm:$0xff]  }
 0x2dc   : > { %5070 = vmatprep.subr.bf16.mxu1 %v6560_v9  ;;  %5059 = vmatprep.mubr.bf16.mxu0 %v8079_v44  ;;  %v6567_v44 = vld [vmem:[%s7797_s7 + $0xc68] ss:$16 sps:$4 sm:$0xff]   ;;  %v6620_v8 = vld [vmem:[%s7797_s7 + $0xf6c] ss:$16 sps:$4 sm:$0xff]  }
 0x2dd   : > { %5100 = vmatprep.mubr.bf16.mxu1 %v8083_v45  ;;  %v6570_v45 = vld [vmem:[%s7797_s7 + $0xe68] ss:$16 sps:$4 sm:$0xff]  }
 0x2de   : > { %5030 = vmatpush1.bf16.msra.mxu0 %v6555_v2  ;;  %v6615_v9 = vld [vmem:[%s7797_s7 + $0xd68] ss:$16 sps:$4 sm:$0xff]  }
 0x2df   : > { %5071 = vmatpush1.bf16.msra.mxu1 %v6558_v14  ;;  %5031 = vmatprep.subr.bf16.mxu0 %v6563_v3  ;;  %v6618_v2 = vld [vmem:[%s7797_s7 + $0xf68] ss:$16 sps:$4 sm:$0xff]   ;;  %v6623_v14 = vld [vmem:[%s7797_s7 + $0xd8c] ss:$16 sps:$4 sm:$0xff]  }
 0x2e0   : > { %5072 = vmatprep.subr.bf16.mxu1 %v6566_v15  ;;  %v6626_v3 = vld [vmem:[%s7797_s7 + $0xf8c] ss:$16 sps:$4 sm:$0xff]   ;;  %v6621_v15 = vld [vmem:[%s7797_s7 + $0xd88] ss:$16 sps:$4 sm:$0xff]  }
 0x2e2   : > { %5032 = vmatpush1.bf16.msra.mxu0 %v6561_v40  ;;  %v6624_v40 = vld [vmem:[%s7797_s7 + $0xf88] ss:$16 sps:$4 sm:$0xff]  }
 0x2e3   : > { %5073 = vmatpush1.bf16.msra.mxu1 %v6564_v41  ;;  %5033 = vmatprep.subr.bf16.mxu0 %v6569_v16  ;;  %v6629_v41 = vld [vmem:[%s7797_s7 + $0xdac] ss:$16 sps:$4 sm:$0xff]  }
 0x2e4   : > { %5074 = vmatprep.subr.bf16.mxu1 %v6572_v17  ;;  %v6632_v16 = vld [vmem:[%s7797_s7 + $0xfac] ss:$16 sps:$4 sm:$0xff]   ;;  %v6627_v17 = vld [vmem:[%s7797_s7 + $0xda8] ss:$16 sps:$4 sm:$0xff]  }
 0x2e6   : > { %5034 = vmatpush1.bf16.msra.mxu0 %v6567_v44  ;;  %v6635_v44 = vld [vmem:[%s7797_s7 + $0xdcc] ss:$16 sps:$4 sm:$0xff]  }
 0x2e7   : > { %5075 = vmatpush1.bf16.msra.mxu1 %v6570_v45  ;;  %5035 = vmatprep.subr.bf16.mxu0 %v6575_v19  ;;  %v6638_v45 = vld [vmem:[%s7797_s7 + $0xfcc] ss:$16 sps:$4 sm:$0xff]   ;;  %v6633_v19 = vld [vmem:[%s7797_s7 + $0xdc8] ss:$16 sps:$4 sm:$0xff]  }
 0x2e8   : > { %5076 = vmatprep.subr.bf16.mxu1 %v6578_v20  ;;  %v6636_v20 = vld [vmem:[%s7797_s7 + $0xfc8] ss:$16 sps:$4 sm:$0xff]  }
 0x2ea   : > { %5036 = vmatpush1.bf16.msra.mxu0 %v6573_v24  ;;  %v6641_v24 = vld [vmem:[%s7797_s7 + $0xdec] ss:$16 sps:$4 sm:$0xff]  }
 0x2eb   : > { %5077 = vmatpush1.bf16.msra.mxu1 %v6576_v25  ;;  %5037 = vmatprep.subr.bf16.mxu0 %v6581_v27  ;;  %v6644_v25 = vld [vmem:[%s7797_s7 + $0xfec] ss:$16 sps:$4 sm:$0xff]   ;;  %v6639_v27 = vld [vmem:[%s7797_s7 + $0xde8] ss:$16 sps:$4 sm:$0xff]  }
 0x2ec   : > { %5078 = vmatprep.subr.bf16.mxu1 %v6584_v30  ;;  %v4733_v13 = vpop.f32.mrb[12].mxu0  ;;  %v6642_v30 = vld [vmem:[%s7797_s7 + $0xfe8] ss:$16 sps:$4 sm:$0xff]  }
 0x2ed   : > { %v4774_v38 = vpop.f32.mrb[12].mxu1  ;;  %v4734_v39 = vadd.f32 %v4733_v13, %v8335_v11  ;;  %v4735_v0 = vpop.f32.mrb[13].mxu0 }
 0x2ee   : > { %v4776_v1 = vpop.f32.mrb[13].mxu1  ;;  %v4736_v10 = vadd.f32 %v4735_v0, %v8339_v31  ;;  %v4737_v47 = vpop.f32.mrb[14].mxu0  ;;  %5038 = vmatpush1.bf16.msra.mxu0 %v6579_v7 }
 0x2ef   : > { %v4778_v48 = vpop.f32.mrb[14].mxu1  ;;  %5079 = vmatpush1.bf16.msra.mxu1 %v6582_v36  ;;  %v4775_v11 = vadd.f32 %v4774_v38, %v4734_v39  ;;  %v4738_v51 = vpop.f32.mrb[15].mxu0  ;;  %5039 = vmatprep.subr.bf16.mxu0 %v6587_v37 }
 0x2f0   : > { %v4779_v52 = vpop.f32.mrb[15].mxu1  ;;  %5080 = vmatprep.subr.bf16.mxu1 %v6590_v12  ;;  %v4777_v31 = vadd.f32 %v4776_v1, %v4736_v10 }
 0x2f1   : > { %v5146_v55 = vadd.f32 %v5129_v26, %v4775_v11 }
 0x2f2   : > { %v5147_v56 = vadd.f32 %v5133_v46, %v4777_v31  ;;  %5040 = vmatpush1.bf16.msra.mxu0 %v6585_v49 }
 0x2f3   : > { %5081 = vmatpush1.bf16.msra.mxu1 %v6588_v50  ;;  %5150 = vst [vmem:[%s8430_s5] sm:$0xff] %v5146_v55  ;;  %5041 = vmatprep.subr.bf16.mxu0 %v6593_v53 }
 0x2f4   : > { %5082 = vmatprep.subr.bf16.mxu1 %v6596_v54  ;;  %5151 = vst [vmem:[%s8430_s5 + $0x8] sm:$0xff] %v5147_v56 }
 0x2f6   : > { %5042 = vmatpush1.bf16.msra.mxu0 %v6591_v57 }
 0x2f7   : > { %5083 = vmatpush1.bf16.msra.mxu1 %v6594_v60  ;;  %5043 = vmatprep.subr.bf16.mxu0 %v6599_v61 }
 0x2f8   : > { %5084 = vmatprep.subr.bf16.mxu1 %v6602_v22 }
 0x2fa   : > { %5044 = vmatpush1.bf16.msra.mxu0 %v6597_v23 }
 0x2fb   : > { %5085 = vmatpush1.bf16.msra.mxu1 %v6600_v62  ;;  %5045 = vmatprep.subr.bf16.mxu0 %v6605_v63  ;;  %v5136_v63 = vsub.s32 2, %v8400_v21 }
 0x2fc   : > { %5086 = vmatprep.subr.bf16.mxu1 %v6608_v42  ;;  %v5140_v42 = vsub.s32 3, %v8400_v21 }
 0x2fe   : > { %5046 = vmatpush1.bf16.msra.mxu0 %v6603_v28 }
 0x2ff   : > { %5087 = vmatpush1.bf16.msra.mxu1 %v6606_v29  ;;  %5047 = vmatprep.subr.bf16.mxu0 %v6611_v4 }
 0x300   : > { %5088 = vmatprep.subr.bf16.mxu1 %v6614_v5  ;;  %v5137_v5 = vrot.slane %v8412_v33, %v5136_v63 }
 0x302   : > { %5048 = vmatpush1.bf16.msra.mxu0 %v6609_v6 }
 0x303   : > { %5089 = vmatpush1.bf16.msra.mxu1 %v6612_v32  ;;  %5049 = vmatprep.subr.bf16.mxu0 %v6617_v35 }
 0x304   : > { %5090 = vmatprep.subr.bf16.mxu1 %v6620_v8  ;;  %v5141_v8 = vrot.slane %v8412_v33, %v5140_v42 }
 0x306   : > { %5050 = vmatpush1.bf16.msra.mxu0 %v6615_v9 }
 0x307   : > { %5091 = vmatpush1.bf16.msra.mxu1 %v6618_v2  ;;  %5051 = vmatprep.subr.bf16.mxu0 %v6623_v14 }
 0x308   : > { %5092 = vmatprep.subr.bf16.mxu1 %v6626_v3 }
 0x30a   : > { %5052 = vmatpush1.bf16.msra.mxu0 %v6621_v15 }
 0x30b   : > { %5093 = vmatpush1.bf16.msra.mxu1 %v6624_v40  ;;  %5053 = vmatprep.subr.bf16.mxu0 %v6629_v41 }
 0x30c   : > { %5094 = vmatprep.subr.bf16.mxu1 %v6632_v16 }
 0x30e   : > { %5054 = vmatpush1.bf16.msra.mxu0 %v6627_v17 }
 0x30f   : > { %5095 = vmatpush1.bf16.msra.mxu1 %v6630_v18  ;;  %5055 = vmatprep.subr.bf16.mxu0 %v6635_v44 }
 0x310   : > { %5096 = vmatprep.subr.bf16.mxu1 %v6638_v45 }
 0x312   : > { %5056 = vmatpush1.bf16.msra.mxu0 %v6633_v19 }
 0x313   : > { %5097 = vmatpush1.bf16.msra.mxu1 %v6636_v20  ;;  %5057 = vmatprep.subr.bf16.mxu0 %v6641_v24 }
 0x314   : > { %5098 = vmatprep.subr.bf16.mxu1 %v6644_v25 }
 0x316   : > { %5058 = vmatpush1.bf16.msra.mxu0 %v6639_v27 }
 0x317   : > { %5099 = vmatpush1.bf16.msra.mxu1 %v6642_v30 }
 0x319   : > { %5060 = vmatmul.mubr.bf16.vlgmr.msra.gmra.mrb[28].mxu0 %v8151_v58 }
 0x31a   : > { %5101 = vmatmul.mubr.bf16.vlgmr.msra.gmra.mrb[28].mxu1 %v8155_v59 }
 0x32c   : > { %v4815_v43 = vpop.f32.mrb[16].mxu0 }
 0x32d   : > { %v4856_v7 = vpop.f32.mrb[16].mxu1  ;;  %v4817_v36 = vpop.f32.mrb[17].mxu0 }
 0x32e   : > { %v4857_v34 = vadd.f32 %v4856_v7, %v4815_v43  ;;  %v4858_v37 = vpop.f32.mrb[17].mxu1  ;;  %v4819_v13 = vpop.f32.mrb[18].mxu0 }
 0x32f   : > { %v4859_v12 = vadd.f32 %v4858_v37, %v4817_v36  ;;  %v4860_v38 = vpop.f32.mrb[18].mxu1  ;;  %v4820_v39 = vpop.f32.mrb[19].mxu0 }
 0x330   : > { %v4861_v26 = vpop.f32.mrb[19].mxu1 }
 0x36c   : > { %v4897_v0 = vpop.f32.mrb[20].mxu0 }
 0x36d   : > { %v4938_v1 = vpop.f32.mrb[20].mxu1  ;;  %v4898_v10 = vadd.f32 %v4897_v0, %v4857_v34  ;;  %v4899_v46 = vpop.f32.mrb[21].mxu0 }
 0x36e   : > { %v4940_v47 = vpop.f32.mrb[21].mxu1  ;;  %v4900_v48 = vadd.f32 %v4899_v46, %v4859_v12  ;;  %v4901_v49 = vpop.f32.mrb[22].mxu0 }
 0x36f   : > { %v4942_v58 = vpop.f32.mrb[22].mxu1  ;;  %v4939_v50 = vadd.f32 %v4938_v1, %v4898_v10  ;;  %v4902_v59 = vpop.f32.mrb[23].mxu0 }
 0x370   : > { %v4943_v11 = vpop.f32.mrb[23].mxu1  ;;  %v4941_v51 = vadd.f32 %v4940_v47, %v4900_v48 }
 0x3ac   : > { %v4979_v52 = vpop.f32.mrb[24].mxu0 }
 0x3ad   : > { %v5020_v53 = vpop.f32.mrb[24].mxu1  ;;  %v4980_v54 = vadd.f32 %v4979_v52, %v4939_v50  ;;  %v4981_v31 = vpop.f32.mrb[25].mxu0 }
 0x3ae   : > { %v5022_v55 = vpop.f32.mrb[25].mxu1  ;;  %v4982_v56 = vadd.f32 %v4981_v31, %v4941_v51  ;;  %v4983_v57 = vpop.f32.mrb[26].mxu0 }
 0x3af   : > { %v5024_v60 = vpop.f32.mrb[26].mxu1  ;;  %v5021_v61 = vadd.f32 %v5020_v53, %v4980_v54  ;;  %v4984_v22 = vpop.f32.mrb[27].mxu0 }
 0x3b0   : > { %v5025_v23 = vpop.f32.mrb[27].mxu1  ;;  %v5023_v62 = vadd.f32 %v5022_v55, %v4982_v56 }
 0x3ec   : > { %v5061_v28 = vpop.f32.mrb[28].mxu0 }
 0x3ed   : > { %v5102_v29 = vpop.f32.mrb[28].mxu1  ;;  %v5062_v4 = vadd.f32 %v5061_v28, %v5021_v61  ;;  %v5063_v6 = vpop.f32.mrb[29].mxu0 }
 0x3ee   : > { %v5104_v32 = vpop.f32.mrb[29].mxu1  ;;  %v5064_v35 = vadd.f32 %v5063_v6, %v5023_v62  ;;  %v5065_v9 = vpop.f32.mrb[30].mxu0 }
 0x3ef   : > { %v5106_v2 = vpop.f32.mrb[30].mxu1  ;;  %v5103_v14 = vadd.f32 %v5102_v29, %v5062_v4  ;;  %v5066_v3 = vpop.f32.mrb[31].mxu0 }
 0x3f0   : > { %v5107_v15 = vpop.f32.mrb[31].mxu1  ;;  %v5105_v40 = vadd.f32 %v5104_v32, %v5064_v35 }
 0x3f1   : > { %v5148_v41 = vadd.f32 %v5137_v5, %v5103_v14 }
 0x3f2   : > { %v5149_v21 = vadd.f32 %v5141_v8, %v5105_v40 }
 0x3f3   : > { %5152 = vst [vmem:[%s8430_s5 + $0x10] sm:$0xff] %v5148_v41 }
 0x3f4   : > { %5153 = vst [vmem:[%s8430_s5 + $0x18] sm:$0xff] %v5149_v21 }
 0x3f5 PF: > { %s13_s16 = sadd.s32 1, %s6683_s16   ;;  %s8495_s12 = smov %s6671_s13 }
 0x3f6   : > { %p10_p10 = scmp.ge.s32.totalorder %s13_s16, 4   ;;  %s8496_s13 = smov %s6740_s20 }
 0x3f7   : > { %s8497_s14 = smov %s6679_s15  ;;  %s8498_s15 = smov %s8500_s17 }
 0x3f8   :  { %12 = sbr.rel (!%p10_p10) target bundleno = 3 (0x3), region = 104 }

// kernel: discriminator_forward.15
= control target key start
LH: loop header
LB: loop body
LE: loop exit
PB: predicated region body
PF: predicated region fallthrough
CT: control target
= control target key end

     0   :  { %s1218_s1 = inlined_call_operand.vmem [shape: bf16[1024,128], index: 1, kind: input, shape index: {}]   ;;  %s1219_s0 = inlined_call_operand.vmem [shape: bf16[8,1024], index: 0, kind: input, shape index: {}]   ;;  %s1220_s2 = inlined_call_operand.vmem [shape: f32[1,128], index: 2, kind: input, shape index: {}]   ;;  %s1221_s3 = inlined_call_operand.vmem [shape: f32[8,128], index: 3, kind: output, shape index: {}]  }
   0x1   :  { %v912_v0 = vld [vmem:[%s1218_s1 + $0x40] sm:$0xff]   ;;  %v916_v4 = vld [vmem:[%s1218_s1 + $0x48] sm:$0xff]   ;;  %v920_v8 = vld [vmem:[%s1218_s1 + $0x50] sm:$0xff]  }
   0x2   :  { %v913_v1 = vld [vmem:[%s1218_s1 + $0xc0] sm:$0xff]   ;;  %824 = vmatprep.subr.bf16.mxu0 %v912_v0  ;;  %v917_v5 = vld [vmem:[%s1218_s1 + $0xc8] sm:$0xff]   ;;  %v921_v9 = vld [vmem:[%s1218_s1 + $0xd0] sm:$0xff]  }
   0x3   :  { %v914_v2 = vld [vmem:[%s1218_s1] sm:$0xff]   ;;  %846 = vmatprep.subr.bf16.mxu1 %v913_v1  ;;  %v918_v6 = vld [vmem:[%s1218_s1 + $0x8] sm:$0xff]   ;;  %v922_v10 = vld [vmem:[%s1218_s1 + $0x10] sm:$0xff]  }
   0x4   :  { %v915_v3 = vld [vmem:[%s1218_s1 + $0x80] sm:$0xff]   ;;  %825 = vmatpush3.bf16.msra.mxu0 %v914_v2  ;;  %v919_v7 = vld [vmem:[%s1218_s1 + $0x88] sm:$0xff]   ;;  %v923_v11 = vld [vmem:[%s1218_s1 + $0x90] sm:$0xff]  }
   0x5   :  { %847 = vmatpush3.bf16.msra.mxu1 %v915_v3  ;;  %826 = vmatprep.subr.bf16.mxu0 %v916_v4  ;;  %v924_v12 = vld [vmem:[%s1218_s1 + $0x58] sm:$0xff]   ;;  %v928_v16 = vld [vmem:[%s1218_s1 + $0x60] sm:$0xff]   ;;  %v932_v20 = vld [vmem:[%s1218_s1 + $0x68] sm:$0xff]  }
   0x6   :  { %848 = vmatprep.subr.bf16.mxu1 %v917_v5  ;;  %v925_v13 = vld [vmem:[%s1218_s1 + $0xd8] sm:$0xff]   ;;  %v929_v17 = vld [vmem:[%s1218_s1 + $0xe0] sm:$0xff]   ;;  %v933_v21 = vld [vmem:[%s1218_s1 + $0xe8] sm:$0xff]  }
   0x7   :  { %v926_v14 = vld [vmem:[%s1218_s1 + $0x18] sm:$0xff]   ;;  %v930_v18 = vld [vmem:[%s1218_s1 + $0x20] sm:$0xff]   ;;  %v934_v22 = vld [vmem:[%s1218_s1 + $0x28] sm:$0xff]  }
   0x8   :  { %827 = vmatpush3.bf16.msra.mxu0 %v918_v6  ;;  %v927_v15 = vld [vmem:[%s1218_s1 + $0x98] sm:$0xff]   ;;  %v931_v19 = vld [vmem:[%s1218_s1 + $0xa0] sm:$0xff]   ;;  %v935_v23 = vld [vmem:[%s1218_s1 + $0xa8] sm:$0xff]  }
   0x9   :  { %849 = vmatpush3.bf16.msra.mxu1 %v919_v7  ;;  %828 = vmatprep.subr.bf16.mxu0 %v920_v8  ;;  %v936_v24 = vld [vmem:[%s1218_s1 + $0x70] sm:$0xff]   ;;  %v940_v28 = vld [vmem:[%s1218_s1 + $0x78] sm:$0xff]   ;;  %v21_v32 = vld [vmem:[%s1219_s0] sm:$0xff] }
   0xa   :  { %850 = vmatprep.subr.bf16.mxu1 %v921_v9  ;;  %v937_v25 = vld [vmem:[%s1218_s1 + $0xf0] sm:$0xff]   ;;  %v941_v29 = vld [vmem:[%s1218_s1 + $0xf8] sm:$0xff]   ;;  %v22_v33 = vld [vmem:[%s1219_s0 + $0x8] sm:$0xff]  ;;  %v750_v34 = vcombine.low %v21_v32, %v21_v32  ;;  %v751_v35 = vcombine.high %v21_v32, %v21_v32 }
   0xb   :  { %v938_v26 = vld [vmem:[%s1218_s1 + $0x30] sm:$0xff]   ;;  %v942_v30 = vld [vmem:[%s1218_s1 + $0x38] sm:$0xff]   ;;  %v752_v36 = vcombine.low %v22_v33, %v22_v33  ;;  %v753_v37 = vcombine.high %v22_v33, %v22_v33  ;;  %v948_v38 = vld [vmem:[%s1218_s1 + $0x140] sm:$0xff]  }
   0xc   :  { %829 = vmatpush3.bf16.msra.mxu0 %v922_v10  ;;  %v939_v27 = vld [vmem:[%s1218_s1 + $0xb0] sm:$0xff]   ;;  %v943_v31 = vld [vmem:[%s1218_s1 + $0xb8] sm:$0xff]   ;;  %v949_v39 = vld [vmem:[%s1218_s1 + $0x1c0] sm:$0xff]   ;;  %597 = vmatprep.mubr.bf16.mxu0 %v751_v35 }
   0xd   :  { %851 = vmatpush3.bf16.msra.mxu1 %v923_v11  ;;  %830 = vmatprep.subr.bf16.mxu0 %v924_v12  ;;  %v950_v40 = vld [vmem:[%s1218_s1 + $0x100] sm:$0xff]   ;;  %v952_v42 = vld [vmem:[%s1218_s1 + $0x148] sm:$0xff]   ;;  %v956_v46 = vld [vmem:[%s1218_s1 + $0x150] sm:$0xff]  }
   0xe   :  { %852 = vmatprep.subr.bf16.mxu1 %v925_v13  ;;  %637 = vmatprep.mubr.bf16.mxu1 %v753_v37  ;;  %v951_v41 = vld [vmem:[%s1218_s1 + $0x180] sm:$0xff]   ;;  %v953_v43 = vld [vmem:[%s1218_s1 + $0x1c8] sm:$0xff]   ;;  %v957_v47 = vld [vmem:[%s1218_s1 + $0x1d0] sm:$0xff]  }
   0xf   :  { %v954_v44 = vld [vmem:[%s1218_s1 + $0x108] sm:$0xff]   ;;  %v958_v48 = vld [vmem:[%s1218_s1 + $0x110] sm:$0xff]   ;;  %v960_v50 = vld [vmem:[%s1218_s1 + $0x158] sm:$0xff]  }
  0x10   :  { %831 = vmatpush3.bf16.msra.mxu0 %v926_v14  ;;  %v955_v45 = vld [vmem:[%s1218_s1 + $0x188] sm:$0xff]   ;;  %v959_v49 = vld [vmem:[%s1218_s1 + $0x190] sm:$0xff]   ;;  %v961_v51 = vld [vmem:[%s1218_s1 + $0x1d8] sm:$0xff]  }
  0x11   :  { %853 = vmatpush3.bf16.msra.mxu1 %v927_v15  ;;  %832 = vmatprep.subr.bf16.mxu0 %v928_v16  ;;  %v962_v52 = vld [vmem:[%s1218_s1 + $0x118] sm:$0xff]   ;;  %v964_v54 = vld [vmem:[%s1218_s1 + $0x160] sm:$0xff]   ;;  %v968_v58 = vld [vmem:[%s1218_s1 + $0x168] sm:$0xff]  }
  0x12   :  { %854 = vmatprep.subr.bf16.mxu1 %v929_v17  ;;  %v963_v53 = vld [vmem:[%s1218_s1 + $0x198] sm:$0xff]   ;;  %v965_v55 = vld [vmem:[%s1218_s1 + $0x1e0] sm:$0xff]   ;;  %v969_v59 = vld [vmem:[%s1218_s1 + $0x1e8] sm:$0xff]  }
  0x13   :  { %v966_v56 = vld [vmem:[%s1218_s1 + $0x120] sm:$0xff]   ;;  %v970_v60 = vld [vmem:[%s1218_s1 + $0x128] sm:$0xff]   ;;  %v972_v62 = vld [vmem:[%s1218_s1 + $0x170] sm:$0xff]  }
  0x14   :  { %833 = vmatpush3.bf16.msra.mxu0 %v930_v18  ;;  %v967_v57 = vld [vmem:[%s1218_s1 + $0x1a0] sm:$0xff]   ;;  %v971_v61 = vld [vmem:[%s1218_s1 + $0x1a8] sm:$0xff]   ;;  %v973_v63 = vld [vmem:[%s1218_s1 + $0x1f0] sm:$0xff]  }
  0x15   :  { %855 = vmatpush3.bf16.msra.mxu1 %v931_v19  ;;  %834 = vmatprep.subr.bf16.mxu0 %v932_v20  ;;  %v974_v0 = vld [vmem:[%s1218_s1 + $0x130] sm:$0xff]   ;;  %v976_v2 = vld [vmem:[%s1218_s1 + $0x178] sm:$0xff]  }
  0x16   :  { %856 = vmatprep.subr.bf16.mxu1 %v933_v21  ;;  %v975_v1 = vld [vmem:[%s1218_s1 + $0x1b0] sm:$0xff]   ;;  %v977_v3 = vld [vmem:[%s1218_s1 + $0x1f8] sm:$0xff]  }
  0x17   :  { %v978_v4 = vld [vmem:[%s1218_s1 + $0x138] sm:$0xff]   ;;  %v23_v6 = vld [vmem:[%s1219_s0 + $0x10] sm:$0xff] }
  0x18   :  { %835 = vmatpush3.bf16.msra.mxu0 %v934_v22  ;;  %v979_v5 = vld [vmem:[%s1218_s1 + $0x1b8] sm:$0xff]   ;;  %v754_v7 = vcombine.low %v23_v6, %v23_v6  ;;  %v755_v8 = vcombine.high %v23_v6, %v23_v6 }
  0x19   :  { %857 = vmatpush3.bf16.msra.mxu1 %v935_v23  ;;  %836 = vmatprep.subr.bf16.mxu0 %v936_v24  ;;  %v24_v9 = vld [vmem:[%s1219_s0 + $0x18] sm:$0xff] }
  0x1a   :  { %858 = vmatprep.subr.bf16.mxu1 %v937_v25  ;;  %v756_v10 = vcombine.low %v24_v9, %v24_v9  ;;  %v757_v11 = vcombine.high %v24_v9, %v24_v9 }
  0x1c   :  { %837 = vmatpush3.bf16.msra.mxu0 %v938_v26 }
  0x1d   :  { %859 = vmatpush3.bf16.msra.mxu1 %v939_v27  ;;  %838 = vmatprep.subr.bf16.mxu0 %v940_v28 }
  0x1e   :  { %860 = vmatprep.subr.bf16.mxu1 %v941_v29 }
  0x20   :  { %839 = vmatpush3.bf16.msra.mxu0 %v942_v30 }
  0x21   :  { %861 = vmatpush3.bf16.msra.mxu1 %v943_v31  ;;  %868 = vmatprep.subr.bf16.mxu0 %v948_v38 }
  0x22   :  { %890 = vmatprep.subr.bf16.mxu1 %v949_v39 }
  0x23   :  { %598 = vmatmul.mubr.bf16.vlgmr.msra.gmra.mrb[0].mxu0 %v750_v34  ;;  %v822_v34 = vld [vmem:[%s1220_s2] ss:$0 sm:$0xff] }
  0x24   :  { %638 = vmatmul.mubr.bf16.vlgmr.msra.gmra.mrb[0].mxu1 %v752_v36  ;;  %869 = vmatpush3.bf16.msra.mxu0 %v950_v40 }
  0x25   :  { %891 = vmatpush3.bf16.msra.mxu1 %v951_v41  ;;  %870 = vmatprep.subr.bf16.mxu0 %v952_v42 }
  0x26   :  { %892 = vmatprep.subr.bf16.mxu1 %v953_v43  ;;  %677 = vmatprep.mubr.bf16.mxu0 %v755_v8 }
  0x27   :  { %717 = vmatprep.mubr.bf16.mxu1 %v757_v11 }
  0x28   :  { %871 = vmatpush3.bf16.msra.mxu0 %v954_v44 }
  0x29   :  { %893 = vmatpush3.bf16.msra.mxu1 %v955_v45  ;;  %872 = vmatprep.subr.bf16.mxu0 %v956_v46 }
  0x2a   :  { %894 = vmatprep.subr.bf16.mxu1 %v957_v47 }
  0x2c   :  { %873 = vmatpush3.bf16.msra.mxu0 %v958_v48 }
  0x2d   :  { %895 = vmatpush3.bf16.msra.mxu1 %v959_v49  ;;  %874 = vmatprep.subr.bf16.mxu0 %v960_v50 }
  0x2e   :  { %896 = vmatprep.subr.bf16.mxu1 %v961_v51 }
  0x30   :  { %875 = vmatpush3.bf16.msra.mxu0 %v962_v52 }
  0x31   :  { %897 = vmatpush3.bf16.msra.mxu1 %v963_v53  ;;  %876 = vmatprep.subr.bf16.mxu0 %v964_v54 }
  0x32   :  { %898 = vmatprep.subr.bf16.mxu1 %v965_v55 }
  0x34   :  { %877 = vmatpush3.bf16.msra.mxu0 %v966_v56 }
  0x35   :  { %899 = vmatpush3.bf16.msra.mxu1 %v967_v57  ;;  %878 = vmatprep.subr.bf16.mxu0 %v968_v58 }
  0x36   :  { %900 = vmatprep.subr.bf16.mxu1 %v969_v59 }
  0x38   :  { %879 = vmatpush3.bf16.msra.mxu0 %v970_v60 }
  0x39   :  { %901 = vmatpush3.bf16.msra.mxu1 %v971_v61  ;;  %880 = vmatprep.subr.bf16.mxu0 %v972_v62 }
  0x3a   :  { %902 = vmatprep.subr.bf16.mxu1 %v973_v63 }
  0x3c   :  { %881 = vmatpush3.bf16.msra.mxu0 %v974_v0 }
  0x3d   :  { %903 = vmatpush3.bf16.msra.mxu1 %v975_v1  ;;  %882 = vmatprep.subr.bf16.mxu0 %v976_v2 }
  0x3e   :  { %904 = vmatprep.subr.bf16.mxu1 %v977_v3 }
  0x40   :  { %883 = vmatpush3.bf16.msra.mxu0 %v978_v4 }
  0x41   :  { %905 = vmatpush3.bf16.msra.mxu1 %v979_v5 }
  0x43   :  { %678 = vmatmul.mubr.bf16.vlgmr.msra.gmra.mrb[4].mxu0 %v754_v7 }
  0x44   :  { %718 = vmatmul.mubr.bf16.vlgmr.msra.gmra.mrb[4].mxu1 %v756_v10 }
  0xf6   :  { %v840_v12 = vpop.f32.mrb[0].mxu0 }
  0xf7   :  { %v862_v13 = vpop.f32.mrb[0].mxu1  ;;  %v841_v14 = vpop.f32.mrb[1].mxu0 }
  0xf8   :  { %v863_v15 = vpop.f32.mrb[1].mxu1  ;;  %v842_v16 = vadd.f32 %v841_v14, %v840_v12  ;;  %v843_v18 = vpop.f32.mrb[2].mxu0 }
  0xf9   :  { %v864_v17 = vadd.f32 %v863_v15, %v862_v13  ;;  %v865_v19 = vpop.f32.mrb[2].mxu1  ;;  %v844_v20 = vpop.f32.mrb[3].mxu0 }
  0xfa   :  { %v866_v21 = vpop.f32.mrb[3].mxu1 }
  0xfb   :  { %v640_v22 = vadd.f32 %v864_v17, %v842_v16 }
 0x116   :  { %v884_v23 = vpop.f32.mrb[4].mxu0 }
 0x117   :  { %v906_v24 = vpop.f32.mrb[4].mxu1  ;;  %v885_v25 = vpop.f32.mrb[5].mxu0 }
 0x118   :  { %v907_v26 = vpop.f32.mrb[5].mxu1  ;;  %v886_v27 = vadd.f32 %v885_v25, %v884_v23  ;;  %v887_v29 = vpop.f32.mrb[6].mxu0 }
 0x119   :  { %v908_v28 = vadd.f32 %v907_v26, %v906_v24  ;;  %v909_v30 = vpop.f32.mrb[6].mxu1  ;;  %v888_v31 = vpop.f32.mrb[7].mxu0 }
 0x11a   :  { %v910_v32 = vpop.f32.mrb[7].mxu1  ;;  %v680_v33 = vadd.f32 %v886_v27, %v640_v22 }
 0x11c   :  { %v720_v35 = vadd.f32 %v908_v28, %v680_v33 }
 0x11e   :  { %v738_v36 = vadd.f32 %v822_v34, %v720_v35 }
 0x120   :  { %v823_v37 = vmul.f32 -1.442695, %v738_v36 }
 0x122   :  { %984 = vpow2.f32 %v823_v37 }
 0x12c   :  { %v985_v38 = vpop.eup %984 }
 0x12d   :  { %v742_v39 = vadd.f32 1.0, %v985_v38 }
 0x12f   :  { %986 = vrcp.f32 %v742_v39 }
 0x139   :  { %v987_v40 = vpop.eup %986 }
 0x13a   :  { %745 = vst [vmem:[%s1221_s3] sm:$0xff] %v987_v40 }

</bundles_post_ra>
